<compile_context>
chip_gen: v6e
topology: v6e:2x2x1
jax: 0.10.0
libtpu: 0.0.40
codegen_flags: <defaults>
</compile_context>

<pallas_src>
import functools

import jax
import jax.numpy as jnp
from jax.experimental import pallas as pl
from jax.experimental.pallas import tpu as pltpu


def gat_kernel(adj_ref, x_ref, pool_ref,
               w1_ref, asrc1_ref, adst1_ref, b1_ref,
               w2_ref, asrc2_ref, adst2_ref, b2_ref,
               o_ref, h1_scratch, *, heads, head_dim, neg_slope):
    # ---- hoisted loads: every operand read from VMEM exactly once -----------
    mask = adj_ref[0] > 0                       # [NS, NS] bool (both convs)
    x = x_ref[0]                                # [NS, Fpad] bf16
    pool = pool_ref[...]                        # [GS, NS]   bf16 (shared)
    w1 = w1_ref[...]                            # [Fpad, H*C1] bf16
    asrc1 = asrc1_ref[...]                      # [H*C1, H] f32 block-diag att_src
    adst1 = adst1_ref[...]                      # [H*C1, H] f32 block-diag att_dst
    b1 = b1_ref[...]                            # [1, H*C1] f32
    w2 = w2_ref[...]                            # [H*C1, C2] bf16
    asrc2 = asrc2_ref[...]                      # [C2, 8]   f32 (col 0 = att_src2)
    adst2 = adst2_ref[...]                      # [C2, 8]   f32 (col 0 = att_dst2)
    b2 = b2_ref[...]                            # [1, C2]   f32

    neg_big = jnp.float32(-1e30)

    def masked_softmax(e):
        e = jnp.where(e > 0, e, neg_slope * e)              # LeakyReLU(0.2)
        e = jnp.where(mask, e, neg_big)                     # only real edges
        e = e - jnp.max(e, axis=1, keepdims=True)
        # masked entries are <= -1e30 after the max-shift -> exp underflows to
        # exactly 0, so no second select is needed (every row has a self loop).
        p = jnp.exp(e)
        inv = pl.reciprocal(jnp.sum(p, axis=1, keepdims=True), approx=True)
        return p * inv

    # ---- GATConv 1: 8 heads, concat ------------------------------------------
    # One node-transform matmul over all packed nodes (bf16 MXU, f32 acc).
    xw1 = jnp.dot(x, w1, preferred_element_type=jnp.float32)        # [NS, H*C1]
    xw1_bf = xw1.astype(jnp.bfloat16)
    s1 = jnp.dot(xw1, asrc1, preferred_element_type=jnp.float32)    # [NS, H]
    d1 = jnp.dot(xw1, adst1, preferred_element_type=jnp.float32)    # [NS, H]
    s1_t = s1.T                                                     # [H, NS]

    for h in range(heads):                       # static, unrolled at trace time
        e = d1[:, h:h + 1] + s1_t[h:h + 1, :]                       # [NS, NS]
        a = masked_softmax(e).astype(jnp.bfloat16)
        out_h = jnp.dot(a, xw1_bf[:, h * head_dim:(h + 1) * head_dim],
                        preferred_element_type=jnp.float32)         # [NS, C1]
        # static 8-lane offset store into VMEM scratch (no lane concat)
        h1_scratch[:, h * head_dim:(h + 1) * head_dim] = out_h

    h1 = h1_scratch[...] + b1                                       # [NS, H*C1]
    h1 = jnp.where(h1 > 0, h1, jnp.exp(jnp.minimum(h1, 0.0)) - 1.0)  # ELU
    h1_bf = h1.astype(jnp.bfloat16)

    # ---- GATConv 2: 1 head, concat=False --------------------------------------
    xw2 = jnp.dot(h1_bf, w2, preferred_element_type=jnp.float32)    # [NS, C2]
    s2 = jnp.dot(xw2, asrc2, preferred_element_type=jnp.float32)    # [NS, 8]
    d2 = jnp.dot(xw2, adst2, preferred_element_type=jnp.float32)    # [NS, 8]
    s2_t = s2.T                                                     # [8, NS]
    e2 = d2[:, 0:1] + s2_t[0:1, :]                                  # [NS, NS]
    a2 = masked_softmax(e2).astype(jnp.bfloat16)
    xw2_bf = xw2.astype(jnp.bfloat16)
    out2 = jnp.dot(a2, xw2_bf, preferred_element_type=jnp.float32) + b2  # [NS,C2]

    # ---- global_mean_pool + log_softmax ---------------------------------------
    pooled = jnp.dot(pool, out2.astype(jnp.bfloat16),
                     preferred_element_type=jnp.float32)            # [GS, C2]
    z = pooled - jnp.max(pooled, axis=1, keepdims=True)
    o_ref[0] = z - jnp.log(jnp.sum(jnp.exp(z), axis=1, keepdims=True))


def gat_forward(adj, x, pool, w1, asrc1, adst1, b1, w2, asrc2, adst2, b2,
                *, heads=8, head_dim=8, neg_slope=0.2):
    SB, NS, _ = adj.shape                 # super-batches, packed nodes
    F = x.shape[-1]
    GS = pool.shape[0]                    # packed graphs per super-batch
    C = w2.shape[1]
    hidden = heads * head_dim
    kernel = functools.partial(gat_kernel, heads=heads, head_dim=head_dim,
                               neg_slope=neg_slope)

    def per_sb(shape):
        nd = len(shape)
        return pl.BlockSpec((1,) + shape, lambda s, _nd=nd: (s,) + (0,) * _nd)

    def shared(arr):
        nd = arr.ndim
        return pl.BlockSpec(arr.shape, lambda s, _nd=nd: (0,) * _nd)

    return pl.pallas_call(
        kernel,
        out_shape=jax.ShapeDtypeStruct((SB, GS, C), jnp.float32),
        grid=(SB,),
        in_specs=[
            per_sb((NS, NS)),              # adj  (bf16, block-diag super-tile)
            per_sb((NS, F)),               # x    (bf16)
            shared(pool),                  # pool (bf16, identical across tiles)
            shared(w1), shared(asrc1), shared(adst1), shared(b1),
            shared(w2), shared(asrc2), shared(adst2), shared(b2),
        ],
        out_specs=pl.BlockSpec((1, GS, C), lambda s: (s, 0, 0)),
        scratch_shapes=[pltpu.VMEM((NS, hidden), jnp.float32)],
        compiler_params=pltpu.CompilerParams(
            dimension_semantics=("parallel",),   # v7x: 2 super-tiles -> 2 TCs
            vmem_limit_bytes=32 * 1024 * 1024,   # working set << 1 MiB; keep default-ish
        ),
    )(adj, x, pool, w1, asrc1, adst1, b1, w2, asrc2, adst2, b2)


# ------------------------------ pure-JAX reference ----------------------------
def gat_reference(adj, x, pool, w1, att_src1, att_dst1, b1, w2, att_src2,
                  att_dst2, b2, *, heads=8, head_dim=8, neg_slope=0.2):
    mask = adj > 0

    def msoft(e):
        e = jnp.where(e > 0, e, neg_slope * e)
        e = jnp.where(mask, e, -1e30)
        e = e - e.max(axis=1, keepdims=True)
        p = jnp.where(mask, jnp.exp(e), 0.0)
        return p / p.sum(axis=1, keepdims=True)

    xw1 = x @ w1                                                    # [N, H*C1]
    xh = xw1.reshape(-1, heads, head_dim)                           # [N, H, C1]
    a_s1 = (xh * att_src1[None]).sum(-1)                            # [N, H]
    a_d1 = (xh * att_dst1[None]).sum(-1)                            # [N, H]
    outs = []
    for h in range(heads):
        e = a_d1[:, h:h + 1] + a_s1[:, h:h + 1].T
        a = msoft(e)
        outs.append(a @ xw1[:, h * head_dim:(h + 1) * head_dim])
    h1 = jnp.concatenate(outs, axis=1) + b1
    h1 = jnp.where(h1 > 0, h1, jnp.exp(jnp.minimum(h1, 0.0)) - 1.0)  # ELU

    xw2 = h1 @ w2                                                   # [N, C2]
    a_s2 = (xw2 * att_src2).sum(-1, keepdims=True)                  # [N, 1]
    a_d2 = (xw2 * att_dst2).sum(-1, keepdims=True)
    e2 = a_d2 + a_s2.T
    a2 = msoft(e2)
    out2 = a2 @ xw2 + b2
    pooled = pool @ out2
    return pooled - jax.scipy.special.logsumexp(pooled, axis=1, keepdims=True)


# ------------------------------ helpers ---------------------------------------
def glorot(key, shape):
    fan_in, fan_out = shape
    limit = jnp.sqrt(6.0 / (fan_in + fan_out))
    return jax.random.uniform(key, shape, jnp.float32, -limit, limit)


def block_diag_att(att):
    """[H, C] attention vector per head -> [H*C, H] block-diagonal matrix."""
    H, C = att.shape
    return (att[:, :, None] * jnp.eye(H, dtype=att.dtype)[:, None, :]).reshape(H * C, H)


if __name__ == "__main__":
    key = jax.random.PRNGKey(0)

    B = 8            # independent PyG mini-batches
    N = 32           # nodes per mini-batch
    G = 4            # graphs per mini-batch
    NPG = N // G     # nodes per graph
    F_IN = 3         # PROTEINS num_node_features
    F_PAD = 8        # zero-pad contraction dim (no semantic change)
    HEADS = 8
    HEAD_DIM = 8
    HIDDEN = HEADS * HEAD_DIM    # 64
    C = 2            # num_classes
    E_PER_GRAPH = 12

    SB = 2           # super-batches (grid steps); 2 keeps both v7x TCs busy
    BP = B // SB     # mini-batches packed per super-batch
    NS = BP * N      # 128 packed nodes (native lane width / MXU tile)
    GS = BP * G      # 16 packed graphs

    keys = jax.random.split(key, 11)

    # Node features, zero-padded 3 -> 8.
    x = jax.random.normal(keys[0], (B, N, F_IN), jnp.float32)
    x_pad = jnp.concatenate(
        [x, jnp.zeros((B, N, F_PAD - F_IN), jnp.float32)], axis=-1)

    # Random undirected edges confined to each graph's node block + self loops
    # (matches GATConv add_self_loops=True).
    src_off = jax.random.randint(keys[1], (B, G, E_PER_GRAPH), 0, NPG)
    dst_off = jax.random.randint(keys[2], (B, G, E_PER_GRAPH), 0, NPG)
    base = (jnp.arange(G) * NPG)[None, :, None]
    src = (src_off + base).reshape(B, -1)
    dst = (dst_off + base).reshape(B, -1)
    b_idx = jnp.broadcast_to(jnp.arange(B)[:, None], src.shape)
    adj = jnp.zeros((B, N, N), jnp.float32)
    adj = adj.at[b_idx, src, dst].set(1.0)
    adj = adj.at[b_idx, dst, src].set(1.0)
    adj = jnp.maximum(adj, jnp.eye(N, dtype=jnp.float32)[None])

    # Mean-pool matrix (global_mean_pool): same node->graph layout per batch.
    batch_vec = jnp.repeat(jnp.arange(G), NPG)
    onehot = (batch_vec[None, :] == jnp.arange(G)[:, None]).astype(jnp.float32)
    pool1 = onehot / jnp.maximum(onehot.sum(axis=1, keepdims=True), 1.0)
    pool = jnp.tile(pool1[None], (B, 1, 1))

    # Parameters (glorot lin weights + attention vectors, small biases).
    w1 = jnp.zeros((F_PAD, HIDDEN), jnp.float32).at[:F_IN, :].set(
        glorot(keys[3], (F_IN, HIDDEN)))
    att_src1 = glorot(keys[4], (HEADS, HEAD_DIM))
    att_dst1 = glorot(keys[5], (HEADS, HEAD_DIM))
    b1 = 0.1 * jax.random.normal(keys[6], (1, HIDDEN), jnp.float32)
    w2 = glorot(keys[7], (HIDDEN, C))
    att_src2 = glorot(keys[8], (1, C))
    att_dst2 = glorot(keys[9], (1, C))
    b2 = 0.1 * jax.random.normal(keys[10], (1, C), jnp.float32)

    # Kernel-side attention matrices: block-diag for conv1, lane-padded for conv2.
    asrc1 = block_diag_att(att_src1)                                  # [64, 8]
    adst1 = block_diag_att(att_dst1)                                  # [64, 8]
    asrc2 = jnp.zeros((C, 8), jnp.float32).at[:, 0].set(att_src2[0])  # [2, 8]
    adst2 = jnp.zeros((C, 8), jnp.float32).at[:, 0].set(att_dst2[0])  # [2, 8]

    # ---- pack BP=4 mini-batches per super-batch into block-diagonal tiles ----
    adj_sb = adj.reshape(SB, BP, N, N)
    adj_packed = jnp.zeros((SB, NS, NS), jnp.float32)
    for p in range(BP):
        adj_packed = adj_packed.at[:, p * N:(p + 1) * N,
                                   p * N:(p + 1) * N].set(adj_sb[:, p])

    pool_packed = jnp.zeros((GS, NS), jnp.float32)        # identical for both tiles
    for p in range(BP):
        pool_packed = pool_packed.at[p * G:(p + 1) * G,
                                     p * N:(p + 1) * N].set(pool1)

    # bf16 operands for the MXU (f32 accumulation happens in-kernel).
    x_bf = x_pad.astype(jnp.bfloat16)
    w1_bf = w1.astype(jnp.bfloat16)
    w2_bf = w2.astype(jnp.bfloat16)
    adj_bf = adj_packed.astype(jnp.bfloat16)              # mask only
    pool_bf = pool_packed.astype(jnp.bfloat16)            # 1/8 entries are exact
    x_packed_bf = x_bf.reshape(SB, NS, F_PAD)

    out_packed = gat_forward(adj_bf, x_packed_bf, pool_bf,
                             w1_bf, asrc1, adst1, b1,
                             w2_bf, asrc2, adst2, b2,
                             heads=HEADS, head_dim=HEAD_DIM)
    out_packed = jax.block_until_ready(out_packed)
    out = out_packed.reshape(B, G, C)

    # Pure-JAX reference (same bf16-quantized weights/inputs, all math in f32).
    x_f = x_bf.astype(jnp.float32)
    w1_f = w1_bf.astype(jnp.float32)
    w2_f = w2_bf.astype(jnp.float32)
    ref_one = lambda a, xx, pp: gat_reference(
        a, xx, pp, w1_f, att_src1, att_dst1, b1, w2_f, att_src2, att_dst2, b2,
        heads=HEADS, head_dim=HEAD_DIM)
    o_ref = jax.vmap(ref_one)(adj, x_f, pool)

    assert out.shape == (B, G, C)
    assert bool(jnp.all(jnp.isfinite(out))), "non-finite outputs"
    # bf16 intermediates (a, h1, xw, out2) + approx reciprocal per perf review;
    # tolerance sized for that extra rounding vs. the all-f32 reference.
    max_err = float(jnp.max(jnp.abs(out - o_ref)))
    assert max_err < 5e-2, f"mismatch vs JAX reference: max|diff|={max_err}"

    print("KERNEL_OK")
</pallas_src>

<mosaic_0001>
module attributes {stable_mosaic.version = 11 : i64} {
  func.func @gat_kernel(%arg0: i32, %arg1: memref<1x128x128xbf16, #tpu.memory_space<vmem>>, %arg2: memref<1x128x8xbf16, #tpu.memory_space<vmem>>, %arg3: memref<16x128xbf16, #tpu.memory_space<vmem>>, %arg4: memref<8x64xbf16, #tpu.memory_space<vmem>>, %arg5: memref<64x8xf32, #tpu.memory_space<vmem>>, %arg6: memref<64x8xf32, #tpu.memory_space<vmem>>, %arg7: memref<1x64xf32, #tpu.memory_space<vmem>>, %arg8: memref<64x2xbf16, #tpu.memory_space<vmem>>, %arg9: memref<2x8xf32, #tpu.memory_space<vmem>>, %arg10: memref<2x8xf32, #tpu.memory_space<vmem>>, %arg11: memref<1x2xf32, #tpu.memory_space<vmem>>, %arg12: memref<1x16x2xf32, #tpu.memory_space<vmem>>, %arg13: memref<128x64xf32, #tpu.memory_space<vmem>>) attributes {dimension_semantics = [#tpu.dimension_semantics<parallel>], iteration_bounds = array<i64: 2>, scalar_prefetch = 0 : i64, scratch_operands = 1 : i64, tpu.core_type = #tpu.core_type<tc>, window_params = [{transform_indices = @transform_0, window_bounds = array<i64: 1, 128, 128>}, {transform_indices = @transform_1, window_bounds = array<i64: 1, 128, 8>}, {pipeline_mode = #tpu.pipeline_mode<synchronous>, transform_indices = @transform_2, window_bounds = array<i64: 16, 128>}, {pipeline_mode = #tpu.pipeline_mode<synchronous>, transform_indices = @transform_3, window_bounds = array<i64: 8, 64>}, {pipeline_mode = #tpu.pipeline_mode<synchronous>, transform_indices = @transform_4, window_bounds = array<i64: 64, 8>}, {pipeline_mode = #tpu.pipeline_mode<synchronous>, transform_indices = @transform_5, window_bounds = array<i64: 64, 8>}, {pipeline_mode = #tpu.pipeline_mode<synchronous>, transform_indices = @transform_6, window_bounds = array<i64: 1, 64>}, {pipeline_mode = #tpu.pipeline_mode<synchronous>, transform_indices = @transform_7, window_bounds = array<i64: 64, 2>}, {pipeline_mode = #tpu.pipeline_mode<synchronous>, transform_indices = @transform_8, window_bounds = array<i64: 2, 8>}, {pipeline_mode = #tpu.pipeline_mode<synchronous>, transform_indices = @transform_9, window_bounds = array<i64: 2, 8>}, {pipeline_mode = #tpu.pipeline_mode<synchronous>, transform_indices = @transform_10, window_bounds = array<i64: 1, 2>}, {transform_indices = @transform_11, window_bounds = array<i64: 1, 16, 2>}]} {
    %c0 = arith.constant 0 : index
    %c0_0 = arith.constant 0 : index
    %c0_1 = arith.constant 0 : index
    %0 = vector.load %arg1[%c0, %c0_0, %c0_1] : memref<1x128x128xbf16, #tpu.memory_space<vmem>>, vector<1x128x128xbf16>
    %1 = vector.shape_cast %0 : vector<1x128x128xbf16> to vector<128x128xbf16>
    %cst = arith.constant 0.000000e+00 : bf16
    %2 = vector.broadcast %cst : bf16 to vector<128x128xbf16>
    %3 = arith.cmpf ogt, %1, %2 : vector<128x128xbf16>
    %c0_2 = arith.constant 0 : index
    %c0_3 = arith.constant 0 : index
    %c0_4 = arith.constant 0 : index
    %4 = vector.load %arg2[%c0_2, %c0_3, %c0_4] : memref<1x128x8xbf16, #tpu.memory_space<vmem>>, vector<1x128x8xbf16>
    %5 = vector.shape_cast %4 : vector<1x128x8xbf16> to vector<128x8xbf16>
    %c0_5 = arith.constant 0 : index
    %c0_6 = arith.constant 0 : index
    %6 = vector.load %arg3[%c0_5, %c0_6] : memref<16x128xbf16, #tpu.memory_space<vmem>>, vector<16x128xbf16>
    %c0_7 = arith.constant 0 : index
    %c0_8 = arith.constant 0 : index
    %7 = vector.load %arg4[%c0_7, %c0_8] : memref<8x64xbf16, #tpu.memory_space<vmem>>, vector<8x64xbf16>
    %c0_9 = arith.constant 0 : index
    %c0_10 = arith.constant 0 : index
    %8 = vector.load %arg5[%c0_9, %c0_10] : memref<64x8xf32, #tpu.memory_space<vmem>>, vector<64x8xf32>
    %c0_11 = arith.constant 0 : index
    %c0_12 = arith.constant 0 : index
    %9 = vector.load %arg6[%c0_11, %c0_12] : memref<64x8xf32, #tpu.memory_space<vmem>>, vector<64x8xf32>
    %c0_13 = arith.constant 0 : index
    %c0_14 = arith.constant 0 : index
    %10 = vector.load %arg7[%c0_13, %c0_14] : memref<1x64xf32, #tpu.memory_space<vmem>>, vector<1x64xf32>
    %c0_15 = arith.constant 0 : index
    %c0_16 = arith.constant 0 : index
    %11 = vector.load %arg8[%c0_15, %c0_16] : memref<64x2xbf16, #tpu.memory_space<vmem>>, vector<64x2xbf16>
    %c0_17 = arith.constant 0 : index
    %c0_18 = arith.constant 0 : index
    %12 = vector.load %arg9[%c0_17, %c0_18] : memref<2x8xf32, #tpu.memory_space<vmem>>, vector<2x8xf32>
    %c0_19 = arith.constant 0 : index
    %c0_20 = arith.constant 0 : index
    %13 = vector.load %arg10[%c0_19, %c0_20] : memref<2x8xf32, #tpu.memory_space<vmem>>, vector<2x8xf32>
    %c0_21 = arith.constant 0 : index
    %c0_22 = arith.constant 0 : index
    %14 = vector.load %arg11[%c0_21, %c0_22] : memref<1x2xf32, #tpu.memory_space<vmem>>, vector<1x2xf32>
    %cst_23 = arith.constant dense<0.000000e+00> : vector<128x64xf32>
    %15 = tpu.matmul %5, %7, %cst_23 {dimension_numbers = #tpu.dot_dimension_numbers<[1], [0], [0], [1], [0, 0, 1, 1], [], []>} : vector<128x8xbf16>, vector<8x64xbf16>, vector<128x64xf32> -> vector<128x64xf32>
    %16 = arith.truncf %15 : vector<128x64xf32> to vector<128x64xbf16>
    %cst_24 = arith.constant dense<0.000000e+00> : vector<128x8xf32>
    %17 = tpu.matmul %15, %8, %cst_24 {dimension_numbers = #tpu.dot_dimension_numbers<[1], [0], [0], [1], [0, 0, 1, 1], [], []>} : vector<128x64xf32>, vector<64x8xf32>, vector<128x8xf32> -> vector<128x8xf32>
    %cst_25 = arith.constant dense<0.000000e+00> : vector<128x8xf32>
    %18 = tpu.matmul %15, %9, %cst_25 {dimension_numbers = #tpu.dot_dimension_numbers<[1], [0], [0], [1], [0, 0, 1, 1], [], []>} : vector<128x64xf32>, vector<64x8xf32>, vector<128x8xf32> -> vector<128x8xf32>
    %19 = tpu.transpose %17, [1, 0] : vector<128x8xf32> -> vector<8x128xf32>
    %20 = vector.extract_strided_slice %18 {offsets = [0, 0], sizes = [128, 1], strides = [1, 1]} : vector<128x8xf32> to vector<128x1xf32>
    %21 = vector.extract_strided_slice %19 {offsets = [0, 0], sizes = [1, 128], strides = [1, 1]} : vector<8x128xf32> to vector<1x128xf32>
    %22 = vector.broadcast %20 : vector<128x1xf32> to vector<128x128xf32>
    %23 = vector.broadcast %21 : vector<1x128xf32> to vector<128x128xf32>
    %24 = arith.addf %22, %23 : vector<128x128xf32>
    %cst_26 = arith.constant 0.000000e+00 : f32
    %25 = vector.broadcast %cst_26 : f32 to vector<128x128xf32>
    %26 = arith.cmpf ogt, %24, %25 : vector<128x128xf32>
    %cst_27 = arith.constant 2.000000e-01 : f32
    %27 = vector.broadcast %cst_27 : f32 to vector<128x128xf32>
    %28 = arith.mulf %27, %24 : vector<128x128xf32>
    %29 = arith.select %26, %24, %28 : vector<128x128xi1>, vector<128x128xf32>
    %cst_28 = arith.constant -1.000000e+30 : f32
    %30 = vector.broadcast %cst_28 : f32 to vector<128x128xf32>
    %31 = arith.select %3, %29, %30 : vector<128x128xi1>, vector<128x128xf32>
    %cst_29 = arith.constant dense<0xFF800000> : vector<128xf32>
    %32 = vector.multi_reduction <maximumf>, %31, %cst_29 [1] : vector<128x128xf32> to vector<128xf32>
    %33 = vector.shape_cast %32 : vector<128xf32> to vector<128x1xf32>
    %34 = vector.broadcast %33 : vector<128x1xf32> to vector<128x128xf32>
    %35 = arith.subf %31, %34 : vector<128x128xf32>
    %36 = math.exp %35 : vector<128x128xf32>
    %cst_30 = arith.constant dense<0.000000e+00> : vector<128xf32>
    %37 = vector.multi_reduction <add>, %36, %cst_30 [1] : vector<128x128xf32> to vector<128xf32>
    %38 = vector.shape_cast %37 : vector<128xf32> to vector<128x1xf32>
    %39 = tpu.reciprocal %38 {approx = true} : vector<128x1xf32> -> vector<128x1xf32>
    %40 = vector.broadcast %39 : vector<128x1xf32> to vector<128x128xf32>
    %41 = arith.mulf %36, %40 : vector<128x128xf32>
    %42 = arith.truncf %41 : vector<128x128xf32> to vector<128x128xbf16>
    %43 = vector.extract_strided_slice %16 {offsets = [0, 0], sizes = [128, 8], strides = [1, 1]} : vector<128x64xbf16> to vector<128x8xbf16>
    %cst_31 = arith.constant dense<0.000000e+00> : vector<128x8xf32>
    %44 = tpu.matmul %42, %43, %cst_31 {dimension_numbers = #tpu.dot_dimension_numbers<[1], [0], [0], [1], [0, 0, 1, 1], [], []>} : vector<128x128xbf16>, vector<128x8xbf16>, vector<128x8xf32> -> vector<128x8xf32>
    %c0_32 = arith.constant 0 : index
    %c0_33 = arith.constant 0 : index
    %45 = vector.load %arg13[%c0_32, %c0_33] : memref<128x64xf32, #tpu.memory_space<vmem>>, vector<128x8xf32>
    tpu.vector_store %arg13[%c0_32, %c0_33], %44 {strides = array<i32>} : memref<128x64xf32, #tpu.memory_space<vmem>>, vector<128x8xf32>,
    %46 = vector.extract_strided_slice %18 {offsets = [0, 1], sizes = [128, 1], strides = [1, 1]} : vector<128x8xf32> to vector<128x1xf32>
    %47 = vector.extract_strided_slice %19 {offsets = [1, 0], sizes = [1, 128], strides = [1, 1]} : vector<8x128xf32> to vector<1x128xf32>
    %48 = vector.broadcast %46 : vector<128x1xf32> to vector<128x128xf32>
    %49 = vector.broadcast %47 : vector<1x128xf32> to vector<128x128xf32>
    %50 = arith.addf %48, %49 : vector<128x128xf32>
    %cst_34 = arith.constant 0.000000e+00 : f32
    %51 = vector.broadcast %cst_34 : f32 to vector<128x128xf32>
    %52 = arith.cmpf ogt, %50, %51 : vector<128x128xf32>
    %cst_35 = arith.constant 2.000000e-01 : f32
    %53 = vector.broadcast %cst_35 : f32 to vector<128x128xf32>
    %54 = arith.mulf %53, %50 : vector<128x128xf32>
    %55 = arith.select %52, %50, %54 : vector<128x128xi1>, vector<128x128xf32>
    %cst_36 = arith.constant -1.000000e+30 : f32
    %56 = vector.broadcast %cst_36 : f32 to vector<128x128xf32>
    %57 = arith.select %3, %55, %56 : vector<128x128xi1>, vector<128x128xf32>
    %cst_37 = arith.constant dense<0xFF800000> : vector<128xf32>
    %58 = vector.multi_reduction <maximumf>, %57, %cst_37 [1] : vector<128x128xf32> to vector<128xf32>
    %59 = vector.shape_cast %58 : vector<128xf32> to vector<128x1xf32>
    %60 = vector.broadcast %59 : vector<128x1xf32> to vector<128x128xf32>
    %61 = arith.subf %57, %60 : vector<128x128xf32>
    %62 = math.exp %61 : vector<128x128xf32>
    %cst_38 = arith.constant dense<0.000000e+00> : vector<128xf32>
    %63 = vector.multi_reduction <add>, %62, %cst_38 [1] : vector<128x128xf32> to vector<128xf32>
    %64 = vector.shape_cast %63 : vector<128xf32> to vector<128x1xf32>
    %65 = tpu.reciprocal %64 {approx = true} : vector<128x1xf32> -> vector<128x1xf32>
    %66 = vector.broadcast %65 : vector<128x1xf32> to vector<128x128xf32>
    %67 = arith.mulf %62, %66 : vector<128x128xf32>
    %68 = arith.truncf %67 : vector<128x128xf32> to vector<128x128xbf16>
    %69 = vector.extract_strided_slice %16 {offsets = [0, 8], sizes = [128, 8], strides = [1, 1]} : vector<128x64xbf16> to vector<128x8xbf16>
    %cst_39 = arith.constant dense<0.000000e+00> : vector<128x8xf32>
    %70 = tpu.matmul %68, %69, %cst_39 {dimension_numbers = #tpu.dot_dimension_numbers<[1], [0], [0], [1], [0, 0, 1, 1], [], []>} : vector<128x128xbf16>, vector<128x8xbf16>, vector<128x8xf32> -> vector<128x8xf32>
    %c0_40 = arith.constant 0 : index
    %c8 = arith.constant 8 : index
    %71 = vector.load %arg13[%c0_40, %c8] : memref<128x64xf32, #tpu.memory_space<vmem>>, vector<128x8xf32>
    tpu.vector_store %arg13[%c0_40, %c8], %70 {strides = array<i32>} : memref<128x64xf32, #tpu.memory_space<vmem>>, vector<128x8xf32>,
    %72 = vector.extract_strided_slice %18 {offsets = [0, 2], sizes = [128, 1], strides = [1, 1]} : vector<128x8xf32> to vector<128x1xf32>
    %73 = vector.extract_strided_slice %19 {offsets = [2, 0], sizes = [1, 128], strides = [1, 1]} : vector<8x128xf32> to vector<1x128xf32>
    %74 = vector.broadcast %72 : vector<128x1xf32> to vector<128x128xf32>
    %75 = vector.broadcast %73 : vector<1x128xf32> to vector<128x128xf32>
    %76 = arith.addf %74, %75 : vector<128x128xf32>
    %cst_41 = arith.constant 0.000000e+00 : f32
    %77 = vector.broadcast %cst_41 : f32 to vector<128x128xf32>
    %78 = arith.cmpf ogt, %76, %77 : vector<128x128xf32>
    %cst_42 = arith.constant 2.000000e-01 : f32
    %79 = vector.broadcast %cst_42 : f32 to vector<128x128xf32>
    %80 = arith.mulf %79, %76 : vector<128x128xf32>
    %81 = arith.select %78, %76, %80 : vector<128x128xi1>, vector<128x128xf32>
    %cst_43 = arith.constant -1.000000e+30 : f32
    %82 = vector.broadcast %cst_43 : f32 to vector<128x128xf32>
    %83 = arith.select %3, %81, %82 : vector<128x128xi1>, vector<128x128xf32>
    %cst_44 = arith.constant dense<0xFF800000> : vector<128xf32>
    %84 = vector.multi_reduction <maximumf>, %83, %cst_44 [1] : vector<128x128xf32> to vector<128xf32>
    %85 = vector.shape_cast %84 : vector<128xf32> to vector<128x1xf32>
    %86 = vector.broadcast %85 : vector<128x1xf32> to vector<128x128xf32>
    %87 = arith.subf %83, %86 : vector<128x128xf32>
    %88 = math.exp %87 : vector<128x128xf32>
    %cst_45 = arith.constant dense<0.000000e+00> : vector<128xf32>
    %89 = vector.multi_reduction <add>, %88, %cst_45 [1] : vector<128x128xf32> to vector<128xf32>
    %90 = vector.shape_cast %89 : vector<128xf32> to vector<128x1xf32>
    %91 = tpu.reciprocal %90 {approx = true} : vector<128x1xf32> -> vector<128x1xf32>
    %92 = vector.broadcast %91 : vector<128x1xf32> to vector<128x128xf32>
    %93 = arith.mulf %88, %92 : vector<128x128xf32>
    %94 = arith.truncf %93 : vector<128x128xf32> to vector<128x128xbf16>
    %95 = vector.extract_strided_slice %16 {offsets = [0, 16], sizes = [128, 8], strides = [1, 1]} : vector<128x64xbf16> to vector<128x8xbf16>
    %cst_46 = arith.constant dense<0.000000e+00> : vector<128x8xf32>
    %96 = tpu.matmul %94, %95, %cst_46 {dimension_numbers = #tpu.dot_dimension_numbers<[1], [0], [0], [1], [0, 0, 1, 1], [], []>} : vector<128x128xbf16>, vector<128x8xbf16>, vector<128x8xf32> -> vector<128x8xf32>
    %c0_47 = arith.constant 0 : index
    %c16 = arith.constant 16 : index
    %97 = vector.load %arg13[%c0_47, %c16] : memref<128x64xf32, #tpu.memory_space<vmem>>, vector<128x8xf32>
    tpu.vector_store %arg13[%c0_47, %c16], %96 {strides = array<i32>} : memref<128x64xf32, #tpu.memory_space<vmem>>, vector<128x8xf32>,
    %98 = vector.extract_strided_slice %18 {offsets = [0, 3], sizes = [128, 1], strides = [1, 1]} : vector<128x8xf32> to vector<128x1xf32>
    %99 = vector.extract_strided_slice %19 {offsets = [3, 0], sizes = [1, 128], strides = [1, 1]} : vector<8x128xf32> to vector<1x128xf32>
    %100 = vector.broadcast %98 : vector<128x1xf32> to vector<128x128xf32>
    %101 = vector.broadcast %99 : vector<1x128xf32> to vector<128x128xf32>
    %102 = arith.addf %100, %101 : vector<128x128xf32>
    %cst_48 = arith.constant 0.000000e+00 : f32
    %103 = vector.broadcast %cst_48 : f32 to vector<128x128xf32>
    %104 = arith.cmpf ogt, %102, %103 : vector<128x128xf32>
    %cst_49 = arith.constant 2.000000e-01 : f32
    %105 = vector.broadcast %cst_49 : f32 to vector<128x128xf32>
    %106 = arith.mulf %105, %102 : vector<128x128xf32>
    %107 = arith.select %104, %102, %106 : vector<128x128xi1>, vector<128x128xf32>
    %cst_50 = arith.constant -1.000000e+30 : f32
    %108 = vector.broadcast %cst_50 : f32 to vector<128x128xf32>
    %109 = arith.select %3, %107, %108 : vector<128x128xi1>, vector<128x128xf32>
    %cst_51 = arith.constant dense<0xFF800000> : vector<128xf32>
    %110 = vector.multi_reduction <maximumf>, %109, %cst_51 [1] : vector<128x128xf32> to vector<128xf32>
    %111 = vector.shape_cast %110 : vector<128xf32> to vector<128x1xf32>
    %112 = vector.broadcast %111 : vector<128x1xf32> to vector<128x128xf32>
    %113 = arith.subf %109, %112 : vector<128x128xf32>
    %114 = math.exp %113 : vector<128x128xf32>
    %cst_52 = arith.constant dense<0.000000e+00> : vector<128xf32>
    %115 = vector.multi_reduction <add>, %114, %cst_52 [1] : vector<128x128xf32> to vector<128xf32>
    %116 = vector.shape_cast %115 : vector<128xf32> to vector<128x1xf32>
    %117 = tpu.reciprocal %116 {approx = true} : vector<128x1xf32> -> vector<128x1xf32>
    %118 = vector.broadcast %117 : vector<128x1xf32> to vector<128x128xf32>
    %119 = arith.mulf %114, %118 : vector<128x128xf32>
    %120 = arith.truncf %119 : vector<128x128xf32> to vector<128x128xbf16>
    %121 = vector.extract_strided_slice %16 {offsets = [0, 24], sizes = [128, 8], strides = [1, 1]} : vector<128x64xbf16> to vector<128x8xbf16>
    %cst_53 = arith.constant dense<0.000000e+00> : vector<128x8xf32>
    %122 = tpu.matmul %120, %121, %cst_53 {dimension_numbers = #tpu.dot_dimension_numbers<[1], [0], [0], [1], [0, 0, 1, 1], [], []>} : vector<128x128xbf16>, vector<128x8xbf16>, vector<128x8xf32> -> vector<128x8xf32>
    %c0_54 = arith.constant 0 : index
    %c24 = arith.constant 24 : index
    %123 = vector.load %arg13[%c0_54, %c24] : memref<128x64xf32, #tpu.memory_space<vmem>>, vector<128x8xf32>
    tpu.vector_store %arg13[%c0_54, %c24], %122 {strides = array<i32>} : memref<128x64xf32, #tpu.memory_space<vmem>>, vector<128x8xf32>,
    %124 = vector.extract_strided_slice %18 {offsets = [0, 4], sizes = [128, 1], strides = [1, 1]} : vector<128x8xf32> to vector<128x1xf32>
    %125 = vector.extract_strided_slice %19 {offsets = [4, 0], sizes = [1, 128], strides = [1, 1]} : vector<8x128xf32> to vector<1x128xf32>
    %126 = vector.broadcast %124 : vector<128x1xf32> to vector<128x128xf32>
    %127 = vector.broadcast %125 : vector<1x128xf32> to vector<128x128xf32>
    %128 = arith.addf %126, %127 : vector<128x128xf32>
    %cst_55 = arith.constant 0.000000e+00 : f32
    %129 = vector.broadcast %cst_55 : f32 to vector<128x128xf32>
    %130 = arith.cmpf ogt, %128, %129 : vector<128x128xf32>
    %cst_56 = arith.constant 2.000000e-01 : f32
    %131 = vector.broadcast %cst_56 : f32 to vector<128x128xf32>
    %132 = arith.mulf %131, %128 : vector<128x128xf32>
    %133 = arith.select %130, %128, %132 : vector<128x128xi1>, vector<128x128xf32>
    %cst_57 = arith.constant -1.000000e+30 : f32
    %134 = vector.broadcast %cst_57 : f32 to vector<128x128xf32>
    %135 = arith.select %3, %133, %134 : vector<128x128xi1>, vector<128x128xf32>
    %cst_58 = arith.constant dense<0xFF800000> : vector<128xf32>
    %136 = vector.multi_reduction <maximumf>, %135, %cst_58 [1] : vector<128x128xf32> to vector<128xf32>
    %137 = vector.shape_cast %136 : vector<128xf32> to vector<128x1xf32>
    %138 = vector.broadcast %137 : vector<128x1xf32> to vector<128x128xf32>
    %139 = arith.subf %135, %138 : vector<128x128xf32>
    %140 = math.exp %139 : vector<128x128xf32>
    %cst_59 = arith.constant dense<0.000000e+00> : vector<128xf32>
    %141 = vector.multi_reduction <add>, %140, %cst_59 [1] : vector<128x128xf32> to vector<128xf32>
    %142 = vector.shape_cast %141 : vector<128xf32> to vector<128x1xf32>
    %143 = tpu.reciprocal %142 {approx = true} : vector<128x1xf32> -> vector<128x1xf32>
    %144 = vector.broadcast %143 : vector<128x1xf32> to vector<128x128xf32>
    %145 = arith.mulf %140, %144 : vector<128x128xf32>
    %146 = arith.truncf %145 : vector<128x128xf32> to vector<128x128xbf16>
    %147 = vector.extract_strided_slice %16 {offsets = [0, 32], sizes = [128, 8], strides = [1, 1]} : vector<128x64xbf16> to vector<128x8xbf16>
    %cst_60 = arith.constant dense<0.000000e+00> : vector<128x8xf32>
    %148 = tpu.matmul %146, %147, %cst_60 {dimension_numbers = #tpu.dot_dimension_numbers<[1], [0], [0], [1], [0, 0, 1, 1], [], []>} : vector<128x128xbf16>, vector<128x8xbf16>, vector<128x8xf32> -> vector<128x8xf32>
    %c0_61 = arith.constant 0 : index
    %c32 = arith.constant 32 : index
    %149 = vector.load %arg13[%c0_61, %c32] : memref<128x64xf32, #tpu.memory_space<vmem>>, vector<128x8xf32>
    tpu.vector_store %arg13[%c0_61, %c32], %148 {strides = array<i32>} : memref<128x64xf32, #tpu.memory_space<vmem>>, vector<128x8xf32>,
    %150 = vector.extract_strided_slice %18 {offsets = [0, 5], sizes = [128, 1], strides = [1, 1]} : vector<128x8xf32> to vector<128x1xf32>
    %151 = vector.extract_strided_slice %19 {offsets = [5, 0], sizes = [1, 128], strides = [1, 1]} : vector<8x128xf32> to vector<1x128xf32>
    %152 = vector.broadcast %150 : vector<128x1xf32> to vector<128x128xf32>
    %153 = vector.broadcast %151 : vector<1x128xf32> to vector<128x128xf32>
    %154 = arith.addf %152, %153 : vector<128x128xf32>
    %cst_62 = arith.constant 0.000000e+00 : f32
    %155 = vector.broadcast %cst_62 : f32 to vector<128x128xf32>
    %156 = arith.cmpf ogt, %154, %155 : vector<128x128xf32>
    %cst_63 = arith.constant 2.000000e-01 : f32
    %157 = vector.broadcast %cst_63 : f32 to vector<128x128xf32>
    %158 = arith.mulf %157, %154 : vector<128x128xf32>
    %159 = arith.select %156, %154, %158 : vector<128x128xi1>, vector<128x128xf32>
    %cst_64 = arith.constant -1.000000e+30 : f32
    %160 = vector.broadcast %cst_64 : f32 to vector<128x128xf32>
    %161 = arith.select %3, %159, %160 : vector<128x128xi1>, vector<128x128xf32>
    %cst_65 = arith.constant dense<0xFF800000> : vector<128xf32>
    %162 = vector.multi_reduction <maximumf>, %161, %cst_65 [1] : vector<128x128xf32> to vector<128xf32>
    %163 = vector.shape_cast %162 : vector<128xf32> to vector<128x1xf32>
    %164 = vector.broadcast %163 : vector<128x1xf32> to vector<128x128xf32>
    %165 = arith.subf %161, %164 : vector<128x128xf32>
    %166 = math.exp %165 : vector<128x128xf32>
    %cst_66 = arith.constant dense<0.000000e+00> : vector<128xf32>
    %167 = vector.multi_reduction <add>, %166, %cst_66 [1] : vector<128x128xf32> to vector<128xf32>
    %168 = vector.shape_cast %167 : vector<128xf32> to vector<128x1xf32>
    %169 = tpu.reciprocal %168 {approx = true} : vector<128x1xf32> -> vector<128x1xf32>
    %170 = vector.broadcast %169 : vector<128x1xf32> to vector<128x128xf32>
    %171 = arith.mulf %166, %170 : vector<128x128xf32>
    %172 = arith.truncf %171 : vector<128x128xf32> to vector<128x128xbf16>
    %173 = vector.extract_strided_slice %16 {offsets = [0, 40], sizes = [128, 8], strides = [1, 1]} : vector<128x64xbf16> to vector<128x8xbf16>
    %cst_67 = arith.constant dense<0.000000e+00> : vector<128x8xf32>
    %174 = tpu.matmul %172, %173, %cst_67 {dimension_numbers = #tpu.dot_dimension_numbers<[1], [0], [0], [1], [0, 0, 1, 1], [], []>} : vector<128x128xbf16>, vector<128x8xbf16>, vector<128x8xf32> -> vector<128x8xf32>
    %c0_68 = arith.constant 0 : index
    %c40 = arith.constant 40 : index
    %175 = vector.load %arg13[%c0_68, %c40] : memref<128x64xf32, #tpu.memory_space<vmem>>, vector<128x8xf32>
    tpu.vector_store %arg13[%c0_68, %c40], %174 {strides = array<i32>} : memref<128x64xf32, #tpu.memory_space<vmem>>, vector<128x8xf32>,
    %176 = vector.extract_strided_slice %18 {offsets = [0, 6], sizes = [128, 1], strides = [1, 1]} : vector<128x8xf32> to vector<128x1xf32>
    %177 = vector.extract_strided_slice %19 {offsets = [6, 0], sizes = [1, 128], strides = [1, 1]} : vector<8x128xf32> to vector<1x128xf32>
    %178 = vector.broadcast %176 : vector<128x1xf32> to vector<128x128xf32>
    %179 = vector.broadcast %177 : vector<1x128xf32> to vector<128x128xf32>
    %180 = arith.addf %178, %179 : vector<128x128xf32>
    %cst_69 = arith.constant 0.000000e+00 : f32
    %181 = vector.broadcast %cst_69 : f32 to vector<128x128xf32>
    %182 = arith.cmpf ogt, %180, %181 : vector<128x128xf32>
    %cst_70 = arith.constant 2.000000e-01 : f32
    %183 = vector.broadcast %cst_70 : f32 to vector<128x128xf32>
    %184 = arith.mulf %183, %180 : vector<128x128xf32>
    %185 = arith.select %182, %180, %184 : vector<128x128xi1>, vector<128x128xf32>
    %cst_71 = arith.constant -1.000000e+30 : f32
    %186 = vector.broadcast %cst_71 : f32 to vector<128x128xf32>
    %187 = arith.select %3, %185, %186 : vector<128x128xi1>, vector<128x128xf32>
    %cst_72 = arith.constant dense<0xFF800000> : vector<128xf32>
    %188 = vector.multi_reduction <maximumf>, %187, %cst_72 [1] : vector<128x128xf32> to vector<128xf32>
    %189 = vector.shape_cast %188 : vector<128xf32> to vector<128x1xf32>
    %190 = vector.broadcast %189 : vector<128x1xf32> to vector<128x128xf32>
    %191 = arith.subf %187, %190 : vector<128x128xf32>
    %192 = math.exp %191 : vector<128x128xf32>
    %cst_73 = arith.constant dense<0.000000e+00> : vector<128xf32>
    %193 = vector.multi_reduction <add>, %192, %cst_73 [1] : vector<128x128xf32> to vector<128xf32>
    %194 = vector.shape_cast %193 : vector<128xf32> to vector<128x1xf32>
    %195 = tpu.reciprocal %194 {approx = true} : vector<128x1xf32> -> vector<128x1xf32>
    %196 = vector.broadcast %195 : vector<128x1xf32> to vector<128x128xf32>
    %197 = arith.mulf %192, %196 : vector<128x128xf32>
    %198 = arith.truncf %197 : vector<128x128xf32> to vector<128x128xbf16>
    %199 = vector.extract_strided_slice %16 {offsets = [0, 48], sizes = [128, 8], strides = [1, 1]} : vector<128x64xbf16> to vector<128x8xbf16>
    %cst_74 = arith.constant dense<0.000000e+00> : vector<128x8xf32>
    %200 = tpu.matmul %198, %199, %cst_74 {dimension_numbers = #tpu.dot_dimension_numbers<[1], [0], [0], [1], [0, 0, 1, 1], [], []>} : vector<128x128xbf16>, vector<128x8xbf16>, vector<128x8xf32> -> vector<128x8xf32>
    %c0_75 = arith.constant 0 : index
    %c48 = arith.constant 48 : index
    %201 = vector.load %arg13[%c0_75, %c48] : memref<128x64xf32, #tpu.memory_space<vmem>>, vector<128x8xf32>
    tpu.vector_store %arg13[%c0_75, %c48], %200 {strides = array<i32>} : memref<128x64xf32, #tpu.memory_space<vmem>>, vector<128x8xf32>,
    %202 = vector.extract_strided_slice %18 {offsets = [0, 7], sizes = [128, 1], strides = [1, 1]} : vector<128x8xf32> to vector<128x1xf32>
    %203 = vector.extract_strided_slice %19 {offsets = [7, 0], sizes = [1, 128], strides = [1, 1]} : vector<8x128xf32> to vector<1x128xf32>
    %204 = vector.broadcast %202 : vector<128x1xf32> to vector<128x128xf32>
    %205 = vector.broadcast %203 : vector<1x128xf32> to vector<128x128xf32>
    %206 = arith.addf %204, %205 : vector<128x128xf32>
    %cst_76 = arith.constant 0.000000e+00 : f32
    %207 = vector.broadcast %cst_76 : f32 to vector<128x128xf32>
    %208 = arith.cmpf ogt, %206, %207 : vector<128x128xf32>
    %cst_77 = arith.constant 2.000000e-01 : f32
    %209 = vector.broadcast %cst_77 : f32 to vector<128x128xf32>
    %210 = arith.mulf %209, %206 : vector<128x128xf32>
    %211 = arith.select %208, %206, %210 : vector<128x128xi1>, vector<128x128xf32>
    %cst_78 = arith.constant -1.000000e+30 : f32
    %212 = vector.broadcast %cst_78 : f32 to vector<128x128xf32>
    %213 = arith.select %3, %211, %212 : vector<128x128xi1>, vector<128x128xf32>
    %cst_79 = arith.constant dense<0xFF800000> : vector<128xf32>
    %214 = vector.multi_reduction <maximumf>, %213, %cst_79 [1] : vector<128x128xf32> to vector<128xf32>
    %215 = vector.shape_cast %214 : vector<128xf32> to vector<128x1xf32>
    %216 = vector.broadcast %215 : vector<128x1xf32> to vector<128x128xf32>
    %217 = arith.subf %213, %216 : vector<128x128xf32>
    %218 = math.exp %217 : vector<128x128xf32>
    %cst_80 = arith.constant dense<0.000000e+00> : vector<128xf32>
    %219 = vector.multi_reduction <add>, %218, %cst_80 [1] : vector<128x128xf32> to vector<128xf32>
    %220 = vector.shape_cast %219 : vector<128xf32> to vector<128x1xf32>
    %221 = tpu.reciprocal %220 {approx = true} : vector<128x1xf32> -> vector<128x1xf32>
    %222 = vector.broadcast %221 : vector<128x1xf32> to vector<128x128xf32>
    %223 = arith.mulf %218, %222 : vector<128x128xf32>
    %224 = arith.truncf %223 : vector<128x128xf32> to vector<128x128xbf16>
    %225 = vector.extract_strided_slice %16 {offsets = [0, 56], sizes = [128, 8], strides = [1, 1]} : vector<128x64xbf16> to vector<128x8xbf16>
    %cst_81 = arith.constant dense<0.000000e+00> : vector<128x8xf32>
    %226 = tpu.matmul %224, %225, %cst_81 {dimension_numbers = #tpu.dot_dimension_numbers<[1], [0], [0], [1], [0, 0, 1, 1], [], []>} : vector<128x128xbf16>, vector<128x8xbf16>, vector<128x8xf32> -> vector<128x8xf32>
    %c0_82 = arith.constant 0 : index
    %c56 = arith.constant 56 : index
    %227 = vector.load %arg13[%c0_82, %c56] : memref<128x64xf32, #tpu.memory_space<vmem>>, vector<128x8xf32>
    tpu.vector_store %arg13[%c0_82, %c56], %226 {strides = array<i32>} : memref<128x64xf32, #tpu.memory_space<vmem>>, vector<128x8xf32>,
    %c0_83 = arith.constant 0 : index
    %c0_84 = arith.constant 0 : index
    %228 = vector.load %arg13[%c0_83, %c0_84] : memref<128x64xf32, #tpu.memory_space<vmem>>, vector<128x64xf32>
    %229 = vector.broadcast %10 : vector<1x64xf32> to vector<128x64xf32>
    %230 = arith.addf %228, %229 : vector<128x64xf32>
    %cst_85 = arith.constant 0.000000e+00 : f32
    %231 = vector.broadcast %cst_85 : f32 to vector<128x64xf32>
    %232 = arith.cmpf ogt, %230, %231 : vector<128x64xf32>
    %cst_86 = arith.constant 0.000000e+00 : f32
    %233 = vector.broadcast %cst_86 : f32 to vector<128x64xf32>
    %234 = arith.minimumf %230, %233 : vector<128x64xf32>
    %235 = math.exp %234 : vector<128x64xf32>
    %cst_87 = arith.constant 1.000000e+00 : f32
    %236 = vector.broadcast %cst_87 : f32 to vector<128x64xf32>
    %237 = arith.subf %235, %236 : vector<128x64xf32>
    %238 = arith.select %232, %230, %237 : vector<128x64xi1>, vector<128x64xf32>
    %239 = arith.truncf %238 : vector<128x64xf32> to vector<128x64xbf16>
    %cst_88 = arith.constant dense<0.000000e+00> : vector<128x2xf32>
    %240 = tpu.matmul %239, %11, %cst_88 {dimension_numbers = #tpu.dot_dimension_numbers<[1], [0], [0], [1], [0, 0, 1, 1], [], []>} : vector<128x64xbf16>, vector<64x2xbf16>, vector<128x2xf32> -> vector<128x2xf32>
    %cst_89 = arith.constant dense<0.000000e+00> : vector<128x8xf32>
    %241 = tpu.matmul %240, %12, %cst_89 {dimension_numbers = #tpu.dot_dimension_numbers<[1], [0], [0], [1], [0, 0, 1, 1], [], []>} : vector<128x2xf32>, vector<2x8xf32>, vector<128x8xf32> -> vector<128x8xf32>
    %cst_90 = arith.constant dense<0.000000e+00> : vector<128x8xf32>
    %242 = tpu.matmul %240, %13, %cst_90 {dimension_numbers = #tpu.dot_dimension_numbers<[1], [0], [0], [1], [0, 0, 1, 1], [], []>} : vector<128x2xf32>, vector<2x8xf32>, vector<128x8xf32> -> vector<128x8xf32>
    %243 = tpu.transpose %241, [1, 0] : vector<128x8xf32> -> vector<8x128xf32>
    %244 = vector.extract_strided_slice %242 {offsets = [0, 0], sizes = [128, 1], strides = [1, 1]} : vector<128x8xf32> to vector<128x1xf32>
    %245 = vector.extract_strided_slice %243 {offsets = [0, 0], sizes = [1, 128], strides = [1, 1]} : vector<8x128xf32> to vector<1x128xf32>
    %246 = vector.broadcast %244 : vector<128x1xf32> to vector<128x128xf32>
    %247 = vector.broadcast %245 : vector<1x128xf32> to vector<128x128xf32>
    %248 = arith.addf %246, %247 : vector<128x128xf32>
    %cst_91 = arith.constant 0.000000e+00 : f32
    %249 = vector.broadcast %cst_91 : f32 to vector<128x128xf32>
    %250 = arith.cmpf ogt, %248, %249 : vector<128x128xf32>
    %cst_92 = arith.constant 2.000000e-01 : f32
    %251 = vector.broadcast %cst_92 : f32 to vector<128x128xf32>
    %252 = arith.mulf %251, %248 : vector<128x128xf32>
    %253 = arith.select %250, %248, %252 : vector<128x128xi1>, vector<128x128xf32>
    %cst_93 = arith.constant -1.000000e+30 : f32
    %254 = vector.broadcast %cst_93 : f32 to vector<128x128xf32>
    %255 = arith.select %3, %253, %254 : vector<128x128xi1>, vector<128x128xf32>
    %cst_94 = arith.constant dense<0xFF800000> : vector<128xf32>
    %256 = vector.multi_reduction <maximumf>, %255, %cst_94 [1] : vector<128x128xf32> to vector<128xf32>
    %257 = vector.shape_cast %256 : vector<128xf32> to vector<128x1xf32>
    %258 = vector.broadcast %257 : vector<128x1xf32> to vector<128x128xf32>
    %259 = arith.subf %255, %258 : vector<128x128xf32>
    %260 = math.exp %259 : vector<128x128xf32>
    %cst_95 = arith.constant dense<0.000000e+00> : vector<128xf32>
    %261 = vector.multi_reduction <add>, %260, %cst_95 [1] : vector<128x128xf32> to vector<128xf32>
    %262 = vector.shape_cast %261 : vector<128xf32> to vector<128x1xf32>
    %263 = tpu.reciprocal %262 {approx = true} : vector<128x1xf32> -> vector<128x1xf32>
    %264 = vector.broadcast %263 : vector<128x1xf32> to vector<128x128xf32>
    %265 = arith.mulf %260, %264 : vector<128x128xf32>
    %266 = arith.truncf %265 : vector<128x128xf32> to vector<128x128xbf16>
    %267 = arith.truncf %240 : vector<128x2xf32> to vector<128x2xbf16>
    %cst_96 = arith.constant dense<0.000000e+00> : vector<128x2xf32>
    %268 = tpu.matmul %266, %267, %cst_96 {dimension_numbers = #tpu.dot_dimension_numbers<[1], [0], [0], [1], [0, 0, 1, 1], [], []>} : vector<128x128xbf16>, vector<128x2xbf16>, vector<128x2xf32> -> vector<128x2xf32>
    %269 = vector.broadcast %14 : vector<1x2xf32> to vector<128x2xf32>
    %270 = arith.addf %268, %269 : vector<128x2xf32>
    %271 = arith.truncf %270 : vector<128x2xf32> to vector<128x2xbf16>
    %cst_97 = arith.constant dense<0.000000e+00> : vector<16x2xf32>
    %272 = tpu.matmul %6, %271, %cst_97 {dimension_numbers = #tpu.dot_dimension_numbers<[1], [0], [0], [1], [0, 0, 1, 1], [], []>} : vector<16x128xbf16>, vector<128x2xbf16>, vector<16x2xf32> -> vector<16x2xf32>
    %cst_98 = arith.constant dense<0xFF800000> : vector<16xf32>
    %273 = vector.multi_reduction <maximumf>, %272, %cst_98 [1] : vector<16x2xf32> to vector<16xf32>
    %274 = vector.shape_cast %273 : vector<16xf32> to vector<16x1xf32>
    %275 = vector.broadcast %274 : vector<16x1xf32> to vector<16x2xf32>
    %276 = arith.subf %272, %275 : vector<16x2xf32>
    %277 = math.exp %276 : vector<16x2xf32>
    %cst_99 = arith.constant dense<0.000000e+00> : vector<16xf32>
    %278 = vector.multi_reduction <add>, %277, %cst_99 [1] : vector<16x2xf32> to vector<16xf32>
    %279 = vector.shape_cast %278 : vector<16xf32> to vector<16x1xf32>
    %280 = math.log %279 : vector<16x1xf32>
    %281 = vector.broadcast %280 : vector<16x1xf32> to vector<16x2xf32>
    %282 = arith.subf %276, %281 : vector<16x2xf32>
    %c0_100 = arith.constant 0 : index
    %c0_101 = arith.constant 0 : index
    %c0_102 = arith.constant 0 : index
    %283 = vector.load %arg12[%c0_100, %c0_101, %c0_102] : memref<1x16x2xf32, #tpu.memory_space<vmem>>, vector<1x16x2xf32>
    %284 = vector.shape_cast %283 : vector<1x16x2xf32> to vector<16x2xf32>
    %285 = vector.shape_cast %282 : vector<16x2xf32> to vector<1x16x2xf32>
    tpu.vector_store %arg12[%c0_100, %c0_101, %c0_102], %285 {strides = array<i32>} : memref<1x16x2xf32, #tpu.memory_space<vmem>>, vector<1x16x2xf32>,
    return
  }
  func.func @transform_0(%arg0: i32) -> (i32, i32, i32) {
    %c0_i32 = arith.constant 0 : i32
    %c0_i32_0 = arith.constant 0 : i32
    %c0_i32_1 = arith.constant 0 : i32
    return %arg0, %c0_i32, %c0_i32_0 : i32, i32, i32
  }
  func.func @transform_1(%arg0: i32) -> (i32, i32, i32) {
    %c0_i32 = arith.constant 0 : i32
    %c0_i32_0 = arith.constant 0 : i32
    %c0_i32_1 = arith.constant 0 : i32
    return %arg0, %c0_i32, %c0_i32_0 : i32, i32, i32
  }
  func.func @transform_2(%arg0: i32) -> (i32, i32) {
    %c0_i32 = arith.constant 0 : i32
    %c0_i32_0 = arith.constant 0 : i32
    %c0_i32_1 = arith.constant 0 : i32
    return %c0_i32, %c0_i32_0 : i32, i32
  }
  func.func @transform_3(%arg0: i32) -> (i32, i32) {
    %c0_i32 = arith.constant 0 : i32
    %c0_i32_0 = arith.constant 0 : i32
    %c0_i32_1 = arith.constant 0 : i32
    return %c0_i32, %c0_i32_0 : i32, i32
  }
  func.func @transform_4(%arg0: i32) -> (i32, i32) {
    %c0_i32 = arith.constant 0 : i32
    %c0_i32_0 = arith.constant 0 : i32
    %c0_i32_1 = arith.constant 0 : i32
    return %c0_i32, %c0_i32_0 : i32, i32
  }
  func.func @transform_5(%arg0: i32) -> (i32, i32) {
    %c0_i32 = arith.constant 0 : i32
    %c0_i32_0 = arith.constant 0 : i32
    %c0_i32_1 = arith.constant 0 : i32
    return %c0_i32, %c0_i32_0 : i32, i32
  }
  func.func @transform_6(%arg0: i32) -> (i32, i32) {
    %c0_i32 = arith.constant 0 : i32
    %c0_i32_0 = arith.constant 0 : i32
    %c0_i32_1 = arith.constant 0 : i32
    return %c0_i32, %c0_i32_0 : i32, i32
  }
  func.func @transform_7(%arg0: i32) -> (i32, i32) {
    %c0_i32 = arith.constant 0 : i32
    %c0_i32_0 = arith.constant 0 : i32
    %c0_i32_1 = arith.constant 0 : i32
    return %c0_i32, %c0_i32_0 : i32, i32
  }
  func.func @transform_8(%arg0: i32) -> (i32, i32) {
    %c0_i32 = arith.constant 0 : i32
    %c0_i32_0 = arith.constant 0 : i32
    %c0_i32_1 = arith.constant 0 : i32
    return %c0_i32, %c0_i32_0 : i32, i32
  }
  func.func @transform_9(%arg0: i32) -> (i32, i32) {
    %c0_i32 = arith.constant 0 : i32
    %c0_i32_0 = arith.constant 0 : i32
    %c0_i32_1 = arith.constant 0 : i32
    return %c0_i32, %c0_i32_0 : i32, i32
  }
  func.func @transform_10(%arg0: i32) -> (i32, i32) {
    %c0_i32 = arith.constant 0 : i32
    %c0_i32_0 = arith.constant 0 : i32
    %c0_i32_1 = arith.constant 0 : i32
    return %c0_i32, %c0_i32_0 : i32, i32
  }
  func.func @transform_11(%arg0: i32) -> (i32, i32, i32) {
    %c0_i32 = arith.constant 0 : i32
    %c0_i32_0 = arith.constant 0 : i32
    %c0_i32_1 = arith.constant 0 : i32
    return %arg0, %c0_i32, %c0_i32_0 : i32, i32, i32
  }
}

</mosaic_0001>

<bundles_post_ra>
// kernel: tpu_custom_call.1
= control target key start
LH: loop header
LB: loop body
LE: loop exit
PB: predicated region body
PF: predicated region fallthrough
CT: control target
= control target key end

     0   :  { %s8000_s17 = smov 0   ;;  %s11879_s0 = inlined_call_operand.vmem [shape: bf16[2,128,128], index: 0, kind: input, shape index: {}]   ;;  %s11880_s1 = inlined_call_operand.vmem [shape: bf16[2,128,8], index: 1, kind: input, shape index: {}]   ;;  %s11881_s2 = inlined_call_operand.vmem [shape: bf16[16,128], index: 2, kind: input, shape index: {}]   ;;  %s11882_s3 = inlined_call_operand.vmem [shape: bf16[8,64], index: 3, kind: input, shape index: {}]   ;;  %s11883_s4 = inlined_call_operand.vmem [shape: f32[64,8], index: 4, kind: input, shape index: {}]   ;;  %s11884_s5 = inlined_call_operand.vmem [shape: f32[64,8], index: 5, kind: input, shape index: {}]   ;;  %s11885_s6 = inlined_call_operand.vmem [shape: f32[1,64], index: 6, kind: input, shape index: {}]   ;;  %s11886_s7 = inlined_call_operand.vmem [shape: bf16[64,2], index: 7, kind: input, shape index: {}]   ;;  %s11887_s8 = inlined_call_operand.vmem [shape: f32[2,8], index: 8, kind: input, shape index: {}]   ;;  %s11888_s9 = inlined_call_operand.vmem [shape: f32[2,8], index: 9, kind: input, shape index: {}]   ;;  %s11889_s10 = inlined_call_operand.vmem [shape: f32[1,2], index: 10, kind: input, shape index: {}]   ;;  %s11890_s11 = inlined_call_operand.vmem [shape: f32[2,16,2], index: 11, kind: output, shape index: {}]  }
   0x1 LB: > { %s6273_s18 = sadd.s32 4294967295, %s7914_s17   ;;  %p6277_p0 = scmp.ge.s32.totalorder %s7914_s17, 1  ;;  %s7914_s17 = sphi %s8000_s17, %s21_s17  }
   0x2   : > { %p347_p1 = scmp.lt.s32.totalorder %s7914_s17, 3 }
   0x4   : > { %p348_p2 = pnand %p6277_p0, %p347_p1 }
   0x6   : > { %351 = sbr.rel (%p348_p2) target bundleno = 4782 (0x12ae), region = 64 }
   0xb   : > { %v460_v0 = vld [vmem:[%s11882_s3] sm:$0xf]  ;;  %vm554_vm0 = vcmask 1043456   ;;  %p392_p3 = scmp.lt.s32.totalorder %s6273_s18, 1  ;;  %v468_v1 = vld [vmem:[%s11883_s4 + $0x38] sm:$0xff]  ;;  %vm11955_vm1 = vcmask 64512  }
   0xc   : > { %7142 = vmatprep.subr.msk.bf16.mxu0 %vm554_vm0, %v460_v0  ;;  %7143 = vmatprep.subr.msk.bf16.mxu1 %vm554_vm0, %v460_v0  ;;  %v556_v2 = vsel %vm554_vm0, %v460_v0, 0  ;;  %v476_v3 = vld [vmem:[%s11884_s5 + $0x38] sm:$0xff]  ;;  %v467_v7 = vld [vmem:[%s11883_s4 + $0x30] sm:$0xff]  ;;  %v466_v11 = vld [vmem:[%s11883_s4 + $0x28] sm:$0xff]  ;;  %v7916_v26 = vmov 1   ;;  %v11891_v27 = vmov 0  }
   0xd   : > { %6659 = vmatpush3.bf16.msra.mxu0 %v556_v2  ;;  %7141 = vmatpush3.bf16.msra.mxu1 %v556_v2  ;;  %s13115_s18 = smov (!%p392_p3, %s6273_s18), 1  ;;  %v475_v8 = vld [vmem:[%s11884_s5 + $0x30] sm:$0xff]  ;;  %v474_v12 = vld [vmem:[%s11884_s5 + $0x28] sm:$0xff]  ;;  %v465_v14 = vld [vmem:[%s11883_s4 + $0x20] sm:$0xff]  ;;  %vm11952_vm2 = vcmask 523264   ;;  %v7918_v53 = vmov 4  }
   0xe   : > { %6676 = vmatprep.subr.mxu1 %v468_v1  ;;  %6716 = vmatprep.subr.mxu0 %v476_v3  ;;  %s6399_s25 = sshll.u32 %s13115_s18, 6  ;;  %v473_v16 = vld [vmem:[%s11884_s5 + $0x20] sm:$0xff]  ;;  %v472_v18 = vld [vmem:[%s11884_s5 + $0x18] sm:$0xff]  ;;  %v463_v20 = vld [vmem:[%s11883_s4 + $0x10] sm:$0xff]  ;;  %v7919_v54 = vmov 2   ;;  %v7920_v56 = vmov 5  }
   0xf   : > { %s401_s28 = scalar_lea.vmem %s11880_s1, %s6399_s25  ;;  %v464_v19 = vld [vmem:[%s11883_s4 + $0x18] sm:$0xff]  ;;  %v471_v21 = vld [vmem:[%s11884_s5 + $0x10] sm:$0xff]  ;;  %v462_v22 = vld [vmem:[%s11883_s4 + $0x8] sm:$0xff]  ;;  %7177 = vset.pattern.permute.xlu1 %v7916_v26  ;;  %7176 = vset.pattern.permute.xlu0 %v11891_v27  ;;  %v7921_v57 = vmov 3   ;;  %s8543_s27 = scalar_lea.vmem %s11879_s0, %s6399_s25 }
  0x10   : > { %v7279_v4 = vld [vmem:[%s401_s28] sm:$0xff]   ;;  %v7281_v6 = vld [vmem:[%s401_s28 + $0x8] sm:$0xff]   ;;  %v7283_v10 = vld [vmem:[%s401_s28 + $0x30] sm:$0xff]   ;;  %s7924_s25 = smov 120   ;;  %s7925_s29 = smov 112  }
  0x11   : > { %v7280_v5 = vld [vmem:[%s401_s28 + $0x20] sm:$0xff]   ;;  %6660 = vmatprep.mubr.msk.bf16.mxu0 %vm11955_vm1, %v7279_v4  ;;  %v7282_v9 = vld [vmem:[%s401_s28 + $0x28] sm:$0xff]   ;;  %v7285_v13 = vld [vmem:[%s401_s28 + $0x10] sm:$0xff]   ;;  %s7927_s30 = smov 96   ;;  %s7928_s12 = smov 88  }
  0x12   : > { %6668 = vmatprep.mubr.msk.bf16.mxu1 %vm11955_vm1, %v7280_v5  ;;  %6661 = vmatmul.mubr.msk.bf16.vlgmr.msra.gmra.mxu0 %vm11955_vm1, %v7281_v6  ;;  %v7286_v15 = vld [vmem:[%s401_s28 + $0x18] sm:$0xff]   ;;  %v470_v23 = vld [vmem:[%s11884_s5 + $0x8] sm:$0xff]  ;;  %v461_v24 = vld [vmem:[%s11883_s4] sm:$0xff]  ;;  %s7929_s13 = smov 80   ;;  %s7930_s14 = smov 72  }
  0x13   : > { %6669 = vmatmul.mubr.msk.bf16.vlgmr.msra.gmra.mxu1 %vm11955_vm1, %v7282_v9  ;;  %6717 = vmatpush3.msra.mxu0 %v476_v3  ;;  %v7284_v17 = vld [vmem:[%s401_s28 + $0x38] sm:$0xff]   ;;  %v469_v25 = vld [vmem:[%s11884_s5] sm:$0xff]  ;;  %s7926_s28 = smov 104   ;;  %s7931_s15 = smov 8  }
  0x14   : > { %6672 = vmatprep.mubr.msk.bf16.mxu1 %vm11955_vm1, %v7283_v10  ;;  %6677 = vmatpush3.msra.mxu1 %v468_v1  ;;  %s7932_s16 = smov 16   ;;  %s7933_s19 = smov 24  }
  0x15   : > { %6678 = vmatprep.subr.mxu1 %v467_v7  ;;  %6718 = vmatprep.subr.mxu0 %v475_v8  ;;  %s7934_s20 = smov 32   ;;  %s7935_s21 = smov 40  }
  0x16   : > { %6664 = vmatprep.mubr.msk.bf16.mxu0 %vm11955_vm1, %v7285_v13  ;;  %6679 = vmatpush3.msra.mxu1 %v467_v7  ;;  %s7936_s22 = smov 48   ;;  %s7937_s23 = smov 56  }
  0x17   : > { %6719 = vmatpush3.msra.mxu0 %v475_v8  ;;  %6680 = vmatprep.subr.mxu1 %v466_v11  ;;  %s6401_s26 = sshll.u32 %s13115_s18, 4 }
  0x18   : > { %6720 = vmatprep.subr.mxu0 %v474_v12  ;;  %6681 = vmatpush3.msra.mxu1 %v466_v11 }
  0x19   : > { %6721 = vmatpush3.msra.mxu0 %v474_v12  ;;  %6682 = vmatprep.subr.mxu1 %v465_v14 }
  0x1a   : > { %6665 = vmatmul.mubr.msk.bf16.gmra.mxu0 %vm11955_vm1, %v7286_v15  ;;  %6722 = vmatprep.subr.mxu0 %v473_v16 }
  0x1b   : > { %6673 = vmatmul.mubr.msk.bf16.gmra.mxu1 %vm11955_vm1, %v7284_v17  ;;  %6723 = vmatpush3.msra.mxu0 %v473_v16 }
  0x1c   : > { %6683 = vmatpush3.msra.mxu1 %v465_v14  ;;  %6724 = vmatprep.subr.mxu0 %v472_v18 }
  0x1d   : > { %6684 = vmatprep.subr.mxu1 %v464_v19  ;;  %6725 = vmatpush3.msra.mxu0 %v472_v18 }
  0x1e   : > { %6685 = vmatpush3.msra.mxu1 %v464_v19  ;;  %6726 = vmatprep.subr.mxu0 %v471_v21 }
  0x1f   : > { %6686 = vmatprep.subr.mxu1 %v463_v20  ;;  %6727 = vmatpush3.msra.mxu0 %v471_v21 }
  0x20   : > { %6687 = vmatpush3.msra.mxu1 %v463_v20  ;;  %6728 = vmatprep.subr.mxu0 %v470_v23 }
  0x21   : > { %6688 = vmatprep.subr.mxu1 %v462_v22  ;;  %6729 = vmatpush3.msra.mxu0 %v470_v23 }
  0x22   : > { %6689 = vmatpush3.msra.mxu1 %v462_v22  ;;  %6730 = vmatprep.subr.mxu0 %v469_v25 }
  0x23   : > { %6690 = vmatprep.subr.mxu1 %v461_v24  ;;  %6731 = vmatpush3.msra.mxu0 %v469_v25 }
  0x24   : > { %6691 = vmatpush3.msra.mxu1 %v461_v24 }
  0xd2   : > { %v8077_v28 = vpop.f32.mrf.mxu0 }
  0xd3   : > { %v6670_v29 = vpop.f32.mrf.mxu1 }
  0xd4   : > { %v8079_v30 = vpop.f32.mrf.mxu0 }
  0xd5   : > { %v624_v31 = vpop.f32.mrf.mxu1  ;;  %6692 = vmatprep.mubr.msk.f32.mxu1 %vm11952_vm2, %v8079_v30  ;;  %6732 = vmatprep.mubr.msk.f32.mxu0 %vm11952_vm2, %v8079_v30 }
  0xd6   : > { %v6663_v32 = vpop.f32.mrf.mxu0 }
  0xd7   : > { %v6671_v33 = vpop.f32.mrf.mxu1  ;;  %v8141_v50 = vpack.c.bf16 %v6663_v32, %v8077_v28 }
  0xd8   : > { %v595_v34 = vpop.f32.mrf.mxu0  ;;  %v8105_v46 = vpack.c.bf16 %v6671_v33, %v6670_v29 }
  0xd9   : > { %v627_v35 = vpop.f32.mrf.mxu1  ;;  %6693 = vmatmul.mubr.msk.f32.vlgmr.msra.gmra.mxu1 %vm11952_vm2, %v595_v34  ;;  %6733 = vmatmul.mubr.msk.f32.vlgmr.msra.gmra.mxu0 %vm11952_vm2, %v595_v34  ;;  %12171 = vst [vmem:[#allocation9_spill] sm:$0xff] %v8141_v50  ;;  %v8146_v51 = vpack.c.bf16 %v595_v34, %v8079_v30 }
  0xda   : > { %6695 = vmatprep.mubr.msk.f32.mxu1 %vm11952_vm2, %v8077_v28  ;;  %6735 = vmatprep.mubr.msk.f32.mxu0 %vm11952_vm2, %v8077_v28  ;;  %v6666_v36 = vpop.f32.mrf.mxu0  ;;  %12167 = vst [vmem:[#allocation5_spill] sm:$0xff] %v8105_v46  ;;  %v8113_v47 = vpack.c.bf16 %v627_v35, %v624_v31 }
  0xdb   : > { %v6674_v37 = vpop.f32.mrf.mxu1  ;;  %12172 = vst [vmem:[#allocation10_spill] sm:$0xff] %v8146_v51 }
  0xdc   : > { %v608_v38 = vpop.f32.mrf.mxu0  ;;  %12168 = vst [vmem:[#allocation6_spill] sm:$0xff] %v8113_v47 }
  0xdd   : > { %v640_v39 = vpop.f32.mrf.mxu1  ;;  %6696 = vmatmul.mubr.msk.f32.gmra.mxu1 %vm11952_vm2, %v6663_v32  ;;  %6736 = vmatmul.mubr.msk.f32.gmra.mxu0 %vm11952_vm2, %v6663_v32 }
  0xde   : > { %v6667_v40 = vpop.f32.mrf.mxu0  ;;  %6698 = vmatprep.mubr.msk.f32.mxu1 %vm11952_vm2, %v608_v38  ;;  %6738 = vmatprep.mubr.msk.f32.mxu0 %vm11952_vm2, %v608_v38 }
  0xdf   : > { %v6675_v41 = vpop.f32.mrf.mxu1  ;;  %v8122_v48 = vpack.c.bf16 %v6667_v40, %v6666_v36 }
  0xe0   : > { %v8095_v42 = vpack.c.bf16 %v6675_v41, %v6674_v37  ;;  %v611_v43 = vpop.f32.mrf.mxu0 }
  0xe1   : > { %v643_v44 = vpop.f32.mrf.mxu1  ;;  %6699 = vmatmul.mubr.msk.f32.gmra.mxu1 %vm11952_vm2, %v611_v43  ;;  %6739 = vmatmul.mubr.msk.f32.gmra.mxu0 %vm11952_vm2, %v611_v43  ;;  %12169 = vst [vmem:[#allocation7_spill] sm:$0xff] %v8122_v48  ;;  %v8130_v49 = vpack.c.bf16 %v611_v43, %v608_v38 }
  0xe2   : > { %12165 = vst [vmem:[#allocation3_spill] sm:$0xff] %v8095_v42  ;;  %6756 = vmatprep.subr.bf16.mxu1 %v8095_v42  ;;  %v8100_v45 = vpack.c.bf16 %v643_v44, %v640_v39  ;;  %6701 = vmatprep.mubr.msk.f32.mxu1 %vm11952_vm2, %v6666_v36 }
  0xe3   : > { %6757 = vmatpush3.bf16.msra.mxu1 %v8095_v42  ;;  %6741 = vmatprep.mubr.msk.f32.mxu0 %vm11952_vm2, %v6666_v36  ;;  %12170 = vst [vmem:[#allocation8_spill] sm:$0xff] %v8130_v49 }
  0xe4   : > { %12166 = vst [vmem:[#allocation4_spill] sm:$0xff] %v8100_v45  ;;  %6758 = vmatprep.subr.bf16.mxu1 %v8100_v45 }
  0xe5   : > { %6702 = vmatmul.mubr.msk.f32.gmra.mxu1 %vm11952_vm2, %v6667_v40  ;;  %6742 = vmatmul.mubr.msk.f32.gmra.mxu0 %vm11952_vm2, %v6667_v40 }
  0xe6   : > { %6704 = vmatprep.mubr.msk.f32.mxu1 %vm11952_vm2, %v624_v31  ;;  %6744 = vmatprep.mubr.msk.f32.mxu0 %vm11952_vm2, %v624_v31 }
  0xe7   : > { %6759 = vmatpush3.bf16.msra.mxu1 %v8100_v45 }
  0xe8   : > { %6760 = vmatprep.subr.bf16.mxu1 %v8105_v46 }
  0xe9   : > { %6705 = vmatmul.mubr.msk.f32.gmra.mxu1 %vm11952_vm2, %v627_v35  ;;  %6745 = vmatmul.mubr.msk.f32.gmra.mxu0 %vm11952_vm2, %v627_v35 }
  0xea   : > { %6707 = vmatprep.mubr.msk.f32.mxu1 %vm11952_vm2, %v6670_v29  ;;  %6747 = vmatprep.mubr.msk.f32.mxu0 %vm11952_vm2, %v6670_v29 }
  0xeb   : > { %6761 = vmatpush3.bf16.msra.mxu1 %v8105_v46 }
  0xec   : > { %6762 = vmatprep.subr.bf16.mxu1 %v8113_v47 }
  0xed   : > { %6708 = vmatmul.mubr.msk.f32.gmra.mxu1 %vm11952_vm2, %v6671_v33  ;;  %6748 = vmatmul.mubr.msk.f32.gmra.mxu0 %vm11952_vm2, %v6671_v33 }
  0xee   : > { %6710 = vmatprep.mubr.msk.f32.mxu1 %vm11952_vm2, %v640_v39  ;;  %6750 = vmatprep.mubr.msk.f32.mxu0 %vm11952_vm2, %v640_v39 }
  0xef   : > { %6763 = vmatpush3.bf16.msra.mxu1 %v8113_v47 }
  0xf0   : > { %6764 = vmatprep.subr.bf16.mxu1 %v8122_v48 }
  0xf1   : > { %6711 = vmatmul.mubr.msk.f32.gmra.mxu1 %vm11952_vm2, %v643_v44  ;;  %6751 = vmatmul.mubr.msk.f32.gmra.mxu0 %vm11952_vm2, %v643_v44 }
  0xf2   : > { %6713 = vmatprep.mubr.msk.f32.mxu1 %vm11952_vm2, %v6674_v37  ;;  %6753 = vmatprep.mubr.msk.f32.mxu0 %vm11952_vm2, %v6674_v37 }
  0xf3   : > { %6765 = vmatpush3.bf16.msra.mxu1 %v8122_v48 }
  0xf4   : > { %6766 = vmatprep.subr.bf16.mxu1 %v8130_v49 }
  0xf5   : > { %6714 = vmatmul.mubr.msk.f32.gmra.mxu1 %vm11952_vm2, %v6675_v41  ;;  %6754 = vmatmul.mubr.msk.f32.gmra.mxu0 %vm11952_vm2, %v6675_v41 }
  0xf7   : > { %6767 = vmatpush3.bf16.msra.mxu1 %v8130_v49 }
  0xf8   : > { %6768 = vmatprep.subr.bf16.mxu1 %v8141_v50 }
  0xfb   : > { %6769 = vmatpush3.bf16.msra.mxu1 %v8141_v50 }
  0xfc   : > { %6770 = vmatprep.subr.bf16.mxu1 %v8146_v51 }
  0xff   : > { %6771 = vmatpush3.bf16.msra.mxu1 %v8146_v51 }
 0x199   : > { %v8151_v52 = vpop.f32.mrf.mxu0  ;;  %v6694_v48 = vpop.f32.mrf.mxu1 }
 0x19a   : > { %12173 = vst [vmem:[#allocation11_spill] sm:$0xff] %v8151_v52  ;;  %1516 = vperm.xlu1 %7177, %v8151_v52   ;;  %1041 = vperm.xlu0 %7176, %v8151_v52  }
 0x19b   : > { %v8159_v55 = vpop.f32.mrf.mxu0  ;;  %v778_v42 = vpop.f32.mrf.mxu1 }
 0x19c   : > { %12174 = vst [vmem:[#allocation12_spill] sm:$0xff] %v8159_v55 }
 0x19d   : > { %v8165_v58 = vpop.f32.mrf.mxu0 }
 0x19e   : > { %7180 = vset.pattern.permute.xlu1 %v7918_v53  ;;  %7178 = vset.pattern.permute.xlu0 %v7919_v54  ;;  %12175 = vst [vmem:[#allocation13_spill] sm:$0xff] %v8165_v58 }
 0x19f   : > { %3030 = vperm.xlu1 %7180, %v8151_v52   ;;  %2026 = vperm.xlu0 %7178, %v8151_v52   ;;  %v8175_v59 = vpop.f32.mrf.mxu0 }
 0x1a0   : > { %12176 = vst [vmem:[#allocation14_spill] sm:$0xff] %v8175_v59 }
 0x1a1   : > { %v8193_v60 = vpop.f32.mrf.mxu0 }
 0x1a2   : > { %12177 = vst [vmem:[#allocation15_spill] sm:$0xff] %v8193_v60 }
 0x1a3   : > { %7187 = vset.pattern.permute.xlu1 %v7920_v56  ;;  %7179 = vset.pattern.permute.xlu0 %v7921_v57  ;;  %v8207_v61 = vpop.f32.mrf.mxu0 }
 0x1a4   : > { %2528 = vperm.xlu0 %7179, %v8151_v52   ;;  %3528 = vperm.xlu1 %7187, %v8159_v55   ;;  %12178 = vst [vmem:[#allocation16_spill] sm:$0xff] %v8207_v61 }
 0x1a5   : > { %v8217_v62 = vpop.f32.mrf.mxu0 }
 0x1a6   : > { %12179 = vst [vmem:[#allocation17_spill] sm:$0xff] %v8217_v62 }
 0x1a7   : > { %v8231_v63 = vpop.f32.mrf.mxu0 }
 0x1a8   : > { %7181 = vset.pattern.permute.xlu0 %v7920_v56  ;;  %7188 = vset.pattern.permute.xlu1 %v11891_v27  ;;  %12180 = vst [vmem:[#allocation18_spill] sm:$0xff] %v8231_v63 }
 0x1a9   : > { %3532 = vperm.xlu0 %7181, %v8151_v52   ;;  %1051 = vperm.xlu1 %7188, %v8165_v58   ;;  %v8249_v0 = vpop.f32.mrf.mxu0 }
 0x1aa   : > { %12181 = vst [vmem:[#allocation19_spill] sm:$0xff] %v8249_v0 }
 0x1ab   : > { %v8259_v1 = vpop.f32.mrf.mxu0 }
 0x1ac   : > { %12182 = vst [vmem:[#allocation20_spill] sm:$0xff] %v8259_v1 }
 0x1ad   : > { %7182 = vset.pattern.permute.xlu0 %v11891_v27  ;;  %7193 = vset.pattern.permute.xlu1 %v7920_v56  ;;  %v8277_v4 = vpop.f32.mrf.mxu0 }
 0x1ae   : > { %1036 = vperm.xlu0 %7182, %v8159_v55   ;;  %3540 = vperm.xlu1 %7193, %v8165_v58   ;;  %12184 = vst [vmem:[#allocation22_spill] sm:$0xff] %v8277_v4 }
 0x1af   : > { %v8291_v7 = vpop.f32.mrf.mxu0 }
 0x1b0   : > { %12186 = vst [vmem:[#allocation24_spill] sm:$0xff] %v8291_v7 }
 0x1b1   : > { %v8317_v12 = vpop.f32.mrf.mxu0 }
 0x1b2   : > { %7183 = vset.pattern.permute.xlu0 %v7916_v26  ;;  %7194 = vset.pattern.permute.xlu1 %v11891_v27  ;;  %12189 = vst [vmem:[#allocation27_spill] sm:$0xff] %v8317_v12 }
 0x1b3   : > { %1512 = vperm.xlu0 %7183, %v8159_v55   ;;  %1046 = vperm.xlu1 %7194, %v8175_v59   ;;  %v8331_v15 = vpop.f32.mrf.mxu0 }
 0x1b4   : > { %12191 = vst [vmem:[#allocation29_spill] sm:$0xff] %v8331_v15 }
 0x1b5   : > { %v8361_v22 = vpop.f32.mrf.mxu0 }
 0x1b6   : > { %12194 = vst [vmem:[#allocation32_spill] sm:$0xff] %v8361_v22 }
 0x1b7   : > { %7184 = vset.pattern.permute.xlu0 %v7919_v54  ;;  %7195 = vset.pattern.permute.xlu1 %v7916_v26  ;;  %v8393_v32 = vpop.f32.mrf.mxu0 }
 0x1b8   : > { %2022 = vperm.xlu0 %7184, %v8159_v55   ;;  %1520 = vperm.xlu1 %7195, %v8175_v59   ;;  %12198 = vst [vmem:[#allocation36_spill] sm:$0xff] %v8393_v32 }
 0x1bc   : > { %7185 = vset.pattern.permute.xlu0 %v7921_v57  ;;  %7198 = vset.pattern.permute.xlu1 %v7918_v53 }
 0x1bd   : > { %2524 = vperm.xlu0 %7185, %v8159_v55   ;;  %3034 = vperm.xlu1 %7198, %v8175_v59  }
 0x1c1   : > { %7186 = vset.pattern.permute.xlu0 %v7918_v53  ;;  %7199 = vset.pattern.permute.xlu1 %v7920_v56 }
 0x1c2   : > { %3026 = vperm.xlu0 %7186, %v8159_v55   ;;  %3536 = vperm.xlu1 %7199, %v8175_v59  }
 0x1c6   : > { %7189 = vset.pattern.permute.xlu0 %v7916_v26  ;;  %7201 = vset.pattern.permute.xlu1 %v7916_v26 }
 0x1c7   : > { %1524 = vperm.xlu0 %7189, %v8165_v58   ;;  %1532 = vperm.xlu1 %7201, %v8193_v60  }
 0x1cb   : > { %7190 = vset.pattern.permute.xlu0 %v7919_v54  ;;  %7204 = vset.pattern.permute.xlu1 %v7918_v53 }
 0x1cc   : > { %2034 = vperm.xlu0 %7190, %v8165_v58   ;;  %3046 = vperm.xlu1 %7204, %v8193_v60  }
 0x1d0   : > { %7191 = vset.pattern.permute.xlu0 %v7921_v57  ;;  %7205 = vset.pattern.permute.xlu1 %v7920_v56 }
 0x1d1   : > { %2536 = vperm.xlu0 %7191, %v8165_v58   ;;  %3548 = vperm.xlu1 %7205, %v8193_v60  }
 0x1d5   : > { %7192 = vset.pattern.permute.xlu0 %v7918_v53  ;;  %7206 = vset.pattern.permute.xlu1 %v11891_v27 }
 0x1d6   : > { %3038 = vperm.xlu0 %7192, %v8165_v58   ;;  %1056 = vperm.xlu1 %7206, %v8207_v61  }
 0x1da   : > { %7196 = vset.pattern.permute.xlu0 %v7919_v54  ;;  %7211 = vset.pattern.permute.xlu1 %v7920_v56 }
 0x1db   : > { %2030 = vperm.xlu0 %7196, %v8175_v59   ;;  %3544 = vperm.xlu1 %7211, %v8207_v61  }
 0x1df   : > { %7197 = vset.pattern.permute.xlu0 %v7921_v57  ;;  %7212 = vset.pattern.permute.xlu1 %v11891_v27 }
 0x1e0   : > { %2532 = vperm.xlu0 %7197, %v8175_v59   ;;  %1071 = vperm.xlu1 %7212, %v8217_v62  }
 0x1e4   : > { %7200 = vset.pattern.permute.xlu0 %v11891_v27  ;;  %7216 = vset.pattern.permute.xlu1 %v7918_v53 }
 0x1e5   : > { %1061 = vperm.xlu0 %7200, %v8193_v60   ;;  %3054 = vperm.xlu1 %7216, %v8217_v62  }
 0x1e9   : > { %7202 = vset.pattern.permute.xlu0 %v7919_v54  ;;  %7217 = vset.pattern.permute.xlu1 %v7920_v56 }
 0x1ea   : > { %2042 = vperm.xlu0 %7202, %v8193_v60   ;;  %3556 = vperm.xlu1 %7217, %v8217_v62  }
 0x1ee   : > { %7203 = vset.pattern.permute.xlu0 %v7921_v57  ;;  %7218 = vset.pattern.permute.xlu1 %v11891_v27 }
 0x1ef   : > { %2544 = vperm.xlu0 %7203, %v8193_v60   ;;  %1066 = vperm.xlu1 %7218, %v8231_v63  }
 0x1f3   : > { %7207 = vset.pattern.permute.xlu0 %v7916_v26  ;;  %7219 = vset.pattern.permute.xlu1 %v7916_v26 }
 0x1f4   : > { %1528 = vperm.xlu0 %7207, %v8207_v61   ;;  %1536 = vperm.xlu1 %7219, %v8231_v63  }
 0x1f8   : > { %7208 = vset.pattern.permute.xlu0 %v7919_v54  ;;  %7222 = vset.pattern.permute.xlu1 %v7918_v53 }
 0x1f9   : > { %2038 = vperm.xlu0 %7208, %v8207_v61   ;;  %3050 = vperm.xlu1 %7222, %v8231_v63  }
 0x1fd   : > { %7209 = vset.pattern.permute.xlu0 %v7921_v57  ;;  %7223 = vset.pattern.permute.xlu1 %v7920_v56 }
 0x1fe   : > { %2540 = vperm.xlu0 %7209, %v8207_v61   ;;  %3552 = vperm.xlu1 %7223, %v8231_v63  }
 0x202   : > { %7210 = vset.pattern.permute.xlu0 %v7918_v53  ;;  %7225 = vset.pattern.permute.xlu1 %v7916_v26 }
 0x203   : > { %3042 = vperm.xlu0 %7210, %v8207_v61   ;;  %1548 = vperm.xlu1 %7225, %v8249_v0  }
 0x207   : > { %7213 = vset.pattern.permute.xlu0 %v7916_v26  ;;  %7228 = vset.pattern.permute.xlu1 %v7918_v53 }
 0x208   : > { %1540 = vperm.xlu0 %7213, %v8217_v62   ;;  %3062 = vperm.xlu1 %7228, %v8249_v0  }
 0x20c   : > { %7214 = vset.pattern.permute.xlu0 %v7919_v54  ;;  %7230 = vset.pattern.permute.xlu1 %v11891_v27 }
 0x20d   : > { %2050 = vperm.xlu0 %7214, %v8217_v62   ;;  %1076 = vperm.xlu1 %7230, %v8259_v1  }
 0x211   : > { %7215 = vset.pattern.permute.xlu0 %v7921_v57  ;;  %7233 = vset.pattern.permute.xlu1 %v7921_v57 }
 0x212   : > { %2552 = vperm.xlu0 %7215, %v8217_v62   ;;  %2556 = vperm.xlu1 %7233, %v8259_v1  }
 0x215   : > { %v8269_v2 = vpop.permute.xlu1 %1516  ;;  %v8337_v16 = vpop.permute.xlu0 %1041 }
 0x216   : > { %7220 = vset.pattern.permute.xlu0 %v7919_v54  ;;  %7235 = vset.pattern.permute.xlu1 %v7920_v56 }
 0x217   : > { %2046 = vperm.xlu0 %7220, %v8231_v63   ;;  %3560 = vperm.xlu1 %7235, %v8259_v1  }
 0x21a   : > { %v8275_v3 = vpop.permute.xlu1 %3030  ;;  %v8345_v18 = vpop.permute.xlu0 %2026 }
 0x21b   : > { %12183 = vst [vmem:[#allocation21_spill] sm:$0xff] %v8275_v3  ;;  %7221 = vset.pattern.permute.xlu0 %v7921_v57  ;;  %7236 = vset.pattern.permute.xlu1 %v11891_v27 }
 0x21c   : > { %2548 = vperm.xlu0 %7221, %v8231_v63   ;;  %1091 = vperm.xlu1 %7236, %v8277_v4  }
 0x21f   : > { %v8283_v5 = vpop.permute.xlu1 %3528  ;;  %v8353_v20 = vpop.permute.xlu0 %2528 }
 0x220   : > { %12185 = vst [vmem:[#allocation23_spill] sm:$0xff] %v8283_v5  ;;  %7224 = vset.pattern.permute.xlu0 %v11891_v27  ;;  %7241 = vset.pattern.permute.xlu1 %v7920_v56 }
 0x221   : > { %1081 = vperm.xlu0 %7224, %v8249_v0   ;;  %3572 = vperm.xlu1 %7241, %v8277_v4  }
 0x224   : > { %v8289_v6 = vpop.permute.xlu1 %1051  ;;  %v8365_v23 = vpop.permute.xlu0 %3532 }
 0x225   : > { %7226 = vset.pattern.permute.xlu0 %v7919_v54  ;;  %7242 = vset.pattern.permute.xlu1 %v11891_v27  ;;  %12195 = vst [vmem:[#allocation33_spill] sm:$0xff] %v8365_v23 }
 0x226   : > { %2058 = vperm.xlu0 %7226, %v8249_v0   ;;  %1086 = vperm.xlu1 %7242, %v8291_v7  }
 0x229   : > { %v8297_v8 = vpop.permute.xlu1 %3540  ;;  %v8375_v25 = vpop.permute.xlu0 %1036 }
 0x22a   : > { %12187 = vst [vmem:[#allocation25_spill] sm:$0xff] %v8297_v8  ;;  %7227 = vset.pattern.permute.xlu0 %v7921_v57  ;;  %7243 = vset.pattern.permute.xlu1 %v7916_v26 }
 0x22b   : > { %2560 = vperm.xlu0 %7227, %v8249_v0   ;;  %1552 = vperm.xlu1 %7243, %v8291_v7  }
 0x22e   : > { %v8303_v9 = vpop.permute.xlu1 %1046  ;;  %v8383_v29 = vpop.permute.xlu0 %1512 }
 0x22f   : > { %7229 = vset.pattern.permute.xlu0 %v7920_v56  ;;  %7246 = vset.pattern.permute.xlu1 %v7918_v53 }
 0x230   : > { %3564 = vperm.xlu0 %7229, %v8249_v0   ;;  %3066 = vperm.xlu1 %7246, %v8291_v7   ;;  %v12235_v0 = vmov 0  }
 0x233   : > { %v8309_v10 = vpop.permute.xlu1 %1520  ;;  %v8391_v31 = vpop.permute.xlu0 %2022 }
 0x234   : > { %7231 = vset.pattern.permute.xlu0 %v7916_v26  ;;  %7247 = vset.pattern.permute.xlu1 %v7920_v56 }
 0x235   : > { %1544 = vperm.xlu0 %7231, %v8259_v1   ;;  %3568 = vperm.xlu1 %7247, %v8291_v7  }
 0x238   : > { %v8315_v11 = vpop.permute.xlu1 %3034  ;;  %v8401_v34 = vpop.permute.xlu0 %2524 }
 0x239   : > { %12188 = vst [vmem:[#allocation26_spill] sm:$0xff] %v8315_v11  ;;  %7232 = vset.pattern.permute.xlu0 %v7919_v54  ;;  %7249 = vset.pattern.permute.xlu1 %v7916_v26 }
 0x23a   : > { %2054 = vperm.xlu0 %7232, %v8259_v1   ;;  %1564 = vperm.xlu1 %7249, %v8317_v12  }
 0x23d   : > { %v8323_v13 = vpop.permute.xlu1 %3536  ;;  %v8411_v36 = vpop.permute.xlu0 %3026 }
 0x23e   : > { %12190 = vst [vmem:[#allocation28_spill] sm:$0xff] %v8323_v13  ;;  %7234 = vset.pattern.permute.xlu0 %v7918_v53  ;;  %7253 = vset.pattern.permute.xlu1 %v7920_v56  ;;  %12200 = vst [vmem:[#allocation38_spill] sm:$0xff] %v8411_v36 }
 0x23f   : > { %3058 = vperm.xlu0 %7234, %v8259_v1   ;;  %3580 = vperm.xlu1 %7253, %v8317_v12  }
 0x242   : > { %v8329_v14 = vpop.permute.xlu1 %1532  ;;  %v8421_v38 = vpop.permute.xlu0 %1524 }
 0x243   : > { %7237 = vset.pattern.permute.xlu0 %v7916_v26  ;;  %7254 = vset.pattern.permute.xlu1 %v11891_v27 }
 0x244   : > { %1556 = vperm.xlu0 %7237, %v8277_v4   ;;  %1096 = vperm.xlu1 %7254, %v8331_v15  }
 0x247   : > { %v8339_v17 = vpop.permute.xlu1 %3046  ;;  %v8429_v40 = vpop.permute.xlu0 %2034 }
 0x248   : > { %12192 = vst [vmem:[#allocation30_spill] sm:$0xff] %v8339_v17  ;;  %7238 = vset.pattern.permute.xlu0 %v7919_v54  ;;  %7257 = vset.pattern.permute.xlu1 %v7921_v57 }
 0x249   : > { %2066 = vperm.xlu0 %7238, %v8277_v4   ;;  %2572 = vperm.xlu1 %7257, %v8331_v15  }
 0x24c   : > { %v8349_v19 = vpop.permute.xlu1 %3548  ;;  %v8437_v43 = vpop.permute.xlu0 %2536 }
 0x24d   : > { %7239 = vset.pattern.permute.xlu0 %v7921_v57  ;;  %7258 = vset.pattern.permute.xlu1 %v7918_v53  ;;  %12193 = vst [vmem:[#allocation31_spill] sm:$0xff] %v8349_v19 }
 0x24e   : > { %2568 = vperm.xlu0 %7239, %v8277_v4   ;;  %3074 = vperm.xlu1 %7258, %v8331_v15  }
 0x251   : > { %v8359_v21 = vpop.permute.xlu1 %1056  ;;  %v8441_v44 = vpop.permute.xlu0 %3038 }
 0x252   : > { %7240 = vset.pattern.permute.xlu0 %v7918_v53  ;;  %7259 = vset.pattern.permute.xlu1 %v7920_v56  ;;  %12203 = vst [vmem:[#allocation41_spill] sm:$0xff] %v8441_v44 }
 0x253   : > { %3070 = vperm.xlu0 %7240, %v8277_v4   ;;  %3576 = vperm.xlu1 %7259, %v8331_v15  }
 0x256   : > { %v8369_v24 = vpop.permute.xlu1 %3544 }
 0x257   : > { %7244 = vset.pattern.permute.xlu0 %v7919_v54  ;;  %7260 = vset.pattern.permute.xlu1 %v11891_v27  ;;  %12196 = vst [vmem:[#allocation34_spill] sm:$0xff] %v8369_v24 }
 0x258   : > { %2062 = vperm.xlu0 %7244, %v8291_v7   ;;  %1111 = vperm.xlu1 %7260, %v8361_v22  }
 0x25b   : > { %v8377_v28 = vpop.permute.xlu1 %1071 }
 0x25c   : > { %7245 = vset.pattern.permute.xlu0 %v7921_v57  ;;  %7263 = vset.pattern.permute.xlu1 %v7921_v57 }
 0x25d   : > { %2564 = vperm.xlu0 %7245, %v8291_v7   ;;  %2584 = vperm.xlu1 %7263, %v8361_v22   ;;  %v413_v7 = vld [vmem:[%s8543_s27 + $0xc] sm:$0xf] }
 0x25e   : > { %vm429_vm5 = vcmp.gt.bf16.partialorder %v413_v7, 0 }
 0x260   : > { %v8385_v30 = vpop.permute.xlu1 %3054 }
 0x261   : > { %7248 = vset.pattern.permute.xlu0 %v11891_v27  ;;  %7264 = vset.pattern.permute.xlu1 %v7918_v53  ;;  %12197 = vst [vmem:[#allocation35_spill] sm:$0xff] %v8385_v30 }
 0x262   : > { %1101 = vperm.xlu0 %7248, %v8317_v12   ;;  %3086 = vperm.xlu1 %7264, %v8361_v22  }
 0x265   : > { %v8397_v33 = vpop.permute.xlu1 %3556 }
 0x266   : > { %7250 = vset.pattern.permute.xlu0 %v7919_v54  ;;  %7265 = vset.pattern.permute.xlu1 %v7920_v56  ;;  %12199 = vst [vmem:[#allocation37_spill] sm:$0xff] %v8397_v33 }
 0x267   : > { %2074 = vperm.xlu0 %7250, %v8317_v12   ;;  %3588 = vperm.xlu1 %7265, %v8361_v22  }
 0x26a   : > { %v8407_v35 = vpop.permute.xlu1 %1066 }
 0x26b   : > { %7251 = vset.pattern.permute.xlu0 %v7921_v57  ;;  %7266 = vset.pattern.permute.xlu1 %v11891_v27 }
 0x26c   : > { %2576 = vperm.xlu0 %7251, %v8317_v12   ;;  %1106 = vperm.xlu1 %7266, %v8393_v32  }
 0x26f   : > { %v8415_v37 = vpop.permute.xlu1 %1536 }
 0x270   : > { %7252 = vset.pattern.permute.xlu0 %v7918_v53  ;;  %7267 = vset.pattern.permute.xlu1 %v7916_v26 }
 0x271   : > { %3078 = vperm.xlu0 %7252, %v8317_v12   ;;  %1568 = vperm.xlu1 %7267, %v8393_v32  }
 0x274   : > { %v8423_v39 = vpop.permute.xlu1 %3050 }
 0x275   : > { %7255 = vset.pattern.permute.xlu0 %v7916_v26  ;;  %7268 = vset.pattern.permute.xlu1 %v7919_v54  ;;  %12201 = vst [vmem:[#allocation39_spill] sm:$0xff] %v8423_v39 }
 0x276   : > { %1560 = vperm.xlu0 %7255, %v8331_v15   ;;  %2078 = vperm.xlu1 %7268, %v8393_v32  }
 0x279   : > { %v8431_v41 = vpop.permute.xlu1 %3552 }
 0x27a   : > { %7256 = vset.pattern.permute.xlu0 %v7919_v54  ;;  %7269 = vset.pattern.permute.xlu1 %v7921_v57  ;;  %12202 = vst [vmem:[#allocation40_spill] sm:$0xff] %v8431_v41  ;;  %v8445_v57 = vpop.permute.xlu0 %2030  ;;  %v6697_v41 = vpop.f32.mrf.mxu1 }
 0x27b   : > { %2070 = vperm.xlu0 %7256, %v8331_v15   ;;  %2580 = vperm.xlu1 %7269, %v8393_v32  }
 0x27c   : > { %v788_v13 = vpop.f32.mrf.mxu1 }
 0x27e   : > { %v8449_v51 = vpop.permute.xlu0 %2532  ;;  %v6700_v5 = vpop.f32.mrf.mxu1 }
 0x27f   : > { %7261 = vset.pattern.permute.xlu0 %v7916_v26  ;;  %7270 = vset.pattern.permute.xlu1 %v7918_v53  ;;  %v8439_v26 = vpop.permute.xlu1 %1548 }
 0x280   : > { %1572 = vperm.xlu0 %7261, %v8361_v22   ;;  %3082 = vperm.xlu1 %7270, %v8393_v32   ;;  %v798_v36 = vpop.f32.mrf.mxu1 }
 0x283   : > { %v8443_v53 = vpop.permute.xlu1 %3062 }
 0x284   : > { %7262 = vset.pattern.permute.xlu0 %v7919_v54  ;;  %7271 = vset.pattern.permute.xlu1 %v7920_v56  ;;  %12204 = vst [vmem:[#allocation42_spill] sm:$0xff] %v8443_v53  ;;  %v8453_v56 = vpop.permute.xlu0 %1061 }
 0x285   : > { %2082 = vperm.xlu0 %7262, %v8361_v22   ;;  %3584 = vperm.xlu1 %7271, %v8393_v32  }
 0x288   : > { %v8447_v27 = vpop.permute.xlu1 %1076  ;;  %v8457_v50 = vpop.permute.xlu0 %2042 }
 0x28c   : > { %v8461_v45 = vpop.permute.xlu0 %2544 }
 0x28d   : > { %v8451_v54 = vpop.permute.xlu1 %2556  ;;  %12207 = vst [vmem:[#allocation45_spill] sm:$0xff] %v8461_v45 }
 0x28e   : > { %12205 = vst [vmem:[#allocation43_spill] sm:$0xff] %v8451_v54  ;;  %v412_v54 = vld [vmem:[%s8543_s27 + $0x8] sm:$0xf] }
 0x28f   : > { %vm428_vm10 = vcmp.gt.bf16.partialorder %v412_v54, 0 }
 0x290   : > { %v8465_v24 = vpop.permute.xlu0 %1528 }
 0x292   : > { %v8455_v49 = vpop.permute.xlu1 %3560 }
 0x293   : > { %12206 = vst [vmem:[#allocation44_spill] sm:$0xff] %v8455_v49 }
 0x294   : > { %v8469_v49 = vpop.permute.xlu0 %2038 }
 0x295   : > { %12209 = vst [vmem:[#allocation47_spill] sm:$0xff] %v8469_v49 }
 0x297   : > { %v8459_v47 = vpop.permute.xlu1 %1091 }
 0x298   : > { %v8473_v53 = vpop.permute.xlu0 %2540 }
 0x29c   : > { %v8463_v46 = vpop.permute.xlu1 %3572  ;;  %v8477_v33 = vpop.permute.xlu0 %3042 }
 0x29d   : > { %12208 = vst [vmem:[#allocation46_spill] sm:$0xff] %v8463_v46  ;;  %12211 = vst [vmem:[#allocation49_spill] sm:$0xff] %v8477_v33 }
 0x2a0   : > { %v8481_v19 = vpop.permute.xlu0 %1540 }
 0x2a1   : > { %v8467_v39 = vpop.permute.xlu1 %1086 }
 0x2a4   : > { %v8485_v30 = vpop.permute.xlu0 %2050 }
 0x2a5   : > { %12213 = vst [vmem:[#allocation51_spill] sm:$0xff] %v8485_v30 }
 0x2a6   : > { %v8471_v11 = vpop.permute.xlu1 %1552 }
 0x2a8   : > { %v8489_v33 = vpop.permute.xlu0 %2552 }
 0x2a9   : > { %12215 = vst [vmem:[#allocation53_spill] sm:$0xff] %v8489_v33  ;;  %v1184_v33 = vsel %vm428_vm10, 65537, %v12235_v0 }
 0x2ab   : > { %v8475_v46 = vpop.permute.xlu1 %3066 }
 0x2ac   : > { %12210 = vst [vmem:[#allocation48_spill] sm:$0xff] %v8475_v46  ;;  %v8493_v17 = vpop.permute.xlu0 %2046 }
 0x2ad   : > { %12216 = vst [vmem:[#allocation54_spill] sm:$0xff] %v8493_v17  ;;  %v1200_v17 = vunpack.c.l.b16 %v1184_v33 }
 0x2ae   : > { %1002 = vxpose.xlu1.b32.start [1/16] (narrow) %v778_v42, 8  ;;  %v6703_v42 = vpop.f32.mrf.mxu1 }
 0x2b0   : > { %v8479_v32 = vpop.permute.xlu1 %3568  ;;  %v8497_v23 = vpop.permute.xlu0 %2548 }
 0x2b1   : > { %12212 = vst [vmem:[#allocation50_spill] sm:$0xff] %v8479_v32 }
 0x2b2   : > { %1003 = vxpose.xlu1.b32.cont [2/16] (narrow) %v6694_v48, 8  ;;  %v808_v48 = vpop.f32.mrf.mxu1 }
 0x2b4   : > { %v8501_v44 = vpop.permute.xlu0 %1081 }
 0x2b5   : > { %v8483_v12 = vpop.permute.xlu1 %1564 }
 0x2b6   : > { %1004 = vxpose.xlu1.b32.cont [3/16] (narrow) %v788_v13, 8  ;;  %v6706_v13 = vpop.f32.mrf.mxu1 }
 0x2ba   : > { %1005 = vxpose.xlu1.b32.cont [4/16] (narrow) %v6697_v41, 8  ;;  %v818_v41 = vpop.f32.mrf.mxu1  ;;  %v8487_v46 = vpop.permute.xlu1 %3580 }
 0x2bb   : > { %12214 = vst [vmem:[#allocation52_spill] sm:$0xff] %v8487_v46 }
 0x2be   : > { %1006 = vxpose.xlu1.b32.cont [5/16] (narrow) %v798_v36, 8  ;;  %v6709_v36 = vpop.f32.mrf.mxu1 }
 0x2bf   : > { %v8491_v32 = vpop.permute.xlu1 %1096 }
 0x2c2   : > { %1007 = vxpose.xlu1.b32.cont [6/16] (narrow) %v6700_v5, 8  ;;  %v828_v5 = vpop.f32.mrf.mxu1 }
 0x2c4   : > { %v8495_v8 = vpop.permute.xlu1 %2572 }
 0x2c5   : > { %12217 = vst [vmem:[#allocation55_spill] sm:$0xff] %v8495_v8 }
 0x2c6   : > { %1008 = vxpose.xlu1.b32.cont [7/16] (narrow) %v808_v48, 8  ;;  %v6712_v48 = vpop.f32.mrf.mxu1 }
 0x2c9   : > { %v8499_v46 = vpop.permute.xlu1 %3074 }
 0x2ca   : > { %1009 = vxpose.xlu1.b32.cont [8/16] (narrow) %v6703_v42, 8  ;;  %v838_v42 = vpop.f32.mrf.mxu1  ;;  %12218 = vst [vmem:[#allocation56_spill] sm:$0xff] %v8499_v46 }
 0x2ce   : > { %1010 = vxpose.xlu1.b32.cont [9/16] (narrow) %v818_v41, 8  ;;  %v6715_v41 = vpop.f32.mrf.mxu1 }
 0x2d2   : > { %1011 = vxpose.xlu1.b32.cont [10/16] (narrow) %v6706_v13, 8  ;;  %v848_v13 = vpop.f32.mrf.mxu1 }
 0x2d6   : > { %1012 = vxpose.xlu1.b32.cont [11/16] (narrow) %v828_v5, 8  ;;  %v8503_v5 = vpop.permute.xlu1 %3576 }
 0x2d7   : > { %12219 = vst [vmem:[#allocation57_spill] sm:$0xff] %v8503_v5 }
 0x2da   : > { %1013 = vxpose.xlu1.b32.cont [12/16] (narrow) %v6709_v36, 8  ;;  %v8505_v36 = vpop.permute.xlu0 %2058  ;;  %v8507_v3 = vpop.permute.xlu1 %1111 }
 0x2db   : > { %12220 = vst [vmem:[#allocation58_spill] sm:$0xff] %v8505_v36 }
 0x2de   : > { %1014 = vxpose.xlu1.b32.cont [13/16] (narrow) %v838_v42, 8  ;;  %v8509_v22 = vpop.permute.xlu0 %2560  ;;  %v8511_v42 = vpop.permute.xlu1 %2584 }
 0x2df   : > { %12221 = vst [vmem:[#allocation59_spill] sm:$0xff] %v8509_v22  ;;  %12222 = vst [vmem:[#allocation60_spill] sm:$0xff] %v8511_v42  ;;  %v11921_v22 = vmov 7  }
 0x2e2   : > { %1015 = vxpose.xlu1.b32.cont [14/16] (narrow) %v6712_v48, 8  ;;  %v8513_v8 = vpop.permute.xlu0 %3564  ;;  %v8515_v48 = vpop.permute.xlu1 %3086 }
 0x2e3   : > { %12223 = vst [vmem:[#allocation61_spill] sm:$0xff] %v8513_v8  ;;  %12224 = vst [vmem:[#allocation62_spill] sm:$0xff] %v8515_v48 }
 0x2e6   : > { %1016 = vxpose.xlu1.b32.cont [15/16] (narrow) %v848_v13, 8  ;;  %v8517_v46 = vpop.permute.xlu0 %1544  ;;  %v8519_v13 = vpop.permute.xlu1 %3588 }
 0x2e7   : > { %12225 = vst [vmem:[#allocation63_spill] sm:$0xff] %v8519_v13  ;;  %v411_v13 = vld [vmem:[%s8543_s27 + $0x4] sm:$0xf] }
 0x2e8   : > { %vm427_vm3 = vcmp.gt.bf16.partialorder %v411_v13, 0 }
 0x2e9   : > { %v1183_v1 = vsel %vm427_vm3, 65537, %v12235_v0 }
 0x2ea   : > { %1017 = vxpose.xlu1.b32.end [16/16] (narrow) %v6715_v41, 8  ;;  %v8521_v60 = vpop.permute.xlu0 %2054  ;;  %v8523_v41 = vpop.permute.xlu1 %1106  ;;  %v1199_v13 = vunpack.c.l.b16 %v1183_v1  ;;  %v12238_v1 = vmov 0 }
 0x2eb   : > { %12226 = vst [vmem:[#allocation64_spill] sm:$0xff] %v8521_v60  ;;  %v410_v60 = vld [vmem:[%s8543_s27] sm:$0xf] }
 0x2ec   : > { %vm426_vm4 = vcmp.gt.bf16.partialorder %v410_v60, 0  ;;  %vm8577_vm7 = vcmp.ne.s32.totalorder %v1199_v13, 0 }
 0x2ed   : > { %v1182_v62 = vsel %vm426_vm4, 65537, %v12235_v0  ;;  %v12239_v1 = vsel %vm8577_vm7, 4294967295, %v12238_v1 }
 0x2ee   : > { %v8525_v5 = vpop.permute.xlu0 %3058  ;;  %v8527_v15 = vpop.permute.xlu1 %1568  ;;  %v1198_v60 = vunpack.c.l.b16 %v1182_v62  ;;  %12240 = vst [vmem:[#allocation75_spill] sm:$0xff] %v12239_v1  ;;  %v12241_v62 = vmov 0 }
 0x2ef   : > { %12227 = vst [vmem:[#allocation65_spill] sm:$0xff] %v8525_v5 }
 0x2f0   : > { %vm8581_vm8 = vcmp.ne.s32.totalorder %v1198_v60, 0 }
 0x2f1   : > { %v12242_v62 = vsel %vm8581_vm8, 4294967295, %v12241_v62 }
 0x2f2   : > { %v8530_v42 = vpop.permute.xlu0 %1556  ;;  %v8532_v8 = vpop.permute.xlu1 %2078  ;;  %12243 = vst [vmem:[#allocation76_spill] sm:$0xff] %v12242_v62 }
 0x2f3   : > { %12228 = vst [vmem:[#allocation66_spill] sm:$0xff] %v8532_v8 }
 0x2f6   : > { %v8534_v48 = vpop.permute.xlu0 %2066  ;;  %v8536_v4 = vpop.permute.xlu1 %2580 }
 0x2f7   : > { %12229 = vst [vmem:[#allocation67_spill] sm:$0xff] %v8534_v48  ;;  %12230 = vst [vmem:[#allocation68_spill] sm:$0xff] %v8536_v4 }
 0x2fa   : > { %v8545_v5 = vpop.permute.xlu0 %2568 }
 0x2fb   : > { %12231 = vst [vmem:[#allocation69_spill] sm:$0xff] %v8545_v5  ;;  %v8550_v8 = vpop.permute.xlu1 %3082  ;;  %v1185_v5 = vsel %vm429_vm5, 65537, %v12235_v0 }
 0x2fc   : > { %12232 = vst [vmem:[#allocation70_spill] sm:$0xff] %v8550_v8  ;;  %v1201_v7 = vunpack.c.l.b16 %v1185_v5  ;;  %v12244_v5 = vmov 0 }
 0x2fe   : > { %v8554_v48 = vpop.permute.xlu0 %3070  ;;  %vm8585_vm9 = vcmp.ne.s32.totalorder %v1201_v7, 0 }
 0x2ff   : > { %12234 = vst [vmem:[#allocation72_spill] sm:$0xff] %v8554_v48  ;;  %v12245_v5 = vsel %vm8585_vm9, 4294967295, %v12244_v5 }
 0x300   : > { %v8559_v63 = vpop.permute.xlu1 %3584  ;;  %12246 = vst [vmem:[#allocation77_spill] sm:$0xff] %v12245_v5 }
 0x301   : > { %12236 = vst [vmem:[#allocation73_spill] sm:$0xff] %v8559_v63 }
 0x302   : > { %v8564_v58 = vpop.permute.xlu0 %2062 }
 0x303   : > { %12237 = vst [vmem:[#allocation74_spill] sm:$0xff] %v8564_v58 }
 0x306   : > { %v8603_v55 = vpop.permute.xlu0 %2564 }
 0x307   : > { %12247 = vst [vmem:[#allocation78_spill] sm:$0xff] %v8603_v55 }
 0x308   : > { %7272 = vset.pattern.permute.xlu1 %v11921_v22  ;;  %v1114_v22 = vlaneseq }
 0x30a   : > { %v8552_v4 = vshrl.u32 %v1114_v22, 7  ;;  %v415_v22 = vld [vmem:[%s8543_s27 + $0x14] sm:$0xf]  ;;  %v8623_v49 = vpop.permute.xlu0 %1101 }
 0x30b   : > { %vm431_vm6 = vcmp.gt.bf16.partialorder %v415_v22, 0 }
 0x30c   : > { %12233 = vst [vmem:[#allocation71_spill] sm:$0xff] %v8552_v4  ;;  %v11939_v61 = vsub.s32 0, %v8552_v4  ;;  %v1577_v8 = vsub.s32 1, %v8552_v4  ;;  %v1187_v52 = vsel %vm431_vm6, 65537, %v12235_v0 }
 0x32a   : > { %v8566_v48 = vpop.trf.xlu1 }
 0x32b   : > { %v8571_v59 = vrot.slane %v8566_v48, %v11939_v61  ;;  %v8574_v63 = vrot.slane %v8566_v48, %v1577_v8 }
 0x32d   : > { %v1119_v61 = vadd.f32 %v8571_v59, %v8337_v16  ;;  %v1118_v8 = vadd.f32 %v8571_v59, %v8375_v25  ;;  %v1580_v13 = vadd.f32 %v8574_v63, %v8269_v2  ;;  %v1121_v22 = vadd.f32 %v8571_v59, %v8289_v6  ;;  %v414_v16 = vld [vmem:[%s8543_s27 + $0x10] sm:$0xf] }
 0x32e   : > { %v1582_v60 = vadd.f32 %v8574_v63, %v8421_v38  ;;  %v1579_v7 = vadd.f32 %v8574_v63, %v8383_v29  ;;  %vm430_vm15 = vcmp.gt.bf16.partialorder %v414_v16, 0  ;;  %v417_v29 = vld [vmem:[%s8543_s27 + $0x1c] sm:$0xf]  ;;  %v1584_v55 = vadd.f32 %v8574_v63, %v8329_v14 }
 0x32f   : > { %vm1135_vm11 = vcmp.gt.f32.partialorder %v1119_v61, 0.0  ;;  %v1151_v58 = vmul.f32 0.2, %v1119_v61  ;;  %vm1134_vm12 = vcmp.gt.f32.partialorder %v1118_v8, 0.0  ;;  %v1150_v25 = vmul.f32 0.2, %v1118_v8 }
 0x330   : > { %vm1596_vm13 = vcmp.gt.f32.partialorder %v1580_v13, 0.0  ;;  %v1612_v2 = vmul.f32 0.2, %v1580_v13  ;;  %vm1137_vm14 = vcmp.gt.f32.partialorder %v1121_v22, 0.0  ;;  %v1153_v6 = vmul.f32 0.2, %v1121_v22 }
 0x331   : > { %v1167_v36 = vsel %vm1135_vm11, %v1119_v61, %v1151_v58  ;;  %v1166_v38 = vsel %vm1134_vm12, %v1118_v8, %v1150_v25  ;;  %v1614_v30 = vmul.f32 0.2, %v1582_v60  ;;  %vm1598_vm0 = vcmp.gt.f32.partialorder %v1582_v60, 0.0 }
 0x332   : > { %v8609_v54 = vsel %vm8577_vm7, %v1167_v36, -1e+30  ;;  %v8613_v45 = vsel %vm8581_vm8, %v1166_v38, -1e+30  ;;  %v1628_v58 = vsel %vm1596_vm13, %v1580_v13, %v1612_v2  ;;  %v1169_v61 = vsel %vm1137_vm14, %v1121_v22, %v1153_v6 }
 0x333   : > { %12248 = vst [vmem:[#allocation79_spill] sm:$0xff] %v8613_v45  ;;  %1248 = vmax.xlane.f32.xlu1 %v8609_v54  ;;  %1246 = vmax.xlane.f32.xlu0 %v8613_v45  ;;  %v1120_v8 = vadd.f32 %v8571_v59, %v8303_v9  ;;  %vm1595_vm3 = vcmp.gt.f32.partialorder %v1579_v7, 0.0  ;;  %v1611_v36 = vmul.f32 0.2, %v1579_v7  ;;  %v1203_v25 = vunpack.c.l.b16 %v1187_v52  ;;  %v8665_v45 = vpop.permute.xlu0 %2074 }
 0x334   : > { %v1186_v38 = vsel %vm430_vm15, 65537, %v12235_v0  ;;  %vm433_vm4 = vcmp.gt.bf16.partialorder %v417_v29, 0  ;;  %v8627_v14 = vsel %vm8577_vm7, %v1628_v58, -1e+30  ;;  %v8631_v13 = vsel %vm8585_vm9, %v1169_v61, -1e+30 }
 0x335   : > { %12249 = vst [vmem:[#allocation80_spill] sm:$0xff] %v8627_v14  ;;  %v1630_v9 = vsel %vm1598_vm0, %v1582_v60, %v1614_v30  ;;  %v1122_v52 = vadd.f32 %v8571_v59, %v8359_v21  ;;  %v1627_v33 = vsel %vm1595_vm3, %v1579_v7, %v1611_v36  ;;  %v1616_v22 = vmul.f32 0.2, %v1584_v55  ;;  %v419_v58 = vld [vmem:[%s8543_s27 + $0x24] sm:$0xf] }
 0x336   : > { %v1152_v16 = vmul.f32 0.2, %v1120_v8  ;;  %v1581_v2 = vadd.f32 %v8574_v63, %v8309_v10  ;;  %vm8639_vm5 = vcmp.ne.s32.totalorder %v1203_v25, 0  ;;  %v12250_v6 = vmov 0  ;;  %v416_v25 = vld [vmem:[%s8543_s27 + $0x18] sm:$0xf] }
 0x337   : > { %1661 = vmax.xlane.f32.xlu1 %v8627_v14  ;;  %1252 = vmax.xlane.f32.xlu0 %v8631_v13  ;;  %v12251_v6 = vsel %vm8639_vm5, 4294967295, %v12250_v6  ;;  %vm1600_vm6 = vcmp.gt.f32.partialorder %v1584_v55, 0.0  ;;  %vm1136_vm10 = vcmp.gt.f32.partialorder %v1120_v8, 0.0  ;;  %v8645_v21 = vsel %vm8585_vm9, %v1630_v9, -1e+30 }
 0x338   : > { %12252 = vst [vmem:[#allocation81_spill] sm:$0xff] %v12251_v6  ;;  %12253 = vst [vmem:[#allocation82_spill] sm:$0xff] %v8645_v21  ;;  %vm8647_vm11 = vcmp.ne.s32.totalorder %v1200_v17, 0  ;;  %v12254_v30 = vmov 0  ;;  %v1202_v60 = vunpack.c.l.b16 %v1186_v38  ;;  %v1189_v7 = vsel %vm433_vm4, 65537, %v12235_v0 }
 0x339   : > { %v12255_v30 = vsel %vm8647_vm11, 4294967295, %v12254_v30  ;;  %v8656_v10 = vsel %vm8581_vm8, %v1627_v33, -1e+30  ;;  %v1154_v61 = vmul.f32 0.2, %v1122_v52  ;;  %v1125_v36 = vadd.f32 %v8571_v59, %v8377_v28 }
 0x33a   : > { %12256 = vst [vmem:[#allocation83_spill] sm:$0xff] %v12255_v30  ;;  %12257 = vst [vmem:[#allocation84_spill] sm:$0xff] %v8656_v10  ;;  %v1123_v17 = vadd.f32 %v8571_v59, %v8453_v56  ;;  %v1632_v29 = vsel %vm1600_vm6, %v1584_v55, %v1616_v22  ;;  %v1168_v38 = vsel %vm1136_vm10, %v1120_v8, %v1152_v16  ;;  %vm1138_vm12 = vcmp.gt.f32.partialorder %v1122_v52, 0.0  ;;  %v418_v56 = vld [vmem:[%s8543_s27 + $0x20] sm:$0xf] }
 0x33b   : > { %1665 = vmax.xlane.f32.xlu1 %v8645_v21  ;;  %1659 = vmax.xlane.f32.xlu0 %v8656_v10  ;;  %v1613_v9 = vmul.f32 0.2, %v1581_v2  ;;  %vm1597_vm13 = vcmp.gt.f32.partialorder %v1581_v2, 0.0  ;;  %v1205_v33 = vunpack.c.l.b16 %v1189_v7  ;;  %vm8667_vm14 = vcmp.ne.s32.totalorder %v1202_v60, 0 }
 0x33c   : > { %v12258_v14 = vmov 0  ;;  %v1586_v28 = vadd.f32 %v8574_v63, %v8481_v19  ;;  %vm435_vm15 = vcmp.gt.bf16.partialorder %v419_v58, 0  ;;  %vm432_vm0 = vcmp.gt.bf16.partialorder %v416_v25, 0 }
 0x33d   : > { %v12259_v14 = vsel %vm8667_vm14, 4294967295, %v12258_v14  ;;  %v8676_v55 = vsel %vm8639_vm5, %v1632_v29, -1e+30  ;;  %v8680_v8 = vsel %vm8647_vm11, %v1168_v38, -1e+30  ;;  %v1170_v22 = vsel %vm1138_vm12, %v1122_v52, %v1154_v61  ;;  %v8698_v38 = vpop.permute.xlu0 %2576 }
 0x33e   : > { %12260 = vst [vmem:[#allocation85_spill] sm:$0xff] %v12259_v14  ;;  %12261 = vst [vmem:[#allocation86_spill] sm:$0xff] %v8676_v55  ;;  %v1157_v16 = vmul.f32 0.2, %v1125_v36  ;;  %v1629_v60 = vsel %vm1597_vm13, %v1581_v2, %v1613_v9  ;;  %vm1141_vm3 = vcmp.gt.f32.partialorder %v1125_v36, 0.0  ;;  %v1583_v7 = vadd.f32 %v8574_v63, %v8465_v24 }
 0x33f   : > { %1669 = vmax.xlane.f32.xlu1 %v8676_v55  ;;  %1250 = vmax.xlane.f32.xlu0 %v8680_v8  ;;  %v1155_v19 = vmul.f32 0.2, %v1123_v17  ;;  %vm8686_vm4 = vcmp.ne.s32.totalorder %v1205_v33, 0  ;;  %v12262_v29 = vmov 0  ;;  %vm1139_vm6 = vcmp.gt.f32.partialorder %v1123_v17, 0.0 }
 0x340   : > { %v12263_v29 = vsel %vm8686_vm4, 4294967295, %v12262_v29  ;;  %v8692_v52 = vsel %vm8667_vm14, %v1170_v22, -1e+30  ;;  %v1191_v61 = vsel %vm435_vm15, 65537, %v12235_v0  ;;  %v1188_v2 = vsel %vm432_vm0, 65537, %v12235_v0 }
 0x341   : > { %12264 = vst [vmem:[#allocation87_spill] sm:$0xff] %v12263_v29  ;;  %12265 = vst [vmem:[#allocation88_spill] sm:$0xff] %v8692_v52  ;;  %vm434_vm10 = vcmp.gt.bf16.partialorder %v418_v56, 0  ;;  %v8702_v24 = vsel %vm8647_vm11, %v1629_v60, -1e+30  ;;  %v1173_v9 = vsel %vm1141_vm3, %v1125_v36, %v1157_v16  ;;  %v1127_v10 = vadd.f32 %v8571_v59, %v8501_v44 }
 0x342   : > { %12266 = vst [vmem:[#allocation89_spill] sm:$0xff] %v8702_v24  ;;  %v1618_v33 = vmul.f32 0.2, %v1586_v28  ;;  %v420_v22 = vld [vmem:[%s8543_s27 + $0x28] sm:$0xf]  ;;  %v1171_v58 = vsel %vm1139_vm6, %v1123_v17, %v1155_v19  ;;  %vm1602_vm12 = vcmp.gt.f32.partialorder %v1586_v28, 0.0  ;;  %v1124_v55 = vadd.f32 %v8571_v59, %v8407_v35 }
 0x343   : > { %1254 = vmax.xlane.f32.xlu1 %v8692_v52  ;;  %1663 = vmax.xlane.f32.xlu0 %v8702_v24  ;;  %v1615_v25 = vmul.f32 0.2, %v1583_v7  ;;  %vm1599_vm13 = vcmp.gt.f32.partialorder %v1583_v7, 0.0  ;;  %v1207_v60 = vunpack.c.l.b16 %v1191_v61  ;;  %v8713_v36 = vsel %vm8686_vm4, %v1173_v9, -1e+30 }
 0x344   : > { %12267 = vst [vmem:[#allocation90_spill] sm:$0xff] %v8713_v36  ;;  %v1204_v16 = vunpack.c.l.b16 %v1188_v2  ;;  %v1190_v44 = vsel %vm434_vm10, 65537, %v12235_v0  ;;  %vm436_vm15 = vcmp.gt.bf16.partialorder %v420_v22, 0  ;;  %v8719_v52 = vsel %vm8639_vm5, %v1171_v58, -1e+30  ;;  %v8728_v58 = vpop.permute.xlu0 %3078 }
 0x345   : > { %12268 = vst [vmem:[#allocation91_spill] sm:$0xff] %v8719_v52  ;;  %v1634_v17 = vsel %vm1602_vm12, %v1586_v28, %v1618_v33  ;;  %v1159_v19 = vmul.f32 0.2, %v1127_v10  ;;  %v1587_v35 = vadd.f32 %v8574_v63, %v8517_v46  ;;  %v423_v61 = vld [vmem:[%s8543_s27 + $0x34] sm:$0xf]  ;;  %v1631_v2 = vsel %vm1599_vm13, %v1583_v7, %v1615_v25 }
 0x346   : > { %vm1143_vm0 = vcmp.gt.f32.partialorder %v1127_v10, 0.0  ;;  %v1156_v56 = vmul.f32 0.2, %v1124_v55  ;;  %v1585_v9 = vadd.f32 %v8574_v63, %v8415_v37  ;;  %vm8730_vm3 = vcmp.ne.s32.totalorder %v1207_v60, 0  ;;  %v422_v37 = vld [vmem:[%s8543_s27 + $0x30] sm:$0xf] }
 0x347   : > { %1260 = vmax.xlane.f32.xlu1 %v8713_v36  ;;  %1256 = vmax.xlane.f32.xlu0 %v8719_v52  ;;  %v12269_v28 = vmov 0  ;;  %vm1140_vm6 = vcmp.gt.f32.partialorder %v1124_v55, 0.0  ;;  %v1206_v46 = vunpack.c.l.b16 %v1190_v44  ;;  %v1192_v33 = vsel %vm436_vm15, 65537, %v12235_v0  ;;  %v421_v44 = vld [vmem:[%s8543_s27 + $0x2c] sm:$0xf] }
 0x348   : > { %v12270_v28 = vsel %vm8730_vm3, 4294967295, %v12269_v28  ;;  %v8738_v7 = vsel %vm8686_vm4, %v1634_v17, -1e+30  ;;  %vm8740_vm10 = vcmp.ne.s32.totalorder %v1204_v16, 0  ;;  %v12273_v25 = vmov 0 }
 0x349   : > { %12271 = vst [vmem:[#allocation92_spill] sm:$0xff] %v12270_v28  ;;  %12272 = vst [vmem:[#allocation93_spill] sm:$0xff] %v8738_v7  ;;  %v12274_v25 = vsel %vm8740_vm10, 4294967295, %v12273_v25  ;;  %vm439_vm12 = vcmp.gt.bf16.partialorder %v423_v61, 0  ;;  %v8747_v60 = vsel %vm8667_vm14, %v1631_v2, -1e+30  ;;  %v1175_v36 = vsel %vm1143_vm0, %v1127_v10, %v1159_v19 }
 0x34a   : > { %12275 = vst [vmem:[#allocation94_spill] sm:$0xff] %v12274_v25  ;;  %12276 = vst [vmem:[#allocation95_spill] sm:$0xff] %v8747_v60  ;;  %v1619_v52 = vmul.f32 0.2, %v1587_v35  ;;  %v1589_v22 = vadd.f32 %v8574_v63, %v8471_v11  ;;  %v1172_v16 = vsel %vm1140_vm6, %v1124_v55, %v1156_v56  ;;  %vm1603_vm13 = vcmp.gt.f32.partialorder %v1587_v35, 0.0  ;;  %v8766_v55 = vpop.permute.xlu0 %1560 }
 0x34b   : > { %1673 = vmax.xlane.f32.xlu1 %v8738_v7  ;;  %1667 = vmax.xlane.f32.xlu0 %v8747_v60  ;;  %v1617_v17 = vmul.f32 0.2, %v1585_v9  ;;  %v1588_v21 = vadd.f32 %v8574_v63, %v8439_v26  ;;  %vm8756_vm15 = vcmp.ne.s32.totalorder %v1206_v46, 0  ;;  %v12277_v2 = vmov 0  ;;  %v425_v60 = vld [vmem:[%s8543_s27 + $0x3c] sm:$0xf] }
 0x34c   : > { %v12278_v2 = vsel %vm8756_vm15, 4294967295, %v12277_v2  ;;  %vm1601_vm0 = vcmp.gt.f32.partialorder %v1585_v9, 0.0  ;;  %v1208_v10 = vunpack.c.l.b16 %v1192_v33  ;;  %v8762_v11 = vsel %vm8730_vm3, %v1175_v36, -1e+30 }
 0x34d   : > { %12279 = vst [vmem:[#allocation96_spill] sm:$0xff] %v12278_v2  ;;  %12280 = vst [vmem:[#allocation97_spill] sm:$0xff] %v8762_v11  ;;  %v1195_v19 = vsel %vm439_vm12, 65537, %v12235_v0  ;;  %vm438_vm6 = vcmp.gt.bf16.partialorder %v422_v37, 0  ;;  %vm437_vm2 = vcmp.gt.bf16.partialorder %v421_v44, 0  ;;  %v1635_v56 = vsel %vm1603_vm13, %v1587_v35, %v1619_v52 }
 0x34e   : > { %v8770_v26 = vsel %vm8740_vm10, %v1172_v16, -1e+30  ;;  %v1621_v46 = vmul.f32 0.2, %v1589_v22  ;;  %v1592_v33 = vadd.f32 %v8574_v63, %v8483_v12  ;;  %v1633_v36 = vsel %vm1601_vm0, %v1585_v9, %v1617_v17 }
 0x34f   : > { %12281 = vst [vmem:[#allocation98_spill] sm:$0xff] %v8770_v26  ;;  %1264 = vmax.xlane.f32.xlu1 %v8762_v11  ;;  %1258 = vmax.xlane.f32.xlu0 %v8770_v26  ;;  %vm1605_vm12 = vcmp.gt.f32.partialorder %v1589_v22, 0.0  ;;  %v1620_v61 = vmul.f32 0.2, %v1588_v21  ;;  %v1126_v7 = vadd.f32 %v8571_v59, %v8447_v27  ;;  %vm8779_vm1 = vcmp.ne.s32.totalorder %v1208_v10, 0 }
 0x350   : > { %v12282_v24 = vmov 0  ;;  %vm1604_vm13 = vcmp.gt.f32.partialorder %v1588_v21, 0.0  ;;  %v1211_v52 = vunpack.c.l.b16 %v1195_v19  ;;  %v8785_v12 = vsel %vm8756_vm15, %v1635_v56, -1e+30  ;;  %v8801_v56 = vpop.permute.xlu0 %2070 }
 0x351   : > { %v12283_v24 = vsel %vm8779_vm1, 4294967295, %v12282_v24  ;;  %12285 = vst [vmem:[#allocation100_spill] sm:$0xff] %v8785_v12  ;;  %v1194_v35 = vsel %vm438_vm6, 65537, %v12235_v0  ;;  %v1193_v9 = vsel %vm437_vm2, 65537, %v12235_v0  ;;  %vm441_vm0 = vcmp.gt.bf16.partialorder %v425_v60, 0 }
 0x352   : > { %12284 = vst [vmem:[#allocation99_spill] sm:$0xff] %v12283_v24  ;;  %v8793_v27 = vsel %vm8740_vm10, %v1633_v36, -1e+30  ;;  %v1637_v16 = vsel %vm1605_vm12, %v1589_v22, %v1621_v46  ;;  %v1624_v17 = vmul.f32 0.2, %v1592_v33  ;;  %v1130_v10 = vadd.f32 %v8571_v59, %v8491_v32 }
 0x353   : > { %12286 = vst [vmem:[#allocation101_spill] sm:$0xff] %v8793_v27  ;;  %1675 = vmax.xlane.f32.xlu1 %v8785_v12  ;;  %1671 = vmax.xlane.f32.xlu0 %v8793_v27  ;;  %v1636_v19 = vsel %vm1604_vm13, %v1588_v21, %v1620_v61  ;;  %vm1608_vm4 = vcmp.gt.f32.partialorder %v1592_v33, 0.0  ;;  %v1158_v37 = vmul.f32 0.2, %v1126_v7  ;;  %v1129_v44 = vadd.f32 %v8571_v59, %v8459_v47 }
 0x354   : > { %v2087_v36 = vsub.s32 2, %v8552_v4  ;;  %vm1142_vm2 = vcmp.gt.f32.partialorder %v1126_v7, 0.0  ;;  %v1210_v22 = vunpack.c.l.b16 %v1194_v35  ;;  %v8806_v46 = vsel %vm8779_vm1, %v1637_v16, -1e+30 }
 0x355   : > { %12287 = vst [vmem:[#allocation102_spill] sm:$0xff] %v8806_v46  ;;  %vm8808_vm6 = vcmp.ne.s32.totalorder %v1211_v52, 0  ;;  %v12288_v32 = vmov 0  ;;  %v1209_v21 = vunpack.c.l.b16 %v1193_v9  ;;  %v1197_v61 = vsel %vm441_vm0, 65537, %v12235_v0 }
 0x356   : > { %v12289_v32 = vsel %vm8808_vm6, 4294967295, %v12288_v32  ;;  %v8816_v47 = vsel %vm8730_vm3, %v1636_v19, -1e+30  ;;  %v1640_v12 = vsel %vm1608_vm4, %v1592_v33, %v1624_v17  ;;  %v1162_v27 = vmul.f32 0.2, %v1130_v10  ;;  %v1573_v19 = vpop.permute.xlu0 %1572 }
 0x357   : > { %12290 = vst [vmem:[#allocation103_spill] sm:$0xff] %v12289_v32  ;;  %12291 = vst [vmem:[#allocation104_spill] sm:$0xff] %v8816_v47  ;;  %v1133_v35 = vadd.f32 %v8571_v59, %v8507_v3  ;;  %1679 = vmax.xlane.f32.xlu1 %v8806_v46  ;;  %1677 = vmax.xlane.f32.xlu0 %v8816_v47  ;;  %v1174_v52 = vsel %vm1142_vm2, %v1126_v7, %v1158_v37  ;;  %vm1146_vm12 = vcmp.gt.f32.partialorder %v1130_v10, 0.0  ;;  %v12292_v9 = vmov 0 }
 0x358   : > { %v1161_v16 = vmul.f32 0.2, %v1129_v44  ;;  %v1590_v60 = vadd.f32 %v8574_v63, %v8530_v42  ;;  %vm8824_vm13 = vcmp.ne.s32.totalorder %v1210_v22, 0  ;;  %vm1145_vm0 = vcmp.gt.f32.partialorder %v1129_v44, 0.0 }
 0x359   : > { %v12293_v9 = vsel %vm8824_vm13, 4294967295, %v12292_v9  ;;  %v8829_v33 = vrot.slane %v8566_v48, %v2087_v36  ;;  %v8833_v3 = vsel %vm8808_vm6, %v1640_v12, -1e+30  ;;  %vm8835_vm4 = vcmp.ne.s32.totalorder %v1209_v21, 0 }
 0x35a   : > { %12294 = vst [vmem:[#allocation105_spill] sm:$0xff] %v12293_v9  ;;  %12295 = vst [vmem:[#allocation106_spill] sm:$0xff] %v8833_v3  ;;  %v12296_v17 = vmov 0  ;;  %v1213_v7 = vunpack.c.l.b16 %v1197_v61  ;;  %v8841_v42 = vsel %vm8756_vm15, %v1174_v52, -1e+30  ;;  %v1178_v37 = vsel %vm1146_vm12, %v1130_v10, %v1162_v27 }
 0x35b   : > { %v12297_v17 = vsel %vm8835_vm4, 4294967295, %v12296_v17  ;;  %vm1149_vm2 = vcmp.gt.f32.partialorder %v1133_v35, 0.0  ;;  %v1165_v22 = vmul.f32 0.2, %v1133_v35  ;;  %1685 = vmax.xlane.f32.xlu1 %v8833_v3  ;;  %1262 = vmax.xlane.f32.xlu0 %v8841_v42  ;;  %v1177_v12 = vsel %vm1145_vm0, %v1129_v44, %v1161_v16 }
 0x35c   : > { %12298 = vst [vmem:[#allocation107_spill] sm:$0xff] %v12297_v17  ;;  %v1622_v36 = vmul.f32 0.2, %v1590_v60  ;;  %v1594_v21 = vadd.f32 %v8574_v63, %v1573_v19  ;;  %v1128_v61 = vadd.f32 %v8571_v59, %v8467_v39  ;;  %vm1606_vm3 = vcmp.gt.f32.partialorder %v1590_v60, 0.0  ;;  %v424_v39 = vld [vmem:[%s8543_s27 + $0x38] sm:$0xf] }
 0x35d   : > { %v2589_v46 = vsub.s32 3, %v8552_v4  ;;  %vm8849_vm15 = vcmp.ne.s32.totalorder %v1213_v7, 0  ;;  %v12299_v52 = vmov 0  ;;  %v8855_v27 = vsel %vm8824_vm13, %v1178_v37, -1e+30 }
 0x35e   : > { %v12300_v52 = vsel %vm8849_vm15, 4294967295, %v12299_v52  ;;  %12302 = vst [vmem:[#allocation109_spill] sm:$0xff] %v8855_v27  ;;  %v8859_v10 = vsel %vm8835_vm4, %v1177_v12, -1e+30  ;;  %v1181_v44 = vsel %vm1149_vm2, %v1133_v35, %v1165_v22  ;;  %v2089_v16 = vadd.f32 %v8829_v33, %v8391_v31 }
 0x35f   : > { %12301 = vst [vmem:[#allocation108_spill] sm:$0xff] %v12300_v52  ;;  %12303 = vst [vmem:[#allocation110_spill] sm:$0xff] %v8859_v10  ;;  %1270 = vmax.xlane.f32.xlu1 %v8855_v27  ;;  %1268 = vmax.xlane.f32.xlu0 %v8859_v10  ;;  %v1638_v7 = vsel %vm1606_vm3, %v1590_v60, %v1622_v36  ;;  %v1626_v19 = vmul.f32 0.2, %v1594_v21  ;;  %v1160_v3 = vmul.f32 0.2, %v1128_v61 }
 0x360   : > { %v1131_v37 = vadd.f32 %v8571_v59, %v8623_v49  ;;  %vm1610_vm12 = vcmp.gt.f32.partialorder %v1594_v21, 0.0  ;;  %vm1144_vm0 = vcmp.gt.f32.partialorder %v1128_v61, 0.0  ;;  %v8869_v12 = vrot.slane %v8566_v48, %v2589_v46 }
 0x361   : > { %v8873_v35 = vsel %vm8849_vm15, %v1181_v44, -1e+30  ;;  %vm440_vm2 = vcmp.gt.bf16.partialorder %v424_v39, 0  ;;  %v8877_v31 = vsel %vm8835_vm4, %v1638_v7, -1e+30  ;;  %vm2105_vm3 = vcmp.gt.f32.partialorder %v2089_v16, 0.0 }
 0x362   : > { %12304 = vst [vmem:[#allocation111_spill] sm:$0xff] %v8873_v35  ;;  %12305 = vst [vmem:[#allocation112_spill] sm:$0xff] %v8877_v31  ;;  %v2121_v60 = vmul.f32 0.2, %v2089_v16  ;;  %v2092_v22 = vadd.f32 %v8829_v33, %v8429_v40  ;;  %v1642_v49 = vsel %vm1610_vm12, %v1594_v21, %v1626_v19  ;;  %v1176_v46 = vsel %vm1144_vm0, %v1128_v61, %v1160_v3 }
 0x363   : > { %1276 = vmax.xlane.f32.xlu1 %v8873_v35  ;;  %1681 = vmax.xlane.f32.xlu0 %v8877_v31  ;;  %v1163_v36 = vmul.f32 0.2, %v1131_v37  ;;  %v1591_v44 = vadd.f32 %v8574_v63, %v8766_v55  ;;  %vm1147_vm10 = vcmp.gt.f32.partialorder %v1131_v37, 0.0  ;;  %v1196_v39 = vsel %vm440_vm2, 65537, %v12235_v0 }
 0x364   : > { %v8888_v7 = vsel %vm8849_vm15, %v1642_v49, -1e+30  ;;  %v8892_v40 = vsel %vm8779_vm1, %v1176_v46, -1e+30  ;;  %v2137_v35 = vsel %vm2105_vm3, %v2089_v16, %v2121_v60  ;;  %v2124_v10 = vmul.f32 0.2, %v2092_v22 }
 0x365   : > { %12306 = vst [vmem:[#allocation113_spill] sm:$0xff] %v8888_v7  ;;  %12307 = vst [vmem:[#allocation114_spill] sm:$0xff] %v8892_v40  ;;  %v1179_v3 = vsel %vm1147_vm10, %v1131_v37, %v1163_v36  ;;  %v1623_v21 = vmul.f32 0.2, %v1591_v44  ;;  %v2592_v55 = vadd.f32 %v8869_v12, %v8353_v20  ;;  %v1132_v61 = vadd.f32 %v8571_v59, %v8523_v41 }
 0x366   : > { %vm2108_vm12 = vcmp.gt.f32.partialorder %v2092_v22, 0.0  ;;  %vm1607_vm0 = vcmp.gt.f32.partialorder %v1591_v44, 0.0  ;;  %v8902_v19 = vsel %vm8581_vm8, %v2137_v35, -1e+30  ;;  %v1212_v16 = vunpack.c.l.b16 %v1196_v39 }
 0x367   : > { %1689 = vmax.xlane.f32.xlu1 %v8888_v7  ;;  %1266 = vmax.xlane.f32.xlu0 %v8892_v40  ;;  %12308 = vst [vmem:[#allocation115_spill] sm:$0xff] %v8902_v19  ;;  %v8906_v60 = vsel %vm8808_vm6, %v1179_v3, -1e+30  ;;  %v2594_v37 = vadd.f32 %v8869_v12, %v8437_v43  ;;  %v1593_v20 = vadd.f32 %v8574_v63, %v8527_v15  ;;  %v2624_v49 = vmul.f32 0.2, %v2592_v55  ;;  %v12367_v40 = vld [vmem:[#allocation67_spill] sm:$0xff] }
 0x368   : > { %12309 = vst [vmem:[#allocation116_spill] sm:$0xff] %v8906_v60  ;;  %v2140_v59 = vsel %vm2108_vm12, %v2092_v22, %v2124_v10  ;;  %v1639_v41 = vsel %vm1607_vm0, %v1591_v44, %v1623_v21  ;;  %v1164_v35 = vmul.f32 0.2, %v1132_v61  ;;  %vm2608_vm10 = vcmp.gt.f32.partialorder %v2592_v55, 0.0 }
 0x369   : > { %vm1148_vm2 = vcmp.gt.f32.partialorder %v1132_v61, 0.0  ;;  %v11973_v46 = vmov 6   ;;  %vm8915_vm3 = vcmp.ne.s32.totalorder %v1212_v16, 0  ;;  %v12310_v36 = vmov 0 }
 0x36a   : > { %7273 = vset.pattern.permute.xlu0 %v11973_v46  ;;  %v12311_v36 = vsel %vm8915_vm3, 4294967295, %v12310_v36  ;;  %v2094_v63 = vadd.f32 %v8829_v33, %v8457_v50  ;;  %v8923_v15 = vsel %vm8585_vm9, %v2140_v59, -1e+30  ;;  %v8927_v43 = vsel %vm8824_vm13, %v1639_v41, -1e+30  ;;  %v12333_v46 = vld [vmem:[#allocation53_spill] sm:$0xff] }
 0x36b   : > { %2169 = vmax.xlane.f32.xlu1 %v8902_v19  ;;  %1272 = vmax.xlane.f32.xlu0 %v8906_v60  ;;  %12312 = vst [vmem:[#allocation117_spill] sm:$0xff] %v12311_v36  ;;  %12313 = vst [vmem:[#allocation118_spill] sm:$0xff] %v8923_v15  ;;  %v2626_v10 = vmul.f32 0.2, %v2594_v37  ;;  %v2090_v22 = vadd.f32 %v8829_v33, %v8345_v18  ;;  %v2640_v44 = vsel %vm2608_vm10, %v2592_v55, %v2624_v49 }
 0x36c   : > { %12314 = vst [vmem:[#allocation119_spill] sm:$0xff] %v8927_v43  ;;  %v1180_v39 = vsel %vm1148_vm2, %v1132_v61, %v1164_v35  ;;  %vm2610_vm12 = vcmp.gt.f32.partialorder %v2594_v37, 0.0  ;;  %v1625_v50 = vmul.f32 0.2, %v1593_v20  ;;  %vm1609_vm0 = vcmp.gt.f32.partialorder %v1593_v20, 0.0 }
 0x36d   : > { %vm2110_vm15 = vcmp.gt.f32.partialorder %v2094_v63, 0.0  ;;  %v8935_v3 = vsel %vm8577_vm7, %v2640_v44, -1e+30  ;;  %v8939_v21 = vsel %vm8915_vm3, %v1180_v39, -1e+30  ;;  %v2642_v16 = vsel %vm2610_vm12, %v2594_v37, %v2626_v10 }
 0x36e   : > { %12315 = vst [vmem:[#allocation120_spill] sm:$0xff] %v8935_v3  ;;  %12316 = vst [vmem:[#allocation121_spill] sm:$0xff] %v8939_v21  ;;  %v2126_v18 = vmul.f32 0.2, %v2094_v63  ;;  %v1641_v55 = vsel %vm1609_vm0, %v1593_v20, %v1625_v50  ;;  %v2122_v61 = vmul.f32 0.2, %v2090_v22  ;;  %v2595_v59 = vadd.f32 %v8869_v12, %v8473_v53 }
 0x36f   : > { %2175 = vmax.xlane.f32.xlu1 %v8923_v15  ;;  %1683 = vmax.xlane.f32.xlu0 %v8927_v43  ;;  %v2091_v41 = vadd.f32 %v8829_v33, %v8445_v57  ;;  %vm2106_vm10 = vcmp.gt.f32.partialorder %v2090_v22, 0.0  ;;  %v8949_v49 = vsel %vm8585_vm9, %v2642_v16, -1e+30  ;;  %v8953_v37 = vsel %vm8915_vm3, %v1641_v55, -1e+30  ;;  %v12362_v43 = vld [vmem:[#allocation64_spill] sm:$0xff] }
 0x370   : > { %12317 = vst [vmem:[#allocation122_spill] sm:$0xff] %v8949_v49  ;;  %12318 = vst [vmem:[#allocation123_spill] sm:$0xff] %v8953_v37  ;;  %v2142_v35 = vsel %vm2110_vm15, %v2094_v63, %v2126_v18  ;;  %v2597_v20 = vadd.f32 %v8869_v12, %v8497_v23  ;;  %v2138_v53 = vsel %vm2106_vm10, %v2090_v22, %v2122_v61  ;;  %v2627_v10 = vmul.f32 0.2, %v2595_v59 }
 0x371   : > { %v2123_v57 = vmul.f32 0.2, %v2091_v41  ;;  %v2591_v44 = vadd.f32 %v8869_v12, %v8401_v34  ;;  %vm2611_vm2 = vcmp.gt.f32.partialorder %v2595_v59, 0.0  ;;  %vm2107_vm12 = vcmp.gt.f32.partialorder %v2091_v41, 0.0 }
 0x372   : > { %v8963_v39 = vsel %vm8639_vm5, %v2142_v35, -1e+30  ;;  %v8967_v63 = vsel %vm8577_vm7, %v2138_v53, -1e+30  ;;  %v2593_v23 = vadd.f32 %v8869_v12, %v8449_v51  ;;  %v2643_v22 = vsel %vm2611_vm2, %v2595_v59, %v2627_v10 }
 0x373   : > { %2673 = vmax.xlane.f32.xlu1 %v8935_v3  ;;  %1274 = vmax.xlane.f32.xlu0 %v8939_v21  ;;  %12319 = vst [vmem:[#allocation124_spill] sm:$0xff] %v8963_v39  ;;  %12320 = vst [vmem:[#allocation125_spill] sm:$0xff] %v8967_v63  ;;  %v2139_v50 = vsel %vm2107_vm12, %v2091_v41, %v2123_v57  ;;  %v2629_v34 = vmul.f32 0.2, %v2597_v20  ;;  %v2623_v16 = vmul.f32 0.2, %v2591_v44  ;;  %vm12324_vm2 = vnez %v12274_v25 }
 0x374   : > { %vm2613_vm15 = vcmp.gt.f32.partialorder %v2597_v20, 0.0  ;;  %vm2607_vm0 = vcmp.gt.f32.partialorder %v2591_v44, 0.0  ;;  %v8975_v18 = vsel %vm8667_vm14, %v2643_v22, -1e+30  ;;  %v8979_v55 = vsel %vm8647_vm11, %v2139_v50, -1e+30 }
 0x375   : > { %12321 = vst [vmem:[#allocation126_spill] sm:$0xff] %v8975_v18  ;;  %12322 = vst [vmem:[#allocation127_spill] sm:$0xff] %v8979_v55  ;;  %v2645_v51 = vsel %vm2613_vm15, %v2597_v20, %v2629_v34  ;;  %v2639_v61 = vsel %vm2607_vm0, %v2591_v44, %v2623_v16  ;;  %v2625_v59 = vmul.f32 0.2, %v2593_v23  ;;  %v12323_v41 = vld [vmem:[#allocation47_spill] sm:$0xff]  ;;  %vm2609_vm10 = vcmp.gt.f32.partialorder %v2593_v23, 0.0 }
 0x376   : > { %v2093_v35 = vadd.f32 %v8829_v33, %v12323_v41  ;;  %v8987_v53 = vsel %vm12324_vm2, %v2645_v51, -1e+30  ;;  %v8991_v10 = vsel %vm8581_vm8, %v2639_v61, -1e+30  ;;  %v12327_v44 = vld [vmem:[#allocation54_spill] sm:$0xff]  ;;  %v12329_v51 = vld [vmem:[#allocation51_spill] sm:$0xff]  ;;  %v2100_v60 = vadd.f32 %v8829_v33, %v12367_v40 }
 0x377   : > { %2677 = vmax.xlane.f32.xlu1 %v8949_v49  ;;  %1687 = vmax.xlane.f32.xlu0 %v8953_v37  ;;  %12325 = vst [vmem:[#allocation47_spill] sm:$0xff] %v8987_v53  ;;  %12326 = vst [vmem:[#allocation128_spill] sm:$0xff] %v8991_v10  ;;  %v2641_v57 = vsel %vm2609_vm10, %v2593_v23, %v2625_v59  ;;  %v2095_v22 = vadd.f32 %v8829_v33, %v12327_v44  ;;  %v12331_v44 = vld [vmem:[#allocation45_spill] sm:$0xff]  ;;  %v12363_v21 = vmov 7  }
 0x378   : > { %v2125_v20 = vmul.f32 0.2, %v2093_v35  ;;  %vm2109_vm12 = vcmp.gt.f32.partialorder %v2093_v35, 0.0  ;;  %v8999_v50 = vsel %vm8647_vm11, %v2641_v57, -1e+30  ;;  %v2096_v61 = vadd.f32 %v8829_v33, %v12329_v51 }
 0x379   : > { %12328 = vst [vmem:[#allocation54_spill] sm:$0xff] %v8999_v50  ;;  %v2127_v16 = vmul.f32 0.2, %v2095_v22  ;;  %vm2111_vm15 = vcmp.gt.f32.partialorder %v2095_v22, 0.0  ;;  %v2596_v57 = vadd.f32 %v8869_v12, %v12331_v44  ;;  %v2132_v47 = vmul.f32 0.2, %v2100_v60 }
 0x37a   : > { %v2141_v34 = vsel %vm2109_vm12, %v2093_v35, %v2125_v20  ;;  %v2128_v41 = vmul.f32 0.2, %v2096_v61  ;;  %vm2112_vm0 = vcmp.gt.f32.partialorder %v2096_v61, 0.0  ;;  %vm12334_vm12 = vnez %v12263_v29 }
 0x37b   : > { %2179 = vmax.xlane.f32.xlu1 %v8963_v39  ;;  %2171 = vmax.xlane.f32.xlu0 %v8967_v63  ;;  %v9006_v23 = vsel %vm8667_vm14, %v2141_v34, -1e+30  ;;  %v2143_v59 = vsel %vm2111_vm15, %v2095_v22, %v2127_v16  ;;  %v2628_v51 = vmul.f32 0.2, %v2596_v57  ;;  %v2598_v34 = vadd.f32 %v8869_v12, %v12333_v46 }
 0x37c   : > { %12330 = vst [vmem:[#allocation51_spill] sm:$0xff] %v9006_v23  ;;  %v9013_v35 = vsel %vm12324_vm2, %v2143_v59, -1e+30  ;;  %v2144_v20 = vsel %vm2112_vm0, %v2096_v61, %v2128_v41  ;;  %vm2612_vm10 = vcmp.gt.f32.partialorder %v2596_v57, 0.0 }
 0x37d   : > { %12332 = vst [vmem:[#allocation45_spill] sm:$0xff] %v9013_v35  ;;  %v9020_v22 = vsel %vm12334_vm12, %v2144_v20, -1e+30  ;;  %v2644_v16 = vsel %vm2612_vm10, %v2596_v57, %v2628_v51  ;;  %v2630_v44 = vmul.f32 0.2, %v2598_v34  ;;  %vm2614_vm15 = vcmp.gt.f32.partialorder %v2598_v34, 0.0 }
 0x37e   : > { %12335 = vst [vmem:[#allocation53_spill] sm:$0xff] %v9020_v22  ;;  %v9028_v61 = vsel %vm8639_vm5, %v2644_v16, -1e+30  ;;  %v12339_v20 = vld [vmem:[#allocation74_spill] sm:$0xff]  ;;  %v12342_v16 = vld [vmem:[#allocation43_spill] sm:$0xff] }
 0x37f   : > { %2679 = vmax.xlane.f32.xlu1 %v8975_v18  ;;  %2173 = vmax.xlane.f32.xlu0 %v8979_v55  ;;  %v12337_v18 = vld [vmem:[#allocation12_spill] sm:$0xff]  ;;  %v2646_v46 = vsel %vm2614_vm15, %v2598_v34, %v2630_v44  ;;  %vm12344_vm15 = vnez %v12270_v28 }
 0x383   : > { %2683 = vmax.xlane.f32.xlu1 %v8987_v53  ;;  %2671 = vmax.xlane.f32.xlu0 %v8991_v10  ;;  %v12336_v53 = vld [vmem:[#allocation58_spill] sm:$0xff] }
 0x384   : > { %v2098_v59 = vadd.f32 %v8829_v33, %v12336_v53  ;;  %12338 = vst [vmem:[#allocation58_spill] sm:$0xff] %v9028_v61  ;;  %v9036_v53 = vsel %vm12334_vm12, %v2646_v46, -1e+30  ;;  %v12346_v46 = vld [vmem:[#allocation78_spill] sm:$0xff] }
 0x385   : > { %12341 = vst [vmem:[#allocation12_spill] sm:$0xff] %v9036_v53  ;;  %v2601_v10 = vadd.f32 %v8869_v12, %v12346_v46  ;;  %v12352_v46 = vld [vmem:[#allocation18_spill] sm:$0xff] }
 0x386   : > { %v2130_v41 = vmul.f32 0.2, %v2098_v59  ;;  %vm2114_vm0 = vcmp.gt.f32.partialorder %v2098_v59, 0.0 }
 0x387   : > { %2675 = vmax.xlane.f32.xlu0 %v8999_v50  ;;  %vm2617_vm2 = vcmp.gt.f32.partialorder %v2601_v10, 0.0 }
 0x388   : > { %v2146_v57 = vsel %vm2114_vm0, %v2098_v59, %v2130_v41 }
 0x389   : > { %v9044_v34 = vsel %vm12344_vm15, %v2146_v57, -1e+30  ;;  %v12349_v57 = vld [vmem:[#allocation16_spill] sm:$0xff] }
 0x38a   : > { %12345 = vst [vmem:[#allocation74_spill] sm:$0xff] %v9044_v34 }
 0x38b   : > { %2177 = vmax.xlane.f32.xlu0 %v9006_v23  ;;  %v2599_v23 = vadd.f32 %v8869_v12, %v12342_v16  ;;  %v2633_v16 = vmul.f32 0.2, %v2601_v10 }
 0x38d   : > { %vm2615_vm0 = vcmp.gt.f32.partialorder %v2599_v23, 0.0 }
 0x38f   : > { %2181 = vmax.xlane.f32.xlu0 %v9013_v35  ;;  %v2099_v35 = vadd.f32 %v8829_v33, %v12339_v20  ;;  %v2631_v20 = vmul.f32 0.2, %v2599_v23 }
 0x391   : > { %v2131_v51 = vmul.f32 0.2, %v2099_v35  ;;  %vm2115_vm10 = vcmp.gt.f32.partialorder %v2099_v35, 0.0  ;;  %v2647_v41 = vsel %vm2615_vm0, %v2599_v23, %v2631_v20  ;;  %v12354_v23 = vld [vmem:[#allocation17_spill] sm:$0xff]  ;;  %v12355_v20 = vld [vmem:[#allocation20_spill] sm:$0xff]  ;;  %vm2116_vm0 = vcmp.gt.f32.partialorder %v2100_v60, 0.0 }
 0x393   : > { %2183 = vmax.xlane.f32.xlu0 %v9020_v22  ;;  %v12340_v22 = vld [vmem:[#allocation11_spill] sm:$0xff]  ;;  %v2147_v44 = vsel %vm2115_vm10, %v2099_v35, %v2131_v51  ;;  %vm12350_vm10 = vnez %v12278_v2  ;;  %v2649_v51 = vsel %vm2617_vm2, %v2601_v10, %v2633_v16  ;;  %v12358_v10 = vld [vmem:[#allocation22_spill] sm:$0xff] }
 0x394   : > { %4532 = vperm.xlu1 %7272, %v12337_v18   ;;  %v9052_v59 = vsel %vm8779_vm1, %v2147_v44, -1e+30  ;;  %v9058_v35 = vsel %vm12350_vm10, %v2647_v41, -1e+30  ;;  %v9064_v44 = vsel %vm8779_vm1, %v2649_v51, -1e+30  ;;  %vm12391_vm1 = vnez %v12300_v52 }
 0x395   : > { %12348 = vst [vmem:[#allocation11_spill] sm:$0xff] %v9052_v59  ;;  %12351 = vst [vmem:[#allocation43_spill] sm:$0xff] %v9058_v35  ;;  %v12357_v41 = vld [vmem:[#allocation24_spill] sm:$0xff] }
 0x397   : > { %2681 = vmax.xlane.f32.xlu0 %v9028_v61  ;;  %v12343_v61 = vld [vmem:[#allocation14_spill] sm:$0xff] }
 0x398   : > { %4536 = vperm.xlu1 %7272, %v12340_v22   ;;  %12353 = vst [vmem:[#allocation14_spill] sm:$0xff] %v9064_v44 }
 0x39b   : > { %2685 = vmax.xlane.f32.xlu0 %v9036_v53  ;;  %v12347_v53 = vld [vmem:[#allocation13_spill] sm:$0xff] }
 0x39c   : > { %4540 = vperm.xlu1 %7272, %v12343_v61  }
 0x39f   : > { %2187 = vmax.xlane.f32.xlu0 %v9044_v34  ;;  %v9070_v34 = vpop.permute.xlu0 %2082 }
 0x3a0   : > { %4544 = vperm.xlu1 %7272, %v12347_v53  }
 0x3a3   : > { %2189 = vmax.xlane.f32.xlu0 %v9052_v59  ;;  %v12356_v59 = vld [vmem:[#allocation19_spill] sm:$0xff] }
 0x3a4   : > { %4548 = vperm.xlu1 %7272, %v12349_v57  }
 0x3a7   : > { %2687 = vmax.xlane.f32.xlu0 %v9058_v35 }
 0x3a8   : > { %4556 = vperm.xlu1 %7272, %v12352_v46  }
 0x3ab   : > { %2691 = vmax.xlane.f32.xlu0 %v9064_v44  ;;  %v12359_v44 = vmov 6  }
 0x3ac   : > { %4560 = vperm.xlu1 %7272, %v12354_v23  }
 0x3b0   : > { %4564 = vperm.xlu1 %7272, %v12355_v20  }
 0x3b4   : > { %4568 = vperm.xlu1 %7272, %v12356_v59  }
 0x3b8   : > { %4572 = vperm.xlu1 %7272, %v12357_v41  }
 0x3bc   : > { %v9073_v35 = vpop.xlane.xlu1 %1248  ;;  %4576 = vperm.xlu1 %7272, %v12358_v10   ;;  %v9076_v16 = vpop.xlane.xlu0 %1246 }
 0x3c0   : > { %v9078_v51 = vpop.xlane.xlu1 %1661  ;;  %v9080_v39 = vpop.xlane.xlu0 %1252  ;;  %7274 = vset.pattern.permute.xlu1 %v12359_v44 }
 0x3c1   : > { %4030 = vperm.xlu0 %7273, %v12337_v18   ;;  %v12360_v18 = vld [vmem:[#allocation29_spill] sm:$0xff] }
 0x3c4   : > { %v9084_v19 = vpop.xlane.xlu0 %1659  ;;  %v9086_v49 = vpop.xlane.xlu1 %1665 }
 0x3c5   : > { %4046 = vperm.xlu0 %7273, %v12349_v57   ;;  %v2097_v57 = vadd.f32 %v8829_v33, %v12362_v43  ;;  %v12369_v43 = vld [vmem:[#allocation59_spill] sm:$0xff] }
 0x3c7   : > { %vm2113_vm2 = vcmp.gt.f32.partialorder %v2097_v57, 0.0 }
 0x3c8   : > { %v9089_v50 = vpop.xlane.xlu0 %1250  ;;  %v9092_v37 = vpop.xlane.xlu1 %1669 }
 0x3c9   : > { %4058 = vperm.xlu0 %7273, %v12354_v23   ;;  %v12364_v23 = vld [vmem:[#allocation15_spill] sm:$0xff] }
 0x3cc   : > { %v9094_v3 = vpop.xlane.xlu0 %1663  ;;  %v9099_v44 = vpop.xlane.xlu1 %1254 }
 0x3cd   : > { %4066 = vperm.xlu0 %7273, %v12356_v59   ;;  %v2129_v59 = vmul.f32 0.2, %v2097_v57 }
 0x3cf   : > { %v2145_v31 = vsel %vm2113_vm2, %v2097_v57, %v2129_v59  ;;  %v12373_v57 = vld [vmem:[#allocation69_spill] sm:$0xff] }
 0x3d0   : > { %v9097_v15 = vpop.xlane.xlu0 %1256  ;;  %v9108_v63 = vpop.xlane.xlu1 %1260  ;;  %v2602_v59 = vadd.f32 %v8869_v12, %v12373_v57 }
 0x3d1   : > { %4078 = vperm.xlu0 %7273, %v12360_v18   ;;  %12365 = vst [vmem:[#allocation13_spill] sm:$0xff] %v9108_v63  ;;  %v12370_v63 = vld [vmem:[#allocation32_spill] sm:$0xff] }
 0x3d4   : > { %v9102_v55 = vpop.xlane.xlu0 %1667  ;;  %v9119_v26 = vpop.xlane.xlu1 %1673 }
 0x3d5   : > { %12361 = vst [vmem:[#allocation78_spill] sm:$0xff] %v9102_v55  ;;  %7275 = vset.pattern.permute.xlu0 %v12363_v21  ;;  %v2600_v55 = vadd.f32 %v8869_v12, %v12369_v43 }
 0x3d6   : > { %4552 = vperm.xlu0 %7275, %v12364_v23  }
 0x3d7   : > { %vm2616_vm2 = vcmp.gt.f32.partialorder %v2600_v55, 0.0 }
 0x3d8   : > { %v9110_v7 = vpop.xlane.xlu0 %1258  ;;  %v9132_v43 = vpop.xlane.xlu1 %1264 }
 0x3d9   : > { %12366 = vst [vmem:[#allocation16_spill] sm:$0xff] %v9110_v7  ;;  %v9124_v7 = vsel %vm12350_vm10, %v2145_v31, -1e+30  ;;  %12374 = vst [vmem:[#allocation19_spill] sm:$0xff] %v9132_v43 }
 0x3da   : > { %4580 = vperm.xlu0 %7275, %v12360_v18   ;;  %12371 = vst [vmem:[#allocation17_spill] sm:$0xff] %v9124_v7  ;;  %v2148_v18 = vsel %vm2116_vm0, %v2100_v60, %v2132_v47  ;;  %vm2618_vm0 = vcmp.gt.f32.partialorder %v2602_v59, 0.0 }
 0x3db   : > { %v9136_v11 = vsel %vm8835_vm4, %v2148_v18, -1e+30 }
 0x3dc   : > { %v9115_v27 = vpop.xlane.xlu0 %1671  ;;  %12375 = vst [vmem:[#allocation24_spill] sm:$0xff] %v9136_v11  ;;  %v9148_v43 = vpop.xlane.xlu1 %1675 }
 0x3dd   : > { %12368 = vst [vmem:[#allocation18_spill] sm:$0xff] %v9115_v27  ;;  %v2632_v27 = vmul.f32 0.2, %v2600_v55  ;;  %12378 = vst [vmem:[#allocation64_spill] sm:$0xff] %v9148_v43  ;;  %v12385_v43 = vld [vmem:[#allocation66_spill] sm:$0xff] }
 0x3de   : > { %4592 = vperm.xlu0 %7275, %v12370_v63  }
 0x3e0   : > { %2185 = vmax.xlane.f32.xlu1 %v9124_v7  ;;  %v9127_v40 = vpop.xlane.xlu0 %1677  ;;  %v2648_v7 = vsel %vm2616_vm2, %v2600_v55, %v2632_v27  ;;  %v9157_v55 = vpop.xlane.xlu1 %1679 }
 0x3e1   : > { %12372 = vst [vmem:[#allocation20_spill] sm:$0xff] %v9127_v40  ;;  %v2634_v40 = vmul.f32 0.2, %v2602_v59  ;;  %v9143_v47 = vsel %vm12344_vm15, %v2648_v7, -1e+30  ;;  %12381 = vst [vmem:[#allocation59_spill] sm:$0xff] %v9157_v55  ;;  %v2102_v7 = vadd.f32 %v8829_v33, %v8665_v45 }
 0x3e2   : > { %7277 = vset.pattern.permute.xlu0 %v12235_v0  ;;  %12376 = vst [vmem:[#allocation22_spill] sm:$0xff] %v9143_v47 }
 0x3e3   : > { %v2650_v57 = vsel %vm2618_vm0, %v2602_v59, %v2634_v40  ;;  %v2134_v59 = vmul.f32 0.2, %v2102_v7  ;;  %vm2118_vm2 = vcmp.gt.f32.partialorder %v2102_v7, 0.0 }
 0x3e4   : > { %2191 = vmax.xlane.f32.xlu1 %v9136_v11  ;;  %v9139_v31 = vpop.xlane.xlu0 %1262  ;;  %v9152_v18 = vsel %vm8835_vm4, %v2650_v57, -1e+30  ;;  %v9165_v40 = vpop.xlane.xlu1 %1685  ;;  %v2103_v57 = vadd.f32 %v8829_v33, %v12385_v43 }
 0x3e5   : > { %12379 = vst [vmem:[#allocation15_spill] sm:$0xff] %v9152_v18  ;;  %12384 = vst [vmem:[#allocation129_spill] sm:$0xff] %v9165_v40  ;;  %v3091_v40 = vsub.s32 4, %v8552_v4 }
 0x3e6   : > { %vm2119_vm0 = vcmp.gt.f32.partialorder %v2103_v57, 0.0 }
 0x3e8   : > { %2689 = vmax.xlane.f32.xlu1 %v9143_v47  ;;  %v9146_v60 = vpop.xlane.xlu0 %1268 }
 0x3e9   : > { %12377 = vst [vmem:[#allocation29_spill] sm:$0xff] %v9146_v60  ;;  %v2150_v60 = vsel %vm2118_vm2, %v2102_v7, %v2134_v59 }
 0x3ea   : > { %v9177_v45 = vsel %vm8808_vm6, %v2150_v60, -1e+30  ;;  %v9191_v60 = vrot.slane %v8566_v48, %v3091_v40 }
 0x3eb   : > { %12387 = vst [vmem:[#allocation130_spill] sm:$0xff] %v9177_v45 }
 0x3ec   : > { %2693 = vmax.xlane.f32.xlu1 %v9152_v18  ;;  %v9155_v27 = vpop.xlane.xlu0 %1681  ;;  %v2135_v18 = vmul.f32 0.2, %v2103_v57 }
 0x3ed   : > { %12380 = vst [vmem:[#allocation67_spill] sm:$0xff] %v9155_v27  ;;  %v2104_v27 = vadd.f32 %v8829_v33, %v9070_v34  ;;  %v2604_v34 = vadd.f32 %v8869_v12, %v8698_v38 }
 0x3ee   : > { %v2151_v43 = vsel %vm2119_vm0, %v2103_v57, %v2135_v18  ;;  %v12390_v57 = vld [vmem:[#allocation60_spill] sm:$0xff] }
 0x3ef   : > { %v2136_v7 = vmul.f32 0.2, %v2104_v27  ;;  %vm2120_vm2 = vcmp.gt.f32.partialorder %v2104_v27, 0.0  ;;  %v2636_v18 = vmul.f32 0.2, %v2604_v34  ;;  %v2606_v38 = vadd.f32 %v8869_v12, %v12390_v57 }
 0x3f0   : > { %v9159_v11 = vpop.xlane.xlu0 %1266  ;;  %vm2620_vm0 = vcmp.gt.f32.partialorder %v2604_v34, 0.0 }
 0x3f1   : > { %12382 = vst [vmem:[#allocation32_spill] sm:$0xff] %v9159_v11  ;;  %v9173_v11 = vpop.xlane.xlu1 %1270  ;;  %v2652_v40 = vsel %vm2620_vm0, %v2604_v34, %v2636_v18  ;;  %v12396_v18 = vld [vmem:[#allocation41_spill] sm:$0xff] }
 0x3f4   : > { %v9163_v47 = vpop.xlane.xlu0 %1272 }
 0x3f5   : > { %12383 = vst [vmem:[#allocation69_spill] sm:$0xff] %v9163_v47  ;;  %v9193_v47 = vpop.xlane.xlu1 %1276 }
 0x3f6   : > { %12389 = vst [vmem:[#allocation132_spill] sm:$0xff] %v9193_v47  ;;  %v12393_v47 = vld [vmem:[#allocation21_spill] sm:$0xff] }
 0x3f8   : > { %v9171_v55 = vpop.xlane.xlu0 %1683 }
 0x3f9   : > { %12386 = vst [vmem:[#allocation66_spill] sm:$0xff] %v9171_v55  ;;  %v9188_v55 = vsel %vm8915_vm3, %v2151_v43, -1e+30  ;;  %v3593_v43 = vsub.s32 5, %v8552_v4  ;;  %v9210_v57 = vpop.xlane.xlu1 %1689 }
 0x3fa   : > { %12388 = vst [vmem:[#allocation131_spill] sm:$0xff] %v9188_v55 }
 0x3fc   : > { %v9184_v59 = vpop.xlane.xlu0 %1274 }
 0x3fd   : > { %4034 = vperm.xlu1 %7274, %v12340_v22   ;;  %2195 = vmax.xlane.f32.xlu0 %v9177_v45  ;;  %v2152_v22 = vsel %vm2120_vm2, %v2104_v27, %v2136_v7  ;;  %v3094_v27 = vadd.f32 %v9191_v60, %v12393_v47  ;;  %vm2622_vm2 = vcmp.gt.f32.partialorder %v2606_v38, 0.0  ;;  %v3096_v47 = vadd.f32 %v9191_v60, %v12396_v18 }
 0x3fe   : > { %v9201_v45 = vsel %vm12391_vm1, %v2152_v22, -1e+30  ;;  %v9214_v22 = vsel %vm8808_vm6, %v2652_v40, -1e+30  ;;  %v9229_v40 = vpop.xlane.xlu1 %2169 }
 0x3ff   : > { %12392 = vst [vmem:[#allocation60_spill] sm:$0xff] %v9201_v45  ;;  %12395 = vst [vmem:[#allocation133_spill] sm:$0xff] %v9214_v22  ;;  %v3126_v34 = vmul.f32 0.2, %v3094_v27  ;;  %vm3110_vm0 = vcmp.gt.f32.partialorder %v3094_v27, 0.0 }
 0x400   : > { %v9208_v7 = vpop.xlane.xlu0 %1687  ;;  %12398 = vst [vmem:[#allocation134_spill] sm:$0xff] %v9229_v40  ;;  %v12401_v40 = vld [vmem:[#allocation25_spill] sm:$0xff] }
 0x401   : > { %4038 = vperm.xlu1 %7274, %v12343_v61   ;;  %2197 = vmax.xlane.f32.xlu0 %v9188_v55  ;;  %v2638_v61 = vmul.f32 0.2, %v2606_v38  ;;  %12394 = vst [vmem:[#allocation21_spill] sm:$0xff] %v9208_v7  ;;  %v9217_v55 = vrot.slane %v8566_v48, %v3593_v43  ;;  %v3128_v43 = vmul.f32 0.2, %v3096_v47 }
 0x405   : > { %4042 = vperm.xlu1 %7274, %v12347_v53   ;;  %2199 = vmax.xlane.f32.xlu0 %v9201_v45  ;;  %v2654_v53 = vsel %vm2622_vm2, %v2606_v38, %v2638_v61  ;;  %v9223_v45 = vpop.xlane.xlu0 %2171  ;;  %v12399_v38 = vld [vmem:[#allocation33_spill] sm:$0xff]  ;;  %vm3112_vm2 = vcmp.gt.f32.partialorder %v3096_v47, 0.0 }
 0x406   : > { %v9227_v7 = vsel %vm12391_vm1, %v2654_v53, -1e+30  ;;  %v3596_v61 = vadd.f32 %v9217_v55, %v12399_v38  ;;  %v3144_v53 = vsel %vm3112_vm2, %v3096_v47, %v3128_v43  ;;  %v12404_v47 = vld [vmem:[#allocation30_spill] sm:$0xff] }
 0x407   : > { %12397 = vst [vmem:[#allocation41_spill] sm:$0xff] %v9227_v7  ;;  %v3098_v43 = vadd.f32 %v9191_v60, %v12404_v47 }
 0x409   : > { %4050 = vperm.xlu1 %7274, %v12364_v23   ;;  %2697 = vmax.xlane.f32.xlu0 %v9214_v22  ;;  %v3142_v23 = vsel %vm3110_vm0, %v3094_v27, %v3126_v34  ;;  %v3628_v22 = vmul.f32 0.2, %v3596_v61  ;;  %vm3612_vm0 = vcmp.gt.f32.partialorder %v3596_v61, 0.0  ;;  %v9245_v27 = vpop.xlane.xlu1 %2175  ;;  %v9249_v34 = vsel %vm8585_vm9, %v3144_v53, -1e+30 }
 0x40a   : > { %v9237_v18 = vsel %vm8577_vm7, %v3142_v23, -1e+30  ;;  %12402 = vst [vmem:[#allocation25_spill] sm:$0xff] %v9245_v27  ;;  %12403 = vst [vmem:[#allocation135_spill] sm:$0xff] %v9249_v34  ;;  %v3130_v53 = vmul.f32 0.2, %v3098_v43 }
 0x40b   : > { %12400 = vst [vmem:[#allocation33_spill] sm:$0xff] %v9237_v18 }
 0x40d   : > { %4054 = vperm.xlu1 %7274, %v12352_v46   ;;  %2701 = vmax.xlane.f32.xlu0 %v9227_v7  ;;  %v3598_v46 = vadd.f32 %v9217_v55, %v12401_v40  ;;  %v9243_v7 = vpop.xlane.xlu0 %2173 }
 0x40f   : > { %v3630_v23 = vmul.f32 0.2, %v3598_v46  ;;  %vm3614_vm2 = vcmp.gt.f32.partialorder %v3598_v46, 0.0 }
 0x411   : > { %4062 = vperm.xlu1 %7274, %v12355_v20   ;;  %3175 = vmax.xlane.f32.xlu0 %v9237_v18  ;;  %v3644_v20 = vsel %vm3612_vm0, %v3596_v61, %v3628_v22  ;;  %v9255_v40 = vpop.xlane.xlu0 %2671  ;;  %v9261_v18 = vpop.xlane.xlu1 %2673  ;;  %v12408_v22 = vld [vmem:[#allocation35_spill] sm:$0xff]  ;;  %vm3114_vm0 = vcmp.gt.f32.partialorder %v3098_v43, 0.0 }
 0x412   : > { %12405 = vst [vmem:[#allocation30_spill] sm:$0xff] %v9255_v40  ;;  %v9259_v38 = vsel %vm8577_vm7, %v3644_v20, -1e+30  ;;  %12407 = vst [vmem:[#allocation137_spill] sm:$0xff] %v9261_v18  ;;  %v3100_v61 = vadd.f32 %v9191_v60, %v12408_v22  ;;  %v3146_v20 = vsel %vm3114_vm0, %v3098_v43, %v3130_v53  ;;  %v12411_v18 = vld [vmem:[#allocation31_spill] sm:$0xff]  ;;  %v12416_v43 = vld [vmem:[#allocation37_spill] sm:$0xff] }
 0x413   : > { %12406 = vst [vmem:[#allocation136_spill] sm:$0xff] %v9259_v38  ;;  %v3602_v53 = vadd.f32 %v9217_v55, %v12416_v43 }
 0x414   : > { %v3132_v40 = vmul.f32 0.2, %v3100_v61 }
 0x415   : > { %4070 = vperm.xlu1 %7274, %v12357_v41   ;;  %3179 = vmax.xlane.f32.xlu0 %v9249_v34  ;;  %v3646_v41 = vsel %vm3614_vm2, %v3598_v46, %v3630_v23  ;;  %v12410_v34 = vld [vmem:[#allocation27_spill] sm:$0xff]  ;;  %vm3116_vm2 = vcmp.gt.f32.partialorder %v3100_v61, 0.0  ;;  %v9277_v46 = vpop.xlane.xlu1 %2677  ;;  %v9281_v23 = vsel %vm8639_vm5, %v3146_v20, -1e+30 }
 0x416   : > { %v9269_v47 = vsel %vm8585_vm9, %v3646_v41, -1e+30  ;;  %12413 = vst [vmem:[#allocation31_spill] sm:$0xff] %v9277_v46  ;;  %12414 = vst [vmem:[#allocation138_spill] sm:$0xff] %v9281_v23  ;;  %v12415_v41 = vld [vmem:[#allocation36_spill] sm:$0xff]  ;;  %v3148_v22 = vsel %vm3116_vm2, %v3100_v61, %v3132_v40  ;;  %v12420_v40 = vld [vmem:[#allocation42_spill] sm:$0xff] }
 0x417   : > { %12409 = vst [vmem:[#allocation35_spill] sm:$0xff] %v9269_v47  ;;  %v3102_v61 = vadd.f32 %v9191_v60, %v12420_v40  ;;  %vm3618_vm2 = vcmp.gt.f32.partialorder %v3602_v53, 0.0 }
 0x419   : > { %4074 = vperm.xlu1 %7274, %v12358_v10   ;;  %3677 = vmax.xlane.f32.xlu0 %v9259_v38  ;;  %v3600_v10 = vadd.f32 %v9217_v55, %v12411_v18  ;;  %v9275_v38 = vpop.xlane.xlu0 %2675  ;;  %v9293_v46 = vpop.xlane.xlu1 %2179 }
 0x41a   : > { %12412 = vst [vmem:[#allocation27_spill] sm:$0xff] %v9275_v38  ;;  %v9291_v38 = vsel %vm12334_vm12, %v3148_v22, -1e+30  ;;  %12419 = vst [vmem:[#allocation139_spill] sm:$0xff] %v9293_v46  ;;  %v12422_v46 = vld [vmem:[#allocation72_spill] sm:$0xff] }
 0x41b   : > { %vm3616_vm0 = vcmp.gt.f32.partialorder %v3600_v10, 0.0  ;;  %12418 = vst [vmem:[#allocation37_spill] sm:$0xff] %v9291_v38 }
 0x41d   : > { %4082 = vperm.xlu1 %7274, %v12410_v34   ;;  %3681 = vmax.xlane.f32.xlu0 %v9269_v47  ;;  %v3632_v47 = vmul.f32 0.2, %v3600_v10  ;;  %v9287_v18 = vpop.xlane.xlu0 %2177 }
 0x41e   : > { %12417 = vst [vmem:[#allocation36_spill] sm:$0xff] %v9287_v18  ;;  %v3134_v18 = vmul.f32 0.2, %v3102_v61 }
 0x41f   : > { %v3648_v20 = vsel %vm3616_vm0, %v3600_v10, %v3632_v47  ;;  %vm3118_vm0 = vcmp.gt.f32.partialorder %v3102_v61, 0.0  ;;  %v1279_v47 = vsub.f32 %v8609_v54, %v9073_v35  ;;  %v9312_v10 = vpop.xlane.xlu1 %2679 }
 0x420   : > { %v9301_v43 = vsel %vm8639_vm5, %v3648_v20, -1e+30  ;;  %12424 = vst [vmem:[#allocation140_spill] sm:$0xff] %v9312_v10  ;;  %v12426_v20 = vld [vmem:[#allocation61_spill] sm:$0xff] }
 0x421   : > { %4086 = vperm.xlu1 %7274, %v12415_v41   ;;  %3183 = vmax.xlane.f32.xlu0 %v9281_v23  ;;  %v3634_v23 = vmul.f32 0.2, %v3602_v53  ;;  %12421 = vst [vmem:[#allocation42_spill] sm:$0xff] %v9301_v43 }
 0x423   : > { %v3650_v22 = vsel %vm3618_vm2, %v3602_v53, %v3634_v23  ;;  %v3150_v23 = vsel %vm3118_vm0, %v3102_v61, %v3134_v18  ;;  %v9328_v35 = vpop.xlane.xlu1 %2683  ;;  %v12430_v61 = vld [vmem:[#allocation46_spill] sm:$0xff] }
 0x424   : > { %v9326_v54 = vsel %vm12344_vm15, %v3150_v23, -1e+30  ;;  %12429 = vst [vmem:[#allocation143_spill] sm:$0xff] %v9328_v35  ;;  %v12449_v35 = vld [vmem:[#allocation89_spill] sm:$0xff] }
 0x425   : > { %4090 = vperm.xlu1 %7274, %v12370_v63   ;;  %3187 = vmax.xlane.f32.xlu0 %v9291_v38  ;;  %v3104_v63 = vadd.f32 %v9191_v60, %v12422_v46  ;;  %v9307_v38 = vpop.xlane.xlu0 %2181  ;;  %v3604_v46 = vadd.f32 %v9217_v55, %v12426_v20  ;;  %12428 = vst [vmem:[#allocation142_spill] sm:$0xff] %v9326_v54 }
 0x426   : > { %12423 = vst [vmem:[#allocation72_spill] sm:$0xff] %v9307_v38  ;;  %v12453_v38 = vld [vmem:[#allocation26_spill] sm:$0xff] }
 0x427   : > { %v3136_v53 = vmul.f32 0.2, %v3104_v63  ;;  %vm3120_vm2 = vcmp.gt.f32.partialorder %v3104_v63, 0.0  ;;  %v3636_v18 = vmul.f32 0.2, %v3604_v46  ;;  %vm3620_vm0 = vcmp.gt.f32.partialorder %v3604_v46, 0.0 }
 0x429   : > { %7276 = vset.pattern.permute.xlu1 %v12363_v21  ;;  %3685 = vmax.xlane.f32.xlu0 %v9301_v43  ;;  %v9316_v21 = vsel %vm12334_vm12, %v3650_v22, -1e+30  ;;  %v9322_v40 = vpop.xlane.xlu0 %2183  ;;  %v3152_v22 = vsel %vm3120_vm2, %v3104_v63, %v3136_v53  ;;  %v3606_v43 = vadd.f32 %v9217_v55, %v12430_v61  ;;  %v1280_v63 = vsub.f32 %v8680_v8, %v9089_v50  ;;  %v9343_v53 = vpop.permute.xlu1 %4532 }
 0x42a   : > { %4584 = vperm.xlu1 %7276, %v12410_v34   ;;  %12425 = vst [vmem:[#allocation141_spill] sm:$0xff] %v9316_v21  ;;  %v1296_v34 = vmul.f32 1.442695, %v1279_v47  ;;  %12427 = vst [vmem:[#allocation61_spill] sm:$0xff] %v9322_v40  ;;  %v3652_v47 = vsel %vm3620_vm0, %v3604_v46, %v3636_v18  ;;  %v1281_v46 = vsub.f32 %v8631_v13, %v9080_v39 }
 0x42b   : > { %v3638_v23 = vmul.f32 0.2, %v3606_v43  ;;  %vm3622_vm12 = vcmp.gt.f32.partialorder %v3606_v43, 0.0  ;;  %v1298_v18 = vmul.f32 1.442695, %v1280_v63 }
 0x42c   : > { %7292 = vpow2.f32 %v1296_v34  ;;  %v1300_v13 = vmul.f32 1.442695, %v1281_v46  ;;  %v2101_v46 = vadd.f32 %v8829_v33, %v8801_v56  ;;  %v12443_v56 = vld [vmem:[#allocation70_spill] sm:$0xff] }
 0x42d   : > { %3689 = vmax.xlane.f32.xlu0 %v9316_v21  ;;  %v9339_v20 = vpop.xlane.xlu0 %2681  ;;  %v3654_v34 = vsel %vm3622_vm12, %v3606_v43, %v3638_v23  ;;  %v9360_v50 = vpop.permute.xlu1 %4536  ;;  %v3106_v43 = vadd.f32 %v9191_v60, %v8728_v58  ;;  %v12437_v23 = vld [vmem:[#allocation80_spill] sm:$0xff]  ;;  %7294 = vpow2.f32 %v1298_v18  ;;  %v3107_v33 = vadd.f32 %v9191_v60, %v12443_v56  ;;  %v12447_v56 = vld [vmem:[#allocation62_spill] sm:$0xff] }
 0x42e   : > { %4588 = vperm.xlu1 %7276, %v12415_v41   ;;  %v9336_v41 = vsel %vm8835_vm4, %v3152_v22, -1e+30  ;;  %12432 = vst [vmem:[#allocation144_spill] sm:$0xff] %v9339_v20  ;;  %v12434_v22 = vld [vmem:[#allocation56_spill] sm:$0xff]  ;;  %v9358_v8 = vsel %vm8835_vm4, %v3654_v34, -1e+30  ;;  %7296 = vpow2.f32 %v1300_v13  ;;  %v1693_v20 = vsub.f32 %v12449_v35, %v9094_v3 }
 0x42f   : > { %12431 = vst [vmem:[#allocation46_spill] sm:$0xff] %v9336_v41  ;;  %v3105_v61 = vadd.f32 %v9191_v60, %v12434_v22  ;;  %12436 = vst [vmem:[#allocation146_spill] sm:$0xff] %v9358_v8  ;;  %v1692_v22 = vsub.f32 %v12437_v23, %v9078_v51  ;;  %v3138_v34 = vmul.f32 0.2, %v3106_v43  ;;  %vm3122_vm2 = vcmp.gt.f32.partialorder %v3106_v43, 0.0 }
 0x430   : > { %v2133_v23 = vmul.f32 0.2, %v2101_v46  ;;  %vm2117_vm0 = vcmp.gt.f32.partialorder %v2101_v46, 0.0  ;;  %v1711_v27 = vmul.f32 1.442695, %v1693_v20 }
 0x431   : > { %3191 = vmax.xlane.f32.xlu0 %v9326_v54  ;;  %vm3121_vm12 = vcmp.gt.f32.partialorder %v3105_v61, 0.0  ;;  %v9372_v54 = vpop.permute.xlu1 %4540  ;;  %v3154_v51 = vsel %vm3122_vm2, %v3106_v43, %v3138_v34  ;;  %vm3123_vm2 = vcmp.gt.f32.partialorder %v3107_v33, 0.0 }
 0x432   : > { %7278 = vset.pattern.permute.xlu1 %v12235_v0  ;;  %v9347_v0 = vsel %vm12344_vm15, %v3652_v47, -1e+30  ;;  %v3137_v47 = vmul.f32 0.2, %v3105_v61  ;;  %v9385_v18 = vsel %vm8808_vm6, %v3154_v51, -1e+30 }
 0x433   : > { %12433 = vst [vmem:[#allocation145_spill] sm:$0xff] %v9347_v0  ;;  %12441 = vst [vmem:[#allocation149_spill] sm:$0xff] %v9385_v18  ;;  %v12445_v51 = vld [vmem:[#allocation68_spill] sm:$0xff] }
 0x434   : > { %v3153_v63 = vsel %vm3121_vm12, %v3105_v61, %v3137_v47 }
 0x435   : > { %3195 = vmax.xlane.f32.xlu0 %v9336_v41  ;;  %v9354_v41 = vpop.xlane.xlu0 %2685  ;;  %v9376_v58 = vsel %vm8824_vm13, %v3153_v63, -1e+30  ;;  %v9387_v47 = vpop.permute.xlu1 %4544  ;;  %v2149_v63 = vsel %vm2117_vm0, %v2101_v46, %v2133_v23  ;;  %v12448_v23 = vld [vmem:[#allocation38_spill] sm:$0xff] }
 0x436   : > { %12435 = vst [vmem:[#allocation56_spill] sm:$0xff] %v9354_v41  ;;  %12439 = vst [vmem:[#allocation147_spill] sm:$0xff] %v9376_v58 }
 0x439   : > { %3693 = vmax.xlane.f32.xlu0 %v9347_v0  ;;  %v9367_v39 = vpop.eup %7292  ;;  %v9370_v0 = vpop.xlane.xlu0 %2187 }
 0x43a   : > { %12438 = vst [vmem:[#allocation80_spill] sm:$0xff] %v9370_v0  ;;  %v9392_v43 = vpop.eup %7294  ;;  %v12454_v0 = vld [vmem:[#allocation82_spill] sm:$0xff] }
 0x43b   : > { %v9403_v21 = vpop.eup %7296  ;;  %v1694_v41 = vsub.f32 %v12454_v0, %v9086_v49  ;;  %v12458_v0 = vld [vmem:[#allocation23_spill] sm:$0xff] }
 0x43d   : > { %3697 = vmax.xlane.f32.xlu0 %v9358_v8  ;;  %v1709_v8 = vmul.f32 1.442695, %v1692_v22  ;;  %v9381_v61 = vpop.xlane.xlu0 %2189  ;;  %v12442_v22 = vld [vmem:[#allocation55_spill] sm:$0xff] }
 0x43e   : > { %12440 = vst [vmem:[#allocation148_spill] sm:$0xff] %v9381_v61  ;;  %v2603_v13 = vadd.f32 %v8869_v12, %v12442_v22  ;;  %v9408_v22 = vsel %vm8824_vm13, %v2149_v63, -1e+30  ;;  %v3139_v61 = vmul.f32 0.2, %v3107_v33 }
 0x43f   : > { %7298 = vpow2.f32 %v1709_v8  ;;  %12446 = vst [vmem:[#allocation70_spill] sm:$0xff] %v9408_v22 }
 0x440   : > { %v2635_v34 = vmul.f32 0.2, %v2603_v13  ;;  %vm2619_vm12 = vcmp.gt.f32.partialorder %v2603_v13, 0.0  ;;  %7300 = vpow2.f32 %v1711_v27 }
 0x441   : > { %1328 = vadd.xlane.f32.xlu0 %v9367_v39  ;;  %v9397_v8 = vpop.xlane.xlu0 %2687 }
 0x442   : > { %12444 = vst [vmem:[#allocation55_spill] sm:$0xff] %v9397_v8  ;;  %v3108_v8 = vadd.f32 %v9191_v60, %v12447_v56  ;;  %v2651_v46 = vsel %vm2619_vm12, %v2603_v13, %v2635_v34  ;;  %v3155_v34 = vsel %vm3123_vm2, %v3107_v33, %v3139_v61 }
 0x443   : > { %v9426_v13 = vsel %vm8824_vm13, %v2651_v46, -1e+30  ;;  %v9439_v61 = vsel %vm8915_vm3, %v3155_v34, -1e+30  ;;  %v3595_v34 = vadd.f32 %v9217_v55, %v12458_v0 }
 0x444   : > { %12451 = vst [vmem:[#allocation62_spill] sm:$0xff] %v9426_v13  ;;  %v3140_v56 = vmul.f32 0.2, %v3108_v8  ;;  %vm3124_vm12 = vcmp.gt.f32.partialorder %v3108_v8, 0.0  ;;  %12455 = vst [vmem:[#allocation38_spill] sm:$0xff] %v9439_v61 }
 0x445   : > { %3197 = vmax.xlane.f32.xlu0 %v9376_v58  ;;  %v2605_v58 = vadd.f32 %v8869_v12, %v12445_v51  ;;  %v3093_v51 = vadd.f32 %v9191_v60, %v12448_v23  ;;  %v9419_v63 = vpop.xlane.xlu0 %2691 }
 0x446   : > { %12450 = vst [vmem:[#allocation68_spill] sm:$0xff] %v9419_v63  ;;  %v3095_v63 = vadd.f32 %v9191_v60, %v12453_v38  ;;  %v3156_v33 = vsel %vm3124_vm12, %v3108_v8, %v3140_v56  ;;  %v12457_v38 = vld [vmem:[#allocation52_spill] sm:$0xff]  ;;  %vm3611_vm12 = vcmp.gt.f32.partialorder %v3595_v34, 0.0 }
 0x447   : > { %v2637_v12 = vmul.f32 0.2, %v2605_v58  ;;  %vm2621_vm0 = vcmp.gt.f32.partialorder %v2605_v58, 0.0  ;;  %v3125_v35 = vmul.f32 0.2, %v3093_v51  ;;  %vm3109_vm4 = vcmp.gt.f32.partialorder %v3093_v51, 0.0 }
 0x448   : > { %v3127_v20 = vmul.f32 0.2, %v3095_v63  ;;  %v9455_v8 = vsel %vm12391_vm1, %v3156_v33, -1e+30 }
 0x449   : > { %3199 = vmax.xlane.f32.xlu0 %v9385_v18  ;;  %v9401_v18 = vpop.permute.xlu1 %4548  ;;  %v2653_v3 = vsel %vm2621_vm0, %v2605_v58, %v2637_v12  ;;  %v9435_v46 = vpop.permute.xlu0 %4030  ;;  %v3608_v12 = vadd.f32 %v9217_v55, %v12457_v38  ;;  %v3141_v49 = vsel %vm3109_vm4, %v3093_v51, %v3125_v35  ;;  %vm3111_vm0 = vcmp.gt.f32.partialorder %v3095_v63, 0.0  ;;  %v12461_v38 = vld [vmem:[#allocation28_spill] sm:$0xff] }
 0x44a   : > { %v9444_v58 = vsel %vm8915_vm3, %v2653_v3, -1e+30  ;;  %v9460_v56 = vsel %vm8581_vm8, %v3141_v49, -1e+30  ;;  %v3143_v27 = vsel %vm3111_vm0, %v3095_v63, %v3127_v20  ;;  %v3597_v0 = vadd.f32 %v9217_v55, %v12461_v38  ;;  %v12465_v38 = vld [vmem:[#allocation49_spill] sm:$0xff] }
 0x44b   : > { %12456 = vst [vmem:[#allocation89_spill] sm:$0xff] %v9444_v58  ;;  %12460 = vst [vmem:[#allocation26_spill] sm:$0xff] %v9460_v56  ;;  %v3640_v3 = vmul.f32 0.2, %v3608_v12  ;;  %vm3624_vm4 = vcmp.gt.f32.partialorder %v3608_v12, 0.0 }
 0x44c   : > { %v9417_v10 = vpop.eup %7298  ;;  %v3629_v20 = vmul.f32 0.2, %v3597_v0 }
 0x44d   : > { %1330 = vadd.xlane.f32.xlu0 %v9392_v43  ;;  %v9421_v40 = vpop.permute.xlu1 %4556  ;;  %v9462_v35 = vpop.permute.xlu0 %4046  ;;  %v3656_v63 = vsel %vm3624_vm4, %v3608_v12, %v3640_v3 }
 0x451   : > { %1332 = vadd.xlane.f32.xlu0 %v9403_v21 }
 0x452   : > { %2193 = vmax.xlane.f32.xlu1 %v9408_v22  ;;  %v12452_v22 = vld [vmem:[#allocation57_spill] sm:$0xff] }
 0x453   : > { %v3607_v23 = vadd.f32 %v9217_v55, %v12452_v22  ;;  %12459 = vst [vmem:[#allocation57_spill] sm:$0xff] %v9455_v8 }
 0x455   : > { %1741 = vadd.xlane.f32.xlu0 %v9417_v10  ;;  %v3639_v22 = vmul.f32 0.2, %v3607_v23  ;;  %vm3623_vm2 = vcmp.gt.f32.partialorder %v3607_v23, 0.0 }
 0x456   : > { %2695 = vmax.xlane.f32.xlu1 %v9426_v13  ;;  %v1713_v13 = vmul.f32 1.442695, %v1694_v41  ;;  %v3627_v41 = vmul.f32 0.2, %v3595_v34 }
 0x457   : > { %v3655_v51 = vsel %vm3623_vm2, %v3607_v23, %v3639_v22  ;;  %v9476_v23 = vsel %vm8647_vm11, %v3143_v27, -1e+30  ;;  %vm3613_vm2 = vcmp.gt.f32.partialorder %v3597_v0, 0.0 }
 0x458   : > { %7302 = vpow2.f32 %v1713_v13  ;;  %v9469_v33 = vsel %vm8824_vm13, %v3655_v51, -1e+30  ;;  %12464 = vst [vmem:[#allocation23_spill] sm:$0xff] %v9476_v23  ;;  %v3643_v22 = vsel %vm3611_vm12, %v3595_v34, %v3627_v41  ;;  %v3097_v13 = vadd.f32 %v9191_v60, %v12465_v38  ;;  %v12469_v34 = vld [vmem:[#allocation73_spill] sm:$0xff] }
 0x459   : > { %3201 = vmax.xlane.f32.xlu0 %v9439_v61  ;;  %v9451_v61 = vpop.permute.xlu1 %4560  ;;  %12462 = vst [vmem:[#allocation82_spill] sm:$0xff] %v9469_v33  ;;  %v9492_v12 = vsel %vm8581_vm8, %v3643_v22, -1e+30  ;;  %v3609_v3 = vadd.f32 %v9217_v55, %v12469_v34  ;;  %v3645_v27 = vsel %vm3613_vm2, %v3597_v0, %v3629_v20  ;;  %v12474_v20 = vld [vmem:[#allocation63_spill] sm:$0xff] }
 0x45a   : > { %2699 = vmax.xlane.f32.xlu1 %v9444_v58  ;;  %v9483_v58 = vpop.permute.xlu0 %4058  ;;  %12468 = vst [vmem:[#allocation49_spill] sm:$0xff] %v9492_v12  ;;  %vm3113_vm0 = vcmp.gt.f32.partialorder %v3097_v13, 0.0  ;;  %v9508_v22 = vsel %vm8647_vm11, %v3645_v27, -1e+30  ;;  %v3610_v34 = vadd.f32 %v9217_v55, %v12474_v20 }
 0x45b   : > { %12473 = vst [vmem:[#allocation73_spill] sm:$0xff] %v9508_v22  ;;  %v3641_v0 = vmul.f32 0.2, %v3609_v3  ;;  %vm3625_vm4 = vcmp.gt.f32.partialorder %v3609_v3, 0.0 }
 0x45c   : > { %vm3626_vm2 = vcmp.gt.f32.partialorder %v3610_v34, 0.0 }
 0x45d   : > { %3203 = vmax.xlane.f32.xlu0 %v9455_v8  ;;  %v9471_v49 = vpop.permute.xlu1 %4564  ;;  %v12466_v8 = vld [vmem:[#allocation88_spill] sm:$0xff] }
 0x45e   : > { %3173 = vmax.xlane.f32.xlu1 %v9460_v56  ;;  %12463 = vst [vmem:[#allocation52_spill] sm:$0xff] %v9471_v49  ;;  %v1282_v51 = vsub.f32 %v12466_v8, %v9099_v44  ;;  %v3129_v44 = vmul.f32 0.2, %v3097_v13  ;;  %v12470_v8 = vld [vmem:[#allocation39_spill] sm:$0xff] }
 0x45f   : > { %v3099_v41 = vadd.f32 %v9191_v60, %v12470_v8  ;;  %v9512_v8 = vpop.permute.xlu0 %4066 }
 0x460   : > { %v1302_v38 = vmul.f32 1.442695, %v1282_v51 }
 0x461   : > { %3699 = vmax.xlane.f32.xlu0 %v9469_v33  ;;  %v9487_v33 = vsel %vm8808_vm6, %v3656_v63, -1e+30  ;;  %v12471_v63 = vld [vmem:[#allocation91_spill] sm:$0xff]  ;;  %v9501_v56 = vpop.permute.xlu1 %4568  ;;  %v3131_v51 = vmul.f32 0.2, %v3099_v41  ;;  %vm3115_vm12 = vcmp.gt.f32.partialorder %v3099_v41, 0.0 }
 0x462   : > { %3177 = vmax.xlane.f32.xlu1 %v9476_v23  ;;  %12467 = vst [vmem:[#allocation28_spill] sm:$0xff] %v9487_v33  ;;  %v1283_v23 = vsub.f32 %v12471_v63, %v9097_v15  ;;  %v3145_v15 = vsel %vm3113_vm0, %v3097_v13, %v3129_v44  ;;  %v12475_v63 = vld [vmem:[#allocation34_spill] sm:$0xff]  ;;  %7304 = vpow2.f32 %v1302_v38  ;;  %v3642_v13 = vmul.f32 0.2, %v3610_v34  ;;  %v12479_v38 = vld [vmem:[#allocation40_spill] sm:$0xff] }
 0x463   : > { %v9524_v20 = vsel %vm8667_vm14, %v3145_v15, -1e+30  ;;  %v3147_v44 = vsel %vm3115_vm12, %v3099_v41, %v3131_v51  ;;  %v9529_v49 = vpop.permute.xlu0 %4078  ;;  %v12483_v51 = vld [vmem:[#allocation65_spill] sm:$0xff] }
 0x464   : > { %12478 = vst [vmem:[#allocation63_spill] sm:$0xff] %v9524_v20  ;;  %v3658_v41 = vsel %vm3626_vm2, %v3610_v34, %v3642_v13 }
 0x465   : > { %3701 = vmax.xlane.f32.xlu0 %v9487_v33  ;;  %v9503_v33 = vpop.eup %7300  ;;  %v9519_v27 = vpop.permute.xlu1 %4572 }
 0x466   : > { %3675 = vmax.xlane.f32.xlu1 %v9492_v12  ;;  %12472 = vst [vmem:[#allocation88_spill] sm:$0xff] %v9503_v33  ;;  %v3599_v12 = vadd.f32 %v9217_v55, %v12475_v63  ;;  %v9517_v32 = vpop.eup %7302  ;;  %12477 = vst [vmem:[#allocation91_spill] sm:$0xff] %v9519_v27 }
 0x467   : > { %12476 = vst [vmem:[#allocation39_spill] sm:$0xff] %v9517_v32  ;;  %v9554_v34 = vpop.permute.xlu0 %4552 }
 0x468   : > { %v3631_v63 = vmul.f32 0.2, %v3599_v12  ;;  %vm3615_vm0 = vcmp.gt.f32.partialorder %v3599_v12, 0.0 }
 0x469   : > { %1743 = vadd.xlane.f32.xlu0 %v9503_v33  ;;  %v1304_v33 = vmul.f32 1.442695, %v1283_v23  ;;  %v3601_v23 = vadd.f32 %v9217_v55, %v12479_v38  ;;  %v9543_v38 = vpop.permute.xlu1 %4576 }
 0x46a   : > { %3679 = vmax.xlane.f32.xlu1 %v9508_v22  ;;  %v3657_v22 = vsel %vm3625_vm4, %v3609_v3, %v3641_v0  ;;  %vm12481_vm4 = vnez %v12274_v25  ;;  %v3647_v0 = vsel %vm3615_vm0, %v3599_v12, %v3631_v63  ;;  %v12486_v63 = vld [vmem:[#allocation48_spill] sm:$0xff] }
 0x46b   : > { %7306 = vpow2.f32 %v1304_v33  ;;  %v9538_v3 = vsel %vm12481_vm4, %v3147_v44, -1e+30  ;;  %v3633_v15 = vmul.f32 0.2, %v3601_v23  ;;  %v3101_v33 = vadd.f32 %v9191_v60, %v12483_v51 }
 0x46c   : > { %12482 = vst [vmem:[#allocation40_spill] sm:$0xff] %v9538_v3  ;;  %vm3617_vm12 = vcmp.gt.f32.partialorder %v3601_v23, 0.0  ;;  %v9552_v44 = vsel %vm8667_vm14, %v3647_v0, -1e+30  ;;  %v3103_v51 = vadd.f32 %v9191_v60, %v12486_v63 }
 0x46d   : > { %1745 = vadd.xlane.f32.xlu0 %v9517_v32  ;;  %v9533_v32 = vsel %vm8915_vm3, %v3657_v22, -1e+30  ;;  %v9547_v22 = vsel %vm12391_vm1, %v3658_v41, -1e+30  ;;  %12485 = vst [vmem:[#allocation150_spill] sm:$0xff] %v9552_v44  ;;  %v3649_v12 = vsel %vm3617_vm12, %v3601_v23, %v3633_v15  ;;  %vm3117_vm2 = vcmp.gt.f32.partialorder %v3101_v33, 0.0 }
 0x46e   : > { %3181 = vmax.xlane.f32.xlu1 %v9524_v20  ;;  %12480 = vst [vmem:[#allocation34_spill] sm:$0xff] %v9533_v32  ;;  %12484 = vst [vmem:[#allocation65_spill] sm:$0xff] %v9547_v22  ;;  %v3133_v13 = vmul.f32 0.2, %v3101_v33  ;;  %v9568_v0 = vsel %vm12481_vm4, %v3649_v12, -1e+30 }
 0x46f   : > { %v9561_v41 = vpop.eup %7304  ;;  %v3135_v15 = vmul.f32 0.2, %v3103_v51  ;;  %vm3119_vm0 = vcmp.gt.f32.partialorder %v3103_v51, 0.0 }
 0x470   : > { %v3149_v23 = vsel %vm3117_vm2, %v3101_v33, %v3133_v13  ;;  %v12494_v13 = vld [vmem:[#allocation50_spill] sm:$0xff]  ;;  %vm12495_vm2 = vnez %v12283_v24 }
 0x471   : > { %3703 = vmax.xlane.f32.xlu0 %v9533_v32  ;;  %v9559_v32 = vpop.xlane.xlu1 %2185  ;;  %v3151_v33 = vsel %vm3119_vm0, %v3103_v51, %v3135_v15 }
 0x472   : > { %3185 = vmax.xlane.f32.xlu1 %v9538_v3  ;;  %12487 = vst [vmem:[#allocation48_spill] sm:$0xff] %v9559_v32  ;;  %v9575_v32 = vpop.permute.xlu0 %4580 }
 0x475   : > { %3705 = vmax.xlane.f32.xlu0 %v9547_v22  ;;  %v12488_v22 = vld [vmem:[#allocation79_spill] sm:$0xff] }
 0x476   : > { %3683 = vmax.xlane.f32.xlu1 %v9552_v44  ;;  %v1278_v3 = vsub.f32 %v12488_v22, %v9076_v16  ;;  %12489 = vst [vmem:[#allocation79_spill] sm:$0xff] %v9568_v0  ;;  %v12490_v44 = vld [vmem:[#allocation44_spill] sm:$0xff]  ;;  %v9577_v16 = vpop.xlane.xlu1 %2191  ;;  %v9582_v22 = vsel %vm12350_vm10, %v3149_v23, -1e+30 }
 0x477   : > { %v3603_v60 = vadd.f32 %v9217_v55, %v12490_v44  ;;  %12491 = vst [vmem:[#allocation44_spill] sm:$0xff] %v9575_v32  ;;  %12492 = vst [vmem:[#allocation151_spill] sm:$0xff] %v9577_v16  ;;  %v3605_v44 = vadd.f32 %v9217_v55, %v12494_v13 }
 0x478   : > { %v9573_v63 = vpop.eup %7306  ;;  %v1294_v20 = vmul.f32 1.442695, %v1278_v3  ;;  %12493 = vst [vmem:[#allocation152_spill] sm:$0xff] %v9582_v22  ;;  %v9589_v3 = vsel %vm12495_vm2, %v3151_v33, -1e+30 }
 0x479   : > { %1334 = vadd.xlane.f32.xlu0 %v9561_v41  ;;  %v3635_v12 = vmul.f32 0.2, %v3603_v60  ;;  %vm3619_vm12 = vcmp.gt.f32.partialorder %v3603_v60, 0.0  ;;  %12496 = vst [vmem:[#allocation50_spill] sm:$0xff] %v9589_v3  ;;  %v3637_v23 = vmul.f32 0.2, %v3605_v44 }
 0x47a   : > { %3687 = vmax.xlane.f32.xlu1 %v9568_v0  ;;  %7308 = vpow2.f32 %v1294_v20  ;;  %v9591_v0 = vpop.permute.xlu0 %4592  ;;  %v9594_v52 = vpop.xlane.xlu1 %2689  ;;  %vm3621_vm1 = vcmp.gt.f32.partialorder %v3605_v44, 0.0 }
 0x47b   : > { %12497 = vst [vmem:[#allocation153_spill] sm:$0xff] %v9591_v0  ;;  %v3651_v16 = vsel %vm3619_vm12, %v3603_v60, %v3635_v12  ;;  %12498 = vst [vmem:[#allocation154_spill] sm:$0xff] %v9594_v52  ;;  %v3653_v20 = vsel %vm3621_vm1, %v3605_v44, %v3637_v23  ;;  %v12506_v44 = vld [vmem:[#allocation5_spill] sm:$0xff]  ;;  %v4095_v52 = vsub.s32 6, %v8552_v4 }
 0x47c   : > { %v9598_v51 = vsel %vm12350_vm10, %v3651_v16, -1e+30  ;;  %v9607_v33 = vsel %vm12495_vm2, %v3653_v20, -1e+30 }
 0x47d   : > { %1336 = vadd.xlane.f32.xlu0 %v9573_v63  ;;  %12499 = vst [vmem:[#allocation155_spill] sm:$0xff] %v9598_v51  ;;  %12502 = vst [vmem:[#allocation158_spill] sm:$0xff] %v9607_v33 }
 0x47e   : > { %3189 = vmax.xlane.f32.xlu1 %v9582_v22  ;;  %v9603_v15 = vpop.xlane.xlu1 %2693 }
 0x47f   : > { %12501 = vst [vmem:[#allocation157_spill] sm:$0xff] %v9603_v15  ;;  %v12510_v15 = vld [vmem:[#allocation3_spill] sm:$0xff] }
 0x482   : > { %3193 = vmax.xlane.f32.xlu1 %v9589_v3  ;;  %v4035_v13 = vpop.permute.xlu1 %4034 }
 0x486   : > { %3691 = vmax.xlane.f32.xlu1 %v9598_v51  ;;  %v9601_v55 = vpop.xlane.xlu0 %2195  ;;  %v9621_v23 = vpop.permute.xlu1 %4038 }
 0x487   : > { %12500 = vst [vmem:[#allocation156_spill] sm:$0xff] %v9601_v55  ;;  %v9612_v12 = vpop.eup %7308 }
 0x48a   : > { %3695 = vmax.xlane.f32.xlu1 %v9607_v33  ;;  %v9610_v60 = vpop.xlane.xlu0 %2197  ;;  %v4043_v22 = vpop.permute.xlu1 %4042 }
 0x48b   : > { %12503 = vst [vmem:[#allocation159_spill] sm:$0xff] %v9610_v60 }
 0x48e   : > { %1326 = vadd.xlane.f32.xlu1 %v9612_v12  ;;  %v9615_v16 = vpop.xlane.xlu0 %2199  ;;  %v9634_v60 = vpop.permute.xlu1 %4050 }
 0x48f   : > { %12504 = vst [vmem:[#allocation160_spill] sm:$0xff] %v9615_v16 }
 0x492   : > { %v9617_v51 = vpop.xlane.xlu0 %2697 }
 0x493   : > { %12505 = vst [vmem:[#allocation161_spill] sm:$0xff] %v9617_v51  ;;  %1829 = vrot.lane.b32.xlu0 %v12506_v44, %s7924_s25  ;;  %v12511_v51 = vld [vmem:[#allocation86_spill] sm:$0xff]  ;;  %v9639_v44 = vrot.slane %v8566_v48, %v4095_v52  ;;  %v12516_v52 = vld [vmem:[#allocation84_spill] sm:$0xff] }
 0x494   : > { %v1696_v16 = vsub.f32 %v12511_v51, %v9092_v37  ;;  %v4597_v37 = vsub.s32 7, %v8552_v4  ;;  %v12515_v51 = vld [vmem:[#allocation93_spill] sm:$0xff]  ;;  %v1691_v27 = vsub.f32 %v12516_v52, %v9084_v19 }
 0x496   : > { %v9623_v20 = vpop.xlane.xlu0 %2701  ;;  %v1707_v9 = vmul.f32 1.442695, %v1691_v27 }
 0x497   : > { %12507 = vst [vmem:[#allocation162_spill] sm:$0xff] %v9623_v20  ;;  %v1717_v20 = vmul.f32 1.442695, %v1696_v16 }
 0x499   : > { %7310 = vpow2.f32 %v1717_v20  ;;  %v9659_v20 = vrot.slane %v8566_v48, %v4597_v37  ;;  %v1286_v48 = vsub.f32 %v8841_v42, %v9139_v31 }
 0x49a   : > { %v9625_v33 = vpop.xlane.xlu0 %3175 }
 0x49b   : > { %12508 = vst [vmem:[#allocation163_spill] sm:$0xff] %v9625_v33  ;;  %v4098_v33 = vadd.f32 %v9639_v44, %v4035_v13  ;;  %v4100_v13 = vadd.f32 %v9639_v44, %v4043_v22  ;;  %v1310_v52 = vmul.f32 1.442695, %v1286_v48 }
 0x49d   : > { %v4130_v36 = vmul.f32 0.2, %v4098_v33  ;;  %vm4114_vm1 = vcmp.gt.f32.partialorder %v4098_v33, 0.0  ;;  %v4132_v19 = vmul.f32 0.2, %v4100_v13  ;;  %vm4116_vm0 = vcmp.gt.f32.partialorder %v4100_v13, 0.0 }
 0x49e   : > { %v9627_v3 = vpop.xlane.xlu0 %3179 }
 0x49f   : > { %12509 = vst [vmem:[#allocation164_spill] sm:$0xff] %v9627_v3  ;;  %1833 = vrot.lane.b32.xlu1 %v12510_v15, %s7924_s25  ;;  %v9644_v3 = vpop.permute.xlu1 %4054  ;;  %v4146_v24 = vsel %vm4114_vm1, %v4098_v33, %v4130_v36  ;;  %v12524_v33 = vld [vmem:[#allocation97_spill] sm:$0xff] }
 0x4a0   : > { %v9663_v4 = vsel %vm8577_vm7, %v4146_v24, -1e+30 }
 0x4a1   : > { %12518 = vst [vmem:[#allocation84_spill] sm:$0xff] %v9663_v4 }
 0x4a2   : > { %v9636_v55 = vpop.xlane.xlu0 %3677 }
 0x4a3   : > { %12512 = vst [vmem:[#allocation86_spill] sm:$0xff] %v9636_v55  ;;  %v1698_v55 = vsub.f32 %v12515_v51, %v9119_v26  ;;  %v9653_v16 = vpop.permute.xlu1 %4062  ;;  %v4600_v26 = vadd.f32 %v9659_v20, %v9360_v50  ;;  %v4148_v50 = vsel %vm4116_vm0, %v4100_v13, %v4132_v19 }
 0x4a4   : > { %v4105_v14 = vadd.f32 %v9639_v44, %v9653_v16  ;;  %v4109_v16 = vadd.f32 %v9639_v44, %v9529_v49 }
 0x4a5   : > { %v4632_v24 = vmul.f32 0.2, %v4600_v26  ;;  %vm4616_vm12 = vcmp.gt.f32.partialorder %v4600_v26, 0.0 }
 0x4a6   : > { %v9642_v0 = vpop.xlane.xlu0 %3681  ;;  %v9674_v36 = vpop.eup %7310 }
 0x4a7   : > { %12513 = vst [vmem:[#allocation165_spill] sm:$0xff] %v9642_v0  ;;  %v9670_v22 = vpop.permute.xlu1 %4070  ;;  %12521 = vst [vmem:[#allocation169_spill] sm:$0xff] %v9674_v36  ;;  %v4648_v31 = vsel %vm4616_vm12, %v4600_v26, %v4632_v24 }
 0x4a8   : > { %12520 = vst [vmem:[#allocation168_spill] sm:$0xff] %v9670_v22  ;;  %v9694_v19 = vsel %vm8577_vm7, %v4648_v31, -1e+30 }
 0x4a9   : > { %12527 = vst [vmem:[#allocation171_spill] sm:$0xff] %v9694_v19 }
 0x4aa   : > { %v9646_v32 = vpop.xlane.xlu0 %3183 }
 0x4ab   : > { %12514 = vst [vmem:[#allocation166_spill] sm:$0xff] %v9646_v32  ;;  %v1721_v32 = vmul.f32 1.442695, %v1698_v55  ;;  %v12523_v55 = vld [vmem:[#allocation19_spill] sm:$0xff] }
 0x4ac   : > { %v1287_v37 = vsub.f32 %v12524_v33, %v12523_v55 }
 0x4ad   : > { %7312 = vpow2.f32 %v1721_v32  ;;  %v9685_v32 = vsel %vm8585_vm9, %v4148_v50, -1e+30 }
 0x4ae   : > { %v9656_v0 = vpop.xlane.xlu0 %3187  ;;  %7314 = vpow2.f32 %v1707_v9  ;;  %12525 = vst [vmem:[#allocation19_spill] sm:$0xff] %v9685_v32  ;;  %v4602_v9 = vadd.f32 %v9659_v20, %v9387_v47  ;;  %v1312_v13 = vmul.f32 1.442695, %v1287_v37 }
 0x4af   : > { %12517 = vst [vmem:[#allocation93_spill] sm:$0xff] %v9656_v0  ;;  %7316 = vpow2.f32 %v1310_v52 }
 0x4b0   : > { %v4634_v48 = vmul.f32 0.2, %v4602_v9  ;;  %vm4618_vm1 = vcmp.gt.f32.partialorder %v4602_v9, 0.0  ;;  %7318 = vpow2.f32 %v1312_v13 }
 0x4b2   : > { %4179 = vmax.xlane.f32.xlu0 %v9663_v4  ;;  %v9668_v51 = vpop.xlane.xlu0 %3685  ;;  %v9681_v4 = vpop.permute.xlu1 %4074  ;;  %v4650_v24 = vsel %vm4618_vm1, %v4602_v9, %v4634_v48 }
 0x4b3   : > { %12519 = vst [vmem:[#allocation167_spill] sm:$0xff] %v9668_v51  ;;  %v9713_v52 = vsel %vm8585_vm9, %v4650_v24, -1e+30  ;;  %vm12579_vm9 = vnez %v12263_v29 }
 0x4b4   : > { %12532 = vst [vmem:[#allocation176_spill] sm:$0xff] %v9713_v52 }
 0x4b6   : > { %1749 = vadd.xlane.f32.xlu0 %v9674_v36  ;;  %v9677_v27 = vpop.xlane.xlu0 %3689  ;;  %v9699_v50 = vpop.permute.xlu1 %4082 }
 0x4b7   : > { %12522 = vst [vmem:[#allocation170_spill] sm:$0xff] %v9677_v27  ;;  %v12546_v27 = vld [vmem:[#allocation16_spill] sm:$0xff]  ;;  %v4110_v49 = vadd.f32 %v9639_v44, %v9699_v50  ;;  %v12631_v50 = vld [vmem:[#allocation21_spill] sm:$0xff] }
 0x4ba   : > { %4183 = vmax.xlane.f32.xlu0 %v9685_v32  ;;  %v9690_v42 = vpop.xlane.xlu0 %3191  ;;  %v9701_v47 = vpop.eup %7312 }
 0x4bb   : > { %12526 = vst [vmem:[#allocation97_spill] sm:$0xff] %v9690_v42  ;;  %12529 = vst [vmem:[#allocation173_spill] sm:$0xff] %v9701_v47  ;;  %v9703_v33 = vpop.eup %7314  ;;  %v9709_v37 = vpop.permute.xlu1 %4086 }
 0x4bc   : > { %12531 = vst [vmem:[#allocation175_spill] sm:$0xff] %v9709_v37  ;;  %v9718_v13 = vpop.eup %7316 }
 0x4bd   : > { %12534 = vst [vmem:[#allocation178_spill] sm:$0xff] %v9718_v13  ;;  %v9725_v9 = vpop.eup %7318 }
 0x4be   : > { %4681 = vmax.xlane.f32.xlu0 %v9694_v19  ;;  %v9697_v55 = vpop.xlane.xlu0 %3195 }
 0x4bf   : > { %12528 = vst [vmem:[#allocation172_spill] sm:$0xff] %v9697_v55  ;;  %v9723_v19 = vpop.permute.xlu1 %4090 }
 0x4c0   : > { %12535 = vst [vmem:[#allocation179_spill] sm:$0xff] %v9723_v19 }
 0x4c2   : > { %1753 = vadd.xlane.f32.xlu0 %v9701_v47  ;;  %v9706_v26 = vpop.xlane.xlu0 %3693  ;;  %v12547_v47 = vld [vmem:[#allocation98_spill] sm:$0xff] }
 0x4c3   : > { %12530 = vst [vmem:[#allocation174_spill] sm:$0xff] %v9706_v26  ;;  %1739 = vadd.xlane.f32.xlu1 %v9703_v33  ;;  %v9730_v24 = vpop.permute.xlu1 %4584  ;;  %v1284_v36 = vsub.f32 %v12547_v47, %v12546_v27 }
 0x4c4   : > { %12537 = vst [vmem:[#allocation181_spill] sm:$0xff] %v9730_v24  ;;  %v12550_v24 = vld [vmem:[#allocation13_spill] sm:$0xff] }
 0x4c5   : > { %v1306_v37 = vmul.f32 1.442695, %v1284_v36 }
 0x4c6   : > { %4685 = vmax.xlane.f32.xlu0 %v9713_v52  ;;  %v9716_v31 = vpop.xlane.xlu0 %3697  ;;  %v12539_v52 = vld [vmem:[#allocation4_spill] sm:$0xff] }
 0x4c7   : > { %12533 = vst [vmem:[#allocation177_spill] sm:$0xff] %v9716_v31  ;;  %v9738_v31 = vpop.permute.xlu1 %4588  ;;  %7320 = vpow2.f32 %v1306_v37 }
 0x4c8   : > { %12540 = vst [vmem:[#allocation183_spill] sm:$0xff] %v9738_v31 }
 0x4ca   : > { %1342 = vadd.xlane.f32.xlu0 %v9718_v13  ;;  %v9721_v1 = vpop.xlane.xlu0 %1328  ;;  %v12555_v13 = vld [vmem:[#allocation95_spill] sm:$0xff] }
 0x4ce   : > { %1344 = vadd.xlane.f32.xlu0 %v9725_v9  ;;  %v9728_v48 = vpop.xlane.xlu0 %3197 }
 0x4cf   : > { %12536 = vst [vmem:[#allocation180_spill] sm:$0xff] %v9728_v48 }
 0x4d2   : > { %v9732_v5 = vpop.xlane.xlu0 %3199 }
 0x4d3   : > { %12538 = vst [vmem:[#allocation182_spill] sm:$0xff] %v9732_v5  ;;  %v12545_v5 = vld [vmem:[#allocation7_spill] sm:$0xff] }
 0x4d4   : > { %1831 = vrot.lane.b32.xlu1 %v12539_v52, %s7924_s25 }
 0x4d6   : > { %v9736_v32 = vpop.xlane.xlu0 %1330 }
 0x4da   : > { %v9740_v26 = vpop.xlane.xlu0 %1332 }
 0x4db   : > { %v9742_v55 = vpop.xlane.xlu1 %2193 }
 0x4dc   : > { %12541 = vst [vmem:[#allocation184_spill] sm:$0xff] %v9742_v55  ;;  %v12551_v55 = vld [vmem:[#allocation90_spill] sm:$0xff] }
 0x4dd   : > { %v1285_v19 = vsub.f32 %v12551_v55, %v12550_v24  ;;  %v12559_v55 = vld [vmem:[#allocation104_spill] sm:$0xff] }
 0x4de   : > { %v9744_v51 = vpop.xlane.xlu0 %1741 }
 0x4df   : > { %v9746_v0 = vpop.xlane.xlu1 %2695 }
 0x4e0   : > { %12542 = vst [vmem:[#allocation185_spill] sm:$0xff] %v9746_v0 }
 0x4e2   : > { %v9748_v48 = vpop.xlane.xlu0 %3201 }
 0x4e3   : > { %12543 = vst [vmem:[#allocation186_spill] sm:$0xff] %v9748_v48  ;;  %v9750_v42 = vpop.xlane.xlu1 %2699  ;;  %v4097_v48 = vadd.f32 %v9639_v44, %v9435_v46 }
 0x4e4   : > { %12544 = vst [vmem:[#allocation187_spill] sm:$0xff] %v9750_v42  ;;  %1825 = vrot.lane.b32.xlu0 %v12545_v5, %s7924_s25  ;;  %v1308_v42 = vmul.f32 1.442695, %v1285_v19  ;;  %v12554_v5 = vld [vmem:[#allocation78_spill] sm:$0xff] }
 0x4e5   : > { %v1695_v2 = vsub.f32 %v12555_v13, %v12554_v5  ;;  %v4129_v47 = vmul.f32 0.2, %v4097_v48  ;;  %vm4113_vm0 = vcmp.gt.f32.partialorder %v4097_v48, 0.0  ;;  %v4102_v5 = vadd.f32 %v9639_v44, %v9634_v60 }
 0x4e6   : > { %v9756_v52 = vpop.xlane.xlu0 %3203  ;;  %7322 = vpow2.f32 %v1308_v42  ;;  %v12564_v42 = vld [vmem:[#allocation101_spill] sm:$0xff]  ;;  %v4099_v60 = vadd.f32 %v9639_v44, %v9621_v23  ;;  %v4599_v23 = vadd.f32 %v9659_v20, %v9343_v53 }
 0x4e7   : > { %12548 = vst [vmem:[#allocation16_spill] sm:$0xff] %v9756_v52  ;;  %v9758_v31 = vpop.xlane.xlu1 %3173  ;;  %v1715_v24 = vmul.f32 1.442695, %v1695_v2  ;;  %v12563_v2 = vld [vmem:[#allocation18_spill] sm:$0xff]  ;;  %vm4118_vm12 = vcmp.gt.f32.partialorder %v4102_v5, 0.0 }
 0x4e8   : > { %12549 = vst [vmem:[#allocation98_spill] sm:$0xff] %v9758_v31  ;;  %v12558_v31 = vld [vmem:[#allocation20_spill] sm:$0xff]  ;;  %vm4115_vm1 = vcmp.gt.f32.partialorder %v4099_v60, 0.0  ;;  %v4631_v53 = vmul.f32 0.2, %v4599_v23 }
 0x4e9   : > { %v1700_v36 = vsub.f32 %v12559_v55, %v12558_v31  ;;  %7324 = vpow2.f32 %v1715_v24  ;;  %v1697_v31 = vsub.f32 %v12564_v42, %v12563_v2  ;;  %v12567_v24 = vld [vmem:[#allocation112_spill] sm:$0xff]  ;;  %v4104_v2 = vadd.f32 %v9639_v44, %v9483_v58 }
 0x4ea   : > { %v9762_v22 = vpop.xlane.xlu0 %3699 }
 0x4eb   : > { %12552 = vst [vmem:[#allocation13_spill] sm:$0xff] %v9762_v22  ;;  %v9764_v0 = vpop.xlane.xlu1 %3177  ;;  %v1725_v46 = vmul.f32 1.442695, %v1700_v36  ;;  %v4136_v58 = vmul.f32 0.2, %v4104_v2 }
 0x4ec   : > { %12553 = vst [vmem:[#allocation90_spill] sm:$0xff] %v9764_v0  ;;  %v4145_v0 = vsel %vm4113_vm0, %v4097_v48, %v4129_v47  ;;  %v9791_v48 = vpop.eup %7320  ;;  %v4134_v47 = vmul.f32 0.2, %v4102_v5  ;;  %vm4120_vm0 = vcmp.gt.f32.partialorder %v4104_v2, 0.0 }
 0x4ed   : > { %v9786_v13 = vsel %vm8581_vm8, %v4145_v0, -1e+30  ;;  %7326 = vpow2.f32 %v1725_v46  ;;  %v12566_v0 = vld [vmem:[#allocation67_spill] sm:$0xff]  ;;  %v1719_v46 = vmul.f32 1.442695, %v1697_v31 }
 0x4ee   : > { %v9772_v52 = vpop.xlane.xlu0 %3701  ;;  %12562 = vst [vmem:[#allocation188_spill] sm:$0xff] %v9786_v13 }
 0x4ef   : > { %v9770_v27 = vpop.xlane.xlu1 %3675  ;;  %12557 = vst [vmem:[#allocation95_spill] sm:$0xff] %v9772_v52  ;;  %7328 = vpow2.f32 %v1719_v46 }
 0x4f0   : > { %12556 = vst [vmem:[#allocation78_spill] sm:$0xff] %v9770_v27 }
 0x4f2   : > { %v9778_v19 = vpop.xlane.xlu0 %1743 }
 0x4f3   : > { %v9776_v22 = vpop.xlane.xlu1 %3679  ;;  %v9802_v52 = vpop.eup %7322 }
 0x4f4   : > { %12560 = vst [vmem:[#allocation20_spill] sm:$0xff] %v9776_v22 }
 0x4f6   : > { %v9797_v36 = vpop.xlane.xlu0 %1745 }
 0x4f7   : > { %v9782_v37 = vpop.xlane.xlu1 %3181 }
 0x4f8   : > { %12561 = vst [vmem:[#allocation104_spill] sm:$0xff] %v9782_v37  ;;  %4177 = vmax.xlane.f32.xlu1 %v9786_v13  ;;  %v1702_v13 = vsub.f32 %v12567_v24, %v12566_v0  ;;  %v4131_v37 = vmul.f32 0.2, %v4099_v60  ;;  %v9817_v0 = vpop.eup %7324  ;;  %v12572_v24 = vld [vmem:[#allocation109_spill] sm:$0xff] }
 0x4f9   : > { %v1290_v46 = vsub.f32 %v12572_v24, %v9173_v11  ;;  %v12577_v24 = vld [vmem:[#allocation69_spill] sm:$0xff] }
 0x4fa   : > { %v1729_v22 = vmul.f32 1.442695, %v1702_v13  ;;  %v9811_v27 = vpop.xlane.xlu0 %3703  ;;  %v4147_v13 = vsel %vm4115_vm1, %v4099_v60, %v4131_v37  ;;  %v4601_v37 = vadd.f32 %v9659_v20, %v9372_v54 }
 0x4fb   : > { %v9793_v55 = vpop.xlane.xlu1 %3185  ;;  %12569 = vst [vmem:[#allocation67_spill] sm:$0xff] %v9811_v27 }
 0x4fc   : > { %12565 = vst [vmem:[#allocation18_spill] sm:$0xff] %v9793_v55  ;;  %1338 = vadd.xlane.f32.xlu1 %v9791_v48  ;;  %v4150_v55 = vsel %vm4118_vm12, %v4102_v5, %v4134_v47  ;;  %v4604_v5 = vadd.f32 %v9659_v20, %v9554_v34  ;;  %7330 = vpow2.f32 %v1729_v22  ;;  %vm4615_vm12 = vcmp.gt.f32.partialorder %v4599_v23, 0.0 }
 0x4fd   : > { %v9815_v31 = vsel %vm8639_vm5, %v4150_v55, -1e+30  ;;  %v9827_v55 = vpop.eup %7326  ;;  %v9834_v34 = vsel %vm8647_vm11, %v4147_v13, -1e+30  ;;  %v4647_v11 = vsel %vm4615_vm12, %v4599_v23, %v4631_v53  ;;  %v1318_v22 = vmul.f32 1.442695, %v1290_v46 }
 0x4fe   : > { %12570 = vst [vmem:[#allocation112_spill] sm:$0xff] %v9815_v31  ;;  %12573 = vst [vmem:[#allocation109_spill] sm:$0xff] %v9827_v55  ;;  %v4636_v27 = vmul.f32 0.2, %v4604_v5  ;;  %v9838_v60 = vpop.xlane.xlu0 %3705  ;;  %vm4620_vm1 = vcmp.gt.f32.partialorder %v4604_v5, 0.0 }
 0x4ff   : > { %v9806_v42 = vpop.xlane.xlu1 %3683  ;;  %12575 = vst [vmem:[#allocation191_spill] sm:$0xff] %v9834_v34  ;;  %12576 = vst [vmem:[#allocation192_spill] sm:$0xff] %v9838_v60  ;;  %v9854_v54 = vsel %vm8581_vm8, %v4647_v11, -1e+30  ;;  %v4633_v53 = vmul.f32 0.2, %v4601_v37  ;;  %7332 = vpow2.f32 %v1318_v22 }
 0x500   : > { %12568 = vst [vmem:[#allocation101_spill] sm:$0xff] %v9806_v42  ;;  %1340 = vadd.xlane.f32.xlu1 %v9802_v52  ;;  %v4652_v23 = vsel %vm4620_vm1, %v4604_v5, %v4636_v27 }
 0x501   : > { %v9859_v13 = vsel %vm8639_vm5, %v4652_v23, -1e+30 }
 0x502   : > { %12582 = vst [vmem:[#allocation193_spill] sm:$0xff] %v9859_v13 }
 0x503   : > { %v9821_v47 = vpop.xlane.xlu1 %3687  ;;  %4187 = vmax.xlane.f32.xlu0 %v9815_v31  ;;  %v4152_v31 = vsel %vm4120_vm0, %v4104_v2, %v4136_v58  ;;  %v4606_v2 = vadd.f32 %v9659_v20, %v9451_v61  ;;  %vm4617_vm0 = vcmp.gt.f32.partialorder %v4601_v37, 0.0  ;;  %v9861_v61 = vpop.eup %7328 }
 0x504   : > { %12571 = vst [vmem:[#allocation189_spill] sm:$0xff] %v9821_v47  ;;  %1747 = vadd.xlane.f32.xlu1 %v9817_v0  ;;  %v12578_v47 = vld [vmem:[#allocation116_spill] sm:$0xff]  ;;  %v4649_v27 = vsel %vm4617_vm0, %v4601_v37, %v4633_v53 }
 0x505   : > { %12581 = vst [vmem:[#allocation116_spill] sm:$0xff] %v9854_v54  ;;  %v4638_v46 = vmul.f32 0.2, %v4606_v2  ;;  %vm4622_vm12 = vcmp.gt.f32.partialorder %v4606_v2, 0.0  ;;  %v9874_v11 = vsel %vm8647_vm11, %v4649_v27, -1e+30 }
 0x506   : > { %12585 = vst [vmem:[#allocation196_spill] sm:$0xff] %v9874_v11 }
 0x507   : > { %v9829_v42 = vpop.xlane.xlu1 %3189  ;;  %1757 = vadd.xlane.f32.xlu0 %v9827_v55  ;;  %v9845_v55 = vsel %vm12579_vm9, %v4152_v31, -1e+30  ;;  %v1335_v31 = vpop.xlane.xlu0 %1334  ;;  %v4654_v22 = vsel %vm4622_vm12, %v4606_v2, %v4638_v46 }
 0x508   : > { %12574 = vst [vmem:[#allocation190_spill] sm:$0xff] %v9829_v42  ;;  %4181 = vmax.xlane.f32.xlu1 %v9834_v34  ;;  %v1291_v42 = vsub.f32 %v12578_v47, %v12577_v24  ;;  %12580 = vst [vmem:[#allocation69_spill] sm:$0xff] %v9845_v55  ;;  %v9882_v37 = vsel %vm12579_vm9, %v4654_v22, -1e+30  ;;  %v12588_v34 = vld [vmem:[#allocation9_spill] sm:$0xff]  ;;  %vm12604_vm9 = vnez %v12297_v17 }
 0x509   : > { %v9867_v5 = vpop.eup %7330  ;;  %12586 = vst [vmem:[#allocation197_spill] sm:$0xff] %v9882_v37 }
 0x50a   : > { %v1320_v47 = vmul.f32 1.442695, %v1291_v42 }
 0x50b   : > { %v9849_v58 = vpop.xlane.xlu1 %3193  ;;  %4191 = vmax.xlane.f32.xlu0 %v9845_v55  ;;  %v1337_v23 = vpop.xlane.xlu0 %1336 }
 0x50c   : > { %4679 = vmax.xlane.f32.xlu1 %v9854_v54  ;;  %7334 = vpow2.f32 %v1320_v47  ;;  %v9885_v2 = vpop.eup %7332 }
 0x50d   : > { %7336 = vrcp.f32 %v9721_v1 }
 0x50e   : > { %7338 = vrcp.f32 %v9736_v32 }
 0x50f   : > { %v9863_v24 = vpop.xlane.xlu1 %3691  ;;  %4689 = vmax.xlane.f32.xlu0 %v9859_v13  ;;  %7340 = vrcp.f32 %v9740_v26 }
 0x510   : > { %12583 = vst [vmem:[#allocation194_spill] sm:$0xff] %v9863_v24  ;;  %1751 = vadd.xlane.f32.xlu1 %v9861_v61  ;;  %7342 = vrcp.f32 %v1337_v23  ;;  %v12587_v23 = vld [vmem:[#allocation6_spill] sm:$0xff] }
 0x511   : > { %7344 = vrcp.f32 %v1335_v31 }
 0x513   : > { %v9869_v42 = vpop.xlane.xlu1 %3695  ;;  %1761 = vadd.xlane.f32.xlu0 %v9867_v5 }
 0x514   : > { %12584 = vst [vmem:[#allocation195_spill] sm:$0xff] %v9869_v42  ;;  %4683 = vmax.xlane.f32.xlu1 %v9874_v11 }
 0x517   : > { %v1327_v53 = vpop.xlane.xlu1 %1326  ;;  %4693 = vmax.xlane.f32.xlu0 %v9882_v37 }
 0x518   : > { %7346 = vrcp.f32 %v1327_v53 }
 0x519   : > { %v9888_v32 = vpop.eup %7334 }
 0x51a   : > { %v7337_v26 = vpop.eup %7336 }
 0x51b   : > { %v1834_v1 = vpop.permute.xlu1 %1833  ;;  %1350 = vadd.xlane.f32.xlu0 %v9885_v2  ;;  %v7339_v47 = vpop.eup %7338  ;;  %v1375_v6 = vmul.f32 %v7337_v26, %v9367_v39  ;;  %v12592_v39 = vld [vmem:[#allocation110_spill] sm:$0xff] }
 0x51c   : > { %6788 = vmatprep.subr.bf16.mxu0 %v1834_v1  ;;  %v7341_v46 = vpop.eup %7340  ;;  %v1376_v30 = vmul.f32 %v7339_v47, %v9392_v43  ;;  %v12594_v43 = vld [vmem:[#allocation100_spill] sm:$0xff] }
 0x51d   : > { %6789 = vmatpush3.bf16.msra.mxu0 %v1834_v1  ;;  %v7343_v27 = vpop.eup %7342  ;;  %v1377_v53 = vmul.f32 %v7341_v46, %v9403_v21  ;;  %v12589_v21 = vld [vmem:[#allocation32_spill] sm:$0xff]  ;;  %v12590_v46 = vld [vmem:[#allocation114_spill] sm:$0xff] }
 0x51e   : > { %v7345_v22 = vpop.eup %7344  ;;  %v1379_v1 = vmul.f32 %v7343_v27, %v9573_v63 }
 0x51f   : > { %1352 = vadd.xlane.f32.xlu0 %v9888_v32  ;;  %v1378_v13 = vmul.f32 %v7345_v22, %v9561_v41  ;;  %v1391_v55 = vpack.c.bf16 %v1377_v53, %v1376_v30  ;;  %v4106_v53 = vadd.f32 %v9639_v44, %v9512_v8  ;;  %v12600_v8 = vld [vmem:[#allocation113_spill] sm:$0xff] }
 0x521   : > { %v1392_v37 = vpack.c.bf16 %v1379_v1, %v1378_v13  ;;  %v12596_v13 = vld [vmem:[#allocation106_spill] sm:$0xff]  ;;  %v12598_v1 = vld [vmem:[#allocation59_spill] sm:$0xff]  ;;  %vm4122_vm0 = vcmp.gt.f32.partialorder %v4106_v53, 0.0 }
 0x525   : > { %1827 = vrot.lane.b32.xlu1 %v12587_v23, %s7924_s25  ;;  %v7347_v31 = vpop.eup %7346 }
 0x526   : > { %v1374_v29 = vmul.f32 %v7347_v31, %v9612_v12  ;;  %v1288_v12 = vsub.f32 %v12590_v46, %v12589_v21  ;;  %v12591_v31 = vld [vmem:[#allocation29_spill] sm:$0xff]  ;;  %v12599_v21 = vld [vmem:[#allocation102_spill] sm:$0xff] }
 0x527   : > { %v1289_v26 = vsub.f32 %v12592_v39, %v12591_v31  ;;  %v1701_v46 = vsub.f32 %v12599_v21, %v12598_v1  ;;  %v4138_v31 = vmul.f32 0.2, %v4106_v53 }
 0x528   : > { %v1390_v62 = vpack.c.bf16 %v1375_v6, %v1374_v29  ;;  %v1314_v63 = vmul.f32 1.442695, %v1288_v12  ;;  %v4101_v6 = vadd.f32 %v9639_v44, %v9462_v35  ;;  %v12593_v29 = vld [vmem:[#allocation64_spill] sm:$0xff] }
 0x529   : > { %v1699_v30 = vsub.f32 %v12594_v43, %v12593_v29  ;;  %v4603_v43 = vadd.f32 %v9659_v20, %v9401_v18 }
 0x52a   : > { %6772 = vmatprep.mubr.bf16.mxu1 %v1390_v62  ;;  %v1316_v62 = vmul.f32 1.442695, %v1289_v26  ;;  %7348 = vpow2.f32 %v1314_v63  ;;  %v4133_v41 = vmul.f32 0.2, %v4101_v6  ;;  %vm4117_vm1 = vcmp.gt.f32.partialorder %v4101_v6, 0.0 }
 0x52b   : > { %6773 = vmatmul.mubr.bf16.vlgmr.msra.gmra.mxu1 %v1391_v55  ;;  %v12595_v55 = vld [vmem:[#allocation129_spill] sm:$0xff]  ;;  %v1723_v47 = vmul.f32 1.442695, %v1699_v30  ;;  %v4103_v26 = vadd.f32 %v9639_v44, %v9644_v3  ;;  %v1706_v63 = vsub.f32 %v12600_v8, %v9210_v57 }
 0x52c   : > { %6776 = vmatprep.mubr.bf16.mxu1 %v1392_v37  ;;  %v1704_v37 = vsub.f32 %v12596_v13, %v12595_v55  ;;  %7350 = vpow2.f32 %v1316_v62  ;;  %v4149_v27 = vsel %vm4117_vm1, %v4101_v6, %v4133_v41  ;;  %v1727_v6 = vmul.f32 1.442695, %v1701_v46  ;;  %v1830_v55 = vpop.permute.xlu0 %1829 }
 0x52d   : > { %7352 = vpow2.f32 %v1723_v47  ;;  %v9915_v35 = vsel %vm8667_vm14, %v4149_v27, -1e+30  ;;  %v4154_v62 = vsel %vm4122_vm0, %v4106_v53, %v4138_v31  ;;  %v4135_v41 = vmul.f32 0.2, %v4103_v26 }
 0x52e   : > { %v1733_v22 = vmul.f32 1.442695, %v1704_v37  ;;  %12597 = vst [vmem:[#allocation32_spill] sm:$0xff] %v9915_v35  ;;  %v1737_v3 = vmul.f32 1.442695, %v1706_v63  ;;  %vm4119_vm12 = vcmp.gt.f32.partialorder %v4103_v26, 0.0  ;;  %v4605_v46 = vadd.f32 %v9659_v20, %v9421_v40 }
 0x52f   : > { %v9937_v57 = vsel %vm12344_vm15, %v4154_v62, -1e+30  ;;  %v4635_v13 = vmul.f32 0.2, %v4603_v43  ;;  %v4151_v47 = vsel %vm4119_vm12, %v4103_v26, %v4135_v41  ;;  %vm4619_vm0 = vcmp.gt.f32.partialorder %v4603_v43, 0.0 }
 0x530   : > { %7354 = vpow2.f32 %v1733_v22  ;;  %12601 = vst [vmem:[#allocation114_spill] sm:$0xff] %v9937_v57  ;;  %v9950_v53 = vsel %vm12481_vm4, %v4151_v47, -1e+30  ;;  %v4610_v63 = vadd.f32 %v9659_v20, %v9543_v38 }
 0x531   : > { %7356 = vrcp.f32 %v9744_v51  ;;  %v4108_v51 = vadd.f32 %v9639_v44, %v9681_v4  ;;  %v4608_v4 = vadd.f32 %v9659_v20, %v9501_v56  ;;  %12602 = vst [vmem:[#allocation29_spill] sm:$0xff] %v9950_v53  ;;  %v4651_v1 = vsel %vm4619_vm0, %v4603_v43, %v4635_v13 }
 0x532   : > { %v9963_v8 = vsel %vm8667_vm14, %v4651_v1, -1e+30  ;;  %vm4626_vm0 = vcmp.gt.f32.partialorder %v4610_v63, 0.0 }
 0x533   : > { %v4140_v37 = vmul.f32 0.2, %v4108_v51  ;;  %vm4124_vm1 = vcmp.gt.f32.partialorder %v4108_v51, 0.0  ;;  %v4640_v22 = vmul.f32 0.2, %v4608_v4  ;;  %vm4624_vm12 = vcmp.gt.f32.partialorder %v4608_v4, 0.0 }
 0x534   : > { %12606 = vst [vmem:[#allocation100_spill] sm:$0xff] %v9963_v8 }
 0x535   : > { %1821 = vrot.lane.b32.xlu0 %v12588_v34, %s7924_s25  ;;  %v4156_v56 = vsel %vm4124_vm1, %v4108_v51, %v4140_v37  ;;  %v4656_v43 = vsel %vm4624_vm12, %v4608_v4, %v4640_v22  ;;  %v4637_v51 = vmul.f32 0.2, %v4605_v46  ;;  %vm4621_vm1 = vcmp.gt.f32.partialorder %v4605_v46, 0.0 }
 0x536   : > { %v9959_v26 = vsel %vm12604_vm9, %v4156_v56, -1e+30  ;;  %v9973_v62 = vsel %vm12344_vm15, %v4656_v43, -1e+30  ;;  %v12612_v56 = vld [vmem:[#allocation8_spill] sm:$0xff]  ;;  %v12616_v43 = vld [vmem:[#allocation121_spill] sm:$0xff] }
 0x537   : > { %v9920_v12 = vpop.eup %7348  ;;  %12605 = vst [vmem:[#allocation64_spill] sm:$0xff] %v9959_v26  ;;  %12607 = vst [vmem:[#allocation129_spill] sm:$0xff] %v9973_v62  ;;  %vm4121_vm12 = vcmp.gt.f32.partialorder %v4105_v14, 0.0 }
 0x539   : > { %v9928_v29 = vpop.eup %7350 }
 0x53a   : > { %v9939_v18 = vpop.eup %7352 }
 0x53b   : > { %v9955_v31 = vpop.xlane.xlu0 %4179 }
 0x53c   : > { %12603 = vst [vmem:[#allocation110_spill] sm:$0xff] %v9955_v31 }
 0x53d   : > { %v9945_v27 = vpop.eup %7354 }
 0x53e   : > { %v7357_v21 = vpop.eup %7356 }
 0x53f   : > { %v9977_v38 = vpop.xlane.xlu0 %1749 }
 0x543   : > { %v9989_v4 = vpop.xlane.xlu0 %4183 }
 0x544   : > { %12609 = vst [vmem:[#allocation59_spill] sm:$0xff] %v9989_v4 }
 0x547   : > { %v9996_v47 = vpop.xlane.xlu0 %4681 }
 0x548   : > { %12611 = vst [vmem:[#allocation113_spill] sm:$0xff] %v9996_v47  ;;  %v12762_v47 = vld [vmem:[#allocation49_spill] sm:$0xff] }
 0x549   : > { %4185 = vmax.xlane.f32.xlu1 %v9915_v35  ;;  %v12650_v35 = vld [vmem:[#allocation31_spill] sm:$0xff] }
 0x54b   : > { %v9998_v22 = vpop.xlane.xlu0 %1753 }
 0x54c   : > { %v1740_v39 = vpop.xlane.xlu1 %1739 }
 0x54d   : > { %1346 = vadd.xlane.f32.xlu1 %v9920_v12  ;;  %7358 = vrcp.f32 %v1740_v39 }
 0x54e   : > { %7360 = vpow2.f32 %v1727_v6  ;;  %v1788_v6 = vmul.f32 %v7357_v21, %v9417_v10  ;;  %v4653_v10 = vsel %vm4621_vm1, %v4605_v46, %v4637_v51  ;;  %v1292_v51 = vsub.f32 %v12616_v43, %v9184_v59 }
 0x54f   : > { %7362 = vpow2.f32 %v1737_v3  ;;  %v4642_v3 = vmul.f32 0.2, %v4610_v63  ;;  %v10002_v1 = vpop.xlane.xlu0 %4685  ;;  %vm4125_vm1 = vcmp.gt.f32.partialorder %v4109_v16, 0.0 }
 0x550   : > { %v1832_v30 = vpop.permute.xlu1 %1831  ;;  %12613 = vst [vmem:[#allocation198_spill] sm:$0xff] %v10002_v1  ;;  %v1322_v28 = vmul.f32 1.442695, %v1292_v51  ;;  %v12654_v1 = vld [vmem:[#allocation181_spill] sm:$0xff] }
 0x551   : > { %6790 = vmatprep.subr.bf16.mxu0 %v1832_v30  ;;  %1348 = vadd.xlane.f32.xlu1 %v9928_v29  ;;  %v4658_v13 = vsel %vm4626_vm0, %v4610_v63, %v4642_v3  ;;  %vm4126_vm0 = vcmp.gt.f32.partialorder %v4110_v49, 0.0 }
 0x552   : > { %6791 = vmatpush3.bf16.msra.mxu0 %v1832_v30  ;;  %v9993_v37 = vsel %vm12604_vm9, %v4658_v13, -1e+30  ;;  %v12618_v13 = vld [vmem:[#allocation111_spill] sm:$0xff] }
 0x553   : > { %6792 = vmatprep.subr.bf16.mxu0 %v1830_v55  ;;  %12610 = vst [vmem:[#allocation102_spill] sm:$0xff] %v9993_v37  ;;  %v1343_v21 = vpop.xlane.xlu0 %1342 }
 0x554   : > { %4195 = vmax.xlane.f32.xlu0 %v9937_v57 }
 0x555   : > { %1755 = vadd.xlane.f32.xlu1 %v9939_v18 }
 0x556   : > { %6793 = vmatpush3.bf16.msra.mxu0 %v1830_v55  ;;  %v9986_v55 = vsel %vm12481_vm4, %v4653_v10, -1e+30  ;;  %v12617_v10 = vld [vmem:[#allocation132_spill] sm:$0xff] }
 0x557   : > { %12608 = vst [vmem:[#allocation106_spill] sm:$0xff] %v9986_v55  ;;  %v1293_v17 = vsub.f32 %v12618_v13, %v12617_v10 }
 0x558   : > { %1765 = vadd.xlane.f32.xlu0 %v9945_v27 }
 0x559   : > { %4189 = vmax.xlane.f32.xlu1 %v9950_v53 }
 0x55a   : > { %v7359_v39 = vpop.eup %7358 }
 0x55b   : > { %v1787_v40 = vmul.f32 %v7359_v39, %v9703_v33  ;;  %v9975_v41 = vpop.eup %7360  ;;  %v1345_v39 = vpop.xlane.xlu0 %1344 }
 0x55c   : > { %4199 = vmax.xlane.f32.xlu0 %v9959_v26  ;;  %v9981_v33 = vpop.eup %7362  ;;  %7364 = vrcp.f32 %v1345_v39  ;;  %v12619_v39 = vld [vmem:[#allocation66_spill] sm:$0xff] }
 0x55d   : > { %4687 = vmax.xlane.f32.xlu1 %v9963_v8  ;;  %v1803_v30 = vpack.c.bf16 %v1788_v6, %v1787_v40  ;;  %v12615_v40 = vld [vmem:[#allocation125_spill] sm:$0xff]  ;;  %v4142_v8 = vmul.f32 0.2, %v4110_v49 }
 0x55e   : > { %v2202_v6 = vsub.f32 %v12615_v40, %v9223_v45  ;;  %v1324_v45 = vmul.f32 1.442695, %v1293_v17  ;;  %v12620_v40 = vld [vmem:[#allocation119_spill] sm:$0xff] }
 0x55f   : > { %6804 = vmatprep.mubr.bf16.mxu0 %v1803_v30 }
 0x560   : > { %4697 = vmax.xlane.f32.xlu0 %v9973_v62  ;;  %v2219_v3 = vmul.f32 1.442695, %v2202_v6 }
 0x561   : > { %1759 = vadd.xlane.f32.xlu1 %v9975_v41 }
 0x564   : > { %1769 = vadd.xlane.f32.xlu0 %v9981_v33 }
 0x565   : > { %4691 = vmax.xlane.f32.xlu1 %v9986_v55 }
 0x568   : > { %4701 = vmax.xlane.f32.xlu0 %v9993_v37  ;;  %v1703_v37 = vsub.f32 %v12620_v40, %v12619_v39  ;;  %v12625_v39 = vld [vmem:[#allocation118_spill] sm:$0xff] }
 0x569   : > { %v7365_v43 = vpop.eup %7364 }
 0x56a   : > { %v1731_v51 = vmul.f32 1.442695, %v1703_v37  ;;  %v1383_v26 = vmul.f32 %v7365_v43, %v9725_v9  ;;  %v12630_v43 = vld [vmem:[#allocation120_spill] sm:$0xff] }
 0x576   : > { %1823 = vrot.lane.b32.xlu1 %v12612_v56, %s7924_s25 }
 0x57e   : > { %2335 = vrot.lane.b32.xlu0 %v12510_v15, %s7925_s29 }
 0x581   : > { %v10006_v46 = vpop.xlane.xlu1 %4177 }
 0x582   : > { %12614 = vst [vmem:[#allocation199_spill] sm:$0xff] %v10006_v46 }
 0x585   : > { %v1339_v63 = vpop.xlane.xlu1 %1338 }
 0x586   : > { %7366 = vrcp.f32 %v1339_v63  ;;  %v12622_v63 = vld [vmem:[#allocation127_spill] sm:$0xff] }
 0x587   : > { %7368 = vrcp.f32 %v1343_v21  ;;  %v4137_v21 = vmul.f32 0.2, %v4105_v14  ;;  %v2203_v6 = vsub.f32 %v12622_v63, %v9243_v7 }
 0x589   : > { %v1341_v30 = vpop.xlane.xlu1 %1340  ;;  %v4153_v10 = vsel %vm4121_vm12, %v4105_v14, %v4137_v21  ;;  %v2221_v62 = vmul.f32 1.442695, %v2203_v6  ;;  %v12628_v21 = vld [vmem:[#allocation178_spill] sm:$0xff] }
 0x58a   : > { %7370 = vrcp.f32 %v1341_v30  ;;  %v10039_v14 = vsel %vm12350_vm10, %v4153_v10, -1e+30 }
 0x58b   : > { %7372 = vpow2.f32 %v2219_v3  ;;  %12627 = vst [vmem:[#allocation132_spill] sm:$0xff] %v10039_v14 }
 0x58c   : > { %7374 = vpow2.f32 %v1322_v28  ;;  %v12624_v28 = vld [vmem:[#allocation25_spill] sm:$0xff] }
 0x58d   : > { %v10014_v25 = vpop.xlane.xlu1 %1747  ;;  %7376 = vpow2.f32 %v1324_v45  ;;  %v2204_v40 = vsub.f32 %v12625_v39, %v12624_v28  ;;  %v4141_v45 = vmul.f32 0.2, %v4109_v16 }
 0x58e   : > { %7378 = vpow2.f32 %v1731_v51 }
 0x58f   : > { %v2223_v6 = vmul.f32 1.442695, %v2204_v40  ;;  %7380 = vpow2.f32 %v2221_v62  ;;  %v4157_v40 = vsel %vm4125_vm1, %v4109_v16, %v4141_v45  ;;  %v12637_v16 = vld [vmem:[#allocation52_spill] sm:$0xff] }
 0x590   : > { %v4607_v45 = vadd.f32 %v9659_v20, %v12637_v16 }
 0x591   : > { %v10020_v59 = vpop.xlane.xlu1 %4181  ;;  %7382 = vpow2.f32 %v2223_v6  ;;  %v1826_v6 = vpop.permute.xlu0 %1825 }
 0x592   : > { %12621 = vst [vmem:[#allocation125_spill] sm:$0xff] %v10020_v59  ;;  %vm4623_vm1 = vcmp.gt.f32.partialorder %v4607_v45, 0.0 }
 0x593   : > { %v7367_v30 = vpop.eup %7366 }
 0x594   : > { %v7369_v17 = vpop.eup %7368  ;;  %v1380_v7 = vmul.f32 %v7367_v30, %v9791_v48  ;;  %v12629_v48 = vld [vmem:[#allocation137_spill] sm:$0xff] }
 0x595   : > { %v10026_v3 = vpop.xlane.xlu1 %4679  ;;  %v1382_v28 = vmul.f32 %v7369_v17, %v12628_v21 }
 0x596   : > { %12623 = vst [vmem:[#allocation121_spill] sm:$0xff] %v10026_v3 }
 0x597   : > { %v7371_v13 = vpop.eup %7370  ;;  %v1394_v51 = vpack.c.bf16 %v1383_v26, %v1382_v28  ;;  %v10059_v28 = vsel %vm8824_vm13, %v4157_v40, -1e+30  ;;  %v12640_v40 = vld [vmem:[#allocation175_spill] sm:$0xff] }
 0x598   : > { %v1381_v37 = vmul.f32 %v7371_v13, %v9802_v52  ;;  %v2704_v52 = vsub.f32 %v12630_v43, %v12629_v48  ;;  %v10045_v30 = vpop.eup %7372  ;;  %v12632_v13 = vld [vmem:[#allocation123_spill] sm:$0xff]  ;;  %12636 = vst [vmem:[#allocation66_spill] sm:$0xff] %v10059_v28  ;;  %v4158_v43 = vsel %vm4126_vm0, %v4110_v49, %v4142_v8  ;;  %v4639_v8 = vmul.f32 0.2, %v4607_v45 }
 0x599   : > { %v10035_v63 = vpop.xlane.xlu1 %1751  ;;  %v1705_v39 = vsub.f32 %v12632_v13, %v12631_v50  ;;  %v10049_v10 = vpop.eup %7374  ;;  %v10069_v50 = vsel %vm8808_vm6, %v4158_v43, -1e+30  ;;  %v12644_v43 = vld [vmem:[#allocation91_spill] sm:$0xff] }
 0x59a   : > { %4193 = vmax.xlane.f32.xlu1 %v10039_v14  ;;  %v1393_v9 = vpack.c.bf16 %v1381_v37, %v1380_v7  ;;  %v12634_v7 = vld [vmem:[#allocation168_spill] sm:$0xff]  ;;  %v2721_v26 = vmul.f32 1.442695, %v2704_v52  ;;  %12639 = vst [vmem:[#allocation119_spill] sm:$0xff] %v10069_v50  ;;  %v4609_v16 = vadd.f32 %v9659_v20, %v12644_v43  ;;  %v12647_v43 = vld [vmem:[#allocation27_spill] sm:$0xff] }
 0x59b   : > { %v4107_v37 = vadd.f32 %v9639_v44, %v12634_v7  ;;  %v1735_v62 = vmul.f32 1.442695, %v1705_v39  ;;  %v4111_v7 = vadd.f32 %v9639_v44, %v12640_v40 }
 0x59c   : > { %6777 = vmatmul.mubr.bf16.gmra.mxu1 %v1393_v9  ;;  %v10061_v9 = vpop.eup %7376  ;;  %7384 = vpow2.f32 %v2721_v26  ;;  %v10079_v26 = vpop.xlane.xlu0 %4187 }
 0x59d   : > { %v10051_v17 = vpop.xlane.xlu1 %4683  ;;  %2251 = vadd.xlane.f32.xlu0 %v10045_v30  ;;  %6780 = vmatprep.mubr.bf16.mxu1 %v1394_v51  ;;  %v4139_v51 = vmul.f32 0.2, %v4107_v37  ;;  %vm4123_vm12 = vcmp.gt.f32.partialorder %v4107_v37, 0.0  ;;  %7386 = vpow2.f32 %v1735_v62  ;;  %v10071_v13 = vpop.eup %7378  ;;  %12641 = vst [vmem:[#allocation127_spill] sm:$0xff] %v10079_v26  ;;  %vm4127_vm0 = vcmp.gt.f32.partialorder %v4111_v7, 0.0 }
 0x59e   : > { %12633 = vst [vmem:[#allocation111_spill] sm:$0xff] %v10051_v17  ;;  %1354 = vadd.xlane.f32.xlu1 %v10049_v10  ;;  %v10075_v39 = vpop.eup %7380  ;;  %v12761_v17 = vld [vmem:[#allocation78_spill] sm:$0xff] }
 0x59f   : > { %v4155_v49 = vsel %vm4123_vm12, %v4107_v37, %v4139_v51  ;;  %v4655_v37 = vsel %vm4623_vm1, %v4607_v45, %v4639_v8  ;;  %v10089_v51 = vpop.eup %7382  ;;  %vm4625_vm12 = vcmp.gt.f32.partialorder %v4609_v16, 0.0 }
 0x5a0   : > { %v10096_v14 = vsel %vm12350_vm10, %v4655_v37, -1e+30  ;;  %v10101_v45 = vpop.xlane.xlu0 %1757 }
 0x5a1   : > { %v1828_v48 = vpop.permute.xlu1 %1827  ;;  %4201 = vmax.xlane.f32.xlu0 %v10059_v28  ;;  %v12645_v28 = vld [vmem:[#allocation179_spill] sm:$0xff]  ;;  %12646 = vst [vmem:[#allocation118_spill] sm:$0xff] %v10096_v14 }
 0x5a2   : > { %1356 = vadd.xlane.f32.xlu1 %v10061_v9  ;;  %6794 = vmatprep.subr.bf16.mxu0 %v1828_v48  ;;  %v4112_v40 = vadd.f32 %v9639_v44, %v12645_v28  ;;  %v12649_v44 = vld [vmem:[#allocation44_spill] sm:$0xff] }
 0x5a3   : > { %6795 = vmatpush3.bf16.msra.mxu0 %v1828_v48  ;;  %v10084_v48 = vsel %vm12495_vm2, %v4155_v49, -1e+30  ;;  %v4641_v49 = vmul.f32 0.2, %v4609_v16  ;;  %v4611_v28 = vadd.f32 %v9659_v20, %v12649_v44  ;;  %v4612_v44 = vadd.f32 %v9659_v20, %v12654_v1 }
 0x5a4   : > { %6796 = vmatprep.subr.bf16.mxu0 %v1826_v6  ;;  %12643 = vst [vmem:[#allocation25_spill] sm:$0xff] %v10084_v48  ;;  %v4144_v55 = vmul.f32 0.2, %v4112_v40  ;;  %vm4128_vm1 = vcmp.gt.f32.partialorder %v4112_v40, 0.0  ;;  %v10119_v11 = vpop.xlane.xlu0 %4191 }
 0x5a5   : > { %4203 = vmax.xlane.f32.xlu0 %v10069_v50  ;;  %v12648_v50 = vld [vmem:[#allocation54_spill] sm:$0xff]  ;;  %v4643_v31 = vmul.f32 0.2, %v4611_v28  ;;  %12655 = vst [vmem:[#allocation137_spill] sm:$0xff] %v10119_v11  ;;  %vm4628_vm9 = vcmp.gt.f32.partialorder %v4612_v44, 0.0 }
 0x5a6   : > { %1763 = vadd.xlane.f32.xlu1 %v10071_v13 }
 0x5a7   : > { %6797 = vmatpush3.bf16.msra.mxu0 %v1826_v6  ;;  %v4143_v6 = vmul.f32 0.2, %v4111_v7 }
 0x5a9   : > { %2253 = vadd.xlane.f32.xlu0 %v10075_v39  ;;  %v10103_v8 = vpop.eup %7384  ;;  %v4159_v37 = vsel %vm4127_vm0, %v4111_v7, %v4143_v6  ;;  %vm4627_vm0 = vcmp.gt.f32.partialorder %v4611_v28, 0.0 }
 0x5aa   : > { %4197 = vmax.xlane.f32.xlu1 %v10084_v48  ;;  %v2705_v48 = vsub.f32 %v12648_v50, %v12647_v43  ;;  %v10105_v53 = vpop.eup %7386  ;;  %v12651_v50 = vld [vmem:[#allocation122_spill] sm:$0xff]  ;;  %v10115_v26 = vsel %vm8915_vm3, %v4159_v37, -1e+30  ;;  %v4659_v1 = vsel %vm4627_vm0, %v4611_v28, %v4643_v31  ;;  %v10132_v37 = vpop.xlane.xlu0 %4689  ;;  %v12664_v28 = vld [vmem:[#allocation153_spill] sm:$0xff]  ;;  %vm12678_vm0 = vcmask 64512  }
 0x5ab   : > { %v2706_v43 = vsub.f32 %v12651_v50, %v12650_v35  ;;  %12653 = vst [vmem:[#allocation178_spill] sm:$0xff] %v10115_v26  ;;  %12660 = vst [vmem:[#allocation123_spill] sm:$0xff] %v10132_v37 }
 0x5ac   : > { %v2723_v57 = vmul.f32 1.442695, %v2705_v48  ;;  %v12657_v48 = vld [vmem:[#allocation108_spill] sm:$0xff] }
 0x5ad   : > { %2255 = vadd.xlane.f32.xlu0 %v10089_v51  ;;  %v2725_v35 = vmul.f32 1.442695, %v2706_v43 }
 0x5ae   : > { %4695 = vmax.xlane.f32.xlu1 %v10096_v14  ;;  %v4657_v14 = vsel %vm4625_vm12, %v4609_v16, %v4641_v49  ;;  %v4160_v16 = vsel %vm4128_vm1, %v4112_v40, %v4144_v55  ;;  %7388 = vpow2.f32 %v2723_v57  ;;  %vm12658_vm12 = vnez %v12657_v48  ;;  %v12663_v40 = vld [vmem:[#allocation183_spill] sm:$0xff]  ;;  %v10145_v43 = vpop.xlane.xlu0 %1761 }
 0x5af   : > { %v10124_v7 = vsel %vm12495_vm2, %v4657_v14, -1e+30  ;;  %v10129_v6 = vsel %vm12658_vm12, %v4160_v16, -1e+30  ;;  %v4644_v49 = vmul.f32 0.2, %v4612_v44  ;;  %7390 = vpow2.f32 %v2725_v35 }
 0x5b0   : > { %12656 = vst [vmem:[#allocation120_spill] sm:$0xff] %v10124_v7  ;;  %12659 = vst [vmem:[#allocation21_spill] sm:$0xff] %v10129_v6  ;;  %v10136_v55 = vsel %vm8824_vm13, %v4659_v1, -1e+30  ;;  %v4613_v50 = vadd.f32 %v9659_v20, %v12663_v40  ;;  %v4614_v16 = vadd.f32 %v9659_v20, %v12664_v28 }
 0x5b1   : > { %2753 = vadd.xlane.f32.xlu0 %v10103_v8  ;;  %12661 = vst [vmem:[#allocation168_spill] sm:$0xff] %v10136_v55  ;;  %v4660_v14 = vsel %vm4628_vm9, %v4612_v44, %v4644_v49  ;;  %v12666_v49 = vld [vmem:[#allocation10_spill] sm:$0xff] }
 0x5b2   : > { %1767 = vadd.xlane.f32.xlu1 %v10105_v53  ;;  %v10141_v57 = vsel %vm8808_vm6, %v4660_v14, -1e+30  ;;  %v4645_v35 = vmul.f32 0.2, %v4613_v50  ;;  %vm4629_vm9 = vcmp.gt.f32.partialorder %v4613_v50, 0.0  ;;  %v10153_v44 = vpop.xlane.xlu0 %4693  ;;  %vm4630_vm1 = vcmp.gt.f32.partialorder %v4614_v16, 0.0 }
 0x5b3   : > { %12662 = vst [vmem:[#allocation52_spill] sm:$0xff] %v10141_v57  ;;  %12665 = vst [vmem:[#allocation175_spill] sm:$0xff] %v10153_v44  ;;  %v4646_v14 = vmul.f32 0.2, %v4614_v16 }
 0x5b4   : > { %v4661_v40 = vsel %vm4629_vm9, %v4613_v50, %v4645_v35  ;;  %v12671_v50 = vld [vmem:[#allocation115_spill] sm:$0xff]  ;;  %vm12680_vm9 = vmmov %vm12678_vm0 }
 0x5b5   : > { %4205 = vmax.xlane.f32.xlu0 %v10115_v26  ;;  %v10162_v52 = vsel %vm8915_vm3, %v4661_v40, -1e+30  ;;  %v4662_v28 = vsel %vm4630_vm1, %v4614_v16, %v4646_v14  ;;  %vm12683_vm1 = vmmov %vm12678_vm0  ;;  %vm12968_vm3 = vcmask 392512  }
 0x5b6   : > { %4699 = vmax.xlane.f32.xlu1 %v10124_v7  ;;  %12667 = vst [vmem:[#allocation91_spill] sm:$0xff] %v10162_v52  ;;  %v1351_v20 = vpop.xlane.xlu0 %1350  ;;  %v10167_v21 = vsel %vm12658_vm12, %v4662_v28, -1e+30  ;;  %vm12967_vm12 = vcmask 326912  }
 0x5b7   : > { %12668 = vst [vmem:[#allocation179_spill] sm:$0xff] %v10167_v21 }
 0x5b9   : > { %4207 = vmax.xlane.f32.xlu0 %v10129_v6 }
 0x5ba   : > { %v1353_v7 = vpop.xlane.xlu0 %1352 }
 0x5bb   : > { %v10148_v31 = vpop.eup %7388  ;;  %7392 = vrcp.f32 %v1353_v7 }
 0x5bc   : > { %v10157_v1 = vpop.eup %7390 }
 0x5bd   : > { %4703 = vmax.xlane.f32.xlu0 %v10136_v55 }
 0x5be   : > { %v1822_v59 = vpop.permute.xlu0 %1821 }
 0x5c1   : > { %4705 = vmax.xlane.f32.xlu0 %v10141_v57  ;;  %v12670_v57 = vld [vmem:[#allocation134_spill] sm:$0xff] }
 0x5c2   : > { %v2201_v35 = vsub.f32 %v12671_v50, %v12670_v57 }
 0x5c4   : > { %v2217_v40 = vmul.f32 1.442695, %v2201_v35 }
 0x5c5   : > { %2755 = vadd.xlane.f32.xlu0 %v10148_v31 }
 0x5c7   : > { %1819 = vrot.lane.b32.xlu1 %v12666_v49, %s7924_s25 }
 0x5c9   : > { %2757 = vadd.xlane.f32.xlu0 %v10157_v1 }
 0x5cd   : > { %4707 = vmax.xlane.f32.xlu0 %v10162_v52 }
 0x5d1   : > { %4709 = vmax.xlane.f32.xlu0 %v10167_v21  ;;  %v7393_v21 = vpop.eup %7392 }
 0x5d2   : > { %v10170_v62 = vpop.xlane.xlu1 %4185 }
 0x5d3   : > { %12669 = vst [vmem:[#allocation27_spill] sm:$0xff] %v10170_v62 }
 0x5d6   : > { %v1347_v55 = vpop.xlane.xlu1 %1346 }
 0x5d7   : > { %7394 = vrcp.f32 %v1347_v55  ;;  %v12676_v55 = vld [vmem:[#allocation4_spill] sm:$0xff] }
 0x5d8   : > { %7396 = vrcp.f32 %v1351_v20  ;;  %v1387_v20 = vmul.f32 %v7393_v21, %v9888_v32 }
 0x5da   : > { %v1349_v52 = vpop.xlane.xlu1 %1348 }
 0x5db   : > { %7398 = vrcp.f32 %v1349_v52 }
 0x5dc   : > { %7400 = vpow2.f32 %v2217_v40 }
 0x5dd   : > { %v10174_v16 = vpop.xlane.xlu0 %4195 }
 0x5de   : > { %12672 = vst [vmem:[#allocation54_spill] sm:$0xff] %v10174_v16  ;;  %v10176_v14 = vpop.xlane.xlu1 %1755 }
 0x5e1   : > { %v10178_v28 = vpop.xlane.xlu0 %1765 }
 0x5e2   : > { %v10180_v48 = vpop.xlane.xlu1 %4189 }
 0x5e3   : > { %12673 = vst [vmem:[#allocation44_spill] sm:$0xff] %v10180_v48 }
 0x5e4   : > { %v7395_v57 = vpop.eup %7394 }
 0x5e5   : > { %v10182_v6 = vpop.xlane.xlu0 %4199  ;;  %v7397_v50 = vpop.eup %7396  ;;  %v1384_v40 = vmul.f32 %v7395_v57, %v9920_v12  ;;  %v12682_v57 = vld [vmem:[#allocation124_spill] sm:$0xff] }
 0x5e6   : > { %12674 = vst [vmem:[#allocation31_spill] sm:$0xff] %v10182_v6  ;;  %v10184_v7 = vpop.xlane.xlu1 %4687 }
 0x5e7   : > { %12675 = vst [vmem:[#allocation122_spill] sm:$0xff] %v10184_v7  ;;  %2835 = vrot.lane.b32.xlu0 %v12676_v55, %s7926_s28  ;;  %v1386_v7 = vmul.f32 %v7397_v50, %v9885_v2 }
 0x5e8   : > { %v7399_v52 = vpop.eup %7398 }
 0x5e9   : > { %v10189_v35 = vpop.xlane.xlu0 %4697  ;;  %v1385_v26 = vmul.f32 %v7399_v52, %v9928_v29  ;;  %v10193_v37 = vpop.eup %7400  ;;  %v1396_v62 = vpack.c.bf16 %v1387_v20, %v1386_v7  ;;  %v12681_v29 = vld [vmem:[#allocation139_spill] sm:$0xff]  ;;  %v12685_v20 = vld [vmem:[#allocation30_spill] sm:$0xff] }
 0x5ea   : > { %12677 = vst [vmem:[#allocation181_spill] sm:$0xff] %v10189_v35  ;;  %v10195_v6 = vpop.xlane.xlu1 %1759  ;;  %v2206_v52 = vsub.f32 %v12682_v57, %v12681_v29  ;;  %v12687_v57 = vld [vmem:[#allocation5_spill] sm:$0xff]  ;;  %v12691_v35 = vld [vmem:[#allocation80_spill] sm:$0xff] }
 0x5eb   : > { %2249 = vadd.xlane.f32.xlu1 %v10193_v37  ;;  %v1395_v11 = vpack.c.bf16 %v1385_v26, %v1384_v40  ;;  %v6774_v48 = vpop.f32.mrf.mxu1  ;;  %v12686_v40 = vld [vmem:[#allocation128_spill] sm:$0xff] }
 0x5ec   : > { %1497 = vst.msk [vmem:[#allocation2 + $0x10] sm:$0xff] %vm12678_vm0, %v6774_v48 }
 0x5ed   : > { %6781 = vmatmul.mubr.bf16.gmra.mxu1 %v1395_v11  ;;  %v10200_v32 = vpop.xlane.xlu0 %1769  ;;  %v1432_v21 = vpop.f32.mrf.mxu1  ;;  %v2227_v11 = vmul.f32 1.442695, %v2206_v52 }
 0x5ee   : > { %v10202_v12 = vpop.xlane.xlu1 %4691  ;;  %6784 = vmatprep.mubr.bf16.mxu1 %v1396_v62  ;;  %1495 = vst.msk [vmem:[#allocation2] sm:$0xff] %vm12680_vm9, %v1432_v21  ;;  %v2703_v21 = vsub.f32 %v12686_v40, %v12685_v20  ;;  %v12692_v20 = vld [vmem:[#allocation74_spill] sm:$0xff]  ;;  %vm12720_vm9 = vmmov %vm12678_vm0 }
 0x5ef   : > { %12679 = vst [vmem:[#allocation183_spill] sm:$0xff] %v10202_v12  ;;  %v6775_v2 = vpop.f32.mrf.mxu1  ;;  %7402 = vpow2.f32 %v2227_v11  ;;  %v2210_v40 = vsub.f32 %v12692_v20, %v12691_v35 }
 0x5f0   : > { %1498 = vst.msk [vmem:[#allocation2 + $0x18] sm:$0xff] %vm12683_vm1, %v6775_v2  ;;  %v2719_v29 = vmul.f32 1.442695, %v2703_v21  ;;  %v12689_v2 = vld [vmem:[#allocation56_spill] sm:$0xff]  ;;  %vm12723_vm1 = vmmov %vm12678_vm0 }
 0x5f1   : > { %v10208_v26 = vpop.xlane.xlu0 %4701  ;;  %v1435_v7 = vpop.f32.mrf.mxu1  ;;  %v2235_v12 = vmul.f32 1.442695, %v2210_v40 }
 0x5f2   : > { %12684 = vst [vmem:[#allocation153_spill] sm:$0xff] %v10208_v26  ;;  %v1824_v50 = vpop.permute.xlu1 %1823  ;;  %1496 = vst.msk [vmem:[#allocation2 + $0x8] sm:$0xff] %vm12678_vm0, %v1435_v7  ;;  %7404 = vpow2.f32 %v2719_v29  ;;  %v12690_v7 = vld [vmem:[#allocation12_spill] sm:$0xff] }
 0x5f3   : > { %6798 = vmatprep.subr.bf16.mxu0 %v1824_v50 }
 0x5f4   : > { %6799 = vmatpush3.bf16.msra.mxu0 %v1824_v50  ;;  %v2710_v50 = vsub.f32 %v12690_v7, %v12689_v2 }
 0x5f5   : > { %6800 = vmatprep.subr.bf16.mxu0 %v1822_v59  ;;  %v2336_v48 = vpop.permute.xlu0 %2335 }
 0x5f6   : > { %6820 = vmatprep.subr.bf16.mxu1 %v2336_v48  ;;  %v2733_v26 = vmul.f32 1.442695, %v2710_v50 }
 0x5f7   : > { %6821 = vmatpush3.bf16.msra.mxu1 %v2336_v48 }
 0x5f8   : > { %6801 = vmatpush3.bf16.msra.mxu0 %v1822_v59 }
 0x5fc   : > { %2837 = vrot.lane.b32.xlu1 %v12510_v15, %s7926_s28  ;;  %v10213_v62 = vpop.eup %7402 }
 0x5ff   : > { %v10220_v52 = vpop.eup %7404 }
 0x606   : > { %2259 = vadd.xlane.f32.xlu0 %v10213_v62 }
 0x61c   : > { %2833 = vrot.lane.b32.xlu0 %v12687_v57, %s7926_s28 }
 0x620   : > { %2751 = vadd.xlane.f32.xlu1 %v10220_v52 }
 0x623   : > { %v10223_v59 = vpop.xlane.xlu1 %4193 }
 0x624   : > { %12688 = vst [vmem:[#allocation134_spill] sm:$0xff] %v10223_v59 }
 0x626   : > { %v10227_v11 = vpop.xlane.xlu0 %2251 }
 0x627   : > { %v1355_v48 = vpop.xlane.xlu1 %1354 }
 0x628   : > { %7406 = vrcp.f32 %v1355_v48 }
 0x62a   : > { %v10231_v29 = vpop.xlane.xlu0 %4201 }
 0x62b   : > { %v1357_v21 = vpop.xlane.xlu1 %1356  ;;  %12693 = vst [vmem:[#allocation115_spill] sm:$0xff] %v10231_v29 }
 0x62c   : > { %7408 = vrcp.f32 %v1357_v21 }
 0x62d   : > { %7410 = vpow2.f32 %v2733_v26 }
 0x62e   : > { %7412 = vpow2.f32 %v2235_v12  ;;  %v10236_v2 = vpop.xlane.xlu0 %4203 }
 0x62f   : > { %v1764_v16 = vpop.xlane.xlu1 %1763  ;;  %7414 = vrcp.f32 %v9797_v36  ;;  %12694 = vst [vmem:[#allocation4_spill] sm:$0xff] %v10236_v2 }
 0x630   : > { %7416 = vrcp.f32 %v10014_v25 }
 0x631   : > { %2333 = vrot.lane.b32.xlu1 %v12676_v55, %s7925_s29  ;;  %7418 = vrcp.f32 %v9778_v19 }
 0x632   : > { %7420 = vrcp.f32 %v9977_v38  ;;  %v10247_v26 = vpop.xlane.xlu0 %2253 }
 0x633   : > { %v10239_v7 = vpop.xlane.xlu1 %4197  ;;  %7422 = vrcp.f32 %v10035_v63 }
 0x634   : > { %12695 = vst [vmem:[#allocation139_spill] sm:$0xff] %v10239_v7  ;;  %7424 = vrcp.f32 %v10176_v14 }
 0x635   : > { %2331 = vrot.lane.b32.xlu1 %v12687_v57, %s7925_s29  ;;  %v7407_v35 = vpop.eup %7406  ;;  %7426 = vrcp.f32 %v9998_v22 }
 0x636   : > { %v1388_v25 = vmul.f32 %v7407_v35, %v10049_v10  ;;  %7428 = vrcp.f32 %v10101_v45  ;;  %v10260_v40 = vpop.xlane.xlu0 %2255  ;;  %v12698_v35 = vld [vmem:[#allocation39_spill] sm:$0xff] }
 0x637   : > { %v10245_v12 = vpop.xlane.xlu1 %4695  ;;  %7430 = vrcp.f32 %v10195_v6  ;;  %v12702_v6 = vld [vmem:[#allocation169_spill] sm:$0xff] }
 0x638   : > { %12696 = vst [vmem:[#allocation124_spill] sm:$0xff] %v10245_v12  ;;  %7432 = vrcp.f32 %v1764_v16  ;;  %v12704_v16 = vld [vmem:[#allocation45_spill] sm:$0xff] }
 0x639   : > { %v7409_v50 = vpop.eup %7408  ;;  %7434 = vrcp.f32 %v10145_v43 }
 0x63a   : > { %v10249_v36 = vpop.eup %7410  ;;  %v1389_v48 = vmul.f32 %v7409_v50, %v10061_v9  ;;  %v12699_v50 = vld [vmem:[#allocation36_spill] sm:$0xff]  ;;  %7436 = vrcp.f32 %v10178_v28 }
 0x63b   : > { %v1768_v19 = vpop.xlane.xlu1 %1767  ;;  %2765 = vadd.xlane.f32.xlu0 %v10249_v36  ;;  %v10258_v20 = vpop.eup %7412 }
 0x63c   : > { %v1397_v38 = vpack.c.bf16 %v1389_v48, %v1388_v25  ;;  %v7415_v63 = vpop.eup %7414  ;;  %v12700_v25 = vld [vmem:[#allocation51_spill] sm:$0xff]  ;;  %7438 = vrcp.f32 %v1768_v19  ;;  %v12710_v19 = vld [vmem:[#allocation140_spill] sm:$0xff] }
 0x63d   : > { %v7417_v10 = vpop.eup %7416  ;;  %v1790_v22 = vmul.f32 %v7415_v63, %v12698_v35  ;;  %v2205_v45 = vsub.f32 %v12700_v25, %v12699_v50  ;;  %v12703_v50 = vld [vmem:[#allocation72_spill] sm:$0xff] }
 0x63e   : > { %6785 = vmatmul.mubr.bf16.gmra.mxu1 %v1397_v38  ;;  %v7419_v9 = vpop.eup %7418  ;;  %v1791_v29 = vmul.f32 %v7417_v10, %v9817_v0  ;;  %v10271_v38 = vpop.xlane.xlu0 %2753  ;;  %v2207_v25 = vsub.f32 %v12704_v16, %v12703_v50 }
 0x63f   : > { %v10262_v21 = vpop.xlane.xlu1 %4699  ;;  %2267 = vadd.xlane.f32.xlu0 %v10258_v20  ;;  %v7421_v14 = vpop.eup %7420  ;;  %v2225_v2 = vmul.f32 1.442695, %v2205_v45  ;;  %v12709_v45 = vld [vmem:[#allocation109_spill] sm:$0xff] }
 0x640   : > { %12697 = vst [vmem:[#allocation30_spill] sm:$0xff] %v10262_v21  ;;  %v12701_v21 = vld [vmem:[#allocation88_spill] sm:$0xff]  ;;  %v1792_v59 = vmul.f32 %v7421_v14, %v12702_v6  ;;  %v7423_v35 = vpop.eup %7422 }
 0x641   : > { %v1789_v12 = vmul.f32 %v7419_v9, %v12701_v21  ;;  %v7425_v0 = vpop.eup %7424  ;;  %v1793_v28 = vmul.f32 %v7423_v35, %v9861_v61  ;;  %7440 = vpow2.f32 %v2225_v2  ;;  %v2229_v21 = vmul.f32 1.442695, %v2207_v25  ;;  %v12706_v9 = vld [vmem:[#allocation61_spill] sm:$0xff] }
 0x642   : > { %v1805_v7 = vpack.c.bf16 %v1792_v59, %v1791_v29  ;;  %v7427_v43 = vpop.eup %7426  ;;  %v10278_v44 = vpop.xlane.xlu0 %4205  ;;  %7442 = vrcp.f32 %v10200_v32  ;;  %v12708_v59 = vld [vmem:[#allocation173_spill] sm:$0xff] }
 0x643   : > { %v1820_v48 = vpop.permute.xlu1 %1819  ;;  %v1804_v63 = vpack.c.bf16 %v1790_v22, %v1789_v12  ;;  %v7429_v10 = vpop.eup %7428  ;;  %12705 = vst [vmem:[#allocation128_spill] sm:$0xff] %v10278_v44  ;;  %v12707_v12 = vld [vmem:[#allocation53_spill] sm:$0xff]  ;;  %v1795_v22 = vmul.f32 %v7425_v0, %v9939_v18  ;;  %v1794_v29 = vmul.f32 %v7427_v43, %v12708_v59  ;;  %7444 = vpow2.f32 %v2229_v21  ;;  %v12713_v43 = vld [vmem:[#allocation144_spill] sm:$0xff] }
 0x644   : > { %6802 = vmatprep.subr.bf16.mxu0 %v1820_v48  ;;  %v2208_v14 = vsub.f32 %v12707_v12, %v12706_v9  ;;  %v7431_v6 = vpop.eup %7430  ;;  %v12715_v12 = vld [vmem:[#allocation7_spill] sm:$0xff] }
 0x645   : > { %6803 = vmatpush3.bf16.msra.mxu0 %v1820_v48  ;;  %v1796_v48 = vmul.f32 %v7429_v10, %v12709_v45  ;;  %v7433_v35 = vpop.eup %7432  ;;  %v1797_v32 = vmul.f32 %v7431_v6, %v9975_v41  ;;  %v12714_v10 = vld [vmem:[#allocation58_spill] sm:$0xff]  ;;  %v12717_v41 = vld [vmem:[#allocation143_spill] sm:$0xff] }
 0x646   : > { %v2231_v61 = vmul.f32 1.442695, %v2208_v14  ;;  %v10289_v16 = vpop.xlane.xlu0 %4207  ;;  %v7435_v25 = vpop.eup %7434  ;;  %v1799_v9 = vmul.f32 %v7433_v35, %v10071_v13  ;;  %v12718_v45 = vld [vmem:[#allocation47_spill] sm:$0xff]  ;;  %v12721_v35 = vld [vmem:[#allocation148_spill] sm:$0xff] }
 0x647   : > { %v1807_v2 = vpack.c.bf16 %v1796_v48, %v1795_v22  ;;  %12712 = vst [vmem:[#allocation5_spill] sm:$0xff] %v10289_v16  ;;  %v7437_v18 = vpop.eup %7436  ;;  %v1798_v21 = vmul.f32 %v7435_v25, %v9867_v5  ;;  %v2709_v48 = vsub.f32 %v12718_v45, %v12717_v41  ;;  %v12722_v25 = vld [vmem:[#allocation11_spill] sm:$0xff] }
 0x648   : > { %6805 = vmatmul.mubr.bf16.vlgmr.msra.gmra.mxu0 %v1804_v63  ;;  %v12711_v63 = vld [vmem:[#allocation126_spill] sm:$0xff]  ;;  %7446 = vpow2.f32 %v2231_v61  ;;  %v1800_v14 = vmul.f32 %v7437_v18, %v9945_v27  ;;  %v2211_v18 = vsub.f32 %v12722_v25, %v12721_v35  ;;  %v12727_v35 = vld [vmem:[#allocation156_spill] sm:$0xff] }
 0x649   : > { %6808 = vmatprep.mubr.bf16.mxu0 %v1805_v7  ;;  %v1806_v7 = vpack.c.bf16 %v1794_v29, %v1793_v28  ;;  %v2707_v50 = vsub.f32 %v12711_v63, %v12710_v19  ;;  %v2708_v28 = vsub.f32 %v12714_v10, %v12713_v43  ;;  %v1808_v59 = vpack.c.bf16 %v1798_v21, %v1797_v32  ;;  %v7439_v29 = vpop.eup %7438  ;;  %v12728_v25 = vld [vmem:[#allocation130_spill] sm:$0xff] }
 0x64a   : > { %v10299_v22 = vpop.xlane.xlu0 %4703  ;;  %v1809_v6 = vpack.c.bf16 %v1800_v14, %v1799_v9  ;;  %v1801_v5 = vmul.f32 %v7439_v29, %v10105_v53  ;;  %v2731_v27 = vmul.f32 1.442695, %v2709_v48 }
 0x64b   : > { %v2727_v0 = vmul.f32 1.442695, %v2707_v50  ;;  %12716 = vst [vmem:[#allocation56_spill] sm:$0xff] %v10299_v22 }
 0x64d   : > { %7448 = vpow2.f32 %v2727_v0 }
 0x64e   : > { %v10303_v19 = vpop.eup %7440  ;;  %v10309_v50 = vpop.xlane.xlu0 %4705 }
 0x64f   : > { %v7443_v13 = vpop.eup %7442  ;;  %12719 = vst [vmem:[#allocation12_spill] sm:$0xff] %v10309_v50 }
 0x650   : > { %6809 = vmatmul.mubr.bf16.gmra.mxu0 %v1806_v7  ;;  %v2729_v7 = vmul.f32 1.442695, %v2708_v28  ;;  %v10307_v63 = vpop.eup %7444 }
 0x651   : > { %6812 = vmatprep.mubr.bf16.mxu0 %v1807_v2  ;;  %v1802_v2 = vmul.f32 %v7443_v13, %v9981_v33  ;;  %v2237_v33 = vmul.f32 1.442695, %v2211_v18  ;;  %v2214_v18 = vsub.f32 %v12728_v25, %v12727_v35  ;;  %v12737_v35 = vld [vmem:[#allocation55_spill] sm:$0xff] }
 0x652   : > { %7450 = vpow2.f32 %v2729_v7  ;;  %v10321_v10 = vpop.xlane.xlu0 %2755  ;;  %v12738_v25 = vld [vmem:[#allocation43_spill] sm:$0xff] }
 0x653   : > { %v1810_v0 = vpack.c.bf16 %v1802_v2, %v1801_v5  ;;  %7452 = vpow2.f32 %v2731_v27 }
 0x654   : > { %7454 = vpow2.f32 %v2237_v33 }
 0x655   : > { %2829 = vrot.lane.b32.xlu0 %v12715_v12, %s7926_s28  ;;  %v10317_v53 = vpop.eup %7446  ;;  %7456 = vrcp.f32 %v10227_v11 }
 0x656   : > { %v10329_v14 = vpop.xlane.xlu0 %2757 }
 0x658   : > { %6813 = vmatmul.mubr.bf16.gmra.mxu0 %v1808_v59 }
 0x659   : > { %2257 = vadd.xlane.f32.xlu1 %v10303_v19  ;;  %6816 = vmatprep.mubr.bf16.mxu0 %v1809_v6 }
 0x65a   : > { %v10324_v9 = vpop.eup %7448  ;;  %v10335_v29 = vpop.xlane.xlu0 %4707 }
 0x65b   : > { %12725 = vst [vmem:[#allocation80_spill] sm:$0xff] %v10335_v29 }
 0x65c   : > { %v6778_v61 = vpop.f32.mrf.mxu1 }
 0x65d   : > { %1501 = vst.msk [vmem:[#allocation2 + $0x30] sm:$0xff] %vm12720_vm9, %v6778_v61  ;;  %2261 = vadd.xlane.f32.xlu1 %v10307_v63  ;;  %vm12724_vm9 = vmmov %vm12678_vm0 }
 0x65e   : > { %v1448_v32 = vpop.f32.mrf.mxu1  ;;  %v10340_v45 = vpop.xlane.xlu0 %4709 }
 0x65f   : > { %1499 = vst.msk [vmem:[#allocation2 + $0x20] sm:$0xff] %vm12723_vm1, %v1448_v32  ;;  %v10327_v21 = vpop.eup %7450  ;;  %12726 = vst [vmem:[#allocation74_spill] sm:$0xff] %v10340_v45  ;;  %v2711_v45 = vsub.f32 %v12738_v25, %v12737_v35  ;;  %v12747_v25 = vld [vmem:[#allocation162_spill] sm:$0xff] }
 0x660   : > { %v6779_v43 = vpop.f32.mrf.mxu1  ;;  %6817 = vmatmul.mubr.bf16.gmra.mxu0 %v1810_v0  ;;  %v10332_v59 = vpop.eup %7452  ;;  %v12729_v0 = vld [vmem:[#allocation48_spill] sm:$0xff]  ;;  %vm12751_vm1 = vmmov %vm12678_vm0 }
 0x661   : > { %1502 = vst.msk [vmem:[#allocation2 + $0x38] sm:$0xff] %vm12678_vm0, %v6779_v43  ;;  %2263 = vadd.xlane.f32.xlu1 %v10317_v53  ;;  %v10337_v41 = vpop.eup %7454  ;;  %v12730_v43 = vld [vmem:[#allocation17_spill] sm:$0xff]  ;;  %v2735_v22 = vmul.f32 1.442695, %v2711_v45 }
 0x662   : > { %v1451_v28 = vpop.f32.mrf.mxu1  ;;  %v2836_v6 = vpop.permute.xlu0 %2835  ;;  %v2209_v33 = vsub.f32 %v12730_v43, %v12729_v0  ;;  %v12739_v43 = vld [vmem:[#allocation154_spill] sm:$0xff] }
 0x663   : > { %1500 = vst.msk [vmem:[#allocation2 + $0x28] sm:$0xff] %vm12724_vm9, %v1451_v28  ;;  %v7457_v13 = vpop.eup %7456  ;;  %v12732_v28 = vld [vmem:[#allocation131_spill] sm:$0xff]  ;;  %vm12752_vm9 = vmmov %vm12678_vm0 }
 0x664   : > { %v2298_v27 = vmul.f32 %v7457_v13, %v10045_v30  ;;  %v2243_v30 = vmul.f32 1.442695, %v2214_v18  ;;  %v12734_v13 = vld [vmem:[#allocation24_spill] sm:$0xff] }
 0x665   : > { %2759 = vadd.xlane.f32.xlu1 %v10324_v9 }
 0x669   : > { %2761 = vadd.xlane.f32.xlu1 %v10327_v21 }
 0x66d   : > { %2763 = vadd.xlane.f32.xlu1 %v10332_v59 }
 0x674   : > { %v2250_v48 = vpop.xlane.xlu1 %2249  ;;  %2269 = vadd.xlane.f32.xlu0 %v10337_v41 }
 0x675   : > { %7458 = vrcp.f32 %v2250_v48 }
 0x676   : > { %7460 = vpow2.f32 %v2243_v30 }
 0x678   : > { %v2838_v7 = vpop.permute.xlu1 %2837 }
 0x679   : > { %6852 = vmatprep.subr.bf16.mxu0 %v2838_v7 }
 0x67a   : > { %6853 = vmatpush3.bf16.msra.mxu0 %v2838_v7  ;;  %v2233_v7 = vmul.f32 1.442695, %v2209_v33  ;;  %v12742_v33 = vld [vmem:[#allocation62_spill] sm:$0xff] }
 0x67b   : > { %6854 = vmatprep.subr.bf16.mxu0 %v2836_v6 }
 0x67c   : > { %7462 = vpow2.f32 %v2233_v7  ;;  %v12746_v7 = vld [vmem:[#allocation14_spill] sm:$0xff] }
 0x67e   : > { %2329 = vrot.lane.b32.xlu1 %v12587_v23, %s7925_s29  ;;  %6855 = vmatpush3.bf16.msra.mxu0 %v2836_v6  ;;  %v12733_v6 = vld [vmem:[#allocation151_spill] sm:$0xff] }
 0x682   : > { %v7459_v5 = vpop.eup %7458  ;;  %2831 = vrot.lane.b32.xlu1 %v12587_v23, %s7926_s28 }
 0x683   : > { %v2297_v11 = vmul.f32 %v7459_v5, %v10193_v37  ;;  %v12731_v37 = vld [vmem:[#allocation159_spill] sm:$0xff]  ;;  %v2212_v5 = vsub.f32 %v12734_v13, %v12733_v6  ;;  %v12744_v6 = vld [vmem:[#allocation133_spill] sm:$0xff] }
 0x684   : > { %v2215_v48 = vsub.f32 %v12732_v28, %v12731_v37  ;;  %v12741_v37 = vld [vmem:[#allocation185_spill] sm:$0xff] }
 0x685   : > { %v2313_v61 = vpack.c.bf16 %v2298_v27, %v2297_v11  ;;  %v12735_v27 = vld [vmem:[#allocation160_spill] sm:$0xff]  ;;  %v2239_v0 = vmul.f32 1.442695, %v2212_v5  ;;  %v2715_v28 = vsub.f32 %v12742_v33, %v12741_v37 }
 0x686   : > { %2327 = vrot.lane.b32.xlu1 %v12715_v12, %s7925_s29  ;;  %v2245_v11 = vmul.f32 1.442695, %v2215_v48  ;;  %v12743_v48 = vld [vmem:[#allocation161_spill] sm:$0xff] }
 0x687   : > { %6836 = vmatprep.mubr.bf16.mxu1 %v2313_v61  ;;  %v12736_v61 = vld [vmem:[#allocation60_spill] sm:$0xff]  ;;  %v2716_v13 = vsub.f32 %v12744_v6, %v12743_v48 }
 0x688   : > { %v2216_v29 = vsub.f32 %v12736_v61, %v12735_v27  ;;  %7464 = vpow2.f32 %v2245_v11  ;;  %v2743_v27 = vmul.f32 1.442695, %v2715_v28  ;;  %v12745_v61 = vld [vmem:[#allocation68_spill] sm:$0xff]  ;;  %v12748_v11 = vld [vmem:[#allocation41_spill] sm:$0xff] }
 0x689   : > { %7466 = vpow2.f32 %v2239_v0  ;;  %v2713_v5 = vsub.f32 %v12746_v7, %v12745_v61  ;;  %v2745_v35 = vmul.f32 1.442695, %v2716_v13  ;;  %v12749_v0 = vld [vmem:[#allocation157_spill] sm:$0xff] }
 0x68a   : > { %2827 = vrot.lane.b32.xlu0 %v12612_v56, %s7926_s28  ;;  %v2247_v50 = vmul.f32 1.442695, %v2216_v29  ;;  %v2718_v29 = vsub.f32 %v12748_v11, %v12747_v25 }
 0x68b   : > { %v2739_v45 = vmul.f32 1.442695, %v2713_v5 }
 0x68c   : > { %7468 = vpow2.f32 %v2247_v50  ;;  %v2749_v37 = vmul.f32 1.442695, %v2718_v29 }
 0x68d   : > { %7470 = vpow2.f32 %v2735_v22 }
 0x68f   : > { %v10353_v2 = vpop.xlane.xlu0 %2259 }
 0x693   : > { %v2834_v32 = vpop.permute.xlu0 %2833 }
 0x694   : > { %6856 = vmatprep.subr.bf16.mxu0 %v2834_v32 }
 0x695   : > { %6857 = vmatpush3.bf16.msra.mxu0 %v2834_v32  ;;  %v12740_v32 = vld [vmem:[#allocation22_spill] sm:$0xff] }
 0x696   : > { %v2712_v18 = vsub.f32 %v12740_v32, %v12739_v43  ;;  %v10377_v43 = vpop.eup %7460  ;;  %v12750_v32 = vld [vmem:[#allocation15_spill] sm:$0xff] }
 0x697   : > { %v2714_v50 = vsub.f32 %v12750_v32, %v12749_v0 }
 0x698   : > { %v2737_v30 = vmul.f32 1.442695, %v2712_v18  ;;  %v10382_v18 = vpop.eup %7462 }
 0x699   : > { %v10386_v33 = vpop.eup %7464  ;;  %v2741_v28 = vmul.f32 1.442695, %v2714_v50 }
 0x69a   : > { %7472 = vpow2.f32 %v2737_v30  ;;  %v10388_v30 = vpop.eup %7466 }
 0x69b   : > { %7474 = vpow2.f32 %v2743_v27  ;;  %v10393_v13 = vpop.eup %7468 }
 0x69c   : > { %7476 = vrcp.f32 %v10271_v38  ;;  %v10396_v27 = vpop.eup %7470 }
 0x6a7   : > { %v10401_v5 = vpop.eup %7472 }
 0x6a8   : > { %v10403_v25 = vpop.eup %7474 }
 0x6a9   : > { %v2752_v22 = vpop.xlane.xlu1 %2751  ;;  %2275 = vadd.xlane.f32.xlu0 %v10377_v43  ;;  %v7477_v11 = vpop.eup %7476 }
 0x6aa   : > { %7478 = vrcp.f32 %v2752_v22  ;;  %2265 = vadd.xlane.f32.xlu1 %v10382_v18  ;;  %v2800_v32 = vmul.f32 %v7477_v11, %v10103_v8  ;;  %v12755_v8 = vld [vmem:[#allocation184_spill] sm:$0xff] }
 0x6ab   : > { %7480 = vpow2.f32 %v2745_v35 }
 0x6ac   : > { %7482 = vpow2.f32 %v2739_v45 }
 0x6ad   : > { %v2334_v48 = vpop.permute.xlu1 %2333  ;;  %2277 = vadd.xlane.f32.xlu0 %v10386_v33  ;;  %v6782_v38 = vpop.f32.mrf.mxu1  ;;  %7484 = vpow2.f32 %v2749_v37 }
 0x6ae   : > { %1505 = vst.msk [vmem:[#allocation2 + $0x50] sm:$0xff] %vm12751_vm1, %v6782_v38  ;;  %2271 = vadd.xlane.f32.xlu1 %v10388_v30  ;;  %6822 = vmatprep.subr.bf16.mxu1 %v2334_v48  ;;  %7486 = vpow2.f32 %v2741_v28  ;;  %vm12753_vm1 = vmmov %vm12678_vm0 }
 0x6af   : > { %v1464_v6 = vpop.f32.mrf.mxu1  ;;  %6823 = vmatpush3.bf16.msra.mxu1 %v2334_v48 }
 0x6b0   : > { %1503 = vst.msk [vmem:[#allocation2 + $0x40] sm:$0xff] %vm12678_vm0, %v1464_v6  ;;  %v12757_v6 = vld [vmem:[#allocation98_spill] sm:$0xff] }
 0x6b1   : > { %v2332_v61 = vpop.permute.xlu1 %2331  ;;  %2279 = vadd.xlane.f32.xlu0 %v10393_v13  ;;  %v6783_v7 = vpop.f32.mrf.mxu1 }
 0x6b2   : > { %1506 = vst.msk [vmem:[#allocation2 + $0x58] sm:$0xff] %vm12752_vm9, %v6783_v7  ;;  %2767 = vadd.xlane.f32.xlu1 %v10396_v27  ;;  %6824 = vmatprep.subr.bf16.mxu1 %v2332_v61  ;;  %vm12772_vm9 = vmmov %vm12678_vm0 }
 0x6b3   : > { %v1467_v35 = vpop.f32.mrf.mxu1  ;;  %6825 = vmatpush3.bf16.msra.mxu1 %v2332_v61  ;;  %v12758_v61 = vld [vmem:[#allocation26_spill] sm:$0xff] }
 0x6b4   : > { %1504 = vst.msk [vmem:[#allocation2 + $0x48] sm:$0xff] %vm12753_vm1, %v1467_v35  ;;  %v3205_v7 = vsub.f32 %v12758_v61, %v12757_v6  ;;  %v12764_v6 = vld [vmem:[#allocation136_spill] sm:$0xff]  ;;  %vm12773_vm1 = vmmov %vm12678_vm0 }
 0x6b5   : > { %2775 = vadd.xlane.f32.xlu0 %v10403_v25 }
 0x6b6   : > { %2769 = vadd.xlane.f32.xlu1 %v10401_v5 }
 0x6b7   : > { %v7479_v29 = vpop.eup %7478 }
 0x6b8   : > { %v10408_v45 = vpop.eup %7480  ;;  %v2799_v0 = vmul.f32 %v7479_v29, %v10220_v52  ;;  %v12756_v52 = vld [vmem:[#allocation70_spill] sm:$0xff]  ;;  %v12759_v29 = vld [vmem:[#allocation164_spill] sm:$0xff] }
 0x6b9   : > { %v10412_v50 = vpop.eup %7482  ;;  %2777 = vadd.xlane.f32.xlu0 %v10408_v45  ;;  %v2213_v48 = vsub.f32 %v12756_v52, %v12755_v8  ;;  %v3707_v8 = vsub.f32 %v12762_v47, %v12761_v17  ;;  %v12767_v17 = vld [vmem:[#allocation165_spill] sm:$0xff] }
 0x6ba   : > { %2771 = vadd.xlane.f32.xlu1 %v10412_v50  ;;  %v2815_v22 = vpack.c.bf16 %v2800_v32, %v2799_v0  ;;  %v10416_v37 = vpop.eup %7484  ;;  %v12760_v0 = vld [vmem:[#allocation135_spill] sm:$0xff] }
 0x6bb   : > { %12754 = vst [vmem:[#allocation39_spill] sm:$0xff] %v10416_v37  ;;  %v10418_v28 = vpop.eup %7486  ;;  %v2241_v35 = vmul.f32 1.442695, %v2213_v48  ;;  %v3208_v32 = vsub.f32 %v12760_v0, %v12759_v29  ;;  %v12763_v48 = vld [vmem:[#allocation86_spill] sm:$0xff]  ;;  %v3723_v3 = vmul.f32 1.442695, %v3707_v8 }
 0x6bc   : > { %6868 = vmatprep.mubr.bf16.mxu0 %v2815_v22  ;;  %v3221_v22 = vmul.f32 1.442695, %v3205_v7  ;;  %v3708_v61 = vsub.f32 %v12764_v6, %v12763_v48  ;;  %v12765_v29 = vld [vmem:[#allocation20_spill] sm:$0xff]  ;;  %v12766_v0 = vld [vmem:[#allocation73_spill] sm:$0xff] }
 0x6bd   : > { %2781 = vadd.xlane.f32.xlu0 %v10416_v37  ;;  %7488 = vpow2.f32 %v2241_v35  ;;  %v3227_v44 = vmul.f32 1.442695, %v3208_v32  ;;  %v3709_v32 = vsub.f32 %v12766_v0, %v12765_v29 }
 0x6be   : > { %2773 = vadd.xlane.f32.xlu1 %v10418_v28  ;;  %7490 = vpow2.f32 %v3221_v22  ;;  %v3725_v35 = vmul.f32 1.442695, %v3708_v61 }
 0x6bf   : > { %7492 = vpow2.f32 %v3227_v44  ;;  %v12768_v44 = vld [vmem:[#allocation35_spill] sm:$0xff]  ;;  %v3727_v8 = vmul.f32 1.442695, %v3709_v32 }
 0x6c0   : > { %7494 = vpow2.f32 %v3723_v3  ;;  %v3710_v48 = vsub.f32 %v12768_v44, %v12767_v17 }
 0x6c1   : > { %7496 = vpow2.f32 %v3725_v35 }
 0x6c2   : > { %v3729_v3 = vmul.f32 1.442695, %v3710_v48  ;;  %7498 = vpow2.f32 %v3727_v8 }
 0x6c4   : > { %v10446_v52 = vpop.xlane.xlu0 %2765  ;;  %7500 = vpow2.f32 %v3729_v3 }
 0x6c8   : > { %v10454_v7 = vpop.xlane.xlu0 %2267 }
 0x6ca   : > { %v10458_v22 = vpop.eup %7488 }
 0x6cb   : > { %v10465_v6 = vpop.eup %7490 }
 0x6cc   : > { %12769 = vst [vmem:[#allocation36_spill] sm:$0xff] %v10465_v6  ;;  %v2830_v46 = vpop.permute.xlu0 %2829  ;;  %v10468_v61 = vpop.eup %7492 }
 0x6cd   : > { %12770 = vst [vmem:[#allocation51_spill] sm:$0xff] %v10468_v61  ;;  %v10474_v17 = vpop.eup %7494 }
 0x6ce   : > { %12771 = vst [vmem:[#allocation88_spill] sm:$0xff] %v10474_v17 }
 0x6cf   : > { %2325 = vrot.lane.b32.xlu1 %v12612_v56, %s7925_s29 }
 0x6d3   : > { %2323 = vrot.lane.b32.xlu1 %v12588_v34, %s7925_s29  ;;  %2321 = vrot.lane.b32.xlu0 %v12666_v49, %s7925_s29  ;;  %s406_s29 = scalar_lea.vmem %s11890_s11, %s6401_s26 }
 0x6d7   : > { %2823 = vrot.lane.b32.xlu0 %v12666_v49, %s7926_s28 }
 0x6db   : > { %3339 = vrot.lane.b32.xlu0 %v12510_v15, %s7927_s30 }
 0x6e2   : > { %v10434_v38 = vpop.xlane.xlu1 %2257 }
 0x6e6   : > { %v10438_v11 = vpop.xlane.xlu1 %2261 }
 0x6ea   : > { %v10442_v16 = vpop.xlane.xlu1 %2263 }
 0x6ee   : > { %v10448_v54 = vpop.xlane.xlu1 %2759 }
 0x6f2   : > { %v10452_v4 = vpop.xlane.xlu1 %2761 }
 0x6f6   : > { %v10460_v47 = vpop.xlane.xlu1 %2763 }
 0x6f7   : > { %2273 = vadd.xlane.f32.xlu1 %v10458_v22 }
 0x6fa   : > { %v2330_v49 = vpop.permute.xlu1 %2329  ;;  %3253 = vadd.xlane.f32.xlu0 %v10465_v6 }
 0x6fb   : > { %6826 = vmatprep.subr.bf16.mxu1 %v2330_v49 }
 0x6fc   : > { %6827 = vmatpush3.bf16.msra.mxu1 %v2330_v49 }
 0x6fd   : > { %v10470_v29 = vpop.xlane.xlu0 %2269 }
 0x6fe   : > { %v2832_v0 = vpop.permute.xlu1 %2831  ;;  %3259 = vadd.xlane.f32.xlu0 %v10468_v61  ;;  %v6786_v35 = vpop.f32.mrf.mxu1 }
 0x6ff   : > { %1509 = vst.msk [vmem:[#allocation2 + $0x70] sm:$0xff] %vm12678_vm0, %v6786_v35  ;;  %6858 = vmatprep.subr.bf16.mxu0 %v2832_v0  ;;  %v10479_v35 = vpop.eup %7496 }
 0x700   : > { %v1480_v32 = vpop.f32.mrf.mxu1  ;;  %6859 = vmatpush3.bf16.msra.mxu0 %v2832_v0  ;;  %12774 = vst [vmem:[#allocation169_spill] sm:$0xff] %v10479_v35  ;;  %v10485_v3 = vpop.eup %7498 }
 0x701   : > { %1507 = vst.msk [vmem:[#allocation2 + $0x60] sm:$0xff] %vm12772_vm9, %v1480_v32  ;;  %6860 = vmatprep.subr.bf16.mxu0 %v2830_v46  ;;  %v2828_v48 = vpop.permute.xlu0 %2827  ;;  %12775 = vst [vmem:[#allocation72_spill] sm:$0xff] %v10485_v3  ;;  %v10488_v0 = vpop.eup %7500  ;;  %v12778_v32 = vld [vmem:[#allocation89_spill] sm:$0xff]  ;;  %vm12153_vm9 = vcmask 130112  }
 0x702   : > { %v2328_v49 = vpop.permute.xlu1 %2327  ;;  %3755 = vadd.xlane.f32.xlu0 %v10474_v17  ;;  %v6787_v44 = vpop.f32.mrf.mxu1  ;;  %12776 = vst [vmem:[#allocation45_spill] sm:$0xff] %v10488_v0 }
 0x703   : > { %1510 = vst.msk [vmem:[#allocation2 + $0x78] sm:$0xff] %vm12773_vm1, %v6787_v44  ;;  %6828 = vmatprep.subr.bf16.mxu1 %v2328_v49  ;;  %v12779_v44 = vld [vmem:[#allocation163_spill] sm:$0xff]  ;;  %vm12158_vm1 = vcmask 195712  }
 0x704   : > { %v1483_v8 = vpop.f32.mrf.mxu1  ;;  %6829 = vmatpush3.bf16.msra.mxu1 %v2328_v49  ;;  %6861 = vmatpush3.bf16.msra.mxu0 %v2830_v46  ;;  %v12777_v46 = vld [vmem:[#allocation187_spill] sm:$0xff] }
 0x705   : > { %1508 = vst.msk [vmem:[#allocation2 + $0x68] sm:$0xff] %vm12678_vm0, %v1483_v8  ;;  %6862 = vmatprep.subr.bf16.mxu0 %v2828_v48  ;;  %v2717_v49 = vsub.f32 %v12778_v32, %v12777_v46  ;;  %v12780_v8 = vld [vmem:[#allocation33_spill] sm:$0xff]  ;;  %v12783_v46 = vld [vmem:[#allocation166_spill] sm:$0xff]  ;;  %vm12160_vm0 = vcmask 261312  }
 0x706   : > { %3757 = vadd.xlane.f32.xlu0 %v10479_v35  ;;  %v3206_v61 = vsub.f32 %v12780_v8, %v12779_v44  ;;  %v12784_v32 = vld [vmem:[#allocation138_spill] sm:$0xff] }
 0x707   : > { %v2747_v60 = vmul.f32 1.442695, %v2717_v49  ;;  %v3210_v49 = vsub.f32 %v12784_v32, %v12783_v46 }
 0x708   : > { %2825 = vrot.lane.b32.xlu1 %v12588_v34, %s7926_s28  ;;  %6863 = vmatpush3.bf16.msra.mxu0 %v2828_v48  ;;  %v3223_v42 = vmul.f32 1.442695, %v3206_v61 }
 0x709   : > { %7502 = vpow2.f32 %v2747_v60 }
 0x70a   : > { %3759 = vadd.xlane.f32.xlu0 %v10485_v3  ;;  %7504 = vpow2.f32 %v3223_v42  ;;  %v3231_v42 = vmul.f32 1.442695, %v3210_v49 }
 0x70c   : > { %7506 = vpow2.f32 %v3231_v42 }
 0x70d   : > { %7508 = vrcp.f32 %v10260_v40 }
 0x70e   : > { %3761 = vadd.xlane.f32.xlu0 %v10488_v0  ;;  %7510 = vrcp.f32 %v10434_v38  ;;  %v12788_v38 = vld [vmem:[#allocation23_spill] sm:$0xff] }
 0x70f   : > { %7512 = vrcp.f32 %v10247_v26 }
 0x710   : > { %7514 = vrcp.f32 %v10353_v2  ;;  %v12787_v2 = vld [vmem:[#allocation90_spill] sm:$0xff] }
 0x711   : > { %7516 = vrcp.f32 %v10442_v16  ;;  %v3207_v6 = vsub.f32 %v12788_v38, %v12787_v2 }
 0x716   : > { %v10499_v48 = vpop.eup %7502 }
 0x717   : > { %12781 = vst [vmem:[#allocation61_spill] sm:$0xff] %v10499_v48  ;;  %v10502_v3 = vpop.eup %7504 }
 0x718   : > { %12782 = vst [vmem:[#allocation53_spill] sm:$0xff] %v10502_v3 }
 0x719   : > { %v10529_v49 = vpop.eup %7506 }
 0x71a   : > { %12785 = vst [vmem:[#allocation173_spill] sm:$0xff] %v10529_v49  ;;  %v7509_v26 = vpop.eup %7508 }
 0x724   : > { %3337 = vrot.lane.b32.xlu0 %v12676_v55, %s7927_s30 }
 0x728   : > { %3335 = vrot.lane.b32.xlu0 %v12687_v57, %s7927_s30 }
 0x72c   : > { %2779 = vadd.xlane.f32.xlu1 %v10499_v48  ;;  %v7511_v48 = vpop.eup %7510 }
 0x730   : > { %3255 = vadd.xlane.f32.xlu1 %v10502_v3 }
 0x732   : > { %v10507_v61 = vpop.xlane.xlu0 %2275 }
 0x733   : > { %v2266_v60 = vpop.xlane.xlu1 %2265 }
 0x734   : > { %7518 = vrcp.f32 %v2266_v60  ;;  %v3225_v60 = vmul.f32 1.442695, %v3207_v6 }
 0x735   : > { %7520 = vrcp.f32 %v10438_v11  ;;  %v2300_v11 = vmul.f32 %v7509_v26, %v10089_v51 }
 0x736   : > { %v10509_v44 = vpop.xlane.xlu0 %2277  ;;  %7522 = vrcp.f32 %v10454_v7  ;;  %v2301_v7 = vmul.f32 %v7511_v48, %v10303_v19 }
 0x737   : > { %v2272_v8 = vpop.xlane.xlu1 %2271 }
 0x738   : > { %7524 = vrcp.f32 %v2272_v8 }
 0x739   : > { %7526 = vrcp.f32 %v10470_v29 }
 0x73a   : > { %v10511_v0 = vpop.xlane.xlu0 %2279  ;;  %7528 = vpow2.f32 %v3225_v60 }
 0x73b   : > { %v10513_v34 = vpop.xlane.xlu1 %2767 }
 0x73e   : > { %v10515_v24 = vpop.xlane.xlu0 %2775 }
 0x73f   : > { %v10517_v56 = vpop.xlane.xlu1 %2769 }
 0x741   : > { %3841 = vrot.lane.b32.xlu1 %v12510_v15, %s7928_s12 }
 0x742   : > { %v10522_v46 = vpop.xlane.xlu0 %2777 }
 0x743   : > { %v10525_v32 = vpop.xlane.xlu1 %2771 }
 0x746   : > { %v10531_v42 = vpop.xlane.xlu0 %2781 }
 0x747   : > { %12786 = vst [vmem:[#allocation109_spill] sm:$0xff] %v10531_v42  ;;  %v10533_v3 = vpop.xlane.xlu1 %2773  ;;  %3263 = vadd.xlane.f32.xlu0 %v10529_v49  ;;  %v7513_v49 = vpop.eup %7512 }
 0x748   : > { %v7515_v16 = vpop.eup %7514 }
 0x749   : > { %v2302_v38 = vmul.f32 %v7515_v16, %v10213_v62  ;;  %v7517_v23 = vpop.eup %7516  ;;  %v12791_v16 = vld [vmem:[#allocation97_spill] sm:$0xff] }
 0x74a   : > { %v2322_v40 = vpop.permute.xlu0 %2321  ;;  %v7519_v8 = vpop.eup %7518  ;;  %v2304_v19 = vmul.f32 %v7517_v23, %v10317_v53  ;;  %v12790_v53 = vld [vmem:[#allocation141_spill] sm:$0xff] }
 0x74b   : > { %v2326_v15 = vpop.permute.xlu1 %2325  ;;  %v7521_v42 = vpop.eup %7520  ;;  %v2305_v6 = vmul.f32 %v7519_v8, %v10382_v18  ;;  %v12796_v8 = vld [vmem:[#allocation40_spill] sm:$0xff] }
 0x74c   : > { %6830 = vmatprep.subr.bf16.mxu1 %v2326_v15  ;;  %v7523_v51 = vpop.eup %7522 }
 0x74d   : > { %6831 = vmatpush3.bf16.msra.mxu1 %v2326_v15  ;;  %v2299_v15 = vmul.f32 %v7513_v49, %v10075_v39  ;;  %v2303_v39 = vmul.f32 %v7521_v42, %v10307_v63  ;;  %v2306_v62 = vmul.f32 %v7523_v51, %v10258_v20  ;;  %v7525_v48 = vpop.eup %7524  ;;  %v12789_v63 = vld [vmem:[#allocation170_spill] sm:$0xff] }
 0x74e   : > { %v10541_v17 = vpop.permute.xlu0 %2823  ;;  %v3714_v18 = vsub.f32 %v12790_v53, %v12789_v63 }
 0x74f   : > { %v2324_v37 = vpop.permute.xlu1 %2323  ;;  %v2314_v35 = vpack.c.bf16 %v2300_v11, %v2299_v15  ;;  %v2316_v29 = vpack.c.bf16 %v2304_v19, %v2303_v39  ;;  %v2317_v49 = vpack.c.bf16 %v2306_v62, %v2305_v6  ;;  %v12792_v11 = vld [vmem:[#allocation142_spill] sm:$0xff] }
 0x750   : > { %6832 = vmatprep.subr.bf16.mxu1 %v2324_v37  ;;  %v3737_v20 = vmul.f32 1.442695, %v3714_v18  ;;  %v3214_v60 = vsub.f32 %v12792_v11, %v12791_v16  ;;  %v12800_v16 = vld [vmem:[#allocation150_spill] sm:$0xff] }
 0x751   : > { %6833 = vmatpush3.bf16.msra.mxu1 %v2324_v37  ;;  %v2315_v37 = vpack.c.bf16 %v2302_v38, %v2301_v7 }
 0x752   : > { %6834 = vmatprep.subr.bf16.mxu1 %v2322_v40  ;;  %v3340_v2 = vpop.permute.xlu0 %3339  ;;  %7530 = vpow2.f32 %v3737_v20  ;;  %v3239_v7 = vmul.f32 1.442695, %v3214_v60  ;;  %v12799_v20 = vld [vmem:[#allocation101_spill] sm:$0xff] }
 0x753   : > { %v3711_v11 = vsub.f32 %v12800_v16, %v12799_v20 }
 0x754   : > { %7532 = vpow2.f32 %v3239_v7 }
 0x755   : > { %6835 = vmatpush3.bf16.msra.mxu1 %v2322_v40  ;;  %v2308_v40 = vmul.f32 %v7525_v48, %v10388_v30  ;;  %7534 = vrcp.f32 %v10329_v14  ;;  %v12793_v14 = vld [vmem:[#allocation104_spill] sm:$0xff]  ;;  %v12798_v48 = vld [vmem:[#allocation37_spill] sm:$0xff] }
 0x756   : > { %6884 = vmatprep.subr.bf16.mxu1 %v3340_v2  ;;  %7536 = vrcp.f32 %v10452_v4 }
 0x757   : > { %7538 = vrcp.f32 %v10321_v10 }
 0x758   : > { %6837 = vmatmul.mubr.bf16.vlgmr.msra.gmra.mxu1 %v2314_v35  ;;  %v7527_v35 = vpop.eup %7526  ;;  %7540 = vrcp.f32 %v10448_v54 }
 0x759   : > { %6840 = vmatprep.mubr.bf16.mxu1 %v2315_v37  ;;  %6885 = vmatpush3.bf16.msra.mxu1 %v3340_v2  ;;  %v10555_v26 = vpop.eup %7528  ;;  %v2307_v23 = vmul.f32 %v7527_v35, %v10337_v41  ;;  %7542 = vrcp.f32 %v10446_v52  ;;  %v12794_v52 = vld [vmem:[#allocation63_spill] sm:$0xff]  ;;  %v12795_v37 = vld [vmem:[#allocation18_spill] sm:$0xff] }
 0x75a   : > { %7544 = vrcp.f32 %v10460_v47  ;;  %v3209_v47 = vsub.f32 %v12794_v52, %v12793_v14  ;;  %v3211_v51 = vsub.f32 %v12796_v8, %v12795_v37 }
 0x75b   : > { %v2318_v42 = vpack.c.bf16 %v2308_v40, %v2307_v23  ;;  %7546 = vrcp.f32 %v10507_v61 }
 0x75c   : > { %7548 = vrcp.f32 %v10511_v0  ;;  %v3229_v38 = vmul.f32 1.442695, %v3209_v47  ;;  %v3233_v40 = vmul.f32 1.442695, %v3211_v51  ;;  %v12802_v47 = vld [vmem:[#allocation42_spill] sm:$0xff] }
 0x75d   : > { %3837 = vrot.lane.b32.xlu0 %v12687_v57, %s7928_s12  ;;  %7550 = vrcp.f32 %v10509_v44 }
 0x75e   : > { %7552 = vrcp.f32 %v10517_v56 }
 0x75f   : > { %v10569_v41 = vpop.eup %7530 }
 0x760   : > { %6841 = vmatmul.mubr.bf16.gmra.mxu1 %v2316_v29  ;;  %v12797_v29 = vld [vmem:[#allocation93_spill] sm:$0xff] }
 0x761   : > { %6844 = vmatprep.mubr.bf16.mxu1 %v2317_v49  ;;  %v10576_v30 = vpop.eup %7532  ;;  %v3212_v49 = vsub.f32 %v12798_v48, %v12797_v29 }
 0x762   : > { %v7535_v10 = vpop.eup %7534 }
 0x763   : > { %v7537_v0 = vpop.eup %7536  ;;  %v3235_v63 = vmul.f32 1.442695, %v3212_v49 }
 0x764   : > { %v7539_v15 = vpop.eup %7538  ;;  %v2804_v19 = vmul.f32 %v7537_v0, %v10327_v21  ;;  %v3731_v0 = vmul.f32 1.442695, %v3711_v11 }
 0x765   : > { %3257 = vadd.xlane.f32.xlu1 %v10555_v26  ;;  %v7541_v44 = vpop.eup %7540 }
 0x766   : > { %v7543_v2 = vpop.eup %7542 }
 0x767   : > { %v7545_v6 = vpop.eup %7544 }
 0x768   : > { %6845 = vmatmul.mubr.bf16.gmra.mxu1 %v2318_v42  ;;  %v7547_v39 = vpop.eup %7546  ;;  %v2805_v42 = vmul.f32 %v7545_v6, %v10332_v59  ;;  %v12801_v59 = vld [vmem:[#allocation167_spill] sm:$0xff] }
 0x769   : > { %v7549_v62 = vpop.eup %7548  ;;  %v2310_v18 = vmul.f32 %v7547_v39, %v10377_v43 }
 0x76a   : > { %v7551_v21 = vpop.eup %7550 }
 0x76b   : > { %v7553_v23 = vpop.eup %7552  ;;  %v2311_v60 = vmul.f32 %v7551_v21, %v10386_v33 }
 0x76c   : > { %v2808_v7 = vmul.f32 %v7553_v23, %v10401_v5 }
 0x776   : > { %3839 = vrot.lane.b32.xlu1 %v12676_v55, %s7928_s12 }
 0x77c   : > { %3769 = vadd.xlane.f32.xlu0 %v10569_v41 }
 0x780   : > { %v2274_v4 = vpop.xlane.xlu1 %2273  ;;  %3271 = vadd.xlane.f32.xlu0 %v10576_v30 }
 0x781   : > { %7554 = vrcp.f32 %v2274_v4 }
 0x782   : > { %7556 = vrcp.f32 %v10513_v34  ;;  %v2802_v34 = vmul.f32 %v7535_v10, %v10157_v1  ;;  %v2803_v1 = vmul.f32 %v7541_v44, %v10324_v9 }
 0x783   : > { %v10582_v54 = vpop.xlane.xlu0 %3253  ;;  %7558 = vrcp.f32 %v10533_v3  ;;  %v2801_v3 = vmul.f32 %v7539_v15, %v10148_v31 }
 0x784   : > { %v2826_v61 = vpop.permute.xlu1 %2825  ;;  %7560 = vrcp.f32 %v10522_v46 }
 0x785   : > { %6864 = vmatprep.subr.bf16.mxu0 %v2826_v61  ;;  %7562 = vrcp.f32 %v10525_v32  ;;  %v2816_v46 = vpack.c.bf16 %v2802_v34, %v2801_v3  ;;  %v2817_v32 = vpack.c.bf16 %v2804_v19, %v2803_v1 }
 0x786   : > { %6865 = vmatpush3.bf16.msra.mxu0 %v2826_v61  ;;  %7564 = vrcp.f32 %v10515_v24  ;;  %v2312_v24 = vmul.f32 %v7549_v62, %v10393_v13  ;;  %v2806_v13 = vmul.f32 %v7543_v2, %v10249_v36  ;;  %v3712_v61 = vsub.f32 %v12802_v47, %v12801_v59  ;;  %v12803_v2 = vld [vmem:[#allocation189_spill] sm:$0xff] }
 0x787   : > { %6866 = vmatprep.subr.bf16.mxu0 %v10541_v17  ;;  %v10588_v56 = vpop.xlane.xlu0 %3259  ;;  %7566 = vpow2.f32 %v3229_v38  ;;  %v12804_v38 = vld [vmem:[#allocation79_spill] sm:$0xff] }
 0x788   : > { %7568 = vpow2.f32 %v3233_v40  ;;  %v2320_v10 = vpack.c.bf16 %v2312_v24, %v2311_v60  ;;  %v2818_v43 = vpack.c.bf16 %v2806_v13, %v2805_v42  ;;  %v3733_v34 = vmul.f32 1.442695, %v3712_v61  ;;  %v12806_v40 = vld [vmem:[#allocation109_spill] sm:$0xff]  ;;  %v12807_v24 = vld [vmem:[#allocation6_spill] sm:$0xff]  ;;  %v12811_v60 = vld [vmem:[#allocation88_spill] sm:$0xff] }
 0x789   : > { %7570 = vpow2.f32 %v3235_v63  ;;  %v3713_v37 = vsub.f32 %v12804_v38, %v12803_v2  ;;  %v12809_v42 = vld [vmem:[#allocation61_spill] sm:$0xff]  ;;  %v12814_v61 = vld [vmem:[#allocation8_spill] sm:$0xff]  ;;  %v12819_v2 = vld [vmem:[#allocation186_spill] sm:$0xff] }
 0x78a   : > { %6867 = vmatpush3.bf16.msra.mxu0 %v10541_v17  ;;  %7572 = vpow2.f32 %v3731_v0  ;;  %v12815_v0 = vld [vmem:[#allocation182_spill] sm:$0xff] }
 0x78b   : > { %v10602_v35 = vpop.xlane.xlu0 %3755  ;;  %7574 = vpow2.f32 %v3733_v34  ;;  %v3735_v1 = vmul.f32 1.442695, %v3713_v37  ;;  %v12820_v38 = vld [vmem:[#allocation38_spill] sm:$0xff] }
 0x78c   : > { %v3219_v37 = vsub.f32 %v12820_v38, %v12819_v2 }
 0x78d   : > { %6869 = vmatmul.mubr.bf16.vlgmr.msra.gmra.mxu0 %v2816_v46  ;;  %7576 = vpow2.f32 %v3735_v1  ;;  %v12823_v1 = vld [vmem:[#allocation16_spill] sm:$0xff] }
 0x78e   : > { %v7555_v31 = vpop.eup %7554  ;;  %6872 = vmatprep.mubr.bf16.mxu0 %v2817_v32 }
 0x78f   : > { %v7557_v17 = vpop.eup %7556  ;;  %v3758_v9 = vpop.xlane.xlu0 %3757  ;;  %v2309_v53 = vmul.f32 %v7555_v31, %v10458_v22 }
 0x790   : > { %v2807_v14 = vmul.f32 %v7557_v17, %v10396_v27  ;;  %v7559_v52 = vpop.eup %7558 }
 0x791   : > { %v2319_v4 = vpack.c.bf16 %v2310_v18, %v2309_v53  ;;  %v7561_v15 = vpop.eup %7560  ;;  %v2810_v44 = vmul.f32 %v7559_v52, %v10418_v28  ;;  %v12813_v52 = vld [vmem:[#allocation53_spill] sm:$0xff] }
 0x792   : > { %v2819_v33 = vpack.c.bf16 %v2808_v7, %v2807_v14  ;;  %v7563_v5 = vpop.eup %7562  ;;  %v2812_v8 = vmul.f32 %v7561_v15, %v10408_v45  ;;  %v12805_v45 = vld [vmem:[#allocation50_spill] sm:$0xff]  ;;  %v12812_v14 = vld [vmem:[#allocation36_spill] sm:$0xff] }
 0x793   : > { %6848 = vmatprep.mubr.bf16.mxu1 %v2319_v4  ;;  %v10614_v22 = vpop.xlane.xlu0 %3759  ;;  %v7565_v36 = vpop.eup %7564  ;;  %v2809_v19 = vmul.f32 %v7563_v5, %v10412_v50  ;;  %v3215_v50 = vsub.f32 %v12805_v45, %v9849_v58  ;;  %v12817_v5 = vld [vmem:[#allocation190_spill] sm:$0xff] }
 0x794   : > { %6849 = vmatmul.mubr.bf16.gmra.mxu1 %v2320_v10  ;;  %v10626_v51 = vpop.eup %7566  ;;  %v2811_v6 = vmul.f32 %v7565_v36, %v10403_v25  ;;  %v12818_v36 = vld [vmem:[#allocation152_spill] sm:$0xff] }
 0x795   : > { %6873 = vmatmul.mubr.bf16.gmra.mxu0 %v2818_v43  ;;  %v2820_v39 = vpack.c.bf16 %v2810_v44, %v2809_v19  ;;  %v10631_v62 = vpop.eup %7568  ;;  %v3241_v48 = vmul.f32 1.442695, %v3215_v50  ;;  %v3213_v44 = vsub.f32 %v12818_v36, %v12817_v5  ;;  %v12822_v19 = vld [vmem:[#allocation46_spill] sm:$0xff] }
 0x796   : > { %3833 = vrot.lane.b32.xlu0 %v12715_v12, %s7928_s12  ;;  %6876 = vmatprep.mubr.bf16.mxu0 %v2819_v33  ;;  %v2821_v28 = vpack.c.bf16 %v2812_v8, %v2811_v6  ;;  %v10636_v25 = vpop.eup %7570  ;;  %v12816_v33 = vld [vmem:[#allocation149_spill] sm:$0xff]  ;;  %v12821_v8 = vld [vmem:[#allocation172_spill] sm:$0xff] }
 0x797   : > { %v10620_v27 = vpop.xlane.xlu0 %3761  ;;  %v10639_v49 = vpop.eup %7572  ;;  %7578 = vpow2.f32 %v3241_v48  ;;  %v3218_v15 = vsub.f32 %v12816_v33, %v12815_v0  ;;  %v3216_v6 = vsub.f32 %v12822_v19, %v12821_v8  ;;  %v12826_v48 = vld [vmem:[#allocation155_spill] sm:$0xff] }
 0x798   : > { %v10642_v46 = vpop.eup %7574  ;;  %7580 = vrcp.f32 %v3758_v9 }
 0x799   : > { %7582 = vrcp.f32 %v12806_v40  ;;  %v3247_v34 = vmul.f32 1.442695, %v3218_v15  ;;  %v3243_v50 = vmul.f32 1.442695, %v3216_v6 }
 0x79a   : > { %3261 = vadd.xlane.f32.xlu1 %v10626_v51  ;;  %v10645_v21 = vpop.eup %7576  ;;  %7584 = vrcp.f32 %v10602_v35  ;;  %v12808_v35 = vld [vmem:[#allocation169_spill] sm:$0xff] }
 0x79b   : > { %v3338_v3 = vpop.permute.xlu0 %3337 }
 0x79c   : > { %6886 = vmatprep.subr.bf16.mxu1 %v3338_v3 }
 0x79d   : > { %6877 = vmatmul.mubr.bf16.gmra.mxu0 %v2820_v39  ;;  %6887 = vmatpush3.bf16.msra.mxu1 %v3338_v3  ;;  %v3237_v3 = vmul.f32 1.442695, %v3213_v44  ;;  %v3249_v39 = vmul.f32 1.442695, %v3219_v37 }
 0x79e   : > { %3265 = vadd.xlane.f32.xlu1 %v10631_v62  ;;  %6880 = vmatprep.mubr.bf16.mxu0 %v2821_v28  ;;  %v12824_v28 = vld [vmem:[#allocation57_spill] sm:$0xff] }
 0x79f   : > { %v3336_v29 = vpop.permute.xlu0 %3335  ;;  %v3220_v45 = vsub.f32 %v12824_v28, %v12823_v1 }
 0x7a0   : > { %6888 = vmatprep.subr.bf16.mxu1 %v3336_v29 }
 0x7a1   : > { %6889 = vmatpush3.bf16.msra.mxu1 %v3336_v29  ;;  %v12825_v29 = vld [vmem:[#allocation194_spill] sm:$0xff] }
 0x7a2   : > { %3267 = vadd.xlane.f32.xlu1 %v10636_v25  ;;  %v3715_v40 = vsub.f32 %v12826_v48, %v12825_v29  ;;  %v12841_v29 = vld [vmem:[#allocation10_spill] sm:$0xff]  ;;  %v12842_v48 = vld [vmem:[#allocation3_spill] sm:$0xff] }
 0x7a4   : > { %v10648_v58 = vpop.eup %7578 }
 0x7a5   : > { %v7581_v17 = vpop.eup %7580 }
 0x7a6   : > { %3763 = vadd.xlane.f32.xlu1 %v10639_v49  ;;  %v7583_v63 = vpop.eup %7582  ;;  %v3804_v18 = vmul.f32 %v7581_v17, %v12808_v35  ;;  %v3739_v35 = vmul.f32 1.442695, %v3715_v40  ;;  %v12843_v40 = vld [vmem:[#allocation180_spill] sm:$0xff] }
 0x7a7   : > { %v7585_v9 = vpop.eup %7584 }
 0x7a8   : > { %v3803_v7 = vmul.f32 %v7585_v9, %v12811_v60  ;;  %v12830_v9 = vld [vmem:[#allocation145_spill] sm:$0xff]  ;;  %v12834_v60 = vld [vmem:[#allocation158_spill] sm:$0xff] }
 0x7aa   : > { %3765 = vadd.xlane.f32.xlu1 %v10642_v46  ;;  %v3819_v10 = vpack.c.bf16 %v3804_v18, %v3803_v7 }
 0x7ae   : > { %3767 = vadd.xlane.f32.xlu1 %v10645_v21 }
 0x7b5   : > { %v2780_v32 = vpop.xlane.xlu1 %2779  ;;  %3273 = vadd.xlane.f32.xlu0 %v10648_v58 }
 0x7b6   : > { %7586 = vrcp.f32 %v2780_v32  ;;  %v3251_v32 = vmul.f32 1.442695, %v3220_v45 }
 0x7b7   : > { %7588 = vrcp.f32 %v10582_v54  ;;  %v12810_v54 = vld [vmem:[#allocation39_spill] sm:$0xff] }
 0x7b8   : > { %v2814_v16 = vmul.f32 %v7583_v63, %v12810_v54  ;;  %v12829_v63 = vld [vmem:[#allocation174_spill] sm:$0xff] }
 0x7b9   : > { %v3256_v23 = vpop.xlane.xlu1 %3255 }
 0x7ba   : > { %7590 = vrcp.f32 %v3256_v23  ;;  %v12827_v23 = vld [vmem:[#allocation13_spill] sm:$0xff] }
 0x7bb   : > { %7592 = vpow2.f32 %v3247_v34 }
 0x7bc   : > { %7594 = vpow2.f32 %v3237_v3 }
 0x7bd   : > { %v3842_v31 = vpop.permute.xlu1 %3841  ;;  %7596 = vpow2.f32 %v3249_v39 }
 0x7be   : > { %6916 = vmatprep.subr.bf16.mxu0 %v3842_v31  ;;  %7598 = vpow2.f32 %v3243_v50  ;;  %v12840_v50 = vld [vmem:[#allocation9_spill] sm:$0xff] }
 0x7bf   : > { %3333 = vrot.lane.b32.xlu1 %v12807_v24, %s7927_s30  ;;  %6917 = vmatpush3.bf16.msra.mxu0 %v3842_v31  ;;  %v12828_v31 = vld [vmem:[#allocation82_spill] sm:$0xff]  ;;  %7600 = vpow2.f32 %v3251_v32  ;;  %v12844_v32 = vld [vmem:[#allocation147_spill] sm:$0xff] }
 0x7c0   : > { %v3719_v17 = vsub.f32 %v12828_v31, %v12827_v23  ;;  %7602 = vpow2.f32 %v3739_v35  ;;  %v3217_v23 = vsub.f32 %v12844_v32, %v12843_v40 }
 0x7c2   : > { %v3747_v18 = vmul.f32 1.442695, %v3719_v17  ;;  %v12845_v17 = vld [vmem:[#allocation199_spill] sm:$0xff] }
 0x7c3   : > { %v7587_v53 = vpop.eup %7586  ;;  %3835 = vrot.lane.b32.xlu1 %v12807_v24, %s7928_s12 }
 0x7c4   : > { %v2813_v20 = vmul.f32 %v7587_v53, %v12809_v42  ;;  %v7589_v11 = vpop.eup %7588  ;;  %v3716_v53 = vsub.f32 %v12830_v9, %v12829_v63  ;;  %v12831_v42 = vld [vmem:[#allocation95_spill] sm:$0xff]  ;;  %7604 = vpow2.f32 %v3747_v18  ;;  %v12846_v63 = vld [vmem:[#allocation188_spill] sm:$0xff] }
 0x7c5   : > { %v3301_v43 = vmul.f32 %v7589_v11, %v12812_v14  ;;  %v12833_v11 = vld [vmem:[#allocation195_spill] sm:$0xff]  ;;  %v4209_v9 = vsub.f32 %v12846_v63, %v12845_v17  ;;  %v12855_v17 = vld [vmem:[#allocation198_spill] sm:$0xff]  ;;  %v12856_v63 = vld [vmem:[#allocation176_spill] sm:$0xff] }
 0x7c6   : > { %v2822_v4 = vpack.c.bf16 %v2814_v16, %v2813_v20  ;;  %v12832_v20 = vld [vmem:[#allocation28_spill] sm:$0xff]  ;;  %v3741_v16 = vmul.f32 1.442695, %v3716_v53  ;;  %v3717_v7 = vsub.f32 %v12834_v60, %v12833_v11  ;;  %v3245_v53 = vmul.f32 1.442695, %v3217_v23  ;;  %v12847_v18 = vld [vmem:[#allocation59_spill] sm:$0xff] }
 0x7c7   : > { %v7591_v13 = vpop.eup %7590  ;;  %3331 = vrot.lane.b32.xlu1 %v12715_v12, %s7927_s30  ;;  %v3720_v54 = vsub.f32 %v12832_v20, %v12831_v42  ;;  %v12848_v42 = vld [vmem:[#allocation19_spill] sm:$0xff]  ;;  %v12849_v60 = vld [vmem:[#allocation121_spill] sm:$0xff] }
 0x7c8   : > { %6881 = vmatmul.mubr.bf16.gmra.mxu0 %v2822_v4  ;;  %v3302_v59 = vmul.f32 %v7591_v13, %v12813_v52  ;;  %v12835_v13 = vld [vmem:[#allocation192_spill] sm:$0xff]  ;;  %7606 = vpow2.f32 %v3741_v16  ;;  %v12837_v52 = vld [vmem:[#allocation177_spill] sm:$0xff]  ;;  %v3743_v0 = vmul.f32 1.442695, %v3717_v7  ;;  %v4212_v20 = vsub.f32 %v12848_v42, %v12847_v18 }
 0x7c9   : > { %6932 = vmatprep.mubr.bf16.mxu0 %v3819_v10  ;;  %v3749_v4 = vmul.f32 1.442695, %v3720_v54  ;;  %v12836_v10 = vld [vmem:[#allocation65_spill] sm:$0xff]  ;;  %v4225_v54 = vmul.f32 1.442695, %v4209_v9  ;;  %v12850_v7 = vld [vmem:[#allocation116_spill] sm:$0xff]  ;;  %v4714_v9 = vsub.f32 %v12856_v63, %v12855_v17 }
 0x7ca   : > { %v3317_v47 = vpack.c.bf16 %v3302_v59, %v3301_v43  ;;  %v3722_v14 = vsub.f32 %v12836_v10, %v12835_v13  ;;  %v10690_v43 = vpop.eup %7592  ;;  %v12838_v59 = vld [vmem:[#allocation146_spill] sm:$0xff]  ;;  %v4231_v11 = vmul.f32 1.442695, %v4212_v20 }
 0x7cb   : > { %3831 = vrot.lane.b32.xlu0 %v12814_v61, %s7928_s12  ;;  %v10694_v33 = vpop.eup %7594  ;;  %7608 = vpow2.f32 %v3749_v4  ;;  %v4711_v4 = vsub.f32 %v12850_v7, %v12849_v60  ;;  %v12864_v63 = vld [vmem:[#allocation110_spill] sm:$0xff] }
 0x7cc   : > { %6900 = vmatprep.mubr.bf16.mxu1 %v3317_v47  ;;  %v3718_v47 = vsub.f32 %v12838_v59, %v12837_v52  ;;  %v3753_v15 = vmul.f32 1.442695, %v3722_v14  ;;  %v10698_v5 = vpop.eup %7596  ;;  %7610 = vpow2.f32 %v3743_v0  ;;  %v12851_v14 = vld [vmem:[#allocation113_spill] sm:$0xff]  ;;  %v12852_v52 = vld [vmem:[#allocation171_spill] sm:$0xff] }
 0x7cd   : > { %v10700_v44 = vpop.eup %7598  ;;  %v4712_v59 = vsub.f32 %v12852_v52, %v12851_v14 }
 0x7ce   : > { %v3745_v36 = vmul.f32 1.442695, %v3718_v47  ;;  %7612 = vpow2.f32 %v3753_v15  ;;  %v10708_v38 = vpop.eup %7600  ;;  %v4727_v47 = vmul.f32 1.442695, %v4711_v4 }
 0x7cf   : > { %v10710_v37 = vpop.eup %7602  ;;  %v4729_v15 = vmul.f32 1.442695, %v4712_v59 }
 0x7d0   : > { %v10702_v34 = vpop.xlane.xlu0 %3263  ;;  %7614 = vpow2.f32 %v3745_v36  ;;  %v12853_v36 = vld [vmem:[#allocation111_spill] sm:$0xff] }
 0x7d1   : > { %v10714_v6 = vpop.eup %7604  ;;  %7616 = vpow2.f32 %v3245_v53 }
 0x7d2   : > { %7618 = vpow2.f32 %v4225_v54  ;;  %v4733_v54 = vmul.f32 1.442695, %v4714_v9  ;;  %v12865_v9 = vld [vmem:[#allocation84_spill] sm:$0xff] }
 0x7d3   : > { %7620 = vpow2.f32 %v4231_v11 }
 0x7d4   : > { %v3838_v19 = vpop.permute.xlu0 %3837  ;;  %7622 = vpow2.f32 %v4727_v47 }
 0x7d5   : > { %v10716_v3 = vpop.eup %7606  ;;  %7624 = vpow2.f32 %v4729_v15 }
 0x7d8   : > { %v10720_v39 = vpop.eup %7608 }
 0x7d9   : > { %v10722_v1 = vpop.eup %7610 }
 0x7db   : > { %v10726_v28 = vpop.eup %7612 }
 0x7dc   : > { %12839 = vst [vmem:[#allocation140_spill] sm:$0xff] %v10726_v28 }
 0x7dd   : > { %v10728_v45 = vpop.eup %7614 }
 0x7de   : > { %v10768_v32 = vpop.eup %7616 }
 0x7df   : > { %v10775_v18 = vpop.eup %7618 }
 0x7e0   : > { %12857 = vst [vmem:[#allocation126_spill] sm:$0xff] %v10775_v18  ;;  %v10778_v11 = vpop.eup %7620 }
 0x7e1   : > { %12858 = vst [vmem:[#allocation144_spill] sm:$0xff] %v10778_v11  ;;  %v10783_v4 = vpop.eup %7622 }
 0x7e2   : > { %12859 = vst [vmem:[#allocation58_spill] sm:$0xff] %v10783_v4  ;;  %v10786_v59 = vpop.eup %7624 }
 0x7ea   : > { %3279 = vadd.xlane.f32.xlu0 %v10690_v43 }
 0x7eb   : > { %3269 = vadd.xlane.f32.xlu1 %v10694_v33 }
 0x7ee   : > { %v10704_v2 = vpop.xlane.xlu1 %3257  ;;  %3281 = vadd.xlane.f32.xlu0 %v10698_v5 }
 0x7ef   : > { %3275 = vadd.xlane.f32.xlu1 %v10700_v44 }
 0x7f2   : > { %v3840_v8 = vpop.permute.xlu1 %3839  ;;  %3283 = vadd.xlane.f32.xlu0 %v10708_v38 }
 0x7f3   : > { %3771 = vadd.xlane.f32.xlu1 %v10710_v37  ;;  %6918 = vmatprep.subr.bf16.mxu0 %v3840_v8 }
 0x7f4   : > { %6919 = vmatpush3.bf16.msra.mxu0 %v3840_v8  ;;  %v12854_v8 = vld [vmem:[#allocation196_spill] sm:$0xff] }
 0x7f5   : > { %6920 = vmatprep.subr.bf16.mxu0 %v3838_v19 }
 0x7f6   : > { %3779 = vadd.xlane.f32.xlu0 %v10714_v6 }
 0x7f7   : > { %3773 = vadd.xlane.f32.xlu1 %v10716_v3 }
 0x7f8   : > { %6921 = vmatpush3.bf16.msra.mxu0 %v3838_v19  ;;  %v4713_v19 = vsub.f32 %v12854_v8, %v12853_v36  ;;  %v12862_v36 = vld [vmem:[#allocation67_spill] sm:$0xff]  ;;  %v12863_v8 = vld [vmem:[#allocation34_spill] sm:$0xff] }
 0x7fa   : > { %3781 = vadd.xlane.f32.xlu0 %v10720_v39  ;;  %v4731_v53 = vmul.f32 1.442695, %v4713_v19  ;;  %v3721_v19 = vsub.f32 %v12863_v8, %v12862_v36 }
 0x7fb   : > { %3775 = vadd.xlane.f32.xlu1 %v10722_v1 }
 0x7fc   : > { %7626 = vpow2.f32 %v4731_v53  ;;  %v3751_v17 = vmul.f32 1.442695, %v3721_v19  ;;  %v4210_v53 = vsub.f32 %v12865_v9, %v12864_v63 }
 0x7fd   : > { %7628 = vpow2.f32 %v4733_v54 }
 0x7fe   : > { %3785 = vadd.xlane.f32.xlu0 %v10726_v28  ;;  %7630 = vpow2.f32 %v3751_v17 }
 0x7ff   : > { %3777 = vadd.xlane.f32.xlu1 %v10728_v45 }
 0x805   : > { %v10756_v13 = vpop.xlane.xlu0 %3769 }
 0x809   : > { %v10766_v40 = vpop.xlane.xlu0 %3271  ;;  %v10791_v47 = vpop.eup %7626 }
 0x80a   : > { %12860 = vst [vmem:[#allocation7_spill] sm:$0xff] %v10791_v47  ;;  %v10794_v15 = vpop.eup %7628 }
 0x80b   : > { %12861 = vst [vmem:[#allocation143_spill] sm:$0xff] %v10794_v15 }
 0x80d   : > { %v3834_v42 = vpop.permute.xlu0 %3833 }
 0x810   : > { %3329 = vrot.lane.b32.xlu1 %v12814_v61, %s7927_s30 }
 0x814   : > { %3327 = vrot.lane.b32.xlu1 %v12840_v50, %s7927_s30  ;;  %3325 = vrot.lane.b32.xlu0 %v12841_v29, %s7927_s30 }
 0x818   : > { %3827 = vrot.lane.b32.xlu0 %v12841_v29, %s7928_s12 }
 0x81c   : > { %4343 = vrot.lane.b32.xlu0 %v12842_v48, %s7929_s13 }
 0x823   : > { %v10744_v31 = vpop.xlane.xlu1 %3261 }
 0x827   : > { %v10748_v35 = vpop.xlane.xlu1 %3265 }
 0x82b   : > { %v10752_v16 = vpop.xlane.xlu1 %3267 }
 0x82f   : > { %v10758_v10 = vpop.xlane.xlu1 %3763 }
 0x833   : > { %v10762_v0 = vpop.xlane.xlu1 %3765 }
 0x837   : > { %v10770_v23 = vpop.xlane.xlu1 %3767 }
 0x838   : > { %3277 = vadd.xlane.f32.xlu1 %v10768_v32 }
 0x83b   : > { %v3334_v20 = vpop.permute.xlu1 %3333  ;;  %4257 = vadd.xlane.f32.xlu0 %v10775_v18 }
 0x83c   : > { %6890 = vmatprep.subr.bf16.mxu1 %v3334_v20 }
 0x83d   : > { %6891 = vmatpush3.bf16.msra.mxu1 %v3334_v20  ;;  %v10805_v20 = vpop.eup %7630 }
 0x83e   : > { %v10780_v60 = vpop.xlane.xlu0 %3273  ;;  %12866 = vst [vmem:[#allocation47_spill] sm:$0xff] %v10805_v20 }
 0x83f   : > { %v3836_v7 = vpop.permute.xlu1 %3835  ;;  %4263 = vadd.xlane.f32.xlu0 %v10778_v11 }
 0x840   : > { %6922 = vmatprep.subr.bf16.mxu0 %v3836_v7 }
 0x841   : > { %6923 = vmatpush3.bf16.msra.mxu0 %v3836_v7  ;;  %v12868_v7 = vld [vmem:[#allocation127_spill] sm:$0xff] }
 0x842   : > { %6924 = vmatprep.subr.bf16.mxu0 %v3834_v42  ;;  %v3832_v52 = vpop.permute.xlu0 %3831 }
 0x843   : > { %v3332_v14 = vpop.permute.xlu1 %3331  ;;  %4759 = vadd.xlane.f32.xlu0 %v10783_v4 }
 0x844   : > { %6892 = vmatprep.subr.bf16.mxu1 %v3332_v14 }
 0x845   : > { %6893 = vmatpush3.bf16.msra.mxu1 %v3332_v14  ;;  %6925 = vmatpush3.bf16.msra.mxu0 %v3834_v42  ;;  %v4227_v42 = vmul.f32 1.442695, %v4210_v53  ;;  %v12869_v14 = vld [vmem:[#allocation112_spill] sm:$0xff] }
 0x846   : > { %6926 = vmatprep.subr.bf16.mxu0 %v3832_v52 }
 0x847   : > { %4761 = vadd.xlane.f32.xlu0 %v10786_v59  ;;  %7632 = vpow2.f32 %v4227_v42 }
 0x849   : > { %3829 = vrot.lane.b32.xlu1 %v12840_v50, %s7928_s12  ;;  %6927 = vmatpush3.bf16.msra.mxu0 %v3832_v52  ;;  %v4214_v52 = vsub.f32 %v12869_v14, %v12868_v7 }
 0x84b   : > { %4763 = vadd.xlane.f32.xlu0 %v10791_v47  ;;  %v4235_v19 = vmul.f32 1.442695, %v4214_v52 }
 0x84d   : > { %7634 = vpow2.f32 %v4235_v19 }
 0x84e   : > { %7636 = vrcp.f32 %v10704_v2 }
 0x84f   : > { %4765 = vadd.xlane.f32.xlu0 %v10794_v15  ;;  %7638 = vrcp.f32 %v10744_v31  ;;  %v12872_v31 = vld [vmem:[#allocation191_spill] sm:$0xff] }
 0x850   : > { %7640 = vrcp.f32 %v10588_v56 }
 0x851   : > { %7642 = vrcp.f32 %v10702_v34  ;;  %v12871_v34 = vld [vmem:[#allocation125_spill] sm:$0xff] }
 0x852   : > { %7644 = vrcp.f32 %v10752_v16  ;;  %v4211_v11 = vsub.f32 %v12872_v31, %v12871_v34  ;;  %v12874_v31 = vld [vmem:[#allocation173_spill] sm:$0xff] }
 0x854   : > { %v10808_v54 = vpop.eup %7632 }
 0x855   : > { %12867 = vst [vmem:[#allocation148_spill] sm:$0xff] %v10808_v54 }
 0x85a   : > { %v10835_v52 = vpop.eup %7634 }
 0x85b   : > { %12870 = vst [vmem:[#allocation11_spill] sm:$0xff] %v10835_v52  ;;  %v7637_v56 = vpop.eup %7636 }
 0x85c   : > { %v7639_v61 = vpop.eup %7638 }
 0x865   : > { %4341 = vrot.lane.b32.xlu0 %v12676_v55, %s7929_s13 }
 0x869   : > { %4339 = vrot.lane.b32.xlu0 %v12687_v57, %s7929_s13 }
 0x86d   : > { %3783 = vadd.xlane.f32.xlu1 %v10805_v20 }
 0x871   : > { %4259 = vadd.xlane.f32.xlu1 %v10808_v54 }
 0x873   : > { %v10813_v36 = vpop.xlane.xlu0 %3279 }
 0x874   : > { %v3270_v8 = vpop.xlane.xlu1 %3269 }
 0x875   : > { %7646 = vrcp.f32 %v3270_v8  ;;  %v4229_v8 = vmul.f32 1.442695, %v4211_v11 }
 0x876   : > { %7648 = vrcp.f32 %v10748_v35  ;;  %v3303_v35 = vmul.f32 %v7637_v56, %v10555_v26 }
 0x877   : > { %v10815_v17 = vpop.xlane.xlu0 %3281  ;;  %7650 = vrcp.f32 %v10766_v40  ;;  %v3305_v40 = vmul.f32 %v7639_v61, %v10626_v51 }
 0x878   : > { %v3276_v63 = vpop.xlane.xlu1 %3275 }
 0x879   : > { %7652 = vrcp.f32 %v3276_v63 }
 0x87a   : > { %7654 = vrcp.f32 %v10780_v60 }
 0x87b   : > { %v10817_v9 = vpop.xlane.xlu0 %3283  ;;  %7656 = vpow2.f32 %v4229_v8 }
 0x87c   : > { %v10819_v53 = vpop.xlane.xlu1 %3771 }
 0x87f   : > { %v10821_v42 = vpop.xlane.xlu0 %3779 }
 0x880   : > { %v10823_v47 = vpop.xlane.xlu1 %3773 }
 0x882   : > { %4845 = vrot.lane.b32.xlu1 %v12842_v48, %s7930_s14 }
 0x883   : > { %v10828_v7 = vpop.xlane.xlu0 %3781 }
 0x884   : > { %v10831_v14 = vpop.xlane.xlu1 %3775 }
 0x887   : > { %v10837_v19 = vpop.xlane.xlu0 %3785 }
 0x888   : > { %v10839_v15 = vpop.xlane.xlu1 %3777  ;;  %4267 = vadd.xlane.f32.xlu0 %v10835_v52  ;;  %v7641_v52 = vpop.eup %7640 }
 0x889   : > { %v7643_v16 = vpop.eup %7642 }
 0x88a   : > { %v3306_v18 = vmul.f32 %v7643_v16, %v12874_v31  ;;  %v7645_v28 = vpop.eup %7644  ;;  %v12878_v16 = vld [vmem:[#allocation114_spill] sm:$0xff]  ;;  %v12882_v31 = vld [vmem:[#allocation44_spill] sm:$0xff] }
 0x88b   : > { %v3326_v2 = vpop.permute.xlu0 %3325  ;;  %v7647_v63 = vpop.eup %7646  ;;  %v3308_v51 = vmul.f32 %v7645_v28, %v10636_v25 }
 0x88c   : > { %v3330_v48 = vpop.permute.xlu1 %3329  ;;  %v7649_v20 = vpop.eup %7648  ;;  %v3309_v61 = vmul.f32 %v7647_v63, %v10694_v33  ;;  %v12876_v33 = vld [vmem:[#allocation197_spill] sm:$0xff] }
 0x88d   : > { %6894 = vmatprep.subr.bf16.mxu1 %v3330_v48  ;;  %v7651_v26 = vpop.eup %7650  ;;  %v3307_v11 = vmul.f32 %v7649_v20, %v10631_v62  ;;  %v12875_v62 = vld [vmem:[#allocation175_spill] sm:$0xff]  ;;  %v12877_v20 = vld [vmem:[#allocation54_spill] sm:$0xff] }
 0x88e   : > { %6895 = vmatpush3.bf16.msra.mxu1 %v3330_v48  ;;  %v12873_v48 = vld [vmem:[#allocation51_spill] sm:$0xff]  ;;  %v3310_v60 = vmul.f32 %v7651_v26, %v10576_v30  ;;  %v4718_v28 = vsub.f32 %v12876_v33, %v12875_v62 }
 0x88f   : > { %v10847_v29 = vpop.permute.xlu0 %3827  ;;  %v3304_v54 = vmul.f32 %v7641_v52, %v12873_v48  ;;  %v7653_v52 = vpop.eup %7652 }
 0x890   : > { %v3328_v50 = vpop.permute.xlu1 %3327  ;;  %v4741_v30 = vmul.f32 1.442695, %v4718_v28 }
 0x891   : > { %6896 = vmatprep.subr.bf16.mxu1 %v3328_v50  ;;  %v3318_v4 = vpack.c.bf16 %v3304_v54, %v3303_v35  ;;  %v3320_v54 = vpack.c.bf16 %v3308_v51, %v3307_v11  ;;  %v4218_v35 = vsub.f32 %v12878_v16, %v12877_v20  ;;  %v12887_v16 = vld [vmem:[#allocation122_spill] sm:$0xff] }
 0x892   : > { %6897 = vmatpush3.bf16.msra.mxu1 %v3328_v50  ;;  %v3319_v50 = vpack.c.bf16 %v3306_v18, %v3305_v40  ;;  %v3321_v18 = vpack.c.bf16 %v3310_v60, %v3309_v61  ;;  %7658 = vpow2.f32 %v4741_v30  ;;  %v12881_v40 = vld [vmem:[#allocation45_spill] sm:$0xff]  ;;  %v12884_v61 = vld [vmem:[#allocation72_spill] sm:$0xff] }
 0x893   : > { %6898 = vmatprep.subr.bf16.mxu1 %v3326_v2  ;;  %v4344_v34 = vpop.permute.xlu0 %4343  ;;  %v4243_v8 = vmul.f32 1.442695, %v4218_v35  ;;  %v12888_v35 = vld [vmem:[#allocation100_spill] sm:$0xff] }
 0x895   : > { %7660 = vpow2.f32 %v4243_v8  ;;  %v4715_v8 = vsub.f32 %v12888_v35, %v12887_v16  ;;  %v12897_v35 = vld [vmem:[#allocation58_spill] sm:$0xff] }
 0x896   : > { %6899 = vmatpush3.bf16.msra.mxu1 %v3326_v2  ;;  %v3312_v2 = vmul.f32 %v7653_v52, %v10700_v44  ;;  %7662 = vrcp.f32 %v10620_v27  ;;  %v12885_v52 = vld [vmem:[#allocation137_spill] sm:$0xff] }
 0x897   : > { %6948 = vmatprep.subr.bf16.mxu1 %v4344_v34  ;;  %7664 = vrcp.f32 %v10762_v0 }
 0x898   : > { %7666 = vrcp.f32 %v10614_v22 }
 0x899   : > { %6901 = vmatmul.mubr.bf16.vlgmr.msra.gmra.mxu1 %v3318_v4  ;;  %v7655_v4 = vpop.eup %7654  ;;  %7668 = vrcp.f32 %v10758_v10  ;;  %v12880_v10 = vld [vmem:[#allocation32_spill] sm:$0xff] }
 0x89a   : > { %6904 = vmatprep.mubr.bf16.mxu1 %v3319_v50  ;;  %6949 = vmatpush3.bf16.msra.mxu1 %v4344_v34  ;;  %v10861_v56 = vpop.eup %7656  ;;  %v3311_v25 = vmul.f32 %v7655_v4, %v10648_v58  ;;  %7670 = vrcp.f32 %v10756_v13  ;;  %v12879_v13 = vld [vmem:[#allocation27_spill] sm:$0xff]  ;;  %v12883_v50 = vld [vmem:[#allocation29_spill] sm:$0xff] }
 0x89b   : > { %7672 = vrcp.f32 %v10770_v23  ;;  %v4213_v0 = vsub.f32 %v12880_v10, %v12879_v13  ;;  %v4215_v63 = vsub.f32 %v12883_v50, %v12882_v31  ;;  %v12892_v31 = vld [vmem:[#allocation106_spill] sm:$0xff] }
 0x89c   : > { %7674 = vrcp.f32 %v10813_v36 }
 0x89d   : > { %7676 = vrcp.f32 %v10817_v9  ;;  %v4233_v34 = vmul.f32 1.442695, %v4213_v0 }
 0x89e   : > { %4841 = vrot.lane.b32.xlu0 %v12687_v57, %s7930_s14  ;;  %v3322_v57 = vpack.c.bf16 %v3312_v2, %v3311_v25  ;;  %7678 = vrcp.f32 %v10815_v17  ;;  %v4237_v25 = vmul.f32 1.442695, %v4215_v63 }
 0x89f   : > { %v10875_v58 = vpop.eup %7658  ;;  %7680 = vrcp.f32 %v10823_v47 }
 0x8a1   : > { %6905 = vmatmul.mubr.bf16.gmra.mxu1 %v3320_v54 }
 0x8a2   : > { %6908 = vmatprep.mubr.bf16.mxu1 %v3321_v18  ;;  %v12886_v18 = vld [vmem:[#allocation69_spill] sm:$0xff] }
 0x8a3   : > { %v4216_v4 = vsub.f32 %v12886_v18, %v12885_v52  ;;  %v12894_v52 = vld [vmem:[#allocation25_spill] sm:$0xff] }
 0x8a5   : > { %v4239_v28 = vmul.f32 1.442695, %v4216_v4 }
 0x8a6   : > { %4261 = vadd.xlane.f32.xlu1 %v10861_v56 }
 0x8a9   : > { %6909 = vmatmul.mubr.bf16.gmra.mxu1 %v3322_v57 }
 0x8b7   : > { %4843 = vrot.lane.b32.xlu1 %v12676_v55, %s7930_s14  ;;  %v10882_v55 = vpop.eup %7660 }
 0x8b8   : > { %v7663_v44 = vpop.eup %7662 }
 0x8b9   : > { %v7665_v36 = vpop.eup %7664 }
 0x8ba   : > { %v7667_v9 = vpop.eup %7666  ;;  %v3808_v26 = vmul.f32 %v7665_v36, %v10642_v46  ;;  %v12890_v36 = vld [vmem:[#allocation193_spill] sm:$0xff] }
 0x8bb   : > { %v7669_v17 = vpop.eup %7668 }
 0x8bc   : > { %v7671_v48 = vpop.eup %7670  ;;  %v3807_v60 = vmul.f32 %v7669_v17, %v10639_v49  ;;  %v4735_v17 = vmul.f32 1.442695, %v4715_v8 }
 0x8bd   : > { %4773 = vadd.xlane.f32.xlu0 %v10875_v58  ;;  %v7673_v51 = vpop.eup %7672 }
 0x8be   : > { %v7675_v11 = vpop.eup %7674  ;;  %v3809_v20 = vmul.f32 %v7673_v51, %v10645_v21  ;;  %v12889_v21 = vld [vmem:[#allocation123_spill] sm:$0xff] }
 0x8bf   : > { %v7677_v54 = vpop.eup %7676  ;;  %v3314_v30 = vmul.f32 %v7675_v11, %v10690_v43 }
 0x8c0   : > { %v7679_v46 = vpop.eup %7678 }
 0x8c1   : > { %v3278_v22 = vpop.xlane.xlu1 %3277  ;;  %4275 = vadd.xlane.f32.xlu0 %v10882_v55  ;;  %v7681_v62 = vpop.eup %7680 }
 0x8c2   : > { %7682 = vrcp.f32 %v3278_v22  ;;  %v3315_v22 = vmul.f32 %v7679_v46, %v10698_v5 }
 0x8c3   : > { %7684 = vrcp.f32 %v10819_v53  ;;  %v3806_v53 = vmul.f32 %v7663_v44, %v12881_v40  ;;  %v3812_v44 = vmul.f32 %v7681_v62, %v10716_v3 }
 0x8c4   : > { %v10888_v27 = vpop.xlane.xlu0 %4257  ;;  %7686 = vrcp.f32 %v10839_v15  ;;  %v3805_v15 = vmul.f32 %v7667_v9, %v12884_v61  ;;  %v4716_v9 = vsub.f32 %v12890_v36, %v12889_v21  ;;  %v12901_v21 = vld [vmem:[#allocation4_spill] sm:$0xff]  ;;  %v12902_v36 = vld [vmem:[#allocation119_spill] sm:$0xff] }
 0x8c5   : > { %v3830_v23 = vpop.permute.xlu1 %3829  ;;  %7688 = vrcp.f32 %v10828_v7 }
 0x8c6   : > { %6928 = vmatprep.subr.bf16.mxu0 %v3830_v23  ;;  %7690 = vrcp.f32 %v10831_v14  ;;  %v3820_v7 = vpack.c.bf16 %v3806_v53, %v3805_v15  ;;  %v3821_v14 = vpack.c.bf16 %v3808_v26, %v3807_v60 }
 0x8c7   : > { %6929 = vmatpush3.bf16.msra.mxu0 %v3830_v23  ;;  %7692 = vrcp.f32 %v10821_v42  ;;  %v3316_v42 = vmul.f32 %v7677_v54, %v10708_v38  ;;  %v3810_v38 = vmul.f32 %v7671_v48, %v10569_v41  ;;  %v4737_v48 = vmul.f32 1.442695, %v4716_v9 }
 0x8c8   : > { %6930 = vmatprep.subr.bf16.mxu0 %v10847_v29  ;;  %v10894_v47 = vpop.xlane.xlu0 %4263  ;;  %7694 = vpow2.f32 %v4233_v34  ;;  %v12891_v34 = vld [vmem:[#allocation183_spill] sm:$0xff]  ;;  %v4222_v9 = vsub.f32 %v12902_v36, %v12901_v21  ;;  %v12924_v21 = vld [vmem:[#allocation102_spill] sm:$0xff] }
 0x8c9   : > { %7696 = vpow2.f32 %v4237_v25  ;;  %v3324_v10 = vpack.c.bf16 %v3316_v42, %v3315_v22  ;;  %v3822_v43 = vpack.c.bf16 %v3810_v38, %v3809_v20  ;;  %v4717_v50 = vsub.f32 %v12892_v31, %v12891_v34  ;;  %v12898_v38 = vld [vmem:[#allocation126_spill] sm:$0xff]  ;;  %v12907_v34 = vld [vmem:[#allocation31_spill] sm:$0xff]  ;;  %v12908_v31 = vld [vmem:[#allocation64_spill] sm:$0xff] }
 0x8ca   : > { %7698 = vpow2.f32 %v4239_v28 }
 0x8cb   : > { %6931 = vmatpush3.bf16.msra.mxu0 %v10847_v29  ;;  %7700 = vpow2.f32 %v4735_v17  ;;  %v4739_v60 = vmul.f32 1.442695, %v4717_v50  ;;  %v12903_v17 = vld [vmem:[#allocation134_spill] sm:$0xff]  ;;  %v4220_v50 = vsub.f32 %v12908_v31, %v12907_v34 }
 0x8cc   : > { %v10908_v2 = vpop.xlane.xlu0 %4759  ;;  %7702 = vpow2.f32 %v4737_v48 }
 0x8cd   : > { %7704 = vpow2.f32 %v4739_v60 }
 0x8ce   : > { %6933 = vmatmul.mubr.bf16.vlgmr.msra.gmra.mxu0 %v3820_v7 }
 0x8cf   : > { %v7683_v33 = vpop.eup %7682  ;;  %6936 = vmatprep.mubr.bf16.mxu0 %v3821_v14 }
 0x8d0   : > { %v7685_v29 = vpop.eup %7684  ;;  %v4762_v49 = vpop.xlane.xlu0 %4761  ;;  %v3313_v57 = vmul.f32 %v7683_v33, %v10768_v32 }
 0x8d1   : > { %v3811_v0 = vmul.f32 %v7685_v29, %v10710_v37  ;;  %v7687_v23 = vpop.eup %7686 }
 0x8d2   : > { %v3323_v13 = vpack.c.bf16 %v3314_v30, %v3313_v57  ;;  %v7689_v40 = vpop.eup %7688  ;;  %v3814_v53 = vmul.f32 %v7687_v23, %v10728_v45  ;;  %v12895_v57 = vld [vmem:[#allocation47_spill] sm:$0xff]  ;;  %v10974_v23 = vpop.f32.mrf.mxu0 }
 0x8d3   : > { %v3823_v5 = vpack.c.bf16 %v3812_v44, %v3811_v0  ;;  %v7691_v3 = vpop.eup %7690  ;;  %v3816_v63 = vmul.f32 %v7689_v40, %v10720_v39  ;;  %v12893_v39 = vld [vmem:[#allocation139_spill] sm:$0xff]  ;;  %v12899_v0 = vld [vmem:[#allocation148_spill] sm:$0xff] }
 0x8d4   : > { %6912 = vmatprep.mubr.bf16.mxu1 %v3323_v13  ;;  %v10920_v32 = vpop.xlane.xlu0 %4763  ;;  %v7693_v41 = vpop.eup %7692  ;;  %v3813_v51 = vmul.f32 %v7691_v3, %v10722_v1  ;;  %v4219_v1 = vsub.f32 %v12894_v52, %v12893_v39  ;;  %v4251_v3 = vmul.f32 1.442695, %v4222_v9  ;;  %v12911_v39 = vld [vmem:[#allocation124_spill] sm:$0xff]  ;;  %v12912_v52 = vld [vmem:[#allocation118_spill] sm:$0xff] }
 0x8d5   : > { %6913 = vmatmul.mubr.bf16.gmra.mxu1 %v3324_v10  ;;  %v10932_v26 = vpop.eup %7694  ;;  %v3815_v61 = vmul.f32 %v7693_v41, %v10714_v6  ;;  %v10980_v40 = vpop.f32.mrf.mxu0  ;;  %v12905_v41 = vld [vmem:[#allocation128_spill] sm:$0xff] }
 0x8d6   : > { %6937 = vmatmul.mubr.bf16.gmra.mxu0 %v3822_v43  ;;  %v3824_v11 = vpack.c.bf16 %v3814_v53, %v3813_v51  ;;  %v10937_v54 = vpop.eup %7696  ;;  %v4245_v4 = vmul.f32 1.442695, %v4219_v1  ;;  %v12900_v43 = vld [vmem:[#allocation8_spill] sm:$0xff]  ;;  %v12906_v53 = vld [vmem:[#allocation178_spill] sm:$0xff]  ;;  %v4719_v1 = vsub.f32 %v12912_v52, %v12911_v39 }
 0x8d7   : > { %4837 = vrot.lane.b32.xlu0 %v12715_v12, %s7930_s14  ;;  %6940 = vmatprep.mubr.bf16.mxu0 %v3823_v5  ;;  %v3825_v45 = vpack.c.bf16 %v3816_v63, %v3815_v61  ;;  %v10942_v6 = vpop.eup %7698  ;;  %v12904_v5 = vld [vmem:[#allocation132_spill] sm:$0xff]  ;;  %v4223_v48 = vsub.f32 %v12906_v53, %v12905_v41  ;;  %v10986_v51 = vpop.f32.mrf.mxu0 }
 0x8d8   : > { %v10926_v37 = vpop.xlane.xlu0 %4765  ;;  %v10945_v7 = vpop.eup %7700  ;;  %7706 = vpow2.f32 %v4245_v4 }
 0x8d9   : > { %v10948_v46 = vpop.eup %7702  ;;  %7708 = vrcp.f32 %v4762_v49  ;;  %v4253_v61 = vmul.f32 1.442695, %v4223_v48 }
 0x8da   : > { %v10951_v25 = vpop.eup %7704  ;;  %7710 = vrcp.f32 %v10837_v19 }
 0x8db   : > { %4265 = vadd.xlane.f32.xlu1 %v10932_v26  ;;  %7712 = vrcp.f32 %v10908_v2 }
 0x8dc   : > { %v4342_v15 = vpop.permute.xlu0 %4341 }
 0x8dd   : > { %6950 = vmatprep.subr.bf16.mxu1 %v4342_v15 }
 0x8de   : > { %6941 = vmatmul.mubr.bf16.gmra.mxu0 %v3824_v11  ;;  %6951 = vmatpush3.bf16.msra.mxu1 %v4342_v15  ;;  %v12909_v15 = vld [vmem:[#allocation5_spill] sm:$0xff] }
 0x8df   : > { %4269 = vadd.xlane.f32.xlu1 %v10937_v54  ;;  %6944 = vmatprep.mubr.bf16.mxu0 %v3825_v45  ;;  %v12910_v11 = vld [vmem:[#allocation21_spill] sm:$0xff]  ;;  %v4247_v45 = vmul.f32 1.442695, %v4220_v50 }
 0x8e0   : > { %v4340_v18 = vpop.permute.xlu0 %4339  ;;  %v4224_v60 = vsub.f32 %v12910_v11, %v12909_v15 }
 0x8e1   : > { %6952 = vmatprep.subr.bf16.mxu1 %v4340_v18 }
 0x8e2   : > { %6953 = vmatpush3.bf16.msra.mxu1 %v4340_v18  ;;  %v10992_v18 = vpop.f32.mrf.mxu0  ;;  %v4255_v4 = vmul.f32 1.442695, %v4224_v60 }
 0x8e3   : > { %4271 = vadd.xlane.f32.xlu1 %v10942_v6 }
 0x8e5   : > { %v10954_v14 = vpop.eup %7706 }
 0x8e6   : > { %v7709_v29 = vpop.eup %7708 }
 0x8e7   : > { %4767 = vadd.xlane.f32.xlu1 %v10945_v7  ;;  %v7711_v28 = vpop.eup %7710  ;;  %v4808_v2 = vmul.f32 %v7709_v29, %v10786_v59  ;;  %v12915_v29 = vld [vmem:[#allocation181_spill] sm:$0xff] }
 0x8e8   : > { %v7713_v49 = vpop.eup %7712 }
 0x8e9   : > { %v4807_v8 = vmul.f32 %v7713_v49, %v12897_v35  ;;  %v12919_v35 = vld [vmem:[#allocation30_spill] sm:$0xff] }
 0x8eb   : > { %4769 = vadd.xlane.f32.xlu1 %v10948_v46  ;;  %v4823_v13 = vpack.c.bf16 %v4808_v2, %v4807_v8  ;;  %v10998_v2 = vpop.f32.mrf.mxu0  ;;  %v12920_v8 = vld [vmem:[#allocation120_spill] sm:$0xff] }
 0x8ef   : > { %4771 = vadd.xlane.f32.xlu1 %v10951_v25 }
 0x8f6   : > { %v3784_v62 = vpop.xlane.xlu1 %3783  ;;  %4277 = vadd.xlane.f32.xlu0 %v10954_v14 }
 0x8f7   : > { %7714 = vrcp.f32 %v3784_v62  ;;  %v12913_v62 = vld [vmem:[#allocation56_spill] sm:$0xff] }
 0x8f8   : > { %7716 = vrcp.f32 %v10888_v27  ;;  %v12896_v27 = vld [vmem:[#allocation140_spill] sm:$0xff] }
 0x8f9   : > { %v3818_v20 = vmul.f32 %v7711_v28, %v12896_v27  ;;  %v12916_v28 = vld [vmem:[#allocation129_spill] sm:$0xff]  ;;  %v12918_v27 = vld [vmem:[#allocation52_spill] sm:$0xff] }
 0x8fa   : > { %v4260_v33 = vpop.xlane.xlu1 %4259  ;;  %v4720_v49 = vsub.f32 %v12916_v28, %v12915_v29 }
 0x8fb   : > { %7718 = vrcp.f32 %v4260_v33  ;;  %v12914_v33 = vld [vmem:[#allocation168_spill] sm:$0xff] }
 0x8fc   : > { %7720 = vpow2.f32 %v4251_v3 }
 0x8fe   : > { %v4846_v42 = vpop.permute.xlu1 %4845 }
 0x8ff   : > { %6980 = vmatprep.subr.bf16.mxu0 %v4846_v42 }
 0x900   : > { %4337 = vrot.lane.b32.xlu1 %v12807_v24, %s7929_s13  ;;  %6981 = vmatpush3.bf16.msra.mxu0 %v4846_v42  ;;  %v4723_v42 = vsub.f32 %v12914_v33, %v12913_v62  ;;  %v6838_v62 = vpop.f32.mrf.mxu1 }
 0x902   : > { %v2379_v28 = vpop.f32.mrf.mxu1 }
 0x904   : > { %v7715_v19 = vpop.eup %7714  ;;  %4839 = vrot.lane.b32.xlu1 %v12807_v24, %s7930_s14 }
 0x905   : > { %v3817_v30 = vmul.f32 %v7715_v19, %v12895_v57  ;;  %v7717_v16 = vpop.eup %7716  ;;  %v4743_v19 = vmul.f32 1.442695, %v4719_v1  ;;  %v4751_v57 = vmul.f32 1.442695, %v4723_v42 }
 0x906   : > { %v4305_v10 = vmul.f32 %v7717_v16, %v12898_v38  ;;  %v4745_v16 = vmul.f32 1.442695, %v4720_v49  ;;  %v12921_v38 = vld [vmem:[#allocation74_spill] sm:$0xff] }
 0x907   : > { %v3826_v22 = vpack.c.bf16 %v3818_v20, %v3817_v30  ;;  %v12917_v30 = vld [vmem:[#allocation12_spill] sm:$0xff] }
 0x908   : > { %v7719_v44 = vpop.eup %7718  ;;  %4335 = vrot.lane.b32.xlu1 %v12715_v12, %s7929_s13  ;;  %v4217_v12 = vsub.f32 %v12904_v5, %v12903_v17  ;;  %v4724_v20 = vsub.f32 %v12918_v27, %v12917_v30 }
 0x909   : > { %6945 = vmatmul.mubr.bf16.gmra.mxu0 %v3826_v22  ;;  %v4306_v24 = vmul.f32 %v7719_v44, %v12899_v0  ;;  %v4721_v22 = vsub.f32 %v12920_v8, %v12919_v35  ;;  %v11004_v44 = vpop.f32.mrf.mxu0 }
 0x90a   : > { %6996 = vmatprep.mubr.bf16.mxu0 %v4823_v13  ;;  %v4241_v63 = vmul.f32 1.442695, %v4217_v12  ;;  %v4753_v13 = vmul.f32 1.442695, %v4724_v20 }
 0x90b   : > { %v4321_v59 = vpack.c.bf16 %v4306_v24, %v4305_v10  ;;  %v12922_v10 = vld [vmem:[#allocation179_spill] sm:$0xff]  ;;  %v11008_v24 = vpop.eup %7720  ;;  %v4747_v9 = vmul.f32 1.442695, %v4721_v22  ;;  %v11012_v17 = vpop.f32.mrf.mxu0 }
 0x90c   : > { %4835 = vrot.lane.b32.xlu0 %v12900_v43, %s7930_s14  ;;  %7722 = vpow2.f32 %v4241_v63  ;;  %v4726_v0 = vsub.f32 %v12922_v10, %v12921_v38  ;;  %v12935_v38 = vld [vmem:[#allocation9_spill] sm:$0xff]  ;;  %v12936_v10 = vld [vmem:[#allocation10_spill] sm:$0xff] }
 0x90d   : > { %6964 = vmatprep.mubr.bf16.mxu1 %v4321_v59  ;;  %7724 = vpow2.f32 %v4253_v61  ;;  %v12923_v59 = vld [vmem:[#allocation153_spill] sm:$0xff]  ;;  %v11020_v53 = vpop.f32.mrf.mxu0 }
 0x90e   : > { %7726 = vpow2.f32 %v4247_v45  ;;  %v4722_v36 = vsub.f32 %v12924_v21, %v12923_v59  ;;  %v4757_v12 = vmul.f32 1.442695, %v4726_v0 }
 0x90f   : > { %7728 = vpow2.f32 %v4255_v4  ;;  %v11034_v61 = vpop.f32.mrf.mxu0 }
 0x910   : > { %7730 = vpow2.f32 %v4743_v19  ;;  %v4749_v41 = vmul.f32 1.442695, %v4722_v36  ;;  %12925 = vst [vmem:[#allocation156_spill] sm:$0xff] %v11034_v61  ;;  %v11064_v19 = vpop.f32.mrf.mxu1 }
 0x911   : > { %7732 = vpow2.f32 %v4751_v57  ;;  %v11024_v34 = vpop.xlane.xlu0 %4267  ;;  %v11042_v39 = vpop.f32.mrf.mxu0 }
 0x912   : > { %7734 = vpow2.f32 %v4745_v16  ;;  %12926 = vst [vmem:[#allocation130_spill] sm:$0xff] %v11042_v39  ;;  %v2382_v30 = vpop.f32.mrf.mxu1 }
 0x913   : > { %7736 = vpow2.f32 %v4753_v13  ;;  %v11050_v4 = vpop.f32.mrf.mxu0 }
 0x914   : > { %7738 = vpow2.f32 %v4747_v9  ;;  %12927 = vst [vmem:[#allocation48_spill] sm:$0xff] %v11050_v4  ;;  %v11070_v20 = vpop.f32.mrf.mxu1 }
 0x915   : > { %7740 = vpow2.f32 %v4757_v12  ;;  %v4842_v11 = vpop.permute.xlu0 %4841  ;;  %v11058_v29 = vpop.f32.mrf.mxu0  ;;  %12932 = vst [vmem:[#allocation24_spill] sm:$0xff] %v11070_v20  ;;  %v12941_v12 = vld [vmem:[#allocation115_spill] sm:$0xff] }
 0x916   : > { %7742 = vpow2.f32 %v4749_v41  ;;  %12928 = vst [vmem:[#allocation17_spill] sm:$0xff] %v11058_v29  ;;  %v11074_v35 = vpop.f32.mrf.mxu1  ;;  %v12942_v41 = vld [vmem:[#allocation66_spill] sm:$0xff] }
 0x917   : > { %v11062_v49 = vpop.f32.mrf.mxu0 }
 0x918   : > { %12929 = vst [vmem:[#allocation159_spill] sm:$0xff] %v11062_v49  ;;  %v11078_v22 = vpop.f32.mrf.mxu1 }
 0x919   : > { %v11014_v5 = vpop.eup %7722  ;;  %v11066_v57 = vpop.f32.mrf.mxu0  ;;  %12934 = vst [vmem:[#allocation60_spill] sm:$0xff] %v11078_v22  ;;  %v12962_v22 = vld [vmem:[#allocation144_spill] sm:$0xff] }
 0x91a   : > { %v11018_v3 = vpop.eup %7724  ;;  %12930 = vst [vmem:[#allocation131_spill] sm:$0xff] %v11066_v57  ;;  %v11084_v0 = vpop.f32.mrf.mxu1 }
 0x91b   : > { %v11022_v48 = vpop.eup %7726  ;;  %v11068_v27 = vpop.f32.mrf.mxu0  ;;  %12937 = vst [vmem:[#allocation55_spill] sm:$0xff] %v11084_v0 }
 0x91c   : > { %v11030_v50 = vpop.eup %7728  ;;  %12931 = vst [vmem:[#allocation151_spill] sm:$0xff] %v11068_v27  ;;  %v11090_v21 = vpop.f32.mrf.mxu1 }
 0x91d   : > { %v11032_v63 = vpop.eup %7730  ;;  %v11072_v16 = vpop.f32.mrf.mxu0  ;;  %12938 = vst [vmem:[#allocation43_spill] sm:$0xff] %v11090_v21 }
 0x91e   : > { %v11038_v60 = vpop.eup %7732  ;;  %12933 = vst [vmem:[#allocation160_spill] sm:$0xff] %v11072_v16 }
 0x91f   : > { %v11040_v45 = vpop.eup %7734  ;;  %v6870_v8 = vpop.f32.mrf.mxu0 }
 0x920   : > { %v11046_v52 = vpop.eup %7736 }
 0x921   : > { %v11048_v1 = vpop.eup %7738  ;;  %v2881_v13 = vpop.f32.mrf.mxu0 }
 0x922   : > { %v11054_v33 = vpop.eup %7740 }
 0x923   : > { %v11056_v42 = vpop.eup %7742  ;;  %v11086_v59 = vpop.f32.mrf.mxu0 }
 0x925   : > { %v11092_v36 = vpop.f32.mrf.mxu0 }
 0x927   : > { %v11098_v9 = vpop.f32.mrf.mxu0 }
 0x928   : > { %12940 = vst [vmem:[#allocation22_spill] sm:$0xff] %v11098_v9 }
 0x929   : > { %v11108_v27 = vpop.f32.mrf.mxu0 }
 0x92a   : > { %12944 = vst [vmem:[#allocation62_spill] sm:$0xff] %v11108_v27 }
 0x92b   : > { %4283 = vadd.xlane.f32.xlu0 %v11008_v24  ;;  %v11116_v57 = vpop.f32.mrf.mxu0 }
 0x92c   : > { %4273 = vadd.xlane.f32.xlu1 %v11014_v5  ;;  %12946 = vst [vmem:[#allocation133_spill] sm:$0xff] %v11116_v57 }
 0x92f   : > { %v11026_v31 = vpop.xlane.xlu1 %4261  ;;  %4285 = vadd.xlane.f32.xlu0 %v11018_v3 }
 0x930   : > { %4279 = vadd.xlane.f32.xlu1 %v11022_v48 }
 0x933   : > { %v4844_v15 = vpop.permute.xlu1 %4843  ;;  %4287 = vadd.xlane.f32.xlu0 %v11030_v50 }
 0x934   : > { %4775 = vadd.xlane.f32.xlu1 %v11032_v63  ;;  %6982 = vmatprep.subr.bf16.mxu0 %v4844_v15 }
 0x935   : > { %6983 = vmatpush3.bf16.msra.mxu0 %v4844_v15  ;;  %v4221_v15 = vsub.f32 %v12942_v41, %v12941_v12  ;;  %v11123_v41 = vpop.f32.mrf.mxu0 }
 0x936   : > { %6984 = vmatprep.subr.bf16.mxu0 %v4842_v11  ;;  %12948 = vst [vmem:[#allocation14_spill] sm:$0xff] %v11123_v41 }
 0x937   : > { %4783 = vadd.xlane.f32.xlu0 %v11038_v60 }
 0x938   : > { %4777 = vadd.xlane.f32.xlu1 %v11040_v45 }
 0x939   : > { %6985 = vmatpush3.bf16.msra.mxu0 %v4842_v11 }
 0x93b   : > { %4785 = vadd.xlane.f32.xlu0 %v11046_v52 }
 0x93c   : > { %4779 = vadd.xlane.f32.xlu1 %v11048_v1 }
 0x93f   : > { %4789 = vadd.xlane.f32.xlu0 %v11054_v33 }
 0x940   : > { %4781 = vadd.xlane.f32.xlu1 %v11056_v42 }
 0x951   : > { %4333 = vrot.lane.b32.xlu1 %v12900_v43, %s7929_s13  ;;  %v11096_v43 = vpop.f32.mrf.mxu1 }
 0x952   : > { %12939 = vst [vmem:[#allocation154_spill] sm:$0xff] %v11096_v43 }
 0x953   : > { %v11104_v11 = vpop.f32.mrf.mxu1 }
 0x954   : > { %12943 = vst [vmem:[#allocation185_spill] sm:$0xff] %v11104_v11 }
 0x955   : > { %4331 = vrot.lane.b32.xlu1 %v12935_v38, %s7929_s13  ;;  %4329 = vrot.lane.b32.xlu0 %v12936_v10, %s7929_s13  ;;  %v11112_v16 = vpop.f32.mrf.mxu1 }
 0x956   : > { %12945 = vst [vmem:[#allocation161_spill] sm:$0xff] %v11112_v16  ;;  %v11132_v16 = vpop.f32.mrf.mxu0 }
 0x957   : > { %12950 = vst [vmem:[#allocation41_spill] sm:$0xff] %v11132_v16 }
 0x959   : > { %4831 = vrot.lane.b32.xlu0 %v12936_v10, %s7930_s14 }
 0x95d   : > { %1956 = vrot.lane.b32.xlu0 %v10980_v40, %s7931_s15  ;;  %v4249_v40 = vmul.f32 1.442695, %v4221_v15  ;;  %v11128_v15 = vpop.xlane.xlu0 %4773 }
 0x95f   : > { %7744 = vpow2.f32 %v4249_v40  ;;  %v11139_v40 = vpop.f32.mrf.mxu0 }
 0x960   : > { %12952 = vst [vmem:[#allocation15_spill] sm:$0xff] %v11139_v40 }
 0x961   : > { %1958 = vrot.lane.b32.xlu0 %v10992_v18, %s7931_s15  ;;  %v11119_v18 = vpop.f32.mrf.mxu1  ;;  %v11141_v21 = vpop.xlane.xlu0 %4275 }
 0x962   : > { %12947 = vst [vmem:[#allocation68_spill] sm:$0xff] %v11119_v18  ;;  %v11150_v16 = vpop.f32.mrf.mxu0 }
 0x963   : > { %12954 = vst [vmem:[#allocation70_spill] sm:$0xff] %v11150_v16 }
 0x964   : > { %v11106_v10 = vpop.xlane.xlu1 %4265  ;;  %v11154_v29 = vpop.f32.mrf.mxu0 }
 0x965   : > { %1962 = vrot.lane.b32.xlu0 %v10986_v51, %s7931_s15  ;;  %v11126_v51 = vpop.f32.mrf.mxu1  ;;  %12955 = vst [vmem:[#allocation98_spill] sm:$0xff] %v11154_v29 }
 0x966   : > { %12949 = vst [vmem:[#allocation162_spill] sm:$0xff] %v11126_v51 }
 0x968   : > { %v11114_v49 = vpop.xlane.xlu1 %4269 }
 0x969   : > { %2458 = vrot.lane.b32.xlu0 %v2379_v28, %s7932_s16  ;;  %v11135_v28 = vpop.f32.mrf.mxu1 }
 0x96a   : > { %12951 = vst [vmem:[#allocation157_spill] sm:$0xff] %v11135_v28 }
 0x96c   : > { %v11121_v12 = vpop.xlane.xlu1 %4271  ;;  %v11146_v51 = vpop.eup %7744 }
 0x96d   : > { %2460 = vrot.lane.b32.xlu0 %v2382_v30, %s7932_s16  ;;  %v11144_v30 = vpop.f32.mrf.mxu1 }
 0x96e   : > { %12953 = vst [vmem:[#allocation184_spill] sm:$0xff] %v11144_v30 }
 0x96f   : > { %v6902_v4 = vpop.f32.mrf.mxu1 }
 0x970   : > { %v11130_v11 = vpop.xlane.xlu1 %4767 }
 0x971   : > { %2462 = vrot.lane.b32.xlu0 %v6838_v62, %s7932_s16  ;;  %v4838_v62 = vpop.permute.xlu0 %4837  ;;  %v3383_v28 = vpop.f32.mrf.mxu1 }
 0x974   : > { %v11137_v18 = vpop.xlane.xlu1 %4769 }
 0x975   : > { %2960 = vrot.lane.b32.xlu0 %v2881_v13, %s7933_s19  ;;  %v11157_v13 = vpop.f32.mrf.mxu0 }
 0x976   : > { %12956 = vst [vmem:[#allocation26_spill] sm:$0xff] %v11157_v13 }
 0x978   : > { %v11148_v43 = vpop.xlane.xlu1 %4771 }
 0x979   : > { %4281 = vadd.xlane.f32.xlu1 %v11146_v51  ;;  %2964 = vrot.lane.b32.xlu0 %v6870_v8, %s7933_s19  ;;  %v11162_v8 = vpop.f32.mrf.mxu0 }
 0x97a   : > { %12957 = vst [vmem:[#allocation164_spill] sm:$0xff] %v11162_v8  ;;  %v12961_v8 = vld [vmem:[#allocation91_spill] sm:$0xff] }
 0x97c   : > { %v4338_v40 = vpop.permute.xlu1 %4337 }
 0x97d   : > { %3462 = vrot.lane.b32.xlu0 %v3383_v28, %s7934_s20  ;;  %6954 = vmatprep.subr.bf16.mxu1 %v4338_v40  ;;  %v11164_v28 = vpop.f32.mrf.mxu0 }
 0x97e   : > { %6955 = vmatpush3.bf16.msra.mxu1 %v4338_v40  ;;  %12958 = vst [vmem:[#allocation135_spill] sm:$0xff] %v11164_v28 }
 0x97f   : > { %v11159_v30 = vpop.xlane.xlu0 %4277  ;;  %v11168_v40 = vpop.f32.mrf.mxu0 }
 0x980   : > { %v4840_v61 = vpop.permute.xlu1 %4839  ;;  %12959 = vst [vmem:[#allocation78_spill] sm:$0xff] %v11168_v40 }
 0x981   : > { %3466 = vrot.lane.b32.xlu0 %v6902_v4, %s7934_s20  ;;  %6986 = vmatprep.subr.bf16.mxu0 %v4840_v61 }
 0x982   : > { %6987 = vmatpush3.bf16.msra.mxu0 %v4840_v61  ;;  %v12960_v61 = vld [vmem:[#allocation80_spill] sm:$0xff] }
 0x983   : > { %6988 = vmatprep.subr.bf16.mxu0 %v4838_v62  ;;  %v4836_v29 = vpop.permute.xlu0 %4835 }
 0x984   : > { %v4336_v16 = vpop.permute.xlu1 %4335 }
 0x985   : > { %6956 = vmatprep.subr.bf16.mxu1 %v4336_v16 }
 0x986   : > { %6957 = vmatpush3.bf16.msra.mxu1 %v4336_v16  ;;  %6989 = vmatpush3.bf16.msra.mxu0 %v4838_v62  ;;  %v4725_v16 = vsub.f32 %v12961_v8, %v12960_v61 }
 0x987   : > { %6990 = vmatprep.subr.bf16.mxu0 %v4836_v29 }
 0x988   : > { %v4755_v62 = vmul.f32 1.442695, %v4725_v16 }
 0x98a   : > { %4833 = vrot.lane.b32.xlu1 %v12935_v38, %s7930_s14  ;;  %6991 = vmatpush3.bf16.msra.mxu0 %v4836_v29  ;;  %7746 = vpow2.f32 %v4755_v62 }
 0x98b   : > { %7748 = vrcp.f32 %v11026_v31 }
 0x98c   : > { %7750 = vrcp.f32 %v11106_v10 }
 0x98d   : > { %7752 = vrcp.f32 %v10894_v47 }
 0x98e   : > { %v6934_v4 = vpop.f32.mrf.mxu0  ;;  %7754 = vrcp.f32 %v11024_v34 }
 0x98f   : > { %7756 = vrcp.f32 %v11121_v12 }
 0x990   : > { %v3885_v13 = vpop.f32.mrf.mxu0 }
 0x991   : > { %3964 = vrot.lane.b32.xlu0 %v3885_v13, %s7935_s21 }
 0x995   : > { %3968 = vrot.lane.b32.xlu0 %v6934_v4, %s7935_s21 }
 0x997   : > { %v11174_v39 = vpop.eup %7746 }
 0x998   : > { %v7749_v34 = vpop.eup %7748 }
 0x999   : > { %v7751_v9 = vpop.eup %7750 }
 0x99a   : > { %v7753_v12 = vpop.eup %7752 }
 0x99b   : > { %v4308_v27 = vmul.f32 %v7753_v12, %v12962_v22 }
 0x9ae   : > { %4787 = vadd.xlane.f32.xlu1 %v11174_v39 }
 0x9b4   : > { %v11177_v38 = vpop.xlane.xlu0 %4283 }
 0x9b5   : > { %v4274_v29 = vpop.xlane.xlu1 %4273 }
 0x9b6   : > { %7758 = vrcp.f32 %v4274_v29  ;;  %v7755_v29 = vpop.eup %7754 }
 0x9b7   : > { %7760 = vrcp.f32 %v11114_v49  ;;  %v7757_v20 = vpop.eup %7756 }
 0x9b8   : > { %v11179_v28 = vpop.xlane.xlu0 %4285  ;;  %7762 = vrcp.f32 %v11141_v21  ;;  %v4307_v21 = vmul.f32 %v7749_v34, %v10861_v56  ;;  %v4312_v22 = vmul.f32 %v7757_v20, %v10942_v6 }
 0x9b9   : > { %v4280_v40 = vpop.xlane.xlu1 %4279 }
 0x9ba   : > { %7764 = vrcp.f32 %v4280_v40  ;;  %v4322_v40 = vpack.c.bf16 %v4308_v27, %v4307_v21 }
 0x9bb   : > { %7766 = vrcp.f32 %v11159_v30 }
 0x9bc   : > { %v11181_v57 = vpop.xlane.xlu0 %4287  ;;  %7768 = vrcp.f32 %v10926_v37 }
 0x9bd   : > { %v11183_v13 = vpop.xlane.xlu1 %4775  ;;  %7770 = vrcp.f32 %v11137_v18 }
 0x9be   : > { %7772 = vrcp.f32 %v10920_v32 }
 0x9bf   : > { %1960 = vrot.lane.b32.xlu1 %v10974_v23, %s7931_s15  ;;  %7774 = vrcp.f32 %v11130_v11 }
 0x9c0   : > { %v11187_v8 = vpop.xlane.xlu0 %4783  ;;  %7776 = vrcp.f32 %v11128_v15 }
 0x9c1   : > { %v11189_v4 = vpop.xlane.xlu1 %4777  ;;  %7778 = vrcp.f32 %v11148_v43 }
 0x9c2   : > { %7780 = vrcp.f32 %v11177_v38 }
 0x9c3   : > { %2464 = vrot.lane.b32.xlu1 %v11064_v19, %s7932_s16  ;;  %v6903_v19 = vpop.f32.mrf.mxu1  ;;  %v7759_v34 = vpop.eup %7758  ;;  %7782 = vrcp.f32 %v11181_v57  ;;  %v12964_v57 = vld [vmem:[#allocation143_spill] sm:$0xff] }
 0x9c4   : > { %v11194_v61 = vpop.xlane.xlu0 %4785  ;;  %v4313_v30 = vmul.f32 %v7759_v34, %v11014_v5  ;;  %7784 = vrcp.f32 %v11179_v28 }
 0x9c5   : > { %v11197_v16 = vpop.xlane.xlu1 %4779  ;;  %v3386_v41 = vpop.f32.mrf.mxu1  ;;  %7786 = vrcp.f32 %v11189_v4 }
 0x9c7   : > { %2962 = vrot.lane.b32.xlu1 %v11092_v36, %s7933_s19 }
 0x9c8   : > { %v11203_v23 = vpop.xlane.xlu0 %4789 }
 0x9c9   : > { %v11205_v62 = vpop.xlane.xlu1 %4781 }
 0x9cb   : > { %2966 = vrot.lane.b32.xlu1 %v11086_v59, %s7933_s19  ;;  %v6935_v59 = vpop.f32.mrf.mxu0 }
 0x9cc   : > { %v4330_v31 = vpop.permute.xlu0 %4329 }
 0x9cd   : > { %v4334_v10 = vpop.permute.xlu1 %4333 }
 0x9ce   : > { %6958 = vmatprep.subr.bf16.mxu1 %v4334_v10 }
 0x9cf   : > { %3464 = vrot.lane.b32.xlu1 %v3386_v41, %s7934_s20  ;;  %6959 = vmatpush3.bf16.msra.mxu1 %v4334_v10  ;;  %v4309_v41 = vmul.f32 %v7751_v9, %v10932_v26  ;;  %v3888_v10 = vpop.f32.mrf.mxu0 }
 0x9d0   : > { %v11213_v47 = vpop.permute.xlu0 %4831 }
 0x9d1   : > { %v4332_v36 = vpop.permute.xlu1 %4331 }
 0x9d2   : > { %6960 = vmatprep.subr.bf16.mxu1 %v4332_v36 }
 0x9d3   : > { %3468 = vrot.lane.b32.xlu1 %v6903_v19, %s7934_s20  ;;  %6961 = vmatpush3.bf16.msra.mxu1 %v4332_v36  ;;  %v12963_v19 = vld [vmem:[#allocation11_spill] sm:$0xff] }
 0x9d4   : > { %6962 = vmatprep.subr.bf16.mxu1 %v4330_v31  ;;  %v1957_v49 = vpop.permute.xlu0 %1956  ;;  %v4310_v36 = vmul.f32 %v7755_v29, %v12963_v19 }
 0x9d5   : > { %2005 = vst.msk [vmem:[#allocation2] sm:$0xff] %vm12153_vm9, %v1957_v49  ;;  %v7761_v49 = vpop.eup %7760 }
 0x9d6   : > { %v4323_v56 = vpack.c.bf16 %v4310_v36, %v4309_v41  ;;  %v7763_v26 = vpop.eup %7762  ;;  %v4311_v27 = vmul.f32 %v7761_v49, %v10937_v54  ;;  %v12965_v36 = vld [vmem:[#allocation7_spill] sm:$0xff] }
 0x9d7   : > { %3966 = vrot.lane.b32.xlu1 %v3888_v10, %s7935_s21  ;;  %6963 = vmatpush3.bf16.msra.mxu1 %v4330_v31  ;;  %v7765_v29 = vpop.eup %7764 }
 0x9d8   : > { %v1959_v0 = vpop.permute.xlu0 %1958  ;;  %v4324_v12 = vpack.c.bf16 %v4312_v22, %v4311_v27  ;;  %v7767_v21 = vpop.eup %7766  ;;  %v4316_v6 = vmul.f32 %v7765_v29, %v11022_v48 }
 0x9d9   : > { %2006 = vst.msk [vmem:[#allocation2 + $0x8] sm:$0xff] %vm12153_vm9, %v1959_v0  ;;  %v4314_v0 = vmul.f32 %v7763_v26, %v10882_v55  ;;  %v4315_v5 = vmul.f32 %v7767_v21, %v10954_v14  ;;  %v7769_v48 = vpop.eup %7768 }
 0x9da   : > { %6965 = vmatmul.mubr.bf16.vlgmr.msra.gmra.mxu1 %v4322_v40  ;;  %v7771_v11 = vpop.eup %7770  ;;  %v4810_v28 = vmul.f32 %v7769_v48, %v12964_v57 }
 0x9db   : > { %3970 = vrot.lane.b32.xlu1 %v6935_v59, %s7935_s21  ;;  %6968 = vmatprep.mubr.bf16.mxu1 %v4323_v56  ;;  %v4325_v59 = vpack.c.bf16 %v4314_v0, %v4313_v30  ;;  %v4326_v54 = vpack.c.bf16 %v4316_v6, %v4315_v5  ;;  %v7773_v18 = vpop.eup %7772 }
 0x9dc   : > { %v1963_v9 = vpop.permute.xlu0 %1962  ;;  %v7775_v15 = vpop.eup %7774  ;;  %v4809_v40 = vmul.f32 %v7773_v18, %v12965_v36 }
 0x9dd   : > { %2008 = vst.msk [vmem:[#allocation2 + $0x18] sm:$0xff] %vm12153_vm9, %v1963_v9  ;;  %vm12154_vm9 = vcmask 326912   ;;  %v7777_v38 = vpop.eup %7776 }
 0x9de   : > { %v7779_v4 = vpop.eup %7778  ;;  %v4824_v49 = vpack.c.bf16 %v4810_v28, %v4809_v40 }
 0x9df   : > { %v7781_v56 = vpop.eup %7780 }
 0x9e0   : > { %v2459_v31 = vpop.permute.xlu0 %2458  ;;  %v7783_v34 = vpop.eup %7782  ;;  %v4318_v27 = vmul.f32 %v7781_v56, %v11008_v24 }
 0x9e1   : > { %2507 = vst.msk [vmem:[#allocation2] sm:$0xff] %vm12158_vm1, %v2459_v31  ;;  %v7785_v26 = vpop.eup %7784  ;;  %v4814_v31 = vmul.f32 %v7777_v38, %v10875_v58 }
 0x9e2   : > { %6969 = vmatmul.mubr.bf16.gmra.mxu1 %v4324_v12  ;;  %v7787_v22 = vpop.eup %7786 }
 0x9e3   : > { %6972 = vmatprep.mubr.bf16.mxu1 %v4325_v59 }
 0x9e4   : > { %v2461_v41 = vpop.permute.xlu0 %2460 }
 0x9e5   : > { %2508 = vst.msk [vmem:[#allocation2 + $0x8] sm:$0xff] %vm12158_vm1, %v2461_v41 }
 0x9e8   : > { %v11234_v20 = vpop.permute.xlu0 %2462 }
 0x9ea   : > { %6973 = vmatmul.mubr.bf16.gmra.mxu1 %v4326_v54 }
 0x9ec   : > { %v2961_v55 = vpop.permute.xlu0 %2960 }
 0x9ed   : > { %3009 = vst.msk [vmem:[#allocation2] sm:$0xff] %vm12160_vm0, %v2961_v55 }
 0x9f0   : > { %v11237_v10 = vpop.permute.xlu0 %2964 }
 0x9f4   : > { %v3463_v19 = vpop.permute.xlu0 %3462 }
 0x9f5   : > { %3511 = vst.msk [vmem:[#allocation2] sm:$0xff] %vm12154_vm9, %v3463_v19  ;;  %vm12155_vm9 = vcmask 392512  }
 0x9f8   : > { %v11247_v14 = vpop.permute.xlu0 %3466 }
 0xa02   : > { %v4282_v37 = vpop.xlane.xlu1 %4281 }
 0xa03   : > { %7788 = vrcp.f32 %v4282_v37  ;;  %v3965_v32 = vpop.permute.xlu0 %3964 }
 0xa04   : > { %7790 = vrcp.f32 %v11183_v13  ;;  %4013 = vst.msk [vmem:[#allocation2] sm:$0xff] %vm12155_vm9, %v3965_v32  ;;  %v4812_v13 = vmul.f32 %v7771_v11, %v10948_v46  ;;  %v4320_v46 = vmul.f32 %v7783_v34, %v11030_v50  ;;  %vm12966_vm9 = vcmask 130112  }
 0xa05   : > { %7792 = vrcp.f32 %v11205_v62  ;;  %v4811_v62 = vmul.f32 %v7775_v15, %v10945_v7  ;;  %v4816_v7 = vmul.f32 %v7787_v22, %v11040_v45 }
 0xa06   : > { %v4834_v43 = vpop.permute.xlu1 %4833  ;;  %7794 = vrcp.f32 %v11194_v61 }
 0xa07   : > { %6992 = vmatprep.subr.bf16.mxu0 %v4834_v43  ;;  %7796 = vrcp.f32 %v11197_v16  ;;  %v4825_v9 = vpack.c.bf16 %v4812_v13, %v4811_v62 }
 0xa08   : > { %6993 = vmatpush3.bf16.msra.mxu0 %v4834_v43  ;;  %7798 = vrcp.f32 %v11187_v8  ;;  %v4813_v8 = vmul.f32 %v7779_v4, %v10951_v25 }
 0xa09   : > { %6994 = vmatprep.subr.bf16.mxu0 %v11213_v47  ;;  %7800 = vrcp.f32 %v11203_v23 }
 0xa0a   : > { %v4826_v59 = vpack.c.bf16 %v4814_v31, %v4813_v8 }
 0xa0c   : > { %6995 = vmatpush3.bf16.msra.mxu0 %v11213_v47  ;;  %v4319_v47 = vmul.f32 %v7785_v26, %v11018_v3 }
 0xa0e   : > { %v4328_v12 = vpack.c.bf16 %v4320_v46, %v4319_v47 }
 0xa0f   : > { %6997 = vmatmul.mubr.bf16.vlgmr.msra.gmra.mxu0 %v4824_v49  ;;  %v6938_v49 = vpop.f32.mrf.mxu0 }
 0xa10   : > { %v7789_v61 = vpop.eup %7788  ;;  %7000 = vmatprep.mubr.bf16.mxu0 %v4825_v9 }
 0xa11   : > { %v7791_v16 = vpop.eup %7790  ;;  %v4317_v30 = vmul.f32 %v7789_v61, %v11146_v51  ;;  %v3901_v26 = vpop.f32.mrf.mxu0 }
 0xa12   : > { %v4815_v29 = vmul.f32 %v7791_v16, %v11032_v63  ;;  %v7793_v50 = vpop.eup %7792 }
 0xa13   : > { %v4327_v0 = vpack.c.bf16 %v4318_v27, %v4317_v30  ;;  %v7795_v51 = vpop.eup %7794  ;;  %v4818_v3 = vmul.f32 %v7793_v50, %v11056_v42  ;;  %v6939_v9 = vpop.f32.mrf.mxu0  ;;  %v7288_v50 = vld [vmem:[%s11886_s7 + $0x10] sm:$0xff]  }
 0xa14   : > { %v4827_v21 = vpack.c.bf16 %v4816_v7, %v4815_v29  ;;  %v7797_v24 = vpop.eup %7796  ;;  %v4820_v45 = vmul.f32 %v7795_v51, %v11046_v52  ;;  %v3969_v52 = vpop.permute.xlu0 %3968  ;;  %v12975_v51 = vld [vmem:[#allocation22_spill] sm:$0xff] }
 0xa15   : > { %6976 = vmatprep.mubr.bf16.mxu1 %v4327_v0  ;;  %v7799_v25 = vpop.eup %7798  ;;  %v4817_v41 = vmul.f32 %v7797_v24, %v11048_v1  ;;  %v3904_v22 = vpop.f32.mrf.mxu0  ;;  %v12976_v24 = vld [vmem:[#allocation14_spill] sm:$0xff] }
 0xa16   : > { %6977 = vmatmul.mubr.bf16.gmra.mxu1 %v4328_v12  ;;  %v4819_v58 = vmul.f32 %v7799_v25, %v11038_v60  ;;  %v7801_v1 = vpop.eup %7800  ;;  %v12977_v25 = vld [vmem:[#allocation133_spill] sm:$0xff] }
 0xa17   : > { %7001 = vmatmul.mubr.bf16.gmra.mxu0 %v4826_v59  ;;  %v4828_v6 = vpack.c.bf16 %v4818_v3, %v4817_v41  ;;  %v11322_v61 = vpop.f32.mrf.mxu0  ;;  %v7287_v59 = vld [vmem:[%s11886_s7 + $0x18] sm:$0xff]  }
 0xa18   : > { %7004 = vmatprep.mubr.bf16.mxu0 %v4827_v21  ;;  %v4829_v63 = vpack.c.bf16 %v4820_v45, %v4819_v58  ;;  %7012 = vmatprep.subr.bf16.mxu1 %v7287_v59  ;;  %v12974_v21 = vld [vmem:[#allocation60_spill] sm:$0xff] }
 0xa19   : > { %v11324_v46 = vpop.f32.mrf.mxu0  ;;  %7013 = vmatpush3.bf16.msra.mxu1 %v7287_v59 }
 0xa1a   : > { %7014 = vmatprep.subr.bf16.mxu1 %v7288_v50 }
 0xa1b   : > { %v11326_v16 = vpop.f32.mrf.mxu0 }
 0xa1d   : > { %v11328_v30 = vpop.f32.mrf.mxu0  ;;  %7015 = vmatpush3.bf16.msra.mxu1 %v7288_v50 }
 0xa1f   : > { %7005 = vmatmul.mubr.bf16.gmra.mxu0 %v4828_v6  ;;  %v11330_v27 = vpop.f32.mrf.mxu0 }
 0xa20   : > { %7008 = vmatprep.mubr.bf16.mxu0 %v4829_v63 }
 0xa21   : > { %v11332_v8 = vpop.f32.mrf.mxu0 }
 0xa23   : > { %v11334_v47 = vpop.f32.mrf.mxu0 }
 0xa25   : > { %v11336_v7 = vpop.f32.mrf.mxu0 }
 0xa37   : > { %v4788_v5 = vpop.xlane.xlu1 %4787 }
 0xa38   : > { %7802 = vrcp.f32 %v4788_v5 }
 0xa3b   : > { %v1961_v54 = vpop.permute.xlu1 %1960 }
 0xa3c   : > { %2007 = vst.msk [vmem:[#allocation2 + $0x10] sm:$0xff] %vm12966_vm9, %v1961_v54  ;;  %vm12969_vm9 = vmmov %vm12967_vm12 }
 0xa3d   : > { %2509 = vst.msk [vmem:[#allocation2 + $0x10] sm:$0xff] %vm12158_vm1, %v11234_v20  ;;  %v4822_v20 = vmul.f32 %v7801_v1, %v11054_v33 }
 0xa3e   : > { %3011 = vst.msk [vmem:[#allocation2 + $0x10] sm:$0xff] %vm12160_vm0, %v11237_v10 }
 0xa3f   : > { %3513 = vst.msk [vmem:[#allocation2 + $0x10] sm:$0xff] %vm12967_vm12, %v11247_v14  ;;  %v2465_v60 = vpop.permute.xlu1 %2464 }
 0xa40   : > { %2510 = vst.msk [vmem:[#allocation2 + $0x18] sm:$0xff] %vm12158_vm1, %v2465_v60  ;;  %vm12970_vm1 = vmmov %vm12968_vm3  ;;  %v12978_v60 = vld [vmem:[#allocation130_spill] sm:$0xff] }
 0xa41   : > { %4015 = vst.msk [vmem:[#allocation2 + $0x10] sm:$0xff] %vm12968_vm3, %v3969_v52 }
 0xa43   : > { %v2963_v42 = vpop.permute.xlu1 %2962 }
 0xa44   : > { %3010 = vst.msk [vmem:[#allocation2 + $0x8] sm:$0xff] %vm12160_vm0, %v2963_v42 }
 0xa45   : > { %v7803_v23 = vpop.eup %7802 }
 0xa46   : > { %v4821_v55 = vmul.f32 %v7803_v23, %v11174_v39  ;;  %v11294_v39 = vpop.f32.mrf.mxu1  ;;  %v12979_v23 = vld [vmem:[#allocation156_spill] sm:$0xff] }
 0xa47   : > { %v2967_v19 = vpop.permute.xlu1 %2966 }
 0xa48   : > { %3012 = vst.msk [vmem:[#allocation2 + $0x18] sm:$0xff] %vm12160_vm0, %v2967_v19  ;;  %v4830_v10 = vpack.c.bf16 %v4822_v20, %v4821_v55  ;;  %v11296_v33 = vpop.f32.mrf.mxu1  ;;  %v12980_v55 = vld [vmem:[#allocation17_spill] sm:$0xff]  ;;  %v12981_v19 = vld [vmem:[#allocation154_spill] sm:$0xff] }
 0xa4a   : > { %7009 = vmatmul.mubr.bf16.gmra.mxu0 %v4830_v10  ;;  %v11298_v43 = vpop.f32.mrf.mxu1  ;;  %v12982_v10 = vld [vmem:[#allocation48_spill] sm:$0xff] }
 0xa4b   : > { %v3465_v14 = vpop.permute.xlu1 %3464 }
 0xa4c   : > { %3512 = vst.msk [vmem:[#allocation2 + $0x8] sm:$0xff] %vm12967_vm12, %v3465_v14  ;;  %v11300_v11 = vpop.f32.mrf.mxu1  ;;  %v12983_v14 = vld [vmem:[#allocation43_spill] sm:$0xff]  ;;  %vm12159_vm12 = vcmask 523712  }
 0xa4e   : > { %v11302_v18 = vpop.f32.mrf.mxu1 }
 0xa4f   : > { %v3469_v37 = vpop.permute.xlu1 %3468 }
 0xa50   : > { %3514 = vst.msk [vmem:[#allocation2 + $0x18] sm:$0xff] %vm12969_vm9, %v3469_v37  ;;  %v11304_v15 = vpop.f32.mrf.mxu1  ;;  %v12984_v37 = vld [vmem:[#allocation161_spill] sm:$0xff]  ;;  %vm12991_vm9 = vcmask 130112  }
 0xa52   : > { %v11306_v57 = vpop.f32.mrf.mxu1 }
 0xa53   : > { %v3967_v32 = vpop.permute.xlu1 %3966 }
 0xa54   : > { %4014 = vst.msk [vmem:[#allocation2 + $0x8] sm:$0xff] %vm12968_vm3, %v3967_v32  ;;  %v11308_v28 = vpop.f32.mrf.mxu1  ;;  %v12985_v32 = vld [vmem:[#allocation15_spill] sm:$0xff]  ;;  %vm12994_vm3 = vmmov %vm12991_vm9 }
 0xa56   : > { %v11310_v38 = vpop.f32.mrf.mxu1 }
 0xa57   : > { %v3971_v48 = vpop.permute.xlu1 %3970 }
 0xa58   : > { %4016 = vst.msk [vmem:[#allocation2 + $0x18] sm:$0xff] %vm12970_vm1, %v3971_v48  ;;  %v11312_v13 = vpop.f32.mrf.mxu1  ;;  %vm12161_vm1 = vcmask 458112   ;;  %v12986_v48 = vld [vmem:[#allocation185_spill] sm:$0xff] }
 0xa5a   : > { %v11314_v4 = vpop.f32.mrf.mxu1 }
 0xa5c   : > { %v11316_v36 = vpop.f32.mrf.mxu1 }
 0xa9a   : > { %v6966_v40 = vpop.f32.mrf.mxu1 }
 0xa9c   : > { %v4387_v56 = vpop.f32.mrf.mxu1 }
 0xa9d   : > { %4466 = vrot.lane.b32.xlu0 %v4387_v56, %s7936_s22 }
 0xa9e   : > { %v6967_v62 = vpop.f32.mrf.mxu1 }
 0xaa0   : > { %v4390_v34 = vpop.f32.mrf.mxu1 }
 0xaa1   : > { %4470 = vrot.lane.b32.xlu0 %v6966_v40, %s7936_s22  ;;  %4468 = vrot.lane.b32.xlu1 %v4390_v34, %s7936_s22 }
 0xaa2   : > { %v6970_v3 = vpop.f32.mrf.mxu1 }
 0xaa4   : > { %v4403_v45 = vpop.f32.mrf.mxu1 }
 0xaa5   : > { %4472 = vrot.lane.b32.xlu1 %v6967_v62, %s7936_s22 }
 0xaa6   : > { %v6971_v41 = vpop.f32.mrf.mxu1 }
 0xaa8   : > { %v4406_v6 = vpop.f32.mrf.mxu1 }
 0xacf   : > { %v6998_v0 = vpop.f32.mrf.mxu0 }
 0xad1   : > { %v4889_v31 = vpop.f32.mrf.mxu0 }
 0xad2   : > { %4968 = vrot.lane.b32.xlu0 %v4889_v31, %s7937_s23  ;;  %v12993_v31 = vld [vmem:[#allocation160_spill] sm:$0xff] }
 0xad3   : > { %v6999_v12 = vpop.f32.mrf.mxu0 }
 0xad5   : > { %v4892_v29 = vpop.f32.mrf.mxu0 }
 0xad6   : > { %4972 = vrot.lane.b32.xlu0 %v6998_v0, %s7937_s23  ;;  %4970 = vrot.lane.b32.xlu1 %v4892_v29, %s7937_s23  ;;  %v12992_v0 = vld [vmem:[#allocation159_spill] sm:$0xff] }
 0xad7   : > { %v7002_v58 = vpop.f32.mrf.mxu0 }
 0xad9   : > { %v4905_v63 = vpop.f32.mrf.mxu0 }
 0xada   : > { %1964 = vrot.lane.b32.xlu0 %v11004_v44, %s7931_s15  ;;  %4974 = vrot.lane.b32.xlu1 %v6999_v12, %s7937_s23  ;;  %v12971_v44 = vld [vmem:[#allocation24_spill] sm:$0xff] }
 0xadb   : > { %v7003_v5 = vpop.f32.mrf.mxu0 }
 0xadd   : > { %v4908_v54 = vpop.f32.mrf.mxu0 }
 0xade   : > { %1968 = vrot.lane.b32.xlu0 %v10998_v2, %s7931_s15  ;;  %1966 = vrot.lane.b32.xlu1 %v11020_v53, %s7931_s15  ;;  %v7289_v2 = vld [vmem:[%s11886_s7 + $0x8] sm:$0xff]   ;;  %v12972_v53 = vld [vmem:[#allocation55_spill] sm:$0xff] }
 0xadf   : > { %7016 = vmatprep.subr.bf16.mxu1 %v7289_v2  ;;  %v7006_v56 = vpop.f32.mrf.mxu0 }
 0xae0   : > { %7017 = vmatpush3.bf16.msra.mxu1 %v7289_v2 }
 0xae2   : > { %2466 = vrot.lane.b32.xlu0 %v11074_v35, %s7932_s16  ;;  %1970 = vrot.lane.b32.xlu1 %v11012_v17, %s7931_s15  ;;  %v7290_v35 = vld [vmem:[%s11886_s7] sm:$0xff]   ;;  %v12973_v17 = vld [vmem:[#allocation62_spill] sm:$0xff] }
 0xae3   : > { %7018 = vmatprep.subr.bf16.mxu1 %v7290_v35 }
 0xae4   : > { %7019 = vmatpush3.bf16.msra.mxu1 %v7290_v35 }
 0xae6   : > { %2470 = vrot.lane.b32.xlu0 %v12971_v44, %s7932_s16  ;;  %2468 = vrot.lane.b32.xlu1 %v12972_v53, %s7932_s16 }
 0xaea   : > { %2968 = vrot.lane.b32.xlu0 %v12973_v17, %s7933_s19  ;;  %2472 = vrot.lane.b32.xlu1 %v12974_v21, %s7932_s16  ;;  %v12996_v17 = vld [vmem:[#allocation162_spill] sm:$0xff]  ;;  %v12997_v21 = vld [vmem:[#allocation151_spill] sm:$0xff] }
 0xaee   : > { %2972 = vrot.lane.b32.xlu0 %v12975_v51, %s7933_s19  ;;  %2970 = vrot.lane.b32.xlu1 %v12976_v24, %s7933_s19 }
 0xaf2   : > { %3470 = vrot.lane.b32.xlu0 %v11296_v33, %s7934_s20  ;;  %2974 = vrot.lane.b32.xlu1 %v12977_v25, %s7933_s19  ;;  %v12988_v33 = vld [vmem:[#allocation98_spill] sm:$0xff] }
 0xaf6   : > { %3474 = vrot.lane.b32.xlu0 %v11294_v39, %s7934_s20  ;;  %3472 = vrot.lane.b32.xlu1 %v11300_v11, %s7934_s20  ;;  %v12987_v39 = vld [vmem:[#allocation41_spill] sm:$0xff]  ;;  %v6974_v11 = vpop.f32.mrf.mxu1 }
 0xaf8   : > { %v4419_v40 = vpop.f32.mrf.mxu1 }
 0xafa   : > { %3972 = vrot.lane.b32.xlu0 %v3901_v26, %s7935_s21  ;;  %3476 = vrot.lane.b32.xlu1 %v11298_v43, %s7934_s20  ;;  %v12989_v43 = vld [vmem:[#allocation70_spill] sm:$0xff] }
 0xafe   : > { %3976 = vrot.lane.b32.xlu0 %v6938_v49, %s7935_s21  ;;  %3974 = vrot.lane.b32.xlu1 %v3904_v22, %s7935_s21  ;;  %v11458_v22 = vld [vmem:[%s11885_s6] ss:$0 sm:$0xff] }
 0xb02   : > { %4474 = vrot.lane.b32.xlu0 %v4403_v45, %s7936_s22  ;;  %3978 = vrot.lane.b32.xlu1 %v6939_v9, %s7935_s21  ;;  %v12990_v9 = vld [vmem:[#allocation131_spill] sm:$0xff] }
 0xb06   : > { %4478 = vrot.lane.b32.xlu0 %v6970_v3, %s7936_s22  ;;  %4476 = vrot.lane.b32.xlu1 %v4406_v6, %s7936_s22  ;;  %v13000_v6 = vld [vmem:[#allocation68_spill] sm:$0xff] }
 0xb0a   : > { %4480 = vrot.lane.b32.xlu1 %v6971_v41, %s7936_s22  ;;  %4976 = vrot.lane.b32.xlu0 %v4905_v63, %s7937_s23  ;;  %v13001_v63 = vld [vmem:[#allocation184_spill] sm:$0xff] }
 0xb0e   : > { %4980 = vrot.lane.b32.xlu0 %v7002_v58, %s7937_s23  ;;  %4978 = vrot.lane.b32.xlu1 %v4908_v54, %s7937_s23 }
 0xb0f   : > { %v4467_v52 = vpop.permute.xlu0 %4466 }
 0xb10   : > { %4515 = vst.msk [vmem:[#allocation2] sm:$0xff] %vm12161_vm1, %v4467_v52 }
 0xb12   : > { %1972 = vrot.lane.b32.xlu0 %v12978_v60, %s7931_s15  ;;  %4982 = vrot.lane.b32.xlu1 %v7003_v5, %s7937_s23 }
 0xb13   : > { %v4469_v1 = vpop.permute.xlu1 %4468  ;;  %v4471_v42 = vpop.permute.xlu0 %4470 }
 0xb14   : > { %4516 = vst.msk [vmem:[#allocation2 + $0x8] sm:$0xff] %vm12161_vm1, %v4469_v1  ;;  %4517 = vst.msk [vmem:[#allocation2 + $0x10] sm:$0xff] %vm12161_vm1, %v4471_v42  ;;  %v13004_v42 = vld [vmem:[#allocation164_spill] sm:$0xff] }
 0xb16   : > { %1976 = vrot.lane.b32.xlu0 %v12979_v23, %s7931_s15  ;;  %1974 = vrot.lane.b32.xlu1 %v12980_v55, %s7931_s15  ;;  %v13005_v23 = vld [vmem:[#allocation157_spill] sm:$0xff] }
 0xb17   : > { %v4473_v20 = vpop.permute.xlu1 %4472 }
 0xb18   : > { %4518 = vst.msk [vmem:[#allocation2 + $0x18] sm:$0xff] %vm12161_vm1, %v4473_v20  ;;  %vm13012_vm1 = vcmask 523264  }
 0xb19   : > { %vm13014_vm6 = vmmov %vm13012_vm1 }
 0xb1a   : > { %2474 = vrot.lane.b32.xlu0 %v12981_v19, %s7932_s16  ;;  %1978 = vrot.lane.b32.xlu1 %v12982_v10, %s7931_s15  ;;  %v13007_v19 = vld [vmem:[#allocation78_spill] sm:$0xff] }
 0xb1b   : > { %v13008_v10 = vld [vmem:[#allocation26_spill] sm:$0xff] }
 0xb1e   : > { %2478 = vrot.lane.b32.xlu0 %v12983_v14, %s7932_s16  ;;  %2476 = vrot.lane.b32.xlu1 %v12984_v37, %s7932_s16 }
 0xb22   : > { %2976 = vrot.lane.b32.xlu0 %v12985_v32, %s7933_s19  ;;  %2480 = vrot.lane.b32.xlu1 %v12986_v48, %s7932_s16  ;;  %v13009_v48 = vld [vmem:[#allocation135_spill] sm:$0xff] }
 0xb26   : > { %2980 = vrot.lane.b32.xlu0 %v12987_v39, %s7933_s19  ;;  %2978 = vrot.lane.b32.xlu1 %v12988_v33, %s7933_s19 }
 0xb2a   : > { %3478 = vrot.lane.b32.xlu0 %v11304_v15, %s7934_s20  ;;  %2982 = vrot.lane.b32.xlu1 %v12989_v43, %s7933_s19  ;;  %v6975_v15 = vpop.f32.mrf.mxu1 }
 0xb2e   : > { %3482 = vrot.lane.b32.xlu0 %v11302_v18, %s7934_s20  ;;  %3480 = vrot.lane.b32.xlu1 %v11308_v28, %s7934_s20  ;;  %v4422_v18 = vpop.f32.mrf.mxu1  ;;  %v4921_v28 = vpop.f32.mrf.mxu0 }
 0xb32   : > { %3980 = vrot.lane.b32.xlu0 %v11324_v46, %s7935_s21  ;;  %3484 = vrot.lane.b32.xlu1 %v11306_v57, %s7934_s20  ;;  %v7007_v57 = vpop.f32.mrf.mxu0 }
 0xb34   : > { %v4924_v34 = vpop.f32.mrf.mxu0 }
 0xb36   : > { %3984 = vrot.lane.b32.xlu0 %v11322_v61, %s7935_s21  ;;  %3982 = vrot.lane.b32.xlu1 %v11328_v30, %s7935_s21 }
 0xb3a   : > { %4482 = vrot.lane.b32.xlu0 %v4419_v40, %s7936_s22  ;;  %3986 = vrot.lane.b32.xlu1 %v11326_v16, %s7935_s21 }
 0xb3e   : > { %4486 = vrot.lane.b32.xlu0 %v6974_v11, %s7936_s22  ;;  %4484 = vrot.lane.b32.xlu1 %v4422_v18, %s7936_s22 }
 0xb42   : > { %4488 = vrot.lane.b32.xlu1 %v6975_v15, %s7936_s22  ;;  %4984 = vrot.lane.b32.xlu0 %v4921_v28, %s7937_s23 }
 0xb44   : > { %v4969_v62 = vpop.permute.xlu0 %4968 }
 0xb45   : > { %5017 = vst.msk [vmem:[#allocation2] sm:$0xff] %vm12159_vm12, %v4969_v62 }
 0xb46   : > { %4988 = vrot.lane.b32.xlu0 %v7006_v56, %s7937_s23  ;;  %4986 = vrot.lane.b32.xlu1 %v4924_v34, %s7937_s23 }
 0xb48   : > { %v4971_v49 = vpop.permute.xlu1 %4970  ;;  %v4973_v26 = vpop.permute.xlu0 %4972 }
 0xb49   : > { %5018 = vst.msk [vmem:[#allocation2 + $0x8] sm:$0xff] %vm12159_vm12, %v4971_v49  ;;  %5019 = vst.msk [vmem:[#allocation2 + $0x10] sm:$0xff] %vm12159_vm12, %v4973_v26  ;;  %v6978_v49 = vpop.f32.mrf.mxu1 }
 0xb4a   : > { %1980 = vrot.lane.b32.xlu0 %v12990_v9, %s7931_s15  ;;  %4990 = vrot.lane.b32.xlu1 %v7007_v57, %s7937_s23 }
 0xb4c   : > { %v4975_v61 = vpop.permute.xlu1 %4974  ;;  %v1965_v46 = vpop.permute.xlu0 %1964  ;;  %v5033_v16 = vld [vmem:[#allocation2] sm:$0xff] }
 0xb4d   : > { %5020 = vst.msk [vmem:[#allocation2 + $0x18] sm:$0xff] %vm12159_vm12, %v4975_v61  ;;  %v11463_v30 = vadd.f32 %v11458_v22, %v5033_v16  ;;  %vm12995_vm12 = vmmov %vm12994_vm3  ;;  %v4435_v16 = vpop.f32.mrf.mxu1 }
 0xb4e   : > { %2009 = vst.msk [vmem:[#allocation2 + $0x20] sm:$0xff] %vm12991_vm9, %v1965_v46  ;;  %1984 = vrot.lane.b32.xlu0 %v12992_v0, %s7931_s15  ;;  %1982 = vrot.lane.b32.xlu1 %v12993_v31, %s7931_s15  ;;  %vm12999_vm9 = vcmask 195712   ;;  %v7010_v0 = vpop.f32.mrf.mxu0 }
 0xb4f   : > { %v5087_v12 = vmin.f32 %v11463_v30, 0.0 }
 0xb50   : > { %v1967_v29 = vpop.permute.xlu1 %1966  ;;  %v1969_v59 = vpop.permute.xlu0 %1968  ;;  %v5034_v50 = vld [vmem:[#allocation2 + $0x8] sm:$0xff]  ;;  %v5035_v2 = vld [vmem:[#allocation2 + $0x10] sm:$0xff] }
 0xb51   : > { %2010 = vst.msk [vmem:[#allocation2 + $0x28] sm:$0xff] %vm12994_vm3, %v1967_v29  ;;  %v5056_v44 = vadd.f32 %v11458_v22, %v5034_v50  ;;  %v5103_v53 = vmul.f32 1.442695, %v5087_v12  ;;  %v11474_v35 = vadd.f32 %v11458_v22, %v5035_v2  ;;  %v4937_v29 = vpop.f32.mrf.mxu0 }
 0xb52   : > { %2011 = vst.msk [vmem:[#allocation2 + $0x30] sm:$0xff] %vm12995_vm12, %v1969_v59  ;;  %2482 = vrot.lane.b32.xlu0 %v12996_v17, %s7932_s16  ;;  %1986 = vrot.lane.b32.xlu1 %v12997_v21, %s7931_s15  ;;  %vm12998_vm12 = vmmov %vm12994_vm3 }
 0xb53   : > { %v5088_v51 = vmin.f32 %v5056_v44, 0.0  ;;  %7804 = vpow2.f32 %v5103_v53  ;;  %v5089_v45 = vmin.f32 %v11474_v35, 0.0  ;;  %vm13002_vm3 = vmmov %vm12999_vm9  ;;  %v7011_v50 = vpop.f32.mrf.mxu0 }
 0xb54   : > { %v1971_v24 = vpop.permute.xlu1 %1970  ;;  %v2467_v25 = vpop.permute.xlu0 %2466  ;;  %v5036_v3 = vld [vmem:[#allocation2 + $0x18] sm:$0xff] }
 0xb55   : > { %2012 = vst.msk [vmem:[#allocation2 + $0x38] sm:$0xff] %vm12998_vm12, %v1971_v24  ;;  %v5105_v41 = vmul.f32 1.442695, %v5088_v51  ;;  %v5058_v58 = vadd.f32 %v11458_v22, %v5036_v3  ;;  %v5107_v5 = vmul.f32 1.442695, %v5089_v45  ;;  %vm13003_vm12 = vmmov %vm13002_vm3 }
 0xb56   : > { %2511 = vst.msk [vmem:[#allocation2 + $0x20] sm:$0xff] %vm12999_vm9, %v2467_v25  ;;  %2486 = vrot.lane.b32.xlu0 %v13000_v6, %s7932_s16  ;;  %2484 = vrot.lane.b32.xlu1 %v13001_v63, %s7932_s16  ;;  %vm13006_vm9 = vmmov %vm13002_vm3 }
 0xb57   : > { %7806 = vpow2.f32 %v5105_v41  ;;  %v5090_v54 = vmin.f32 %v5058_v58, 0.0 }
 0xb58   : > { %v2469_v52 = vpop.permute.xlu1 %2468  ;;  %v2471_v60 = vpop.permute.xlu0 %2470  ;;  %7808 = vpow2.f32 %v5107_v5 }
 0xb59   : > { %2512 = vst.msk [vmem:[#allocation2 + $0x28] sm:$0xff] %vm13002_vm3, %v2469_v52  ;;  %v5109_v1 = vmul.f32 1.442695, %v5090_v54  ;;  %vm13010_vm3 = vcmask 326912  }
 0xb5a   : > { %2513 = vst.msk [vmem:[#allocation2 + $0x30] sm:$0xff] %vm13003_vm12, %v2471_v60  ;;  %2984 = vrot.lane.b32.xlu0 %v13004_v42, %s7933_s19  ;;  %2488 = vrot.lane.b32.xlu1 %v13005_v23, %s7932_s16  ;;  %vm5071_vm12 = vcmp.gt.f32.partialorder %v11463_v30, 0.0 }
 0xb5b   : > { %7810 = vpow2.f32 %v5109_v1 }
 0xb5c   : > { %v2473_v55 = vpop.permute.xlu1 %2472  ;;  %v2969_v20 = vpop.permute.xlu0 %2968 }
 0xb5d   : > { %2514 = vst.msk [vmem:[#allocation2 + $0x38] sm:$0xff] %vm13006_vm9, %v2473_v55  ;;  %vm5072_vm9 = vcmp.gt.f32.partialorder %v5056_v44, 0.0 }
 0xb5e   : > { %3013 = vst.msk [vmem:[#allocation2 + $0x20] sm:$0xff] %vm12160_vm0, %v2969_v20  ;;  %2986 = vrot.lane.b32.xlu1 %v13007_v19, %s7933_s19  ;;  %2988 = vrot.lane.b32.xlu0 %v13008_v10, %s7933_s19 }
 0xb60   : > { %v7805_v14 = vpop.eup %7804  ;;  %v2971_v37 = vpop.permute.xlu1 %2970 }
 0xb61   : > { %v2973_v32 = vpop.permute.xlu0 %2972  ;;  %3014 = vst.msk [vmem:[#allocation2 + $0x28] sm:$0xff] %vm12160_vm0, %v2971_v37  ;;  %v6333_v39 = vadd.f32 -1.0, %v7805_v14 }
 0xb62   : > { %3015 = vst.msk [vmem:[#allocation2 + $0x30] sm:$0xff] %vm12160_vm0, %v2973_v32  ;;  %2990 = vrot.lane.b32.xlu1 %v13009_v48, %s7933_s19  ;;  %3486 = vrot.lane.b32.xlu0 %v11312_v13, %s7934_s20 }
 0xb63   : > { %v5151_v13 = vsel %vm5071_vm12, %v11463_v30, %v6333_v39  ;;  %vm5073_vm12 = vcmp.gt.f32.partialorder %v11474_v35, 0.0  ;;  %v6979_v30 = vpop.f32.mrf.mxu1 }
 0xb64   : > { %v7807_v33 = vpop.eup %7806  ;;  %v2975_v43 = vpop.permute.xlu1 %2974 }
 0xb65   : > { %v3471_v11 = vpop.permute.xlu0 %3470  ;;  %v7809_v40 = vpop.eup %7808  ;;  %3016 = vst.msk [vmem:[#allocation2 + $0x38] sm:$0xff] %vm12160_vm0, %v2975_v43  ;;  %v6334_v15 = vadd.f32 -1.0, %v7807_v33  ;;  %vm13011_vm0 = vmmov %vm13010_vm3 }
 0xb66   : > { %3515 = vst.msk [vmem:[#allocation2 + $0x20] sm:$0xff] %vm13010_vm3, %v3471_v11  ;;  %3488 = vrot.lane.b32.xlu1 %v11316_v36, %s7934_s20  ;;  %3490 = vrot.lane.b32.xlu0 %v11310_v38, %s7934_s20  ;;  %v6335_v18 = vadd.f32 -1.0, %v7809_v40  ;;  %v4438_v12 = vpop.f32.mrf.mxu1 }
 0xb67   : > { %v5152_v56 = vsel %vm5072_vm9, %v5056_v44, %v6334_v15  ;;  %vm5074_vm9 = vcmp.gt.f32.partialorder %v5058_v58, 0.0  ;;  %v4940_v44 = vpop.f32.mrf.mxu0 }
 0xb68   : > { %v7811_v28 = vpop.eup %7810  ;;  %v3473_v57 = vpop.permute.xlu1 %3472  ;;  %v5167_v34 = vpack.c.bf16 %v5152_v56, %v5151_v13  ;;  %v5153_v38 = vsel %vm5073_vm12, %v11474_v35, %v6335_v18 }
 0xb69   : > { %v3475_v62 = vpop.permute.xlu0 %3474  ;;  %3516 = vst.msk [vmem:[#allocation2 + $0x28] sm:$0xff] %vm13010_vm3, %v3473_v57  ;;  %v6336_v36 = vadd.f32 -1.0, %v7811_v28  ;;  %vm13013_vm3 = vcmask 392512  }
 0xb6a   : > { %3517 = vst.msk [vmem:[#allocation2 + $0x30] sm:$0xff] %vm13011_vm0, %v3475_v62  ;;  %3492 = vrot.lane.b32.xlu1 %v11314_v4, %s7934_s20  ;;  %3988 = vrot.lane.b32.xlu0 %v11332_v8, %s7935_s21 }
 0xb6b   : > { %7020 = vmatprep.mubr.msk.bf16.mxu1 %vm13012_vm1, %v5167_v34  ;;  %v5154_v26 = vsel %vm5074_vm9, %v5058_v58, %v6336_v36  ;;  %vm13015_vm1 = vmmov %vm13013_vm3 }
 0xb6c   : > { %v3477_v9 = vpop.permute.xlu1 %3476  ;;  %v5168_v46 = vpack.c.bf16 %v5154_v26, %v5153_v38  ;;  %vm13016_vm12 = vmmov %vm13015_vm1 }
 0xb6d   : > { %v3973_v61 = vpop.permute.xlu0 %3972  ;;  %3518 = vst.msk [vmem:[#allocation2 + $0x38] sm:$0xff] %vm13011_vm0, %v3477_v9  ;;  %vm13017_vm9 = vmmov %vm13015_vm1 }
 0xb6e   : > { %4017 = vst.msk [vmem:[#allocation2 + $0x20] sm:$0xff] %vm13013_vm3, %v3973_v61  ;;  %3990 = vrot.lane.b32.xlu1 %v11336_v7, %s7935_s21  ;;  %3992 = vrot.lane.b32.xlu0 %v11330_v27, %s7935_s21 }
 0xb6f   : > { %7021 = vmatmul.mubr.msk.bf16.vlgmr.msra.gmra.mxu1 %vm13014_vm6, %v5168_v46  ;;  %vm13018_vm6 = vcmask 458112  }
 0xb70   : > { %v3975_v4 = vpop.permute.xlu1 %3974  ;;  %vm13019_vm0 = vmmov %vm13018_vm6 }
 0xb71   : > { %v3977_v8 = vpop.permute.xlu0 %3976  ;;  %4018 = vst.msk [vmem:[#allocation2 + $0x28] sm:$0xff] %vm13015_vm1, %v3975_v4  ;;  %vm13020_vm3 = vmmov %vm13019_vm0 }
 0xb72   : > { %4019 = vst.msk [vmem:[#allocation2 + $0x30] sm:$0xff] %vm13016_vm12, %v3977_v8  ;;  %3994 = vrot.lane.b32.xlu1 %v11334_v47, %s7935_s21  ;;  %4490 = vrot.lane.b32.xlu0 %v4435_v16, %s7936_s22  ;;  %vm13021_vm1 = vmmov %vm13019_vm0  ;;  %vm13022_vm12 = vcmask 523712  }
 0xb74   : > { %v3979_v31 = vpop.permute.xlu1 %3978 }
 0xb75   : > { %v4475_v7 = vpop.permute.xlu0 %4474  ;;  %4020 = vst.msk [vmem:[#allocation2 + $0x38] sm:$0xff] %vm13017_vm9, %v3979_v31  ;;  %vm13023_vm9 = vmmov %vm13022_vm12 }
 0xb76   : > { %4519 = vst.msk [vmem:[#allocation2 + $0x20] sm:$0xff] %vm13018_vm6, %v4475_v7  ;;  %4492 = vrot.lane.b32.xlu1 %v4438_v12, %s7936_s22  ;;  %4494 = vrot.lane.b32.xlu0 %v6978_v49, %s7936_s22  ;;  %vm13024_vm6 = vmmov %vm13023_vm9 }
 0xb78   : > { %v4477_v27 = vpop.permute.xlu1 %4476 }
 0xb79   : > { %v4479_v59 = vpop.permute.xlu0 %4478  ;;  %4520 = vst.msk [vmem:[#allocation2 + $0x28] sm:$0xff] %vm13019_vm0, %v4477_v27  ;;  %vm13025_vm0 = vmmov %vm13024_vm6 }
 0xb7a   : > { %4521 = vst.msk [vmem:[#allocation2 + $0x30] sm:$0xff] %vm13020_vm3, %v4479_v59  ;;  %4496 = vrot.lane.b32.xlu1 %v6979_v30, %s7936_s22  ;;  %4992 = vrot.lane.b32.xlu0 %v4937_v29, %s7937_s23  ;;  %vm13026_vm3 = vcmask 130112   ;;  %v486_v59 = vld [vmem:[%s11887_s8] sm:$0x3] }
 0xb7c   : > { %v4481_v47 = vpop.permute.xlu1 %4480 }
 0xb7d   : > { %v4977_v2 = vpop.permute.xlu0 %4976  ;;  %4522 = vst.msk [vmem:[#allocation2 + $0x38] sm:$0xff] %vm13021_vm1, %v4481_v47  ;;  %vm13027_vm1 = vmmov %vm13026_vm3 }
 0xb7e   : > { %5021 = vst.msk [vmem:[#allocation2 + $0x20] sm:$0xff] %vm13022_vm12, %v4977_v2  ;;  %4994 = vrot.lane.b32.xlu1 %v4940_v44, %s7937_s23  ;;  %4996 = vrot.lane.b32.xlu0 %v7010_v0, %s7937_s23  ;;  %vm13028_vm12 = vmmov %vm13027_vm1 }
 0xb80   : > { %v4979_v53 = vpop.permute.xlu1 %4978 }
 0xb81   : > { %v4981_v35 = vpop.permute.xlu0 %4980  ;;  %5022 = vst.msk [vmem:[#allocation2 + $0x28] sm:$0xff] %vm13023_vm9, %v4979_v53  ;;  %vm13029_vm9 = vmmov %vm13027_vm1 }
 0xb82   : > { %5023 = vst.msk [vmem:[#allocation2 + $0x30] sm:$0xff] %vm13024_vm6, %v4981_v35  ;;  %4998 = vrot.lane.b32.xlu1 %v7011_v50, %s7937_s23  ;;  %vm13030_vm6 = vcmask 195712   ;;  %v487_v50 = vld [vmem:[%s11888_s9] sm:$0x3] }
 0xb84   : > { %v4983_v17 = vpop.permute.xlu1 %4982 }
 0xb85   : > { %v1973_v21 = vpop.permute.xlu0 %1972  ;;  %v5037_v51 = vld [vmem:[#allocation2 + $0x20] sm:$0xff]  ;;  %5024 = vst.msk [vmem:[#allocation2 + $0x38] sm:$0xff] %vm13025_vm0, %v4983_v17  ;;  %vm13031_vm0 = vmmov %vm13030_vm6 }
 0xb86   : > { %2013 = vst.msk [vmem:[#allocation2 + $0x40] sm:$0xff] %vm13026_vm3, %v1973_v21  ;;  %v5059_v24 = vadd.f32 %v11458_v22, %v5037_v51  ;;  %vm13032_vm3 = vmmov %vm13031_vm0 }
 0xb88   : > { %v5091_v25 = vmin.f32 %v5059_v24, 0.0  ;;  %v1975_v3 = vpop.permute.xlu1 %1974  ;;  %v5038_v41 = vld [vmem:[#allocation2 + $0x28] sm:$0xff] }
 0xb89   : > { %v1977_v45 = vpop.permute.xlu0 %1976  ;;  %v5039_v58 = vld [vmem:[#allocation2 + $0x30] sm:$0xff]  ;;  %2014 = vst.msk [vmem:[#allocation2 + $0x48] sm:$0xff] %vm13027_vm1, %v1975_v3  ;;  %v5060_v6 = vadd.f32 %v11458_v22, %v5038_v41  ;;  %vm13033_vm1 = vmmov %vm13031_vm0 }
 0xb8a   : > { %2015 = vst.msk [vmem:[#allocation2 + $0x50] sm:$0xff] %vm13028_vm12, %v1977_v45  ;;  %v5111_v63 = vmul.f32 1.442695, %v5091_v25  ;;  %v5061_v5 = vadd.f32 %v11458_v22, %v5039_v58  ;;  %vm13034_vm12 = vcmask 261312  }
 0xb8b   : > { %v5092_v54 = vmin.f32 %v5060_v6, 0.0  ;;  %vm5076_vm13 = vcmp.gt.f32.partialorder %v5060_v6, 0.0 }
 0xb8c   : > { %7812 = vpow2.f32 %v5111_v63  ;;  %v1979_v52 = vpop.permute.xlu1 %1978  ;;  %v5040_v1 = vld [vmem:[#allocation2 + $0x38] sm:$0xff]  ;;  %v5093_v42 = vmin.f32 %v5061_v5, 0.0 }
 0xb8d   : > { %v2475_v60 = vpop.permute.xlu0 %2474  ;;  %2016 = vst.msk [vmem:[#allocation2 + $0x58] sm:$0xff] %vm13029_vm9, %v1979_v52  ;;  %v5113_v23 = vmul.f32 1.442695, %v5092_v54  ;;  %v5062_v55 = vadd.f32 %v11458_v22, %v5040_v1  ;;  %vm13035_vm9 = vmmov %vm13034_vm12 }
 0xb8e   : > { %2515 = vst.msk [vmem:[#allocation2 + $0x40] sm:$0xff] %vm13030_vm6, %v2475_v60  ;;  %v5115_v20 = vmul.f32 1.442695, %v5093_v42  ;;  %vm13036_vm6 = vmmov %vm13035_vm9 }
 0xb8f   : > { %7814 = vpow2.f32 %v5113_v23  ;;  %v5094_v19 = vmin.f32 %v5062_v55, 0.0  ;;  %vm5078_vm2 = vcmp.gt.f32.partialorder %v5062_v55, 0.0 }
 0xb90   : > { %v2477_v10 = vpop.permute.xlu1 %2476  ;;  %7816 = vpow2.f32 %v5115_v20 }
 0xb91   : > { %v2479_v14 = vpop.permute.xlu0 %2478  ;;  %2516 = vst.msk [vmem:[#allocation2 + $0x48] sm:$0xff] %vm13031_vm0, %v2477_v10  ;;  %v5117_v37 = vmul.f32 1.442695, %v5094_v19  ;;  %vm13037_vm0 = vmmov %vm13036_vm6 }
 0xb92   : > { %2517 = vst.msk [vmem:[#allocation2 + $0x50] sm:$0xff] %vm13032_vm3, %v2479_v14  ;;  %vm13038_vm3 = vcmask 326912  }
 0xb93   : > { %7818 = vpow2.f32 %v5117_v37 }
 0xb94   : > { %v2481_v32 = vpop.permute.xlu1 %2480 }
 0xb95   : > { %v2977_v48 = vpop.permute.xlu0 %2976  ;;  %2518 = vst.msk [vmem:[#allocation2 + $0x58] sm:$0xff] %vm13033_vm1, %v2481_v32  ;;  %vm5075_vm1 = vcmp.gt.f32.partialorder %v5059_v24, 0.0 }
 0xb96   : > { %3017 = vst.msk [vmem:[#allocation2 + $0x40] sm:$0xff] %vm13034_vm12, %v2977_v48  ;;  %vm13039_vm12 = vmmov %vm13038_vm3 }
 0xb98   : > { %v2979_v33 = vpop.permute.xlu1 %2978 }
 0xb99   : > { %v7813_v39 = vpop.eup %7812  ;;  %v2981_v43 = vpop.permute.xlu0 %2980  ;;  %3018 = vst.msk [vmem:[#allocation2 + $0x48] sm:$0xff] %vm13035_vm9, %v2979_v33  ;;  %vm13040_vm9 = vmmov %vm13038_vm3 }
 0xb9a   : > { %3019 = vst.msk [vmem:[#allocation2 + $0x50] sm:$0xff] %vm13036_vm6, %v2981_v43  ;;  %v6337_v11 = vadd.f32 -1.0, %v7813_v39  ;;  %vm13041_vm6 = vcmask 523264  }
 0xb9c   : > { %v7815_v40 = vpop.eup %7814  ;;  %v2983_v15 = vpop.permute.xlu1 %2982  ;;  %v5155_v28 = vsel %vm5075_vm1, %v5059_v24, %v6337_v11  ;;  %vm13044_vm1 = vmmov %vm13041_vm6 }
 0xb9d   : > { %v3479_v13 = vpop.permute.xlu0 %3478  ;;  %v7817_v56 = vpop.eup %7816  ;;  %3020 = vst.msk [vmem:[#allocation2 + $0x58] sm:$0xff] %vm13037_vm0, %v2983_v15  ;;  %v6338_v18 = vadd.f32 -1.0, %v7815_v40  ;;  %vm5077_vm0 = vcmp.gt.f32.partialorder %v5061_v5, 0.0 }
 0xb9e   : > { %3519 = vst.msk [vmem:[#allocation2 + $0x40] sm:$0xff] %vm13038_vm3, %v3479_v13  ;;  %v6339_v62 = vadd.f32 -1.0, %v7817_v56 }
 0xb9f   : > { %v5156_v57 = vsel %vm5076_vm13, %v5060_v6, %v6338_v18  ;;  %vm13042_vm13 = vmmov %vm13038_vm3  ;;  %vm13043_vm3 = vcmask 392512  }
 0xba0   : > { %v7819_v34 = vpop.eup %7818  ;;  %v3481_v49 = vpop.permute.xlu1 %3480  ;;  %v5169_v38 = vpack.c.bf16 %v5156_v57, %v5155_v28  ;;  %v5157_v9 = vsel %vm5077_vm0, %v5061_v5, %v6339_v62 }
 0xba1   : > { %v3483_v36 = vpop.permute.xlu0 %3482  ;;  %3520 = vst.msk [vmem:[#allocation2 + $0x48] sm:$0xff] %vm13039_vm12, %v3481_v49  ;;  %v6340_v26 = vadd.f32 -1.0, %v7819_v34  ;;  %vm13045_vm12 = vmmov %vm13043_vm3 }
 0xba2   : > { %3521 = vst.msk [vmem:[#allocation2 + $0x50] sm:$0xff] %vm13040_vm9, %v3483_v36  ;;  %7024 = vmatprep.mubr.msk.bf16.mxu1 %vm13041_vm6, %v5169_v38  ;;  %vm13046_vm9 = vmmov %vm13043_vm3 }
 0xba3   : > { %v5158_v61 = vsel %vm5078_vm2, %v5062_v55, %v6340_v26  ;;  %vm13047_vm6 = vmmov %vm13043_vm3  ;;  %vm13048_vm2 = vcmask 458112  }
 0xba4   : > { %v3485_v46 = vpop.permute.xlu1 %3484  ;;  %v5170_v4 = vpack.c.bf16 %v5158_v61, %v5157_v9  ;;  %vm13049_vm0 = vmmov %vm13048_vm2 }
 0xba5   : > { %v3981_v16 = vpop.permute.xlu0 %3980  ;;  %3522 = vst.msk [vmem:[#allocation2 + $0x58] sm:$0xff] %vm13042_vm13, %v3485_v46  ;;  %vm13050_vm13 = vmmov %vm13049_vm0 }
 0xba6   : > { %4021 = vst.msk [vmem:[#allocation2 + $0x40] sm:$0xff] %vm13043_vm3, %v3981_v16  ;;  %7025 = vmatmul.mubr.msk.bf16.gmra.mxu1 %vm13044_vm1, %v5170_v4  ;;  %vm5369_vm3 = vcmask 1041408   ;;  %vm13051_vm1 = vmmov %vm13049_vm0 }
 0xba7   : > { %7036 = vmatprep.subr.msk.mxu0 %vm5369_vm3, %v486_v59  ;;  %7062 = vmatprep.subr.msk.mxu1 %vm5369_vm3, %v487_v50 }
 0xba8   : > { %v3983_v8 = vpop.permute.xlu1 %3982  ;;  %7037 = vmatpush3.msk.msra.mxu0 %vm5369_vm3, %v486_v59  ;;  %7063 = vmatpush3.msk.msra.mxu1 %vm5369_vm3, %v487_v50 }
 0xba9   : > { %v3985_v30 = vpop.permute.xlu0 %3984  ;;  %4022 = vst.msk [vmem:[#allocation2 + $0x48] sm:$0xff] %vm13045_vm12, %v3983_v8  ;;  %vm13052_vm12 = vcmask 523712  }
 0xbaa   : > { %4023 = vst.msk [vmem:[#allocation2 + $0x50] sm:$0xff] %vm13046_vm9, %v3985_v30  ;;  %vm13053_vm9 = vmmov %vm13052_vm12 }
 0xbac   : > { %v3987_v0 = vpop.permute.xlu1 %3986 }
 0xbad   : > { %v4483_v31 = vpop.permute.xlu0 %4482  ;;  %4024 = vst.msk [vmem:[#allocation2 + $0x58] sm:$0xff] %vm13047_vm6, %v3987_v0  ;;  %vm13054_vm6 = vmmov %vm13053_vm9 }
 0xbae   : > { %4523 = vst.msk [vmem:[#allocation2 + $0x40] sm:$0xff] %vm13048_vm2, %v4483_v31  ;;  %vm13055_vm2 = vmmov %vm13054_vm6 }
 0xbb0   : > { %v4485_v7 = vpop.permute.xlu1 %4484 }
 0xbb1   : > { %v4487_v12 = vpop.permute.xlu0 %4486  ;;  %4524 = vst.msk [vmem:[#allocation2 + $0x48] sm:$0xff] %vm13049_vm0, %v4485_v7  ;;  %vm13056_vm0 = vcmask 130112  }
 0xbb2   : > { %4525 = vst.msk [vmem:[#allocation2 + $0x50] sm:$0xff] %vm13050_vm13, %v4487_v12  ;;  %vm13057_vm13 = vmmov %vm13056_vm0 }
 0xbb3   : > { %vm13058_vm3 = vmmov %vm13056_vm0 }
 0xbb4   : > { %v4489_v29 = vpop.permute.xlu1 %4488 }
 0xbb5   : > { %v4985_v27 = vpop.permute.xlu0 %4984  ;;  %4526 = vst.msk [vmem:[#allocation2 + $0x58] sm:$0xff] %vm13051_vm1, %v4489_v29  ;;  %vm13059_vm1 = vmmov %vm13056_vm0 }
 0xbb6   : > { %5025 = vst.msk [vmem:[#allocation2 + $0x40] sm:$0xff] %vm13052_vm12, %v4985_v27  ;;  %vm13060_vm12 = vcmask 195712  }
 0xbb8   : > { %v4987_v47 = vpop.permute.xlu1 %4986 }
 0xbb9   : > { %v4989_v2 = vpop.permute.xlu0 %4988  ;;  %5026 = vst.msk [vmem:[#allocation2 + $0x48] sm:$0xff] %vm13053_vm9, %v4987_v47  ;;  %vm13061_vm9 = vmmov %vm13060_vm12 }
 0xbba   : > { %5027 = vst.msk [vmem:[#allocation2 + $0x50] sm:$0xff] %vm13054_vm6, %v4989_v2  ;;  %vm13062_vm6 = vmmov %vm13061_vm9 }
 0xbbc   : > { %v4991_v44 = vpop.permute.xlu1 %4990 }
 0xbbd   : > { %v1981_v53 = vpop.permute.xlu0 %1980  ;;  %v5041_v35 = vld [vmem:[#allocation2 + $0x40] sm:$0xff]  ;;  %5028 = vst.msk [vmem:[#allocation2 + $0x58] sm:$0xff] %vm13055_vm2, %v4991_v44  ;;  %vm13063_vm2 = vmmov %vm13062_vm6 }
 0xbbe   : > { %2017 = vst.msk [vmem:[#allocation2 + $0x60] sm:$0xff] %vm13056_vm0, %v1981_v53  ;;  %v5063_v17 = vadd.f32 %v11458_v22, %v5041_v35  ;;  %vm13064_vm0 = vcmask 261312  }
 0xbc0   : > { %v5095_v21 = vmin.f32 %v5063_v17, 0.0  ;;  %v1983_v51 = vpop.permute.xlu1 %1982  ;;  %v5042_v25 = vld [vmem:[#allocation2 + $0x48] sm:$0xff] }
 0xbc1   : > { %v1985_v24 = vpop.permute.xlu0 %1984  ;;  %v5043_v3 = vld [vmem:[#allocation2 + $0x50] sm:$0xff]  ;;  %2018 = vst.msk [vmem:[#allocation2 + $0x68] sm:$0xff] %vm13057_vm13, %v1983_v51  ;;  %v5064_v45 = vadd.f32 %v11458_v22, %v5042_v25  ;;  %vm13065_vm13 = vmmov %vm13064_vm0 }
 0xbc2   : > { %2019 = vst.msk [vmem:[#allocation2 + $0x70] sm:$0xff] %vm13058_vm3, %v1985_v24  ;;  %v5119_v41 = vmul.f32 1.442695, %v5095_v21  ;;  %v5065_v58 = vadd.f32 %v11458_v22, %v5043_v3  ;;  %vm13066_vm3 = vmmov %vm13064_vm0 }
 0xbc3   : > { %v5096_v6 = vmin.f32 %v5064_v45, 0.0 }
 0xbc4   : > { %7820 = vpow2.f32 %v5119_v41  ;;  %v1987_v63 = vpop.permute.xlu1 %1986  ;;  %v5044_v54 = vld [vmem:[#allocation2 + $0x58] sm:$0xff]  ;;  %v5097_v52 = vmin.f32 %v5065_v58, 0.0 }
 0xbc5   : > { %v2483_v5 = vpop.permute.xlu0 %2482  ;;  %2020 = vst.msk [vmem:[#allocation2 + $0x78] sm:$0xff] %vm13059_vm1, %v1987_v63  ;;  %v5121_v60 = vmul.f32 1.442695, %v5096_v6  ;;  %v5066_v1 = vadd.f32 %v11458_v22, %v5044_v54  ;;  %vm13067_vm1 = vmmov %vm13064_vm0 }
 0xbc6   : > { %2519 = vst.msk [vmem:[#allocation2 + $0x60] sm:$0xff] %vm13060_vm12, %v2483_v5  ;;  %v5123_v42 = vmul.f32 1.442695, %v5097_v52  ;;  %vm13068_vm12 = vcmask 326912  }
 0xbc7   : > { %7822 = vpow2.f32 %v5121_v60  ;;  %v5098_v23 = vmin.f32 %v5066_v1, 0.0 }
 0xbc8   : > { %v2485_v55 = vpop.permute.xlu1 %2484  ;;  %7824 = vpow2.f32 %v5123_v42 }
 0xbc9   : > { %v2487_v20 = vpop.permute.xlu0 %2486  ;;  %2520 = vst.msk [vmem:[#allocation2 + $0x68] sm:$0xff] %vm13061_vm9, %v2485_v55  ;;  %v5125_v19 = vmul.f32 1.442695, %v5098_v23  ;;  %vm5079_vm9 = vcmp.gt.f32.partialorder %v5063_v17, 0.0 }
 0xbca   : > { %2521 = vst.msk [vmem:[#allocation2 + $0x70] sm:$0xff] %vm13062_vm6, %v2487_v20  ;;  %vm5080_vm6 = vcmp.gt.f32.partialorder %v5064_v45, 0.0 }
 0xbcb   : > { %7826 = vpow2.f32 %v5125_v19 }
 0xbcc   : > { %v2489_v10 = vpop.permute.xlu1 %2488 }
 0xbcd   : > { %v2985_v14 = vpop.permute.xlu0 %2984  ;;  %2522 = vst.msk [vmem:[#allocation2 + $0x78] sm:$0xff] %vm13063_vm2, %v2489_v10  ;;  %vm13069_vm2 = vmmov %vm13068_vm12 }
 0xbce   : > { %3021 = vst.msk [vmem:[#allocation2 + $0x60] sm:$0xff] %vm13064_vm0, %v2985_v14  ;;  %vm13070_vm0 = vmmov %vm13069_vm2 }
 0xbd0   : > { %v2987_v32 = vpop.permute.xlu1 %2986 }
 0xbd1   : > { %v7821_v37 = vpop.eup %7820  ;;  %v2989_v48 = vpop.permute.xlu0 %2988  ;;  %3022 = vst.msk [vmem:[#allocation2 + $0x68] sm:$0xff] %vm13065_vm13, %v2987_v32  ;;  %vm13071_vm13 = vcmask 523264  }
 0xbd2   : > { %3023 = vst.msk [vmem:[#allocation2 + $0x70] sm:$0xff] %vm13066_vm3, %v2989_v48  ;;  %v6341_v39 = vadd.f32 -1.0, %v7821_v37  ;;  %vm5081_vm3 = vcmp.gt.f32.partialorder %v5065_v58, 0.0 }
 0xbd4   : > { %v7823_v33 = vpop.eup %7822  ;;  %v2991_v43 = vpop.permute.xlu1 %2990  ;;  %v5159_v13 = vsel %vm5079_vm9, %v5063_v17, %v6341_v39  ;;  %vm13073_vm9 = vcmask 392512  }
 0xbd5   : > { %v3487_v11 = vpop.permute.xlu0 %3486  ;;  %v7825_v40 = vpop.eup %7824  ;;  %3024 = vst.msk [vmem:[#allocation2 + $0x78] sm:$0xff] %vm13067_vm1, %v2991_v43  ;;  %v6342_v15 = vadd.f32 -1.0, %v7823_v33  ;;  %vm5082_vm1 = vcmp.gt.f32.partialorder %v5066_v1, 0.0 }
 0xbd6   : > { %3523 = vst.msk [vmem:[#allocation2 + $0x60] sm:$0xff] %vm13068_vm12, %v3487_v11  ;;  %v6343_v18 = vadd.f32 -1.0, %v7825_v40  ;;  %vm13072_vm12 = vmmov %vm13070_vm0 }
 0xbd7   : > { %v5160_v56 = vsel %vm5080_vm6, %v5064_v45, %v6342_v15  ;;  %vm13074_vm6 = vmmov %vm13071_vm13 }
 0xbd8   : > { %v7827_v28 = vpop.eup %7826  ;;  %v3489_v57 = vpop.permute.xlu1 %3488  ;;  %v5171_v34 = vpack.c.bf16 %v5160_v56, %v5159_v13  ;;  %v5161_v36 = vsel %vm5081_vm3, %v5065_v58, %v6343_v18  ;;  %vm13078_vm3 = vcmask 458112  }
 0xbd9   : > { %v3491_v62 = vpop.permute.xlu0 %3490  ;;  %3524 = vst.msk [vmem:[#allocation2 + $0x68] sm:$0xff] %vm13069_vm2, %v3489_v57  ;;  %v6344_v49 = vadd.f32 -1.0, %v7827_v28  ;;  %vm13075_vm2 = vmmov %vm13073_vm9 }
 0xbda   : > { %3525 = vst.msk [vmem:[#allocation2 + $0x70] sm:$0xff] %vm13070_vm0, %v3491_v62  ;;  %7028 = vmatprep.mubr.msk.bf16.mxu1 %vm13071_vm13, %v5171_v34  ;;  %vm13076_vm0 = vmmov %vm13075_vm2 }
 0xbdb   : > { %v5162_v38 = vsel %vm5082_vm1, %v5066_v1, %v6344_v49  ;;  %vm13077_vm13 = vmmov %vm13076_vm0 }
 0xbdc   : > { %v3493_v26 = vpop.permute.xlu1 %3492  ;;  %v5172_v61 = vpack.c.bf16 %v5162_v38, %v5161_v36  ;;  %vm13079_vm1 = vmmov %vm13078_vm3 }
 0xbdd   : > { %v3989_v9 = vpop.permute.xlu0 %3988  ;;  %3526 = vst.msk [vmem:[#allocation2 + $0x78] sm:$0xff] %vm13072_vm12, %v3493_v26  ;;  %vm13080_vm12 = vmmov %vm13079_vm1 }
 0xbde   : > { %4025 = vst.msk [vmem:[#allocation2 + $0x60] sm:$0xff] %vm13073_vm9, %v3989_v9  ;;  %7029 = vmatmul.mubr.msk.bf16.gmra.mxu1 %vm13074_vm6, %v5172_v61  ;;  %vm13081_vm9 = vmmov %vm13079_vm1  ;;  %vm13082_vm6 = vcmask 523712  }
 0xbe0   : > { %v3991_v46 = vpop.permute.xlu1 %3990 }
 0xbe1   : > { %v3993_v16 = vpop.permute.xlu0 %3992  ;;  %4026 = vst.msk [vmem:[#allocation2 + $0x68] sm:$0xff] %vm13075_vm2, %v3991_v46  ;;  %vm13083_vm2 = vmmov %vm13082_vm6 }
 0xbe2   : > { %4027 = vst.msk [vmem:[#allocation2 + $0x70] sm:$0xff] %vm13076_vm0, %v3993_v16  ;;  %vm13084_vm0 = vmmov %vm13083_vm2 }
 0xbe4   : > { %v3995_v4 = vpop.permute.xlu1 %3994 }
 0xbe5   : > { %v4491_v8 = vpop.permute.xlu0 %4490  ;;  %4028 = vst.msk [vmem:[#allocation2 + $0x78] sm:$0xff] %vm13077_vm13, %v3995_v4  ;;  %vm13085_vm13 = vmmov %vm13084_vm0 }
 0xbe6   : > { %4527 = vst.msk [vmem:[#allocation2 + $0x60] sm:$0xff] %vm13078_vm3, %v4491_v8 }
 0xbe8   : > { %v4493_v30 = vpop.permute.xlu1 %4492 }
 0xbe9   : > { %v4495_v0 = vpop.permute.xlu0 %4494  ;;  %4528 = vst.msk [vmem:[#allocation2 + $0x68] sm:$0xff] %vm13079_vm1, %v4493_v30 }
 0xbea   : > { %4529 = vst.msk [vmem:[#allocation2 + $0x70] sm:$0xff] %vm13080_vm12, %v4495_v0  ;;  %vm13086_vm12 = vcmask 523264  }
 0xbec   : > { %v4497_v31 = vpop.permute.xlu1 %4496 }
 0xbed   : > { %v4993_v7 = vpop.permute.xlu0 %4992  ;;  %4530 = vst.msk [vmem:[#allocation2 + $0x78] sm:$0xff] %vm13081_vm9, %v4497_v31 }
 0xbee   : > { %5029 = vst.msk [vmem:[#allocation2 + $0x60] sm:$0xff] %vm13082_vm6, %v4993_v7 }
 0xbf0   : > { %v4995_v12 = vpop.permute.xlu1 %4994 }
 0xbf1   : > { %v4997_v29 = vpop.permute.xlu0 %4996  ;;  %5030 = vst.msk [vmem:[#allocation2 + $0x68] sm:$0xff] %vm13083_vm2, %v4995_v12  ;;  %vm13087_vm2 = vmmov %vm13086_vm12 }
 0xbf2   : > { %5031 = vst.msk [vmem:[#allocation2 + $0x70] sm:$0xff] %vm13084_vm0, %v4997_v29  ;;  %vm5320_vm0 = vcmask 15360  }
 0xbf4   : > { %v4999_v27 = vpop.permute.xlu1 %4998 }
 0xbf5   : > { %v5045_v59 = vld [vmem:[#allocation2 + $0x60] sm:$0xff]  ;;  %5032 = vst.msk [vmem:[#allocation2 + $0x78] sm:$0xff] %vm13085_vm13, %v4999_v27 }
 0xbf6   : > { %v5067_v50 = vadd.f32 %v11458_v22, %v5045_v59 }
 0xbf8   : > { %v5099_v47 = vmin.f32 %v5067_v50, 0.0  ;;  %v5046_v2 = vld [vmem:[#allocation2 + $0x68] sm:$0xff]  ;;  %vm5083_vm3 = vcmp.gt.f32.partialorder %v5067_v50, 0.0 }
 0xbf9   : > { %v5047_v44 = vld [vmem:[#allocation2 + $0x70] sm:$0xff]  ;;  %v5068_v53 = vadd.f32 %v11458_v22, %v5046_v2 }
 0xbfa   : > { %v5127_v35 = vmul.f32 1.442695, %v5099_v47  ;;  %v5069_v17 = vadd.f32 %v11458_v22, %v5047_v44 }
 0xbfb   : > { %v5100_v21 = vmin.f32 %v5068_v53, 0.0  ;;  %vm5084_vm1 = vcmp.gt.f32.partialorder %v5068_v53, 0.0 }
 0xbfc   : > { %7828 = vpow2.f32 %v5127_v35  ;;  %v5048_v51 = vld [vmem:[#allocation2 + $0x78] sm:$0xff]  ;;  %v5101_v24 = vmin.f32 %v5069_v17, 0.0  ;;  %vm5085_vm9 = vcmp.gt.f32.partialorder %v5069_v17, 0.0 }
 0xbfd   : > { %v5129_v25 = vmul.f32 1.442695, %v5100_v21  ;;  %v5070_v3 = vadd.f32 %v11458_v22, %v5048_v51 }
 0xbfe   : > { %v5131_v45 = vmul.f32 1.442695, %v5101_v24 }
 0xbff   : > { %7830 = vpow2.f32 %v5129_v25  ;;  %v5102_v41 = vmin.f32 %v5070_v3, 0.0  ;;  %vm5086_vm6 = vcmp.gt.f32.partialorder %v5070_v3, 0.0 }
 0xc00   : > { %7832 = vpow2.f32 %v5131_v45 }
 0xc01   : > { %v5133_v58 = vmul.f32 1.442695, %v5102_v41 }
 0xc03   : > { %7834 = vpow2.f32 %v5133_v58 }
 0xc09   : > { %v7829_v6 = vpop.eup %7828 }
 0xc0a   : > { %v6345_v63 = vadd.f32 -1.0, %v7829_v6 }
 0xc0c   : > { %v7831_v5 = vpop.eup %7830  ;;  %v5163_v60 = vsel %vm5083_vm3, %v5067_v50, %v6345_v63 }
 0xc0d   : > { %v7833_v54 = vpop.eup %7832  ;;  %v6346_v52 = vadd.f32 -1.0, %v7831_v5 }
 0xc0e   : > { %v6347_v42 = vadd.f32 -1.0, %v7833_v54 }
 0xc0f   : > { %v5164_v1 = vsel %vm5084_vm1, %v5068_v53, %v6346_v52 }
 0xc10   : > { %v7835_v23 = vpop.eup %7834  ;;  %v5173_v55 = vpack.c.bf16 %v5164_v1, %v5163_v60  ;;  %v5165_v22 = vsel %vm5085_vm9, %v5069_v17, %v6347_v42 }
 0xc11   : > { %v6348_v20 = vadd.f32 -1.0, %v7835_v23 }
 0xc12   : > { %7032 = vmatprep.mubr.msk.bf16.mxu1 %vm13086_vm12, %v5173_v55 }
 0xc13   : > { %v5166_v19 = vsel %vm5086_vm6, %v5070_v3, %v6348_v20 }
 0xc14   : > { %v5174_v10 = vpack.c.bf16 %v5166_v19, %v5165_v22 }
 0xc16   : > { %7033 = vmatmul.mubr.msk.bf16.gmra.mxu1 %vm13087_vm2, %v5174_v10 }
 0xc2f   : > { %v7022_v14 = vpop.f32.mrf.mxu1 }
 0xc31   : > { %v5257_v37 = vpop.f32.mrf.mxu1 }
 0xc32   : > { %7038 = vmatprep.mubr.msk.f32.mxu0 %vm5320_vm0, %v5257_v37  ;;  %7064 = vmatprep.mubr.msk.f32.mxu1 %vm5320_vm0, %v5257_v37 }
 0xc33   : > { %v7023_v32 = vpop.f32.mrf.mxu1 }
 0xc34   : > { %v11633_v48 = vpack.c.bf16 %v7023_v32, %v7022_v14 }
 0xc35   : > { %v5260_v39 = vpop.f32.mrf.mxu1 }
 0xc36   : > { %v11635_v33 = vpack.c.bf16 %v5260_v39, %v5257_v37  ;;  %7039 = vmatmul.mubr.msk.f32.vlgmr.msra.gmra.mxu0 %vm5320_vm0, %v5260_v39  ;;  %7065 = vmatmul.mubr.msk.f32.vlgmr.msra.gmra.mxu1 %vm5320_vm0, %v5260_v39  ;;  %v13088_v37 = vld [vmem:[#allocation71_spill] sm:$0xff] }
 0xc37   : > { %7041 = vmatprep.mubr.msk.f32.mxu0 %vm5320_vm0, %v7022_v14  ;;  %7067 = vmatprep.mubr.msk.f32.mxu1 %vm5320_vm0, %v7022_v14 }
 0xc3a   : > { %7042 = vmatmul.mubr.msk.f32.gmra.mxu0 %vm5320_vm0, %v7023_v32  ;;  %7068 = vmatmul.mubr.msk.f32.gmra.mxu1 %vm5320_vm0, %v7023_v32  ;;  %v13089_v32 = vsub.s32 0, %v13088_v37 }
 0xc66   : > { %v7026_v43 = vpop.f32.mrf.mxu1 }
 0xc68   : > { %v5273_v11 = vpop.f32.mrf.mxu1 }
 0xc69   : > { %7044 = vmatprep.mubr.msk.f32.mxu0 %vm5320_vm0, %v5273_v11  ;;  %7070 = vmatprep.mubr.msk.f32.mxu1 %vm5320_vm0, %v5273_v11 }
 0xc6a   : > { %v7027_v40 = vpop.f32.mrf.mxu1 }
 0xc6b   : > { %v6017_v15 = vpack.c.bf16 %v7027_v40, %v7026_v43 }
 0xc6c   : > { %v5276_v13 = vpop.f32.mrf.mxu1 }
 0xc6d   : > { %v6016_v56 = vpack.c.bf16 %v5276_v13, %v5273_v11  ;;  %7045 = vmatmul.mubr.msk.f32.gmra.mxu0 %vm5320_vm0, %v5276_v13  ;;  %7071 = vmatmul.mubr.msk.f32.gmra.mxu1 %vm5320_vm0, %v5276_v13 }
 0xc6e   : > { %7047 = vmatprep.mubr.msk.f32.mxu0 %vm5320_vm0, %v7026_v43  ;;  %7073 = vmatprep.mubr.msk.f32.mxu1 %vm5320_vm0, %v7026_v43 }
 0xc71   : > { %7048 = vmatmul.mubr.msk.f32.gmra.mxu0 %vm5320_vm0, %v7027_v40  ;;  %7074 = vmatmul.mubr.msk.f32.gmra.mxu1 %vm5320_vm0, %v7027_v40 }
 0xc9e   : > { %v7030_v18 = vpop.f32.mrf.mxu1 }
 0xca0   : > { %v5289_v28 = vpop.f32.mrf.mxu1 }
 0xca1   : > { %7050 = vmatprep.mubr.msk.f32.mxu0 %vm5320_vm0, %v5289_v28  ;;  %7076 = vmatprep.mubr.msk.f32.mxu1 %vm5320_vm0, %v5289_v28 }
 0xca2   : > { %v7031_v57 = vpop.f32.mrf.mxu1 }
 0xca3   : > { %v6019_v46 = vpack.c.bf16 %v7031_v57, %v7030_v18 }
 0xca4   : > { %v5292_v62 = vpop.f32.mrf.mxu1 }
 0xca5   : > { %v6018_v34 = vpack.c.bf16 %v5292_v62, %v5289_v28  ;;  %7051 = vmatmul.mubr.msk.f32.gmra.mxu0 %vm5320_vm0, %v5292_v62  ;;  %7077 = vmatmul.mubr.msk.f32.gmra.mxu1 %vm5320_vm0, %v5292_v62 }
 0xca6   : > { %7053 = vmatprep.mubr.msk.f32.mxu0 %vm5320_vm0, %v7030_v18  ;;  %7079 = vmatprep.mubr.msk.f32.mxu1 %vm5320_vm0, %v7030_v18 }
 0xca9   : > { %7054 = vmatmul.mubr.msk.f32.gmra.mxu0 %vm5320_vm0, %v7031_v57  ;;  %7080 = vmatmul.mubr.msk.f32.gmra.mxu1 %vm5320_vm0, %v7031_v57 }
 0xcd6   : > { %v7034_v49 = vpop.f32.mrf.mxu1 }
 0xcd8   : > { %v5305_v36 = vpop.f32.mrf.mxu1 }
 0xcd9   : > { %7056 = vmatprep.mubr.msk.f32.mxu0 %vm5320_vm0, %v5305_v36  ;;  %7082 = vmatprep.mubr.msk.f32.mxu1 %vm5320_vm0, %v5305_v36 }
 0xcda   : > { %v7035_v38 = vpop.f32.mrf.mxu1 }
 0xcdb   : > { %v6021_v26 = vpack.c.bf16 %v7035_v38, %v7034_v49 }
 0xcdc   : > { %v5308_v9 = vpop.f32.mrf.mxu1 }
 0xcdd   : > { %v6020_v61 = vpack.c.bf16 %v5308_v9, %v5305_v36  ;;  %7057 = vmatmul.mubr.msk.f32.gmra.mxu0 %vm5320_vm0, %v5308_v9  ;;  %7083 = vmatmul.mubr.msk.f32.gmra.mxu1 %vm5320_vm0, %v5308_v9 }
 0xcde   : > { %7088 = vmatprep.subr.bf16.mxu0 %v6021_v26  ;;  %7059 = vmatprep.mubr.msk.f32.mxu0 %vm5320_vm0, %v7034_v49 }
 0xcdf   : > { %7085 = vmatprep.mubr.msk.f32.mxu1 %vm5320_vm0, %v7034_v49  ;;  %7089 = vmatpush3.bf16.msra.mxu0 %v6021_v26  ;;  %v13106_v49 = vld [vmem:[#allocation105_spill] sm:$0xff] }
 0xce0   : > { %7090 = vmatprep.subr.bf16.mxu0 %v6020_v61 }
 0xce1   : > { %7060 = vmatmul.mubr.msk.f32.gmra.mxu0 %vm5320_vm0, %v7035_v38  ;;  %7086 = vmatmul.mubr.msk.f32.gmra.mxu1 %vm5320_vm0, %v7035_v38 }
 0xce3   : > { %7091 = vmatpush3.bf16.msra.mxu0 %v6020_v61 }
 0xce4   : > { %7092 = vmatprep.subr.bf16.mxu0 %v6019_v46 }
 0xce7   : > { %7093 = vmatpush3.bf16.msra.mxu0 %v6019_v46  ;;  %v13108_v46 = vld [vmem:[#allocation103_spill] sm:$0xff] }
 0xce8   : > { %7094 = vmatprep.subr.bf16.mxu0 %v6018_v34 }
 0xceb   : > { %7095 = vmatpush3.bf16.msra.mxu0 %v6018_v34 }
 0xcec   : > { %7096 = vmatprep.subr.bf16.mxu0 %v6017_v15 }
 0xcef   : > { %7097 = vmatpush3.bf16.msra.mxu0 %v6017_v15 }
 0xcf0   : > { %7098 = vmatprep.subr.bf16.mxu0 %v6016_v56 }
 0xcf3   : > { %7099 = vmatpush3.bf16.msra.mxu0 %v6016_v56 }
 0xcf4   : > { %7100 = vmatprep.subr.bf16.mxu0 %v11633_v48 }
 0xcf6   : > { %v7066_v16 = vpop.f32.mrf.mxu1  ;;  %v7040_v35 = vpop.f32.mrf.mxu0 }
 0xcf7   : > { %7101 = vmatpush3.bf16.msra.mxu0 %v11633_v48  ;;  %5705 = vperm.xlu1 %7278, %v7066_v16  }
 0xcf8   : > { %v5587_v4 = vpop.f32.mrf.mxu1  ;;  %7102 = vmatprep.subr.bf16.mxu0 %v11635_v33  ;;  %v5439_v17 = vpop.f32.mrf.mxu0 }
 0xcf9   : > { %5700 = vperm.xlu0 %7277, %v5587_v4  }
 0xcfa   : > { %v7069_v8 = vpop.f32.mrf.mxu1  ;;  %v7043_v21 = vpop.f32.mrf.mxu0 }
 0xcfb   : > { %7103 = vmatpush3.bf16.msra.mxu0 %v11635_v33 }
 0xcfc   : > { %v5597_v30 = vpop.f32.mrf.mxu1  ;;  %v5449_v51 = vpop.f32.mrf.mxu0 }
 0xcfd   : > { %5715 = vperm.xlu0 %7277, %v7069_v8   ;;  %5710 = vperm.xlu1 %7278, %v5597_v30  }
 0xd2d   : > { %v7072_v0 = vpop.f32.mrf.mxu1  ;;  %v7046_v24 = vpop.f32.mrf.mxu0 }
 0xd2e   : > { %5725 = vperm.xlu0 %7277, %v7072_v0   ;;  %v13093_v0 = vld [vmem:[#allocation77_spill] sm:$0xff] }
 0xd2f   : > { %v5607_v31 = vpop.f32.mrf.mxu1  ;;  %v5459_v25 = vpop.f32.mrf.mxu0 }
 0xd30   : > { %5720 = vperm.xlu1 %7278, %v5607_v31  }
 0xd31   : > { %v7075_v7 = vpop.f32.mrf.mxu1  ;;  %v7049_v3 = vpop.f32.mrf.mxu0 }
 0xd32   : > { %5735 = vperm.xlu0 %7277, %v7075_v7  }
 0xd33   : > { %v5617_v12 = vpop.f32.mrf.mxu1  ;;  %v5469_v45 = vpop.f32.mrf.mxu0 }
 0xd34   : > { %5730 = vperm.xlu1 %7278, %v5617_v12  }
 0xd65   : > { %v7078_v29 = vpop.f32.mrf.mxu1  ;;  %v7052_v41 = vpop.f32.mrf.mxu0 }
 0xd66   : > { %5745 = vperm.xlu0 %7277, %v7078_v29  }
 0xd67   : > { %v5627_v27 = vpop.f32.mrf.mxu1  ;;  %v5479_v58 = vpop.f32.mrf.mxu0 }
 0xd68   : > { %5740 = vperm.xlu1 %7278, %v5627_v27  }
 0xd69   : > { %v7081_v59 = vpop.f32.mrf.mxu1  ;;  %v7055_v6 = vpop.f32.mrf.mxu0 }
 0xd6a   : > { %5755 = vperm.xlu0 %7277, %v7081_v59  }
 0xd6b   : > { %v5637_v50 = vpop.f32.mrf.mxu1  ;;  %v5489_v63 = vpop.f32.mrf.mxu0 }
 0xd6c   : > { %5750 = vperm.xlu1 %7278, %v5637_v50  }
 0xd72   : > { %v5706_v1 = vpop.permute.xlu1 %5705 }
 0xd74   : > { %v5701_v39 = vpop.permute.xlu0 %5700 }
 0xd78   : > { %v5711_v42 = vpop.permute.xlu1 %5710  ;;  %v5716_v56 = vpop.permute.xlu0 %5715 }
 0xd9d   : > { %v7084_v47 = vpop.f32.mrf.mxu1  ;;  %v7058_v5 = vpop.f32.mrf.mxu0 }
 0xd9e   : > { %5765 = vperm.xlu0 %7277, %v7084_v47  }
 0xd9f   : > { %v5647_v2 = vpop.f32.mrf.mxu1  ;;  %v5499_v54 = vpop.f32.mrf.mxu0 }
 0xda0   : > { %5760 = vperm.xlu1 %7278, %v5647_v2  }
 0xda1   : > { %v7087_v44 = vpop.f32.mrf.mxu1  ;;  %v7061_v52 = vpop.f32.mrf.mxu0 }
 0xda2   : > { %5775 = vperm.xlu0 %7277, %v7087_v44  }
 0xda3   : > { %v5657_v53 = vpop.f32.mrf.mxu1  ;;  %v5509_v60 = vpop.f32.mrf.mxu0 }
 0xda4   : > { %5770 = vperm.xlu1 %7278, %v5657_v53  }
 0xda9   : > { %v5726_v61 = vpop.permute.xlu0 %5725 }
 0xdab   : > { %v5721_v23 = vpop.permute.xlu1 %5720 }
 0xdad   : > { %v5736_v27 = vpop.permute.xlu0 %5735 }
 0xdaf   : > { %v5731_v55 = vpop.permute.xlu1 %5730 }
 0xdcd   : > { %5666 = vxpose.xlu1.b32.start [1/16] (narrow) %v5439_v17, 8 }
 0xdd1   : > { %5667 = vxpose.xlu1.b32.cont [2/16] (narrow) %v7040_v35, 8 }
 0xdd5   : > { %5668 = vxpose.xlu1.b32.cont [3/16] (narrow) %v5449_v51, 8 }
 0xdd9   : > { %5669 = vxpose.xlu1.b32.cont [4/16] (narrow) %v7043_v21, 8 }
 0xddd   : > { %5670 = vxpose.xlu1.b32.cont [5/16] (narrow) %v5459_v25, 8 }
 0xde1   : > { %5671 = vxpose.xlu1.b32.cont [6/16] (narrow) %v7046_v24, 8  ;;  %v5746_v24 = vpop.permute.xlu0 %5745 }
 0xde3   : > { %v5741_v20 = vpop.permute.xlu1 %5740 }
 0xde5   : > { %5672 = vxpose.xlu1.b32.cont [7/16] (narrow) %v5469_v45, 8 }
 0xde7   : > { %v11671_v22 = vpop.permute.xlu1 %5750 }
 0xde9   : > { %5673 = vxpose.xlu1.b32.cont [8/16] (narrow) %v7049_v3, 8 }
 0xded   : > { %5674 = vxpose.xlu1.b32.cont [9/16] (narrow) %v5479_v58, 8 }
 0xdf1   : > { %5675 = vxpose.xlu1.b32.cont [10/16] (narrow) %v7052_v41, 8 }
 0xdf5   : > { %5676 = vxpose.xlu1.b32.cont [11/16] (narrow) %v5489_v63, 8 }
 0xdf9   : > { %5677 = vxpose.xlu1.b32.cont [12/16] (narrow) %v7055_v6, 8  ;;  %v13098_v6 = vld [vmem:[#allocation87_spill] sm:$0xff] }
 0xdfd   : > { %5678 = vxpose.xlu1.b32.cont [13/16] (narrow) %v5499_v54, 8 }
 0xe01   : > { %5679 = vxpose.xlu1.b32.cont [14/16] (narrow) %v7058_v5, 8 }
 0xe05   : > { %5680 = vxpose.xlu1.b32.cont [15/16] (narrow) %v5509_v60, 8  ;;  %v5756_v60 = vpop.permute.xlu0 %5755 }
 0xe09   : > { %5681 = vxpose.xlu1.b32.end [16/16] (narrow) %v7061_v52, 8 }
 0xe1b   : > { %v11673_v19 = vpop.permute.xlu1 %5760 }
 0xe1f   : > { %v11675_v10 = vpop.permute.xlu1 %5770 }
 0xe49   : > { %v5682_v14 = vpop.trf.xlu1 }
 0xe4a   : > { %v11679_v48 = vrot.slane %v5682_v14, %v13089_v32 }
 0xe4c   : > { %v5782_v33 = vadd.f32 %v11679_v48, %v5701_v39  ;;  %v5783_v43 = vadd.f32 %v11679_v48, %v5706_v1  ;;  %v5784_v15 = vadd.f32 %v11679_v48, %v5711_v42  ;;  %v5785_v34 = vadd.f32 %v11679_v48, %v5716_v56  ;;  %v13104_v56 = vld [vmem:[#allocation107_spill] sm:$0xff] }
 0xe4d   : > { %v5786_v9 = vadd.f32 %v11679_v48, %v5721_v23  ;;  %v5787_v30 = vadd.f32 %v11679_v48, %v5726_v61  ;;  %v5788_v29 = vadd.f32 %v11679_v48, %v5731_v55  ;;  %v5789_v44 = vadd.f32 %v11679_v48, %v5736_v27 }
 0xe4e   : > { %vm5798_vm13 = vcmp.gt.f32.partialorder %v5782_v33, 0.0  ;;  %v5814_v11 = vmul.f32 0.2, %v5782_v33  ;;  %v5815_v40 = vmul.f32 0.2, %v5783_v43  ;;  %vm5799_vm3 = vcmp.gt.f32.partialorder %v5783_v43, 0.0 }
 0xe4f   : > { %v5816_v62 = vmul.f32 0.2, %v5784_v15  ;;  %vm5800_vm1 = vcmp.gt.f32.partialorder %v5784_v15, 0.0  ;;  %v5817_v26 = vmul.f32 0.2, %v5785_v34  ;;  %vm5801_vm12 = vcmp.gt.f32.partialorder %v5785_v34, 0.0 }
 0xe50   : > { %v5830_v13 = vsel %vm5798_vm13, %v5782_v33, %v5814_v11  ;;  %v5831_v57 = vsel %vm5799_vm3, %v5783_v43, %v5815_v40  ;;  %v5818_v8 = vmul.f32 0.2, %v5786_v9  ;;  %v5819_v12 = vmul.f32 0.2, %v5787_v30  ;;  %v5766_v33 = vpop.permute.xlu0 %5765  ;;  %v13102_v43 = vld [vmem:[#allocation99_spill] sm:$0xff] }
 0xe51   : > { %v11686_v28 = vsel %vm8581_vm8, %v5830_v13, -1e+30  ;;  %v11692_v36 = vsel %vm8577_vm7, %v5831_v57, -1e+30  ;;  %v5832_v38 = vsel %vm5800_vm1, %v5784_v15, %v5816_v62  ;;  %v5833_v4 = vsel %vm5801_vm12, %v5785_v34, %v5817_v26 }
 0xe52   : > { %5862 = vmax.xlane.f32.xlu0 %v11686_v28  ;;  %v11698_v16 = vsel %vm8647_vm11, %v5832_v38, -1e+30  ;;  %vm5802_vm7 = vcmp.gt.f32.partialorder %v5786_v9, 0.0  ;;  %vm13094_vm8 = vnez %v13093_v0  ;;  %vm5803_vm9 = vcmp.gt.f32.partialorder %v5787_v30, 0.0 }
 0xe53   : > { %v11704_v31 = vsel %vm13094_vm8, %v5833_v4, -1e+30  ;;  %v5834_v7 = vsel %vm5802_vm7, %v5786_v9, %v5818_v8  ;;  %v5835_v47 = vsel %vm5803_vm9, %v5787_v30, %v5819_v12  ;;  %v5820_v2 = vmul.f32 0.2, %v5788_v29  ;;  %v13110_v30 = vld [vmem:[#allocation117_spill] sm:$0xff]  ;;  %v13112_v12 = vld [vmem:[#allocation108_spill] sm:$0xff] }
 0xe54   : > { %v11710_v50 = vsel %vm8667_vm14, %v5834_v7, -1e+30  ;;  %vm5804_vm11 = vcmp.gt.f32.partialorder %v5788_v29, 0.0  ;;  %v11716_v35 = vsel %vm8639_vm5, %v5835_v47, -1e+30  ;;  %v5790_v51 = vadd.f32 %v11679_v48, %v5741_v20  ;;  %v5776_v34 = vpop.permute.xlu0 %5775 }
 0xe55   : > { %v5836_v17 = vsel %vm5804_vm11, %v5788_v29, %v5820_v2  ;;  %v5821_v21 = vmul.f32 0.2, %v5789_v44  ;;  %vm5805_vm6 = vcmp.gt.f32.partialorder %v5789_v44, 0.0  ;;  %v5791_v58 = vadd.f32 %v11679_v48, %v5746_v24 }
 0xe56   : > { %5864 = vmax.xlane.f32.xlu0 %v11692_v36  ;;  %v11722_v3 = vsel %vm12481_vm4, %v5836_v17, -1e+30  ;;  %v5822_v41 = vmul.f32 0.2, %v5790_v51  ;;  %vm5806_vm5 = vcmp.gt.f32.partialorder %v5790_v51, 0.0  ;;  %vm13099_vm14 = vnez %v13098_v6 }
 0xe57   : > { %v5837_v45 = vsel %vm5805_vm6, %v5789_v44, %v5821_v21  ;;  %v5823_v54 = vmul.f32 0.2, %v5791_v58  ;;  %v5792_v52 = vadd.f32 %v11679_v48, %v11671_v22  ;;  %vm5807_vm4 = vcmp.gt.f32.partialorder %v5791_v58, 0.0 }
 0xe58   : > { %v11728_v63 = vsel %vm13099_vm14, %v5837_v45, -1e+30  ;;  %v5838_v5 = vsel %vm5806_vm5, %v5790_v51, %v5822_v41  ;;  %v5793_v20 = vadd.f32 %v11679_v48, %v5756_v60  ;;  %v5794_v39 = vadd.f32 %v11679_v48, %v11673_v19 }
 0xe59   : > { %v11735_v42 = vsel %vm12350_vm10, %v5838_v5, -1e+30  ;;  %v5839_v23 = vsel %vm5807_vm4, %v5791_v58, %v5823_v54  ;;  %v5824_v55 = vmul.f32 0.2, %v5792_v52  ;;  %vm5808_vm2 = vcmp.gt.f32.partialorder %v5792_v52, 0.0 }
 0xe5a   : > { %5866 = vmax.xlane.f32.xlu0 %v11698_v16  ;;  %v11741_v37 = vsel %vm12344_vm15, %v5839_v23, -1e+30  ;;  %v5825_v32 = vmul.f32 0.2, %v5793_v20  ;;  %vm5809_vm10 = vcmp.gt.f32.partialorder %v5793_v20, 0.0  ;;  %vm13103_vm13 = vnez %v13102_v43 }
 0xe5b   : > { %v5840_v22 = vsel %vm5808_vm2, %v5792_v52, %v5824_v55  ;;  %v5826_v15 = vmul.f32 0.2, %v5794_v39  ;;  %v5795_v13 = vadd.f32 %v11679_v48, %v5766_v33  ;;  %vm5810_vm15 = vcmp.gt.f32.partialorder %v5794_v39, 0.0 }
 0xe5c   : > { %v11748_v11 = vsel %vm13103_vm13, %v5840_v22, -1e+30  ;;  %v5841_v40 = vsel %vm5809_vm10, %v5793_v20, %v5825_v32  ;;  %vm13105_vm3 = vnez %v13104_v56  ;;  %v5796_v62 = vadd.f32 %v11679_v48, %v11675_v10 }
 0xe5d   : > { %v11754_v18 = vsel %vm13105_vm3, %v5841_v40, -1e+30  ;;  %v5842_v19 = vsel %vm5810_vm15, %v5794_v39, %v5826_v15  ;;  %v5827_v57 = vmul.f32 0.2, %v5795_v13  ;;  %vm5811_vm1 = vcmp.gt.f32.partialorder %v5795_v13, 0.0 }
 0xe5e   : > { %5868 = vmax.xlane.f32.xlu0 %v11704_v31  ;;  %vm13107_vm12 = vnez %v13106_v49  ;;  %v5828_v9 = vmul.f32 0.2, %v5796_v62  ;;  %v5797_v61 = vadd.f32 %v11679_v48, %v5776_v34  ;;  %vm5812_vm7 = vcmp.gt.f32.partialorder %v5796_v62, 0.0 }
 0xe5f   : > { %v11761_v38 = vsel %vm13107_vm12, %v5842_v19, -1e+30  ;;  %v5843_v26 = vsel %vm5811_vm1, %v5795_v13, %v5827_v57  ;;  %vm13109_vm8 = vnez %v13108_v46  ;;  %vm13111_vm11 = vnez %v13110_v30 }
 0xe60   : > { %v11767_v4 = vsel %vm13109_vm8, %v5843_v26, -1e+30  ;;  %v5844_v10 = vsel %vm5812_vm7, %v5796_v62, %v5828_v9  ;;  %v5829_v8 = vmul.f32 0.2, %v5797_v61  ;;  %vm5813_vm9 = vcmp.gt.f32.partialorder %v5797_v61, 0.0 }
 0xe61   : > { %v11772_v0 = vsel %vm13111_vm11, %v5844_v10, -1e+30  ;;  %vm13113_vm6 = vnez %v13112_v12  ;;  %vm7939_vm5 = vmmov 0  }
 0xe62   : > { %5870 = vmax.xlane.f32.xlu0 %v11710_v50  ;;  %v5845_v7 = vsel %vm5813_vm9, %v5797_v61, %v5829_v8 }
 0xe63   : > { %v11777_v48 = vsel %vm13113_vm6, %v5845_v7, -1e+30 }
 0xe66   : > { %5872 = vmax.xlane.f32.xlu0 %v11716_v35 }
 0xe6a   : > { %5874 = vmax.xlane.f32.xlu0 %v11722_v3 }
 0xe6e   : > { %5876 = vmax.xlane.f32.xlu0 %v11728_v63 }
 0xe72   : > { %5878 = vmax.xlane.f32.xlu0 %v11735_v42 }
 0xe76   : > { %5880 = vmax.xlane.f32.xlu0 %v11741_v37 }
 0xe7a   : > { %5882 = vmax.xlane.f32.xlu0 %v11748_v11 }
 0xe7e   : > { %5884 = vmax.xlane.f32.xlu0 %v11754_v18 }
 0xe82   : > { %5886 = vmax.xlane.f32.xlu0 %v11761_v38 }
 0xe86   : > { %5888 = vmax.xlane.f32.xlu0 %v11767_v4 }
 0xe8a   : > { %5890 = vmax.xlane.f32.xlu0 %v11772_v0 }
 0xe8e   : > { %5892 = vmax.xlane.f32.xlu0 %v11777_v48 }
 0xedb   : > { %v5863_v29 = vpop.xlane.xlu0 %5862 }
 0xedc   : > { %v5894_v27 = vsub.f32 %v11686_v28, %v5863_v29 }
 0xede   : > { %v5910_v59 = vmul.f32 1.442695, %v5894_v27 }
 0xedf   : > { %v5865_v47 = vpop.xlane.xlu0 %5864 }
 0xee0   : > { %7836 = vpow2.f32 %v5910_v59  ;;  %v5895_v2 = vsub.f32 %v11692_v36, %v5865_v47 }
 0xee2   : > { %v5912_v44 = vmul.f32 1.442695, %v5895_v2 }
 0xee3   : > { %v5867_v53 = vpop.xlane.xlu0 %5866 }
 0xee4   : > { %7838 = vpow2.f32 %v5912_v44  ;;  %v5896_v17 = vsub.f32 %v11698_v16, %v5867_v53 }
 0xee6   : > { %v5914_v21 = vmul.f32 1.442695, %v5896_v17 }
 0xee7   : > { %v5869_v51 = vpop.xlane.xlu0 %5868 }
 0xee8   : > { %7840 = vpow2.f32 %v5914_v21  ;;  %v5897_v24 = vsub.f32 %v11704_v31, %v5869_v51 }
 0xeea   : > { %v5916_v25 = vmul.f32 1.442695, %v5897_v24 }
 0xeeb   : > { %v5871_v45 = vpop.xlane.xlu0 %5870 }
 0xeec   : > { %7842 = vpow2.f32 %v5916_v25  ;;  %v5898_v28 = vsub.f32 %v11710_v50, %v5871_v45 }
 0xeed   : > { %v11785_v41 = vpop.eup %7836 }
 0xeee   : > { %v5918_v58 = vmul.f32 1.442695, %v5898_v28  ;;  %5942 = vadd.xlane.f32.xlu0 %v11785_v41 }
 0xeef   : > { %v5873_v36 = vpop.xlane.xlu0 %5872 }
 0xef0   : > { %7844 = vpow2.f32 %v5918_v58  ;;  %v5899_v6 = vsub.f32 %v11716_v35, %v5873_v36 }
 0xef1   : > { %v11789_v16 = vpop.eup %7838 }
 0xef2   : > { %v5920_v5 = vmul.f32 1.442695, %v5899_v6  ;;  %5944 = vadd.xlane.f32.xlu0 %v11789_v16 }
 0xef3   : > { %v5875_v31 = vpop.xlane.xlu0 %5874 }
 0xef4   : > { %7846 = vpow2.f32 %v5920_v5  ;;  %v5900_v54 = vsub.f32 %v11722_v3, %v5875_v31 }
 0xef5   : > { %v11793_v52 = vpop.eup %7840 }
 0xef6   : > { %v5922_v50 = vmul.f32 1.442695, %v5900_v54  ;;  %5946 = vadd.xlane.f32.xlu1 %v11793_v52 }
 0xef7   : > { %v5877_v60 = vpop.xlane.xlu0 %5876 }
 0xef8   : > { %7848 = vpow2.f32 %v5922_v50  ;;  %v5901_v1 = vsub.f32 %v11728_v63, %v5877_v60 }
 0xef9   : > { %v11797_v23 = vpop.eup %7842 }
 0xefa   : > { %v5924_v35 = vmul.f32 1.442695, %v5901_v1  ;;  %5948 = vadd.xlane.f32.xlu0 %v11797_v23 }
 0xefb   : > { %v5879_v55 = vpop.xlane.xlu0 %5878 }
 0xefc   : > { %7850 = vpow2.f32 %v5924_v35  ;;  %v5902_v20 = vsub.f32 %v11735_v42, %v5879_v55 }
 0xefd   : > { %v11801_v14 = vpop.eup %7844 }
 0xefe   : > { %v5926_v3 = vmul.f32 1.442695, %v5902_v20  ;;  %5950 = vadd.xlane.f32.xlu0 %v11801_v14 }
 0xeff   : > { %v5881_v22 = vpop.xlane.xlu0 %5880 }
 0xf00   : > { %7852 = vpow2.f32 %v5926_v3  ;;  %v5903_v32 = vsub.f32 %v11741_v37, %v5881_v22 }
 0xf01   : > { %v11805_v39 = vpop.eup %7846 }
 0xf02   : > { %v5928_v63 = vmul.f32 1.442695, %v5903_v32  ;;  %5952 = vadd.xlane.f32.xlu0 %v11805_v39 }
 0xf03   : > { %v5883_v33 = vpop.xlane.xlu0 %5882 }
 0xf04   : > { %7854 = vpow2.f32 %v5928_v63  ;;  %v5904_v43 = vsub.f32 %v11748_v11, %v5883_v33 }
 0xf05   : > { %v11809_v40 = vpop.eup %7848 }
 0xf06   : > { %v5930_v42 = vmul.f32 1.442695, %v5904_v43  ;;  %5954 = vadd.xlane.f32.xlu0 %v11809_v40 }
 0xf07   : > { %v5885_v15 = vpop.xlane.xlu0 %5884 }
 0xf08   : > { %7856 = vpow2.f32 %v5930_v42  ;;  %v5905_v13 = vsub.f32 %v11754_v18, %v5885_v15 }
 0xf09   : > { %v11813_v56 = vpop.eup %7850 }
 0xf0a   : > { %v5932_v37 = vmul.f32 1.442695, %v5905_v13  ;;  %5956 = vadd.xlane.f32.xlu0 %v11813_v56 }
 0xf0b   : > { %v5887_v19 = vpop.xlane.xlu0 %5886 }
 0xf0c   : > { %7858 = vpow2.f32 %v5932_v37  ;;  %v5906_v57 = vsub.f32 %v11761_v38, %v5887_v19 }
 0xf0d   : > { %v11817_v62 = vpop.eup %7852 }
 0xf0e   : > { %v5934_v11 = vmul.f32 1.442695, %v5906_v57  ;;  %5958 = vadd.xlane.f32.xlu0 %v11817_v62 }
 0xf0f   : > { %v5889_v34 = vpop.xlane.xlu0 %5888 }
 0xf10   : > { %7860 = vpow2.f32 %v5934_v11  ;;  %v5907_v49 = vsub.f32 %v11767_v4, %v5889_v34 }
 0xf11   : > { %v11821_v26 = vpop.eup %7854 }
 0xf12   : > { %v5936_v18 = vmul.f32 1.442695, %v5907_v49  ;;  %5960 = vadd.xlane.f32.xlu0 %v11821_v26 }
 0xf13   : > { %v5891_v9 = vpop.xlane.xlu0 %5890 }
 0xf14   : > { %7862 = vpow2.f32 %v5936_v18  ;;  %v5908_v61 = vsub.f32 %v11772_v0, %v5891_v9 }
 0xf15   : > { %v11825_v46 = vpop.eup %7856 }
 0xf16   : > { %v5938_v38 = vmul.f32 1.442695, %v5908_v61  ;;  %5962 = vadd.xlane.f32.xlu0 %v11825_v46 }
 0xf17   : > { %v5893_v10 = vpop.xlane.xlu0 %5892 }
 0xf18   : > { %7864 = vpow2.f32 %v5938_v38  ;;  %v5909_v8 = vsub.f32 %v11777_v48, %v5893_v10  ;;  %v7938_v10 = vmov 0.0  }
 0xf19   : > { %v11829_v30 = vpop.eup %7858  ;;  %7120 = vmatprep.subr.bf16.mxu1 %v7938_v10  ;;  %7136 = vmatprep.mubr.msk.bf16.mxu1 %vm7939_vm5, %v7938_v10 }
 0xf1a   : > { %v5940_v4 = vmul.f32 1.442695, %v5909_v8  ;;  %5964 = vadd.xlane.f32.xlu0 %v11829_v30 }
 0xf1c   : > { %7866 = vpow2.f32 %v5940_v4 }
 0xf1d   : > { %v11832_v7 = vpop.eup %7860 }
 0xf1e   : > { %5966 = vadd.xlane.f32.xlu0 %v11832_v7 }
 0xf21   : > { %v11835_v0 = vpop.eup %7862 }
 0xf22   : > { %5968 = vadd.xlane.f32.xlu1 %v11835_v0 }
 0xf25   : > { %v11838_v12 = vpop.eup %7864 }
 0xf26   : > { %5970 = vadd.xlane.f32.xlu0 %v11838_v12 }
 0xf29   : > { %v11841_v29 = vpop.eup %7866 }
 0xf2a   : > { %5972 = vadd.xlane.f32.xlu1 %v11841_v29 }
 0xf77   : > { %v5943_v48 = vpop.xlane.xlu0 %5942 }
 0xf78   : > { %7868 = vrcp.f32 %v5943_v48 }
 0xf7b   : > { %v5945_v27 = vpop.xlane.xlu0 %5944 }
 0xf7c   : > { %7870 = vrcp.f32 %v5945_v27 }
 0xf7f   : > { %v5947_v59 = vpop.xlane.xlu1 %5946 }
 0xf80   : > { %7872 = vrcp.f32 %v5947_v59 }
 0xf83   : > { %v5949_v47 = vpop.xlane.xlu0 %5948 }
 0xf84   : > { %7874 = vrcp.f32 %v5949_v47 }
 0xf85   : > { %v7869_v2 = vpop.eup %7868 }
 0xf86   : > { %v5990_v17 = vmul.f32 %v7869_v2, %v11785_v41 }
 0xf87   : > { %v5951_v44 = vpop.xlane.xlu0 %5950 }
 0xf88   : > { %7876 = vrcp.f32 %v5951_v44 }
 0xf89   : > { %v7871_v53 = vpop.eup %7870 }
 0xf8a   : > { %v5991_v21 = vmul.f32 %v7871_v53, %v11789_v16 }
 0xf8b   : > { %v5953_v51 = vpop.xlane.xlu0 %5952 }
 0xf8c   : > { %7878 = vrcp.f32 %v5953_v51  ;;  %v6006_v24 = vpack.c.bf16 %v5991_v21, %v5990_v17  ;;  %v6395_v17 = vld [vmem:[%s11889_s10] ss:$0 sm:$0xff] }
 0xf8d   : > { %v7873_v25 = vpop.eup %7872 }
 0xf8e   : > { %7104 = vmatprep.mubr.bf16.mxu0 %v6006_v24  ;;  %v5992_v58 = vmul.f32 %v7873_v25, %v11793_v52 }
 0xf8f   : > { %v5955_v45 = vpop.xlane.xlu0 %5954 }
 0xf90   : > { %7880 = vrcp.f32 %v5955_v45 }
 0xf91   : > { %v7875_v28 = vpop.eup %7874 }
 0xf92   : > { %v5993_v36 = vmul.f32 %v7875_v28, %v11797_v23 }
 0xf93   : > { %v5957_v6 = vpop.xlane.xlu0 %5956 }
 0xf94   : > { %7882 = vrcp.f32 %v5957_v6  ;;  %v6007_v5 = vpack.c.bf16 %v5993_v36, %v5992_v58 }
 0xf95   : > { %v7877_v31 = vpop.eup %7876 }
 0xf96   : > { %7105 = vmatmul.mubr.bf16.vlgmr.msra.gmra.mxu0 %v6007_v5  ;;  %v5994_v16 = vmul.f32 %v7877_v31, %v11801_v14 }
 0xf97   : > { %v5959_v41 = vpop.xlane.xlu0 %5958 }
 0xf98   : > { %7884 = vrcp.f32 %v5959_v41 }
 0xf99   : > { %v7879_v54 = vpop.eup %7878 }
 0xf9a   : > { %v5995_v50 = vmul.f32 %v7879_v54, %v11805_v39 }
 0xf9b   : > { %v5961_v60 = vpop.xlane.xlu0 %5960 }
 0xf9c   : > { %7886 = vrcp.f32 %v5961_v60  ;;  %v6008_v1 = vpack.c.bf16 %v5995_v50, %v5994_v16 }
 0xf9d   : > { %v7881_v35 = vpop.eup %7880 }
 0xf9e   : > { %7108 = vmatprep.mubr.bf16.mxu0 %v6008_v1  ;;  %v5996_v23 = vmul.f32 %v7881_v35, %v11809_v40 }
 0xf9f   : > { %v5963_v52 = vpop.xlane.xlu0 %5962 }
 0xfa0   : > { %7888 = vrcp.f32 %v5963_v52 }
 0xfa1   : > { %v7883_v55 = vpop.eup %7882 }
 0xfa2   : > { %v5997_v20 = vmul.f32 %v7883_v55, %v11813_v56 }
 0xfa3   : > { %v5965_v3 = vpop.xlane.xlu0 %5964 }
 0xfa4   : > { %7890 = vrcp.f32 %v5965_v3  ;;  %v6009_v22 = vpack.c.bf16 %v5997_v20, %v5996_v23 }
 0xfa5   : > { %v7885_v32 = vpop.eup %7884 }
 0xfa6   : > { %7109 = vmatmul.mubr.bf16.gmra.mxu0 %v6009_v22  ;;  %v5998_v39 = vmul.f32 %v7885_v32, %v11817_v62 }
 0xfa7   : > { %v5967_v14 = vpop.xlane.xlu0 %5966 }
 0xfa8   : > { %7892 = vrcp.f32 %v5967_v14 }
 0xfa9   : > { %v7887_v63 = vpop.eup %7886 }
 0xfaa   : > { %v5999_v33 = vmul.f32 %v7887_v63, %v11821_v26  ;;  %v7291_v63 = vld [vmem:[%s11881_s2] sm:$0xff]  }
 0xfab   : > { %v5969_v43 = vpop.xlane.xlu1 %5968 }
 0xfac   : > { %7894 = vrcp.f32 %v5969_v43  ;;  %v6010_v42 = vpack.c.bf16 %v5999_v33, %v5998_v39 }
 0xfad   : > { %v7889_v15 = vpop.eup %7888 }
 0xfae   : > { %7112 = vmatprep.mubr.bf16.mxu0 %v6010_v42  ;;  %v6000_v56 = vmul.f32 %v7889_v15, %v11825_v46 }
 0xfaf   : > { %v5971_v40 = vpop.xlane.xlu0 %5970 }
 0xfb0   : > { %7896 = vrcp.f32 %v5971_v40 }
 0xfb1   : > { %v7891_v13 = vpop.eup %7890 }
 0xfb2   : > { %v6001_v37 = vmul.f32 %v7891_v13, %v11829_v30 }
 0xfb3   : > { %v5973_v19 = vpop.xlane.xlu1 %5972 }
 0xfb4   : > { %7898 = vrcp.f32 %v5973_v19  ;;  %v6011_v57 = vpack.c.bf16 %v6001_v37, %v6000_v56 }
 0xfb5   : > { %v7893_v11 = vpop.eup %7892 }
 0xfb6   : > { %7113 = vmatmul.mubr.bf16.gmra.mxu0 %v6011_v57  ;;  %v6002_v34 = vmul.f32 %v7893_v11, %v11832_v7 }
 0xfb9   : > { %v7895_v62 = vpop.eup %7894 }
 0xfba   : > { %v6003_v49 = vmul.f32 %v7895_v62, %v11835_v0 }
 0xfbc   : > { %v6012_v26 = vpack.c.bf16 %v6003_v49, %v6002_v34 }
 0xfbd   : > { %v7897_v18 = vpop.eup %7896 }
 0xfbe   : > { %7116 = vmatprep.mubr.bf16.mxu0 %v6012_v26  ;;  %v6004_v61 = vmul.f32 %v7897_v18, %v11838_v12 }
 0xfc1   : > { %v7899_v9 = vpop.eup %7898 }
 0xfc2   : > { %v6005_v46 = vmul.f32 %v7899_v9, %v11841_v29 }
 0xfc4   : > { %v6013_v38 = vpack.c.bf16 %v6005_v46, %v6004_v61 }
 0xfc6   : > { %7117 = vmatmul.mubr.bf16.gmra.mxu0 %v6013_v38 }
0x1056   : > { %v7106_v8 = vpop.f32.mrf.mxu0 }
0x1057   : > { %v6071_v20 = vadd.f32 %v7106_v8, %v6395_v17 }
0x1058   : > { %v6062_v30 = vpop.f32.mrf.mxu0 }
0x1059   : > { %v6063_v32 = vadd.f32 %v6395_v17, %v6062_v30 }
0x105a   : > { %v7107_v4 = vpop.f32.mrf.mxu0 }
0x105b   : > { %v6074_v55 = vadd.f32 %v7107_v4, %v6395_v17 }
0x105c   : > { %v6065_v7 = vpop.f32.mrf.mxu0 }
0x105d   : > { %v6126_v3 = vpack.c.bf16 %v6074_v55, %v6071_v20  ;;  %v6066_v22 = vadd.f32 %v6395_v17, %v6065_v7 }
0x105f   : > { %v6125_v14 = vpack.c.bf16 %v6066_v22, %v6063_v32 }
0x1066   : > { %v7110_v48 = vpop.f32.mrf.mxu0 }
0x1067   : > { %v6087_v60 = vadd.f32 %v7110_v48, %v6395_v17 }
0x1068   : > { %v6078_v0 = vpop.f32.mrf.mxu0 }
0x1069   : > { %v6079_v52 = vadd.f32 %v6395_v17, %v6078_v0 }
0x106a   : > { %v7111_v27 = vpop.f32.mrf.mxu0 }
0x106b   : > { %v6090_v16 = vadd.f32 %v7111_v27, %v6395_v17 }
0x106c   : > { %v6081_v59 = vpop.f32.mrf.mxu0 }
0x106d   : > { %v6128_v1 = vpack.c.bf16 %v6090_v16, %v6087_v60  ;;  %v6082_v35 = vadd.f32 %v6395_v17, %v6081_v59 }
0x106f   : > { %v6127_v23 = vpack.c.bf16 %v6082_v35, %v6079_v52 }
0x1076   : > { %v7114_v47 = vpop.f32.mrf.mxu0 }
0x1077   : > { %v6103_v5 = vadd.f32 %v7114_v47, %v6395_v17 }
0x1078   : > { %v6094_v2 = vpop.f32.mrf.mxu0 }
0x1079   : > { %v6095_v54 = vadd.f32 %v6395_v17, %v6094_v2 }
0x107a   : > { %v7115_v44 = vpop.f32.mrf.mxu0 }
0x107b   : > { %v6106_v36 = vadd.f32 %v7115_v44, %v6395_v17 }
0x107c   : > { %v6097_v12 = vpop.f32.mrf.mxu0 }
0x107d   : > { %v6130_v31 = vpack.c.bf16 %v6106_v36, %v6103_v5  ;;  %v6098_v41 = vadd.f32 %v6395_v17, %v6097_v12 }
0x107f   : > { %v6129_v50 = vpack.c.bf16 %v6098_v41, %v6095_v54 }
0x1086   : > { %v7118_v53 = vpop.f32.mrf.mxu0 }
0x1087   : > { %v6119_v51 = vadd.f32 %v7118_v53, %v6395_v17 }
0x1088   : > { %v6110_v29 = vpop.f32.mrf.mxu0 }
0x1089   : > { %v6111_v58 = vadd.f32 %v6395_v17, %v6110_v29 }
0x108a   : > { %v7119_v21 = vpop.f32.mrf.mxu0 }
0x108b   : > { %v6122_v24 = vadd.f32 %v7119_v21, %v6395_v17 }
0x108c   : > { %v6113_v25 = vpop.f32.mrf.mxu0 }
0x108d   : > { %v6132_v45 = vpack.c.bf16 %v6122_v24, %v6119_v51  ;;  %v6114_v28 = vadd.f32 %v6395_v17, %v6113_v25 }
0x108f   : > { %7121 = vmatpush3.bf16.msra.mxu1 %v6132_v45  ;;  %v6131_v6 = vpack.c.bf16 %v6114_v28, %v6111_v58 }
0x1090   : > { %7122 = vmatprep.subr.bf16.mxu1 %v7938_v10 }
0x1093   : > { %7123 = vmatpush3.bf16.msra.mxu1 %v6131_v6 }
0x1094   : > { %7124 = vmatprep.subr.bf16.mxu1 %v7938_v10 }
0x1097   : > { %7125 = vmatpush3.bf16.msra.mxu1 %v6130_v31 }
0x1098   : > { %7126 = vmatprep.subr.bf16.mxu1 %v7938_v10 }
0x109b   : > { %7127 = vmatpush3.bf16.msra.mxu1 %v6129_v50 }
0x109c   : > { %7128 = vmatprep.subr.bf16.mxu1 %v7938_v10 }
0x109f   : > { %7129 = vmatpush3.bf16.msra.mxu1 %v6128_v1 }
0x10a0   : > { %7130 = vmatprep.subr.bf16.mxu1 %v7938_v10 }
0x10a3   : > { %7131 = vmatpush3.bf16.msra.mxu1 %v6127_v23 }
0x10a4   : > { %7132 = vmatprep.subr.bf16.mxu1 %v7938_v10 }
0x10a7   : > { %7133 = vmatpush3.bf16.msra.mxu1 %v6126_v3 }
0x10a8   : > { %7134 = vmatprep.subr.bf16.mxu1 %v7938_v10 }
0x10ab   : > { %7135 = vmatpush3.bf16.msra.mxu1 %v6125_v14 }
0x10ae   : > { %7137 = vmatmul.mubr.bf16.vlgmr.msra.gmra.mxu1 %v7291_v63 }
0x116e   : > { %v6173_v39 = vpop.f32.mrf.mxu1 }
0x116f   : > { %v6180_v33 = vsel %vm5320_vm0, %v6173_v39, -inf }
0x1170   : > { %6181 = vmax.xlane.f32.xlu0 %v6180_v33  ;;  %v7138_v43 = vpop.f32.mrf.mxu1 }
0x1172   : > { %v6176_v42 = vpop.f32.mrf.mxu1 }
0x1173   : > { %v6183_v15 = vsel %vm5320_vm0, %v6176_v42, -inf }
0x1174   : > { %6184 = vmax.xlane.f32.xlu1 %v6183_v15  ;;  %v7139_v40 = vpop.f32.mrf.mxu1 }
0x11f9   : > { %v6182_v13 = vpop.xlane.xlu0 %6181 }
0x11fa   : > { %v6186_v56 = vsub.f32 %v6173_v39, %v6182_v13 }
0x11fc   : > { %v6188_v37 = vmul.f32 1.442695, %v6186_v56 }
0x11fd   : > { %v6185_v19 = vpop.xlane.xlu1 %6184 }
0x11fe   : > { %7900 = vpow2.f32 %v6188_v37  ;;  %v6187_v57 = vsub.f32 %v6176_v42, %v6185_v19 }
0x1200   : > { %v6190_v11 = vmul.f32 1.442695, %v6187_v57 }
0x1202   : > { %7902 = vpow2.f32 %v6190_v11 }
0x120b   : > { %v7901_v62 = vpop.eup %7900 }
0x120c   : > { %v6192_v34 = vsel %vm5320_vm0, %v7901_v62, 0.0 }
0x120d   : > { %6193 = vadd.xlane.f32.xlu0 %v6192_v34 }
0x120f   : > { %v7903_v49 = vpop.eup %7902 }
0x1210   : > { %v6195_v26 = vsel %vm5320_vm0, %v7903_v49, 0.0 }
0x1211   : > { %6196 = vadd.xlane.f32.xlu1 %v6195_v26 }
0x1296   : > { %v6194_v18 = vpop.xlane.xlu0 %6193 }
0x1297   : > { %7904 = vlog2.f32 %v6194_v18 }
0x129a   : > { %v6197_v9 = vpop.xlane.xlu1 %6196 }
0x129b   : > { %7906 = vlog2.f32 %v6197_v9 }
0x12a4   : > { %v7905_v61 = vpop.eup %7904 }
0x12a5   : > { %v6199_v46 = vmul.f32 0.6931472, %v7905_v61 }
0x12a7   : > { %v6202_v38 = vsub.f32 %v6186_v56, %v6199_v46 }
0x12a8   : > { %v7907_v10 = vpop.eup %7906 }
0x12a9   : > { %6204 = vst.msk [vmem:[%s406_s29] sm:$0xff] %vm5320_vm0, %v6202_v38  ;;  %v6201_v8 = vmul.f32 0.6931472, %v7907_v10 }
0x12ab   : > { %v6203_v30 = vsub.f32 %v6187_v57, %v6201_v8 }
0x12ad   : > { %6205 = vst.msk [vmem:[%s406_s29 + $0x8] sm:$0xff] %vm5320_vm0, %v6203_v30 }
0x12ae PF: > { %s21_s17 = sadd.s32 1, %s7914_s17  }
0x12af   : > { %p18_p4 = scmp.ge.s32.totalorder %s21_s17, 4  }
0x12b1   :  { %20 = sbr.rel (!%p18_p4) target bundleno = 1 (0x1), region = 97 }

</bundles_post_ra>
